<compile_context>
chip_gen: v7x
topology: tpu7x:2x2x1
jax: 0.10.0
libtpu: 0.0.40
codegen_flags: <defaults>
</compile_context>

<pallas_src>
import jax
import jax.numpy as jnp
from jax import lax
from jax.experimental import pallas as pl
from jax.experimental.pallas import tpu as pltpu


def _hswish(v):
    return v * jnp.clip(v + 3.0, 0.0, 6.0) * (1.0 / 6.0)


def _make_shuffle_block_kernel(H, W, Cb):
    """Build the fused ShuffleBlock kernel for a given spatial size / branch width."""
    HW = H * W

    def kernel(x_ref, w1_ref, w3_ref, pp_ref, o_ref):
        # x_ref : (1, 2*Cb, HW)  input, channels on sublanes, flattened spatial on lanes
        # w1/w3 : (Cb, Cb)       pointwise conv weights laid out [c_out, c_in]
        # pp_ref: (Cb, 16)       packed per-channel params:
        #                        cols 0..8 = depthwise taps (already divided by 6),
        #                        9..14 = s1,b1,s2,b2,s3,b3 (folded BN), col 15 unused
        # o_ref : (1, Cb, 2*HW)  row j = [shuffled out-channel 2j | out-channel 2j+1]
        x1 = x_ref[0, :Cb, :]                     # identity branch (first half of channels)
        x2 = x_ref[0, Cb:, :]                     # branch_2 input  (second half)

        pp = pp_ref[...]
        taps = pp[:, 0:9]
        s1, b1 = pp[:, 9:10], pp[:, 10:11]
        s2, b2 = pp[:, 11:12], pp[:, 12:13]
        s3, b3 = pp[:, 13:14], pp[:, 14:15]

        # ---- 1x1 conv + BN + hswish (its 1/6 is folded into the depthwise taps) ----
        h = jnp.dot(w1_ref[...], x2, preferred_element_type=jnp.float32)
        h = h * s1 + b1
        h = h * jnp.clip(h + 3.0, 0.0, 6.0)       # = 6 * hswish(h)

        # ---- depthwise 3x3, pad=1, stride=1: zero-pad in values + 9 shifted lane slices ----
        zpad = jnp.zeros((Cb, W + 1), jnp.float32)
        hp = jnp.concatenate([zpad, h, zpad], axis=1)          # (Cb, HW + 2W + 2)
        pos = lax.broadcasted_iota(jnp.int32, (1, HW), 1)
        if (W & (W - 1)) == 0:
            col = jnp.bitwise_and(pos, W - 1)
        else:
            col = pos % W
        m_left = col >= 1            # a (w-1) neighbour exists
        m_right = col < (W - 1)      # a (w+1) neighbour exists

        acc = jnp.zeros((Cb, HW), jnp.float32)
        for dy in range(3):
            for dx in range(3):
                off = (dy - 1) * W + (dx - 1)
                src = hp[:, (W + 1) + off:(W + 1) + off + HW]
                if dx == 0:
                    src = jnp.where(m_left, src, 0.0)
                elif dx == 2:
                    src = jnp.where(m_right, src, 0.0)
                t = dy * 3 + dx
                acc = acc + src * taps[:, t:t + 1]
        g = acc * s2 + b2                                       # BN, no activation

        # ---- second 1x1 conv + BN + hswish ----
        y = jnp.dot(w3_ref[...], g, preferred_element_type=jnp.float32)
        y = y * s3 + b3
        y = y * jnp.clip(y + 3.0, 0.0, 6.0) * (1.0 / 6.0)

        # ---- fused concat + channel_shuffle(groups=2): even channels = x1, odd = branch_2 ----
        o_ref[0, :, 0:HW] = x1.astype(o_ref.dtype)
        o_ref[0, :, HW:2 * HW] = y.astype(o_ref.dtype)

    return kernel


@jax.jit
def shuffle_block_forward(x_nchw, params):
    """Full ShuffleBlock forward (stride=1). Input/output are NCHW like PyTorch."""
    B, C, H, W = x_nchw.shape
    Cb = C // 2
    HW = H * W
    x_flat = x_nchw.reshape(B, C, HW)             # metadata-only reshape (row-major)

    out = pl.pallas_call(
        _make_shuffle_block_kernel(H, W, Cb),
        out_shape=jax.ShapeDtypeStruct((B, Cb, 2 * HW), x_nchw.dtype),
        grid_spec=pltpu.PrefetchScalarGridSpec(
            num_scalar_prefetch=0,
            grid=(B,),
            in_specs=[
                pl.BlockSpec((1, C, HW), lambda b: (b, 0, 0)),
                pl.BlockSpec((Cb, Cb), lambda b: (0, 0)),
                pl.BlockSpec((Cb, Cb), lambda b: (0, 0)),
                pl.BlockSpec((Cb, 16), lambda b: (0, 0)),
            ],
            out_specs=pl.BlockSpec((1, Cb, 2 * HW), lambda b: (b, 0, 0)),
        ),
        compiler_params=pltpu.CompilerParams(
            dimension_semantics=("parallel",)),
    )(x_flat, params["w1_k"], params["w3_k"], params["pp"])

    # (B, Cb, 2*HW) row-major IS the channel-shuffled NCHW tensor: free reshape back.
    return out.reshape(B, C, H, W)


# ------------------------- pure-JAX reference (NCHW, PyTorch-style) ---------------------
def reference_forward(x, p):
    Cb = x.shape[1] // 2
    x1, x2 = x[:, :Cb], x[:, Cb:]
    dn = ("NCHW", "OIHW", "NCHW")

    def pw(h, w, s, b, act):
        o = lax.conv_general_dilated(h, w, (1, 1), "VALID", dimension_numbers=dn,
                                     precision=lax.Precision.HIGHEST)
        o = o * s[None, :, None, None] + b[None, :, None, None]
        return _hswish(o) if act else o

    def dw(h, w, s, b):
        o = lax.conv_general_dilated(h, w, (1, 1), ((1, 1), (1, 1)),
                                     dimension_numbers=dn, feature_group_count=Cb,
                                     precision=lax.Precision.HIGHEST)
        return o * s[None, :, None, None] + b[None, :, None, None]

    h = pw(x2, p["w1_oihw"], p["s1"], p["b1"], True)
    h = dw(h, p["dw_oihw"], p["s2"], p["b2"])
    h = pw(h, p["w3_oihw"], p["s3"], p["b3"], True)
    y = jnp.concatenate([x1, h], axis=1)
    B, C, H, W = y.shape
    y = y.reshape(B, 2, C // 2, H, W).transpose(0, 2, 1, 3, 4).reshape(B, C, H, W)
    return y


if __name__ == "__main__":
    key = jax.random.PRNGKey(0)
    # Realistic ShuffleNet stage width so the branch channels (Cb=128) are lane-dense and
    # the pointwise convs feed full MXU tiles; still a small tensor (2*256*16*16 f32 = 512 KiB).
    B, C, H, W = 2, 256, 16, 16
    Cb, k = C // 2, 3
    keys = jax.random.split(key, 8)

    x = jax.random.normal(keys[0], (B, C, H, W), jnp.float32)

    # Conv weights (PyTorch OIHW shapes), deterministic init (~1/sqrt(fan_in) scaling)
    w1_oihw = jax.random.normal(keys[1], (Cb, Cb, 1, 1), jnp.float32) / jnp.sqrt(1.0 * Cb)
    dw_oihw = jax.random.normal(keys[2], (Cb, 1, k, k), jnp.float32) * (1.0 / 3.0)
    w3_oihw = jax.random.normal(keys[3], (Cb, Cb, 1, 1), jnp.float32) / jnp.sqrt(1.0 * Cb)

    def bn_fold(subkey):
        kg, kb, km, kv = jax.random.split(subkey, 4)
        gamma = jax.random.uniform(kg, (Cb,), jnp.float32, 0.5, 1.5)
        beta = jax.random.normal(kb, (Cb,), jnp.float32) * 0.1
        rmean = jax.random.normal(km, (Cb,), jnp.float32) * 0.1
        rvar = jax.random.uniform(kv, (Cb,), jnp.float32, 0.5, 1.5)
        scale = gamma / jnp.sqrt(rvar + 1e-5)
        bias = beta - rmean * scale
        return scale, bias

    s1, b1 = bn_fold(keys[4])
    s2, b2 = bn_fold(keys[5])
    s3, b3 = bn_fold(keys[6])

    # Kernel-layout params: pointwise weights as [c_out, c_in]; depthwise taps (with the first
    # hswish's 1/6 folded in) + all folded-BN scale/bias packed into one (Cb, 16) array.
    dw_taps = dw_oihw[:, 0].reshape(Cb, k * k) / 6.0
    pp = jnp.concatenate(
        [dw_taps,
         s1[:, None], b1[:, None], s2[:, None], b2[:, None], s3[:, None], b3[:, None],
         jnp.zeros((Cb, 1), jnp.float32)],
        axis=1)                                                   # (Cb, 16)

    params = {
        # reference (PyTorch-layout) params
        "w1_oihw": w1_oihw, "dw_oihw": dw_oihw, "w3_oihw": w3_oihw,
        "s1": s1, "b1": b1, "s2": s2, "b2": b2, "s3": s3, "b3": b3,
        # kernel-layout params
        "w1_k": w1_oihw[:, :, 0, 0],          # (c_out, c_in)
        "w3_k": w3_oihw[:, :, 0, 0],
        "pp": pp,
    }

    out = shuffle_block_forward(x, params)
    out = jax.block_until_ready(out)

    ref = jax.block_until_ready(reference_forward(x, params))
    assert out.shape == (B, C, H, W)
    assert jnp.allclose(out, ref, atol=2e-3, rtol=2e-3), "mismatch vs reference"

    print("KERNEL_OK")
</pallas_src>

<mosaic_0001>
module attributes {stable_mosaic.version = 11 : i64} {
  func.func @kernel(%arg0: i32, %arg1: memref<1x256x256xf32, #tpu.memory_space<vmem>>, %arg2: memref<128x128xf32, #tpu.memory_space<vmem>>, %arg3: memref<128x128xf32, #tpu.memory_space<vmem>>, %arg4: memref<128x16xf32, #tpu.memory_space<vmem>>, %arg5: memref<1x128x512xf32, #tpu.memory_space<vmem>>) attributes {dimension_semantics = [#tpu.dimension_semantics<parallel>], iteration_bounds = array<i64: 2>, scalar_prefetch = 0 : i64, scratch_operands = 0 : i64, tpu.core_type = #tpu.core_type<tc>, window_params = [{transform_indices = @transform_0, window_bounds = array<i64: 1, 256, 256>}, {pipeline_mode = #tpu.pipeline_mode<synchronous>, transform_indices = @transform_1, window_bounds = array<i64: 128, 128>}, {pipeline_mode = #tpu.pipeline_mode<synchronous>, transform_indices = @transform_2, window_bounds = array<i64: 128, 128>}, {pipeline_mode = #tpu.pipeline_mode<synchronous>, transform_indices = @transform_3, window_bounds = array<i64: 128, 16>}, {transform_indices = @transform_4, window_bounds = array<i64: 1, 128, 512>}]} {
    %c0 = arith.constant 0 : index
    %c0_0 = arith.constant 0 : index
    %c0_1 = arith.constant 0 : index
    %0 = vector.load %arg1[%c0, %c0_0, %c0_1] : memref<1x256x256xf32, #tpu.memory_space<vmem>>, vector<1x128x256xf32>
    %1 = vector.shape_cast %0 : vector<1x128x256xf32> to vector<128x256xf32>
    %c0_2 = arith.constant 0 : index
    %c128 = arith.constant 128 : index
    %c0_3 = arith.constant 0 : index
    %2 = vector.load %arg1[%c0_2, %c128, %c0_3] : memref<1x256x256xf32, #tpu.memory_space<vmem>>, vector<1x128x256xf32>
    %3 = vector.shape_cast %2 : vector<1x128x256xf32> to vector<128x256xf32>
    %c0_4 = arith.constant 0 : index
    %c0_5 = arith.constant 0 : index
    %4 = vector.load %arg4[%c0_4, %c0_5] : memref<128x16xf32, #tpu.memory_space<vmem>>, vector<128x16xf32>
    %5 = vector.extract_strided_slice %4 {offsets = [0, 0], sizes = [128, 9], strides = [1, 1]} : vector<128x16xf32> to vector<128x9xf32>
    %6 = vector.extract_strided_slice %4 {offsets = [0, 9], sizes = [128, 1], strides = [1, 1]} : vector<128x16xf32> to vector<128x1xf32>
    %7 = vector.extract_strided_slice %4 {offsets = [0, 10], sizes = [128, 1], strides = [1, 1]} : vector<128x16xf32> to vector<128x1xf32>
    %8 = vector.extract_strided_slice %4 {offsets = [0, 11], sizes = [128, 1], strides = [1, 1]} : vector<128x16xf32> to vector<128x1xf32>
    %9 = vector.extract_strided_slice %4 {offsets = [0, 12], sizes = [128, 1], strides = [1, 1]} : vector<128x16xf32> to vector<128x1xf32>
    %10 = vector.extract_strided_slice %4 {offsets = [0, 13], sizes = [128, 1], strides = [1, 1]} : vector<128x16xf32> to vector<128x1xf32>
    %11 = vector.extract_strided_slice %4 {offsets = [0, 14], sizes = [128, 1], strides = [1, 1]} : vector<128x16xf32> to vector<128x1xf32>
    %c0_6 = arith.constant 0 : index
    %c0_7 = arith.constant 0 : index
    %12 = vector.load %arg2[%c0_6, %c0_7] : memref<128x128xf32, #tpu.memory_space<vmem>>, vector<128x128xf32>
    %cst = arith.constant dense<0.000000e+00> : vector<128x256xf32>
    %13 = tpu.matmul %12, %3, %cst {dimension_numbers = #tpu.dot_dimension_numbers<[1], [0], [0], [1], [0, 0, 1, 1], [], []>} : vector<128x128xf32>, vector<128x256xf32>, vector<128x256xf32> -> vector<128x256xf32>
    %14 = vector.broadcast %6 : vector<128x1xf32> to vector<128x256xf32>
    %15 = arith.mulf %13, %14 : vector<128x256xf32>
    %16 = vector.broadcast %7 : vector<128x1xf32> to vector<128x256xf32>
    %17 = arith.addf %15, %16 : vector<128x256xf32>
    %cst_8 = arith.constant 3.000000e+00 : f32
    %18 = vector.broadcast %cst_8 : f32 to vector<128x256xf32>
    %19 = arith.addf %17, %18 : vector<128x256xf32>
    %cst_9 = arith.constant 0.000000e+00 : f32
    %cst_10 = arith.constant 6.000000e+00 : f32
    %20 = vector.broadcast %cst_9 : f32 to vector<128x256xf32>
    %21 = arith.maximumf %20, %19 : vector<128x256xf32>
    %22 = vector.broadcast %cst_10 : f32 to vector<128x256xf32>
    %23 = arith.minimumf %22, %21 : vector<128x256xf32>
    %24 = arith.mulf %17, %23 : vector<128x256xf32>
    %cst_11 = arith.constant 0.000000e+00 : f32
    %25 = vector.broadcast %cst_11 : f32 to vector<128x17xf32>
    %26 = tpu.concatenate %25, %24, %25 in 1 : vector<128x17xf32>, vector<128x256xf32>, vector<128x17xf32> -> vector<128x290xf32>
    %27 = tpu.iota {dimensions = array<i32: 1>} : vector<1x256xi32>
    %c15_i32 = arith.constant 15 : i32
    %28 = vector.broadcast %c15_i32 : i32 to vector<1x256xi32>
    %29 = arith.andi %27, %28 : vector<1x256xi32>
    %c1_i32 = arith.constant 1 : i32
    %30 = vector.broadcast %c1_i32 : i32 to vector<1x256xi32>
    %31 = arith.cmpi sge, %29, %30 : vector<1x256xi32>
    %c15_i32_12 = arith.constant 15 : i32
    %32 = vector.broadcast %c15_i32_12 : i32 to vector<1x256xi32>
    %33 = arith.cmpi slt, %29, %32 : vector<1x256xi32>
    %cst_13 = arith.constant 0.000000e+00 : f32
    %34 = vector.broadcast %cst_13 : f32 to vector<128x256xf32>
    %35 = vector.extract_strided_slice %26 {offsets = [0, 0], sizes = [128, 256], strides = [1, 1]} : vector<128x290xf32> to vector<128x256xf32>
    %cst_14 = arith.constant 0.000000e+00 : f32
    %36 = vector.shape_cast %31 : vector<1x256xi1> to vector<1x256xi1>
    %37 = vector.broadcast %36 : vector<1x256xi1> to vector<128x256xi1>
    %38 = vector.broadcast %cst_14 : f32 to vector<128x256xf32>
    %39 = arith.select %37, %35, %38 : vector<128x256xi1>, vector<128x256xf32>
    %40 = vector.extract_strided_slice %5 {offsets = [0, 0], sizes = [128, 1], strides = [1, 1]} : vector<128x9xf32> to vector<128x1xf32>
    %41 = vector.broadcast %40 : vector<128x1xf32> to vector<128x256xf32>
    %42 = arith.mulf %39, %41 : vector<128x256xf32>
    %43 = arith.addf %34, %42 : vector<128x256xf32>
    %44 = vector.extract_strided_slice %26 {offsets = [0, 1], sizes = [128, 256], strides = [1, 1]} : vector<128x290xf32> to vector<128x256xf32>
    %45 = vector.extract_strided_slice %5 {offsets = [0, 1], sizes = [128, 1], strides = [1, 1]} : vector<128x9xf32> to vector<128x1xf32>
    %46 = vector.broadcast %45 : vector<128x1xf32> to vector<128x256xf32>
    %47 = arith.mulf %44, %46 : vector<128x256xf32>
    %48 = arith.addf %43, %47 : vector<128x256xf32>
    %49 = vector.extract_strided_slice %26 {offsets = [0, 2], sizes = [128, 256], strides = [1, 1]} : vector<128x290xf32> to vector<128x256xf32>
    %cst_15 = arith.constant 0.000000e+00 : f32
    %50 = vector.shape_cast %33 : vector<1x256xi1> to vector<1x256xi1>
    %51 = vector.broadcast %50 : vector<1x256xi1> to vector<128x256xi1>
    %52 = vector.broadcast %cst_15 : f32 to vector<128x256xf32>
    %53 = arith.select %51, %49, %52 : vector<128x256xi1>, vector<128x256xf32>
    %54 = vector.extract_strided_slice %5 {offsets = [0, 2], sizes = [128, 1], strides = [1, 1]} : vector<128x9xf32> to vector<128x1xf32>
    %55 = vector.broadcast %54 : vector<128x1xf32> to vector<128x256xf32>
    %56 = arith.mulf %53, %55 : vector<128x256xf32>
    %57 = arith.addf %48, %56 : vector<128x256xf32>
    %58 = vector.extract_strided_slice %26 {offsets = [0, 16], sizes = [128, 256], strides = [1, 1]} : vector<128x290xf32> to vector<128x256xf32>
    %cst_16 = arith.constant 0.000000e+00 : f32
    %59 = vector.shape_cast %31 : vector<1x256xi1> to vector<1x256xi1>
    %60 = vector.broadcast %59 : vector<1x256xi1> to vector<128x256xi1>
    %61 = vector.broadcast %cst_16 : f32 to vector<128x256xf32>
    %62 = arith.select %60, %58, %61 : vector<128x256xi1>, vector<128x256xf32>
    %63 = vector.extract_strided_slice %5 {offsets = [0, 3], sizes = [128, 1], strides = [1, 1]} : vector<128x9xf32> to vector<128x1xf32>
    %64 = vector.broadcast %63 : vector<128x1xf32> to vector<128x256xf32>
    %65 = arith.mulf %62, %64 : vector<128x256xf32>
    %66 = arith.addf %57, %65 : vector<128x256xf32>
    %67 = vector.extract_strided_slice %26 {offsets = [0, 17], sizes = [128, 256], strides = [1, 1]} : vector<128x290xf32> to vector<128x256xf32>
    %68 = vector.extract_strided_slice %5 {offsets = [0, 4], sizes = [128, 1], strides = [1, 1]} : vector<128x9xf32> to vector<128x1xf32>
    %69 = vector.broadcast %68 : vector<128x1xf32> to vector<128x256xf32>
    %70 = arith.mulf %67, %69 : vector<128x256xf32>
    %71 = arith.addf %66, %70 : vector<128x256xf32>
    %72 = vector.extract_strided_slice %26 {offsets = [0, 18], sizes = [128, 256], strides = [1, 1]} : vector<128x290xf32> to vector<128x256xf32>
    %cst_17 = arith.constant 0.000000e+00 : f32
    %73 = vector.shape_cast %33 : vector<1x256xi1> to vector<1x256xi1>
    %74 = vector.broadcast %73 : vector<1x256xi1> to vector<128x256xi1>
    %75 = vector.broadcast %cst_17 : f32 to vector<128x256xf32>
    %76 = arith.select %74, %72, %75 : vector<128x256xi1>, vector<128x256xf32>
    %77 = vector.extract_strided_slice %5 {offsets = [0, 5], sizes = [128, 1], strides = [1, 1]} : vector<128x9xf32> to vector<128x1xf32>
    %78 = vector.broadcast %77 : vector<128x1xf32> to vector<128x256xf32>
    %79 = arith.mulf %76, %78 : vector<128x256xf32>
    %80 = arith.addf %71, %79 : vector<128x256xf32>
    %81 = vector.extract_strided_slice %26 {offsets = [0, 32], sizes = [128, 256], strides = [1, 1]} : vector<128x290xf32> to vector<128x256xf32>
    %cst_18 = arith.constant 0.000000e+00 : f32
    %82 = vector.shape_cast %31 : vector<1x256xi1> to vector<1x256xi1>
    %83 = vector.broadcast %82 : vector<1x256xi1> to vector<128x256xi1>
    %84 = vector.broadcast %cst_18 : f32 to vector<128x256xf32>
    %85 = arith.select %83, %81, %84 : vector<128x256xi1>, vector<128x256xf32>
    %86 = vector.extract_strided_slice %5 {offsets = [0, 6], sizes = [128, 1], strides = [1, 1]} : vector<128x9xf32> to vector<128x1xf32>
    %87 = vector.broadcast %86 : vector<128x1xf32> to vector<128x256xf32>
    %88 = arith.mulf %85, %87 : vector<128x256xf32>
    %89 = arith.addf %80, %88 : vector<128x256xf32>
    %90 = vector.extract_strided_slice %26 {offsets = [0, 33], sizes = [128, 256], strides = [1, 1]} : vector<128x290xf32> to vector<128x256xf32>
    %91 = vector.extract_strided_slice %5 {offsets = [0, 7], sizes = [128, 1], strides = [1, 1]} : vector<128x9xf32> to vector<128x1xf32>
    %92 = vector.broadcast %91 : vector<128x1xf32> to vector<128x256xf32>
    %93 = arith.mulf %90, %92 : vector<128x256xf32>
    %94 = arith.addf %89, %93 : vector<128x256xf32>
    %95 = vector.extract_strided_slice %26 {offsets = [0, 34], sizes = [128, 256], strides = [1, 1]} : vector<128x290xf32> to vector<128x256xf32>
    %cst_19 = arith.constant 0.000000e+00 : f32
    %96 = vector.shape_cast %33 : vector<1x256xi1> to vector<1x256xi1>
    %97 = vector.broadcast %96 : vector<1x256xi1> to vector<128x256xi1>
    %98 = vector.broadcast %cst_19 : f32 to vector<128x256xf32>
    %99 = arith.select %97, %95, %98 : vector<128x256xi1>, vector<128x256xf32>
    %100 = vector.extract_strided_slice %5 {offsets = [0, 8], sizes = [128, 1], strides = [1, 1]} : vector<128x9xf32> to vector<128x1xf32>
    %101 = vector.broadcast %100 : vector<128x1xf32> to vector<128x256xf32>
    %102 = arith.mulf %99, %101 : vector<128x256xf32>
    %103 = arith.addf %94, %102 : vector<128x256xf32>
    %104 = vector.broadcast %8 : vector<128x1xf32> to vector<128x256xf32>
    %105 = arith.mulf %103, %104 : vector<128x256xf32>
    %106 = vector.broadcast %9 : vector<128x1xf32> to vector<128x256xf32>
    %107 = arith.addf %105, %106 : vector<128x256xf32>
    %c0_20 = arith.constant 0 : index
    %c0_21 = arith.constant 0 : index
    %108 = vector.load %arg3[%c0_20, %c0_21] : memref<128x128xf32, #tpu.memory_space<vmem>>, vector<128x128xf32>
    %cst_22 = arith.constant dense<0.000000e+00> : vector<128x256xf32>
    %109 = tpu.matmul %108, %107, %cst_22 {dimension_numbers = #tpu.dot_dimension_numbers<[1], [0], [0], [1], [0, 0, 1, 1], [], []>} : vector<128x128xf32>, vector<128x256xf32>, vector<128x256xf32> -> vector<128x256xf32>
    %110 = vector.broadcast %10 : vector<128x1xf32> to vector<128x256xf32>
    %111 = arith.mulf %109, %110 : vector<128x256xf32>
    %112 = vector.broadcast %11 : vector<128x1xf32> to vector<128x256xf32>
    %113 = arith.addf %111, %112 : vector<128x256xf32>
    %cst_23 = arith.constant 3.000000e+00 : f32
    %114 = vector.broadcast %cst_23 : f32 to vector<128x256xf32>
    %115 = arith.addf %113, %114 : vector<128x256xf32>
    %cst_24 = arith.constant 0.000000e+00 : f32
    %cst_25 = arith.constant 6.000000e+00 : f32
    %116 = vector.broadcast %cst_24 : f32 to vector<128x256xf32>
    %117 = arith.maximumf %116, %115 : vector<128x256xf32>
    %118 = vector.broadcast %cst_25 : f32 to vector<128x256xf32>
    %119 = arith.minimumf %118, %117 : vector<128x256xf32>
    %120 = arith.mulf %113, %119 : vector<128x256xf32>
    %cst_26 = arith.constant 0.166666672 : f32
    %121 = vector.broadcast %cst_26 : f32 to vector<128x256xf32>
    %122 = arith.mulf %120, %121 : vector<128x256xf32>
    %c0_27 = arith.constant 0 : index
    %c0_28 = arith.constant 0 : index
    %c0_29 = arith.constant 0 : index
    %123 = vector.load %arg5[%c0_27, %c0_28, %c0_29] : memref<1x128x512xf32, #tpu.memory_space<vmem>>, vector<1x128x256xf32>
    %124 = vector.shape_cast %123 : vector<1x128x256xf32> to vector<128x256xf32>
    %125 = vector.shape_cast %1 : vector<128x256xf32> to vector<1x128x256xf32>
    tpu.vector_store %arg5[%c0_27, %c0_28, %c0_29], %125 {strides = array<i32>} : memref<1x128x512xf32, #tpu.memory_space<vmem>>, vector<1x128x256xf32>,
    %c0_30 = arith.constant 0 : index
    %c0_31 = arith.constant 0 : index
    %c256 = arith.constant 256 : index
    %126 = vector.load %arg5[%c0_30, %c0_31, %c256] : memref<1x128x512xf32, #tpu.memory_space<vmem>>, vector<1x128x256xf32>
    %127 = vector.shape_cast %126 : vector<1x128x256xf32> to vector<128x256xf32>
    %128 = vector.shape_cast %122 : vector<128x256xf32> to vector<1x128x256xf32>
    tpu.vector_store %arg5[%c0_30, %c0_31, %c256], %128 {strides = array<i32>} : memref<1x128x512xf32, #tpu.memory_space<vmem>>, vector<1x128x256xf32>,
    return
  }
  func.func @transform_0(%arg0: i32) -> (i32, i32, i32) {
    %c0_i32 = arith.constant 0 : i32
    %c0_i32_0 = arith.constant 0 : i32
    %c0_i32_1 = arith.constant 0 : i32
    return %arg0, %c0_i32, %c0_i32_0 : i32, i32, i32
  }
  func.func @transform_1(%arg0: i32) -> (i32, i32) {
    %c0_i32 = arith.constant 0 : i32
    %c0_i32_0 = arith.constant 0 : i32
    %c0_i32_1 = arith.constant 0 : i32
    return %c0_i32, %c0_i32_0 : i32, i32
  }
  func.func @transform_2(%arg0: i32) -> (i32, i32) {
    %c0_i32 = arith.constant 0 : i32
    %c0_i32_0 = arith.constant 0 : i32
    %c0_i32_1 = arith.constant 0 : i32
    return %c0_i32, %c0_i32_0 : i32, i32
  }
  func.func @transform_3(%arg0: i32) -> (i32, i32) {
    %c0_i32 = arith.constant 0 : i32
    %c0_i32_0 = arith.constant 0 : i32
    %c0_i32_1 = arith.constant 0 : i32
    return %c0_i32, %c0_i32_0 : i32, i32
  }
  func.func @transform_4(%arg0: i32) -> (i32, i32, i32) {
    %c0_i32 = arith.constant 0 : i32
    %c0_i32_0 = arith.constant 0 : i32
    %c0_i32_1 = arith.constant 0 : i32
    return %arg0, %c0_i32, %c0_i32_0 : i32, i32, i32
  }
}

</mosaic_0001>

<bundles_post_ra>
// kernel: shuffle_block_forward.1
= control target key start
LH: loop header
LB: loop body
LE: loop exit
PB: predicated region body
PF: predicated region fallthrough
CT: control target
= control target key end

     0   :  { %9 = vsyncpa [#allocation3], 0  ;;  %s9807_s0 = inlined_call_operand.vmem [shape: f32[2,256,256], index: 0, kind: input, shape index: {}]   ;;  %s9808_s1 = inlined_call_operand.hbm [shape: f32[128,128], index: 1, kind: input, shape index: {}]   ;;  %s9809_s2 = inlined_call_operand.hbm [shape: f32[128,128], index: 2, kind: input, shape index: {}]   ;;  %s9810_s3 = inlined_call_operand.vmem [shape: f32[128,16], index: 3, kind: input, shape index: {}]   ;;  %s9811_s4 = inlined_call_operand.vmem [shape: f32[2,128,512], index: 4, kind: output, shape index: {}]  }
   0x1   :  { %10 = vsyncpa [#allocation5], 0  ;;  %s5110_s15 = smov 0  }
   0x2 LB: > { %s5116_s16 = sadd.s32 4294967295, %s5054_s15   ;;  %p4751_p0 = scmp.ge.s32.totalorder %s5054_s15, 1  ;;  %s5054_s15 = sphi %s5110_s15, %s16_s15  }
   0x3   : > { %p136_p1 = scmp.lt.s32.totalorder %s5054_s15, 3  ;;  %s5056_s17 = smov [#allocation2]  }
   0x4   : > { %s148_s18 = sshll.u32 %s5056_s17, 4  ;;  %p9812_p3 = scmp.eq.s32.totalorder %s5116_s16, 0  ;;  %s149_s18 = int_to_ptr.vmem [resolvable:$true] %s148_s18 }
   0x5   : > { %p5120_p2 = pnand %p4751_p0, %p136_p1  ;;  %s5057_s20 = smov [#allocation4]  }
   0x6   : > { %s161_s21 = sshll.u32 %s5057_s20, 4  ;;  %s4984_s25 = scalar_lea.hbm %s9808_s1, 2048  ;;  %s5133_s21 = int_to_ptr.vmem [resolvable:$true] %s161_s21 }
   0x7   : > { %s10069_s19 = scalar_select %p5120_p2, 1, 0 }
   0x8   : > { %p4838_p4 = pneg %p5120_p2  ;;  %p4985_p6 = scmp.ne.s32.totalorder %s9808_s1, %s4984_s25 }
   0x9   : > { %p4991_p10 = scmp.lt.u32.totalorder %s4984_s25, %s9808_s1 }
   0xa   : > { %p5129_p5 = pnand %p9812_p3, %p4838_p4 }
   0xc   : > { %p4986_p7 = pneg %p5129_p5 }
   0xe   : > { %p4987_p8 = pnand %p4986_p7, %p4985_p6 }
  0x10   : > { %p4988_p9 = pneg %p4987_p8 }
  0x12   : > { %p4993_p11 = pnand %p4991_p10, %p4988_p9 }
  0x14   : > { %4996 = shalt.err (!%p4993_p11)
}
  0x15   : > { %s4997_s30 = scalar_lea.vmem %s149_s18, 2048  ;;  %p5005_p1 = scmp.lt.s32.totalorder %s149_s18, %s149_s18 }
  0x16   : > { %p4998_p12 = scmp.ne.s32.totalorder %s149_s18, %s4997_s30  ;;  %p5006_p4 = scmp.lt.s32.totalorder %s4997_s30, %s4997_s30 }
  0x18   : > { %p5000_p13 = pnand %p4998_p12, %p4986_p7  ;;  %p5007_p3 = por %p5006_p4, %p5005_p1 }
  0x1a   : > { %p5001_p0 = pneg %p5000_p13 }
  0x1c   : > { %p5008_p2 = pnand %p5007_p3, %p5001_p0 }
  0x1e   : > { %5011 = shalt.err (!%p5008_p2)
}
  0x1f   : > { %s5058_s5 = smov 128   ;;  %s5059_s6 = smov 8  }
  0x20   : > { %4841 = dma.hbm_to_vmem [thread:$0]  (!%p5129_p5), %s9808_s1, 2048, %s149_s18, [#allocation3], %s5058_s5, %s5058_s5, %s5059_s6  }
  0x21   : > { %s5012_s11 = scalar_lea.hbm %s9809_s2, 2048 }
  0x22   : > { %p5013_p6 = scmp.ne.s32.totalorder %s9809_s2, %s5012_s11  ;;  %p5019_p8 = scmp.lt.u32.totalorder %s5012_s11, %s9809_s2 }
  0x24   : > { %p5015_p2 = pnand %p5013_p6, %p4986_p7 }
  0x26   : > { %p5016_p3 = pneg %p5015_p2 }
  0x28   : > { %p5021_p9 = pnand %p5019_p8, %p5016_p3 }
  0x2a   : > { %5024 = shalt.err (!%p5021_p9)
}
  0x2b   : > { %s5025_s18 = scalar_lea.vmem %s5133_s21, 2048  ;;  %p5033_p13 = scmp.lt.s32.totalorder %s5133_s21, %s5133_s21 }
  0x2c   : > { %p5026_p10 = scmp.ne.s32.totalorder %s5133_s21, %s5025_s18  ;;  %p5034_p0 = scmp.lt.s32.totalorder %s5025_s18, %s5025_s18 }
  0x2e   : > { %p5028_p11 = pnand %p5026_p10, %p4986_p7  ;;  %p5035_p1 = por %p5034_p0, %p5033_p13 }
  0x30   : > { %p5029_p12 = pneg %p5028_p11 }
  0x32   : > { %p5036_p4 = pnand %p5035_p1, %p5029_p12 }
  0x34   : > { %5039 = shalt.err (!%p5036_p4)
}
  0x35   : > { %4844 = dma.hbm_to_vmem [thread:$0]  (!%p5129_p5), %s9809_s2, 2048, %s5133_s21, [#allocation5], %s5058_s5, %s5058_s5, %s5059_s6  }
  0x36   : > { %p10071_p6 = scmp.ne.s32.totalorder %s10069_s19, 0 }
  0x38   : > { %188 = sbr.rel (%p10071_p6) target bundleno = 2152 (0x868), region = 36 }
  0x3f   : > { %p10072_p2 = scmp.eq.s32.totalorder %s5116_s16, 0 }
  0x41   : > { %5045 = dma.done.wait (%p10072_p2), [#allocation3], 2048   ;;  %p10073_p7 = pmov %p10072_p2 }
  0x42   : > { %p10074_p3 = pmov %p10072_p2 }
  0x43   : > { %5047 = vsyncadd (%p10073_p7), [#allocation3], 4294965248 }
  0x44   : > { %5049 = dma.done.wait (%p10074_p3), [#allocation5], 2048   ;;  %p10075_p8 = pmov %p10072_p2 }
  0x45   : > { %p218_p9 = scmp.lt.s32.totalorder %s5116_s16, 1  ;;  %v9814_v0 = vmov 0.0   ;;  %v5061_v1 = vmov 9   ;;  %v5291_v59 = vld [vmem:[%s9810_s3 + $0x10] sm:$0xff]  ;;  %s5066_s9 = smov 17   ;;  %vm917_vm0 = vcmask 138240  }
  0x46   : > { %5051 = vsyncadd (%p10075_p8), [#allocation5], 4294965248  ;;  %388 = vmatprep.mubr.f32.mxu0 %v9814_v0  ;;  %4887 = vset.pattern.permute.xlu1 %v5061_v1  ;;  %s5067_s10 = smov 126   ;;  %s5068_s11 = smov 112   ;;  %vm1672_vm3 = vcmask 1031168   ;;  %vm1993_vm6 = vcmask 916480  }
  0x47   : > { %s11051_s16 = smov (!%p218_p9, %s5116_s16), 1  ;;  %4886 = vset.pattern.permute.xlu0 %v5061_v1  ;;  %4159 = vmatprep.mubr.f32.mxu1 %v9814_v0  ;;  %v5299_v1 = vld [vmem:[%s9810_s3 + $0x18] sm:$0xff]  ;;  %s5069_s12 = smov 127   ;;  %vm1443_vm7 = vcmask 1039360   ;;  %vm2474_vm8 = vcmask 908288   ;;  %vm2667_vm9 = vcmask 900096  }
  0x48   : > { %s4764_s19 = sshll.u32 %s11051_s16, 9  ;;  %497 = vperm.xlu1 %4887, %v5291_v59   ;;  %s5072_s22 = smov 111   ;;  %vm2988_vm10 = vcmask 785408   ;;  %vm3662_vm11 = vcmask 769024   ;;  %vm3469_vm12 = vcmask 777216  }
  0x49   : > { %s5199_s24 = scalar_lea.vmem %s9807_s0, %s4764_s19  ;;  %s5204_s27 = scalar_lea.vmem %s9811_s4, %s4764_s19 }
  0x4a   : > { %v228_v2 = vld [vmem:[%s5199_s24] sm:$0xff]  ;;  %v229_v3 = vld [vmem:[%s5199_s24 + $0x8] sm:$0xff]  ;;  %v230_v4 = vld [vmem:[%s5199_s24 + $0x10] sm:$0xff]  ;;  %s5074_s25 = smov 110   ;;  %s5079_s26 = smov 95  }
  0x4b   : > { %v231_v5 = vld [vmem:[%s5199_s24 + $0x18] sm:$0xff]  ;;  %v232_v6 = vld [vmem:[%s5199_s24 + $0x20] sm:$0xff]  ;;  %v233_v7 = vld [vmem:[%s5199_s24 + $0x28] sm:$0xff]  ;;  %4608 = vst [vmem:[%s5204_s27] sm:$0xff] %v228_v2  ;;  %s5080_s16 = smov 94  }
  0x4c   : > { %4609 = vst [vmem:[%s5204_s27 + $0x8] sm:$0xff] %v229_v3  ;;  %4610 = vst [vmem:[%s5204_s27 + $0x20] sm:$0xff] %v230_v4  ;;  %v234_v8 = vld [vmem:[%s5199_s24 + $0x30] sm:$0xff]  ;;  %v235_v9 = vld [vmem:[%s5199_s24 + $0x38] sm:$0xff]  ;;  %502 = vperm.xlu1 %4887, %v5299_v1  }
  0x4d   : > { %v236_v10 = vld [vmem:[%s5199_s24 + $0x40] sm:$0xff]  ;;  %4611 = vst [vmem:[%s5204_s27 + $0x28] sm:$0xff] %v231_v5  ;;  %4612 = vst [vmem:[%s5204_s27 + $0x40] sm:$0xff] %v232_v6  ;;  %v237_v11 = vld [vmem:[%s5199_s24 + $0x48] sm:$0xff] }
  0x4e   : > { %4613 = vst [vmem:[%s5204_s27 + $0x48] sm:$0xff] %v233_v7  ;;  %v238_v12 = vld [vmem:[%s5199_s24 + $0x50] sm:$0xff]  ;;  %v239_v13 = vld [vmem:[%s5199_s24 + $0x58] sm:$0xff]  ;;  %4614 = vst [vmem:[%s5204_s27 + $0x60] sm:$0xff] %v234_v8 }
  0x4f   : > { %4615 = vst [vmem:[%s5204_s27 + $0x68] sm:$0xff] %v235_v9  ;;  %4616 = vst [vmem:[%s5204_s27 + $0x80] sm:$0xff] %v236_v10  ;;  %v240_v14 = vld [vmem:[%s5199_s24 + $0x60] sm:$0xff]  ;;  %v241_v15 = vld [vmem:[%s5199_s24 + $0x68] sm:$0xff] }
  0x50   : > { %v242_v16 = vld [vmem:[%s5199_s24 + $0x70] sm:$0xff]  ;;  %4617 = vst [vmem:[%s5204_s27 + $0x88] sm:$0xff] %v237_v11  ;;  %4618 = vst [vmem:[%s5204_s27 + $0xa0] sm:$0xff] %v238_v12  ;;  %v243_v17 = vld [vmem:[%s5199_s24 + $0x78] sm:$0xff] }
  0x51   : > { %4619 = vst [vmem:[%s5204_s27 + $0xa8] sm:$0xff] %v239_v13  ;;  %v244_v18 = vld [vmem:[%s5199_s24 + $0x80] sm:$0xff]  ;;  %v245_v19 = vld [vmem:[%s5199_s24 + $0x88] sm:$0xff]  ;;  %4620 = vst [vmem:[%s5204_s27 + $0xc0] sm:$0xff] %v240_v14 }
  0x52   : > { %4621 = vst [vmem:[%s5204_s27 + $0xc8] sm:$0xff] %v241_v15  ;;  %4622 = vst [vmem:[%s5204_s27 + $0xe0] sm:$0xff] %v242_v16  ;;  %v246_v20 = vld [vmem:[%s5199_s24 + $0x90] sm:$0xff]  ;;  %v247_v21 = vld [vmem:[%s5199_s24 + $0x98] sm:$0xff] }
  0x53   : > { %v248_v22 = vld [vmem:[%s5199_s24 + $0xa0] sm:$0xff]  ;;  %4623 = vst [vmem:[%s5204_s27 + $0xe8] sm:$0xff] %v243_v17  ;;  %4624 = vst [vmem:[%s5204_s27 + $0x100] sm:$0xff] %v244_v18  ;;  %v249_v23 = vld [vmem:[%s5199_s24 + $0xa8] sm:$0xff] }
  0x54   : > { %4625 = vst [vmem:[%s5204_s27 + $0x108] sm:$0xff] %v245_v19  ;;  %v250_v24 = vld [vmem:[%s5199_s24 + $0xb0] sm:$0xff]  ;;  %v251_v25 = vld [vmem:[%s5199_s24 + $0xb8] sm:$0xff]  ;;  %4626 = vst [vmem:[%s5204_s27 + $0x120] sm:$0xff] %v246_v20 }
  0x55   : > { %4627 = vst [vmem:[%s5204_s27 + $0x128] sm:$0xff] %v247_v21  ;;  %4628 = vst [vmem:[%s5204_s27 + $0x140] sm:$0xff] %v248_v22  ;;  %v252_v26 = vld [vmem:[%s5199_s24 + $0xc0] sm:$0xff]  ;;  %v253_v27 = vld [vmem:[%s5199_s24 + $0xc8] sm:$0xff] }
  0x56   : > { %v254_v28 = vld [vmem:[%s5199_s24 + $0xd0] sm:$0xff]  ;;  %4629 = vst [vmem:[%s5204_s27 + $0x148] sm:$0xff] %v249_v23  ;;  %4630 = vst [vmem:[%s5204_s27 + $0x160] sm:$0xff] %v250_v24  ;;  %v255_v29 = vld [vmem:[%s5199_s24 + $0xd8] sm:$0xff] }
  0x57   : > { %4631 = vst [vmem:[%s5204_s27 + $0x168] sm:$0xff] %v251_v25  ;;  %v256_v30 = vld [vmem:[%s5199_s24 + $0xe0] sm:$0xff]  ;;  %v257_v31 = vld [vmem:[%s5199_s24 + $0xe8] sm:$0xff]  ;;  %4632 = vst [vmem:[%s5204_s27 + $0x180] sm:$0xff] %v252_v26 }
  0x58   : > { %4633 = vst [vmem:[%s5204_s27 + $0x188] sm:$0xff] %v253_v27  ;;  %4634 = vst [vmem:[%s5204_s27 + $0x1a0] sm:$0xff] %v254_v28  ;;  %v258_v32 = vld [vmem:[%s5199_s24 + $0xf0] sm:$0xff]  ;;  %v259_v33 = vld [vmem:[%s5199_s24 + $0xf8] sm:$0xff] }
  0x59   : > { %4635 = vst [vmem:[%s5204_s27 + $0x1a8] sm:$0xff] %v255_v29  ;;  %4636 = vst [vmem:[%s5204_s27 + $0x1c0] sm:$0xff] %v256_v30  ;;  %v261_v34 = vld [vmem:[%s5199_s24 + $0x108] sm:$0xff]  ;;  %v263_v35 = vld [vmem:[%s5199_s24 + $0x118] sm:$0xff] }
  0x5a   : > { %4637 = vst [vmem:[%s5204_s27 + $0x1c8] sm:$0xff] %v257_v31  ;;  %4638 = vst [vmem:[%s5204_s27 + $0x1e0] sm:$0xff] %v258_v32  ;;  %v260_v36 = vld [vmem:[%s5199_s24 + $0x100] sm:$0xff]  ;;  %v262_v37 = vld [vmem:[%s5199_s24 + $0x110] sm:$0xff]  ;;  %v4766_v38 = vpack.c.bf16 %v263_v35, %v261_v34 }
  0x5b   : > { %4639 = vst [vmem:[%s5204_s27 + $0x1e8] sm:$0xff] %v259_v33  ;;  %v4768_v39 = vpack.c.bf16 %v262_v37, %v260_v36  ;;  %v265_v40 = vld [vmem:[%s5199_s24 + $0x128] sm:$0xff]  ;;  %v267_v41 = vld [vmem:[%s5199_s24 + $0x138] sm:$0xff]  ;;  %v264_v42 = vld [vmem:[%s5199_s24 + $0x120] sm:$0xff] }
  0x5c   : > { %v4770_v43 = vpack.c.bf16 %v267_v41, %v265_v40  ;;  %v266_v44 = vld [vmem:[%s5199_s24 + $0x130] sm:$0xff]  ;;  %v269_v45 = vld [vmem:[%s5199_s24 + $0x148] sm:$0xff]  ;;  %v271_v46 = vld [vmem:[%s5199_s24 + $0x158] sm:$0xff]  ;;  %4767 = vmatprep.subr.bf16.mxu0 %v4766_v38 }
  0x5d   : > { %4769 = vmatpush1.bf16.msra.mxu0 %v4768_v39  ;;  %v4772_v47 = vpack.c.bf16 %v266_v44, %v264_v42  ;;  %v4774_v48 = vpack.c.bf16 %v271_v46, %v269_v45  ;;  %v268_v49 = vld [vmem:[%s5199_s24 + $0x140] sm:$0xff]  ;;  %v270_v50 = vld [vmem:[%s5199_s24 + $0x150] sm:$0xff]  ;;  %v273_v51 = vld [vmem:[%s5199_s24 + $0x168] sm:$0xff]  ;;  %v5062_v39 = vmov 10  }
  0x5e   : > { %4771 = vmatprep.subr.bf16.mxu0 %v4770_v43  ;;  %v275_v52 = vld [vmem:[%s5199_s24 + $0x178] sm:$0xff]  ;;  %v4776_v53 = vpack.c.bf16 %v270_v50, %v268_v49  ;;  %v272_v55 = vld [vmem:[%s5199_s24 + $0x160] sm:$0xff]  ;;  %v274_v56 = vld [vmem:[%s5199_s24 + $0x170] sm:$0xff] }
  0x5f   : > { %v4778_v54 = vpack.c.bf16 %v275_v52, %v273_v51  ;;  %v277_v57 = vld [vmem:[%s5199_s24 + $0x188] sm:$0xff]  ;;  %v279_v58 = vld [vmem:[%s5199_s24 + $0x198] sm:$0xff]  ;;  %v4780_v60 = vpack.c.bf16 %v274_v56, %v272_v55  ;;  %v276_v62 = vld [vmem:[%s5199_s24 + $0x180] sm:$0xff]  ;;  %v5065_v55 = vmov 2  }
  0x60   : > { %v4782_v61 = vpack.c.bf16 %v279_v58, %v277_v57  ;;  %v278_v63 = vld [vmem:[%s5199_s24 + $0x190] sm:$0xff]  ;;  %v281_v2 = vld [vmem:[%s5199_s24 + $0x1a8] sm:$0xff]  ;;  %v283_v3 = vld [vmem:[%s5199_s24 + $0x1b8] sm:$0xff] }
  0x61   : > { %4773 = vmatpush1.bf16.msra.mxu0 %v4772_v47  ;;  %v5306_v4 = vld [vmem:[%s9810_s3] sm:$0xff]  ;;  %v4784_v5 = vpack.c.bf16 %v278_v63, %v276_v62  ;;  %v5313_v6 = vld [vmem:[%s9810_s3 + $0x8] sm:$0xff]  ;;  %v4786_v7 = vpack.c.bf16 %v283_v3, %v281_v2  ;;  %v282_v9 = vld [vmem:[%s5199_s24 + $0x1b0] sm:$0xff] }
  0x62   : > { %4775 = vmatprep.subr.bf16.mxu0 %v4774_v48  ;;  %487 = vperm.xlu0 %4886, %v5306_v4   ;;  %v280_v8 = vld [vmem:[%s5199_s24 + $0x1a0] sm:$0xff]  ;;  %v5320_v10 = vld [vmem:[%s9810_s3 + $0x28] sm:$0xff]  ;;  %v287_v12 = vld [vmem:[%s5199_s24 + $0x1d8] sm:$0xff]  ;;  %v5063_v48 = vmov 0  }
  0x63   : > { %v285_v11 = vld [vmem:[%s5199_s24 + $0x1c8] sm:$0xff]  ;;  %v4788_v13 = vpack.c.bf16 %v282_v9, %v280_v8  ;;  %512 = vperm.xlu1 %4887, %v5320_v10   ;;  %v5329_v14 = vld [vmem:[%s9810_s3 + $0x20] sm:$0xff]  ;;  %v286_v17 = vld [vmem:[%s5199_s24 + $0x1d0] sm:$0xff] }
  0x64   : > { %v4790_v15 = vpack.c.bf16 %v287_v12, %v285_v11  ;;  %v284_v16 = vld [vmem:[%s5199_s24 + $0x1c0] sm:$0xff]  ;;  %v5336_v18 = vld [vmem:[%s9810_s3 + $0x38] sm:$0xff]  ;;  %v289_v19 = vld [vmem:[%s5199_s24 + $0x1e8] sm:$0xff] }
  0x65   : > { %4777 = vmatpush1.bf16.msra.mxu0 %v4776_v53  ;;  %v291_v20 = vld [vmem:[%s5199_s24 + $0x1f8] sm:$0xff]  ;;  %v4792_v21 = vpack.c.bf16 %v286_v17, %v284_v16  ;;  %v5345_v22 = vld [vmem:[%s9810_s3 + $0x30] sm:$0xff]  ;;  %v288_v24 = vld [vmem:[%s5199_s24 + $0x1e0] sm:$0xff]  ;;  %v5064_v53 = vmov 1  }
  0x66   : > { %4779 = vmatprep.subr.bf16.mxu0 %v4778_v54  ;;  %492 = vperm.xlu0 %4886, %v5313_v6   ;;  %v4794_v23 = vpack.c.bf16 %v291_v20, %v289_v19  ;;  %v290_v25 = vld [vmem:[%s5199_s24 + $0x1f0] sm:$0xff]  ;;  %v5352_v26 = vld [vmem:[%s9810_s3 + $0x48] sm:$0xff]  ;;  %v5359_v28 = vld [vmem:[%s9810_s3 + $0x40] sm:$0xff]  ;;  %s5075_s24 = smov 96  }
  0x67   : > { %522 = vperm.xlu1 %4887, %v5336_v18   ;;  %v4796_v27 = vpack.c.bf16 %v290_v25, %v288_v24  ;;  %v5364_v29 = vld [vmem:[%s9810_s3 + $0x58] sm:$0xff]  ;;  %v308_v30 = vld [vmem:[#allocation2] sm:$0xff]  ;;  %v5371_v31 = vld [vmem:[%s9810_s3 + $0x50] sm:$0xff] }
  0x68   : > { %v5376_v32 = vld [vmem:[%s9810_s3 + $0x68] sm:$0xff]  ;;  %v5384_v34 = vld [vmem:[%s9810_s3 + $0x60] sm:$0xff]  ;;  %v5389_v35 = vld [vmem:[%s9810_s3 + $0x78] sm:$0xff] }
  0x69   : > { %4781 = vmatpush1.bf16.msra.mxu0 %v4780_v60  ;;  %v309_v33 = vld [vmem:[#allocation2 + $0x8] sm:$0xff]  ;;  %v310_v36 = vld [vmem:[#allocation2 + $0x10] sm:$0xff]  ;;  %v311_v38 = vld [vmem:[#allocation2 + $0x18] sm:$0xff] }
  0x6a   : > { %4783 = vmatprep.subr.bf16.mxu0 %v4782_v61  ;;  %507 = vperm.xlu0 %4886, %v5329_v14   ;;  %v5397_v37 = vld [vmem:[%s9810_s3 + $0x70] sm:$0xff]  ;;  %v312_v40 = vld [vmem:[#allocation2 + $0x20] sm:$0xff]  ;;  %v313_v41 = vld [vmem:[#allocation2 + $0x28] sm:$0xff] }
  0x6b   : > { %532 = vperm.xlu1 %4887, %v5352_v26   ;;  %v314_v42 = vld [vmem:[#allocation2 + $0x30] sm:$0xff]  ;;  %v315_v43 = vld [vmem:[#allocation2 + $0x38] sm:$0xff]  ;;  %v316_v44 = vld [vmem:[#allocation2 + $0x40] sm:$0xff] }
  0x6c   : > { %v317_v45 = vld [vmem:[#allocation2 + $0x48] sm:$0xff]  ;;  %v318_v46 = vld [vmem:[#allocation2 + $0x50] sm:$0xff]  ;;  %v319_v47 = vld [vmem:[#allocation2 + $0x58] sm:$0xff] }
  0x6d   : > { %4785 = vmatpush1.bf16.msra.mxu0 %v4784_v5  ;;  %v320_v49 = vld [vmem:[#allocation2 + $0x60] sm:$0xff]  ;;  %v321_v50 = vld [vmem:[#allocation2 + $0x68] sm:$0xff]  ;;  %v322_v51 = vld [vmem:[#allocation2 + $0x70] sm:$0xff] }
  0x6e   : > { %4787 = vmatprep.subr.bf16.mxu0 %v4786_v7  ;;  %517 = vperm.xlu0 %4886, %v5345_v22   ;;  %v323_v52 = vld [vmem:[#allocation2 + $0x78] sm:$0xff] }
  0x6f   : > { %542 = vperm.xlu1 %4887, %v5364_v29  }
  0x71   : > { %4789 = vmatpush1.bf16.msra.mxu0 %v4788_v13 }
  0x72   : > { %4791 = vmatprep.subr.bf16.mxu0 %v4790_v15  ;;  %527 = vperm.xlu0 %4886, %v5359_v28  }
  0x73   : > { %552 = vperm.xlu1 %4887, %v5376_v32  }
  0x75   : > { %4793 = vmatpush1.bf16.msra.mxu0 %v4792_v21 }
  0x76   : > { %4795 = vmatprep.subr.bf16.mxu0 %v4794_v23  ;;  %537 = vperm.xlu0 %4886, %v5371_v31  }
  0x77   : > { %562 = vperm.xlu1 %4887, %v5389_v35  }
  0x79   : > { %4797 = vmatpush1.bf16.msra.mxu0 %v4796_v27 }
  0x7a   : > { %547 = vperm.xlu0 %4886, %v5384_v34  }
  0x7b   : > { %4889 = vset.pattern.permute.xlu1 %v5062_v39 }
  0x7c   : > { %389 = vmatmul.mubr.f32.vlgmr.msra.gmra.mrb[0].mxu0 %v308_v30  ;;  %602 = vperm.xlu1 %4889, %v5313_v6  }
  0x7d   : > { %394 = vmatprep.mubr.f32.mxu0 %v9814_v0 }
  0x7e   : > { %557 = vperm.xlu0 %4886, %v5397_v37  }
  0x80   : > { %395 = vmatmul.mubr.f32.gmra.mrb[2].mxu0 %v309_v33  ;;  %606 = vperm.xlu1 %4889, %v5291_v59  }
  0x81   : > { %400 = vmatprep.mubr.f32.mxu0 %v9814_v0 }
  0x82   : > { %4888 = vset.pattern.permute.xlu0 %v5062_v39 }
  0x83   : > { %598 = vperm.xlu0 %4888, %v5306_v4  }
  0x84   : > { %401 = vmatmul.mubr.f32.gmra.mrb[4].mxu0 %v310_v36  ;;  %614 = vperm.xlu1 %4889, %v5329_v14  }
  0x85   : > { %406 = vmatprep.mubr.f32.mxu0 %v9814_v0 }
  0x87   : > { %610 = vperm.xlu0 %4888, %v5299_v1  }
  0x88   : > { %407 = vmatmul.mubr.f32.gmra.mrb[6].mxu0 %v311_v38  ;;  %622 = vperm.xlu1 %4889, %v5345_v22  }
  0x89   : > { %412 = vmatprep.mubr.f32.mxu0 %v9814_v0 }
  0x8b   : > { %618 = vperm.xlu0 %4888, %v5320_v10  }
  0x8c   : > { %413 = vmatmul.mubr.f32.gmra.mrb[8].mxu0 %v312_v40  ;;  %630 = vperm.xlu1 %4889, %v5359_v28  }
  0x8d   : > { %418 = vmatprep.mubr.f32.mxu0 %v9814_v0 }
  0x8f   : > { %626 = vperm.xlu0 %4888, %v5336_v18  }
  0x90   : > { %419 = vmatmul.mubr.f32.gmra.mrb[10].mxu0 %v313_v41  ;;  %638 = vperm.xlu1 %4889, %v5371_v31  }
  0x91   : > { %424 = vmatprep.mubr.f32.mxu0 %v9814_v0 }
  0x93   : > { %634 = vperm.xlu0 %4888, %v5352_v26  }
  0x94   : > { %425 = vmatmul.mubr.f32.gmra.mrb[12].mxu0 %v314_v42  ;;  %646 = vperm.xlu1 %4889, %v5384_v34  }
  0x95   : > { %430 = vmatprep.mubr.f32.mxu0 %v9814_v0 }
  0x97   : > { %642 = vperm.xlu0 %4888, %v5364_v29  }
  0x98   : > { %431 = vmatmul.mubr.f32.gmra.mrb[14].mxu0 %v315_v43  ;;  %654 = vperm.xlu1 %4889, %v5397_v37  }
  0x99   : > { %436 = vmatprep.mubr.f32.mxu0 %v9814_v0 }
  0x9b   : > { %650 = vperm.xlu0 %4888, %v5376_v32  }
  0x9c   : > { %437 = vmatmul.mubr.f32.gmra.mrb[16].mxu0 %v316_v44  ;;  %4890 = vset.pattern.permute.xlu1 %v5063_v48 }
  0x9d   : > { %442 = vmatprep.mubr.f32.mxu0 %v9814_v0  ;;  %1060 = vperm.xlu1 %4890, %v5306_v4  }
  0x9f   : > { %658 = vperm.xlu0 %4888, %v5389_v35  }
  0xa0   : > { %443 = vmatmul.mubr.f32.gmra.mrb[18].mxu0 %v317_v45 }
  0xa1   : > { %448 = vmatprep.mubr.f32.mxu0 %v9814_v0  ;;  %1068 = vperm.xlu1 %4890, %v5291_v59  }
  0xa3   : > { %4891 = vset.pattern.permute.xlu0 %v5063_v48 }
  0xa4   : > { %449 = vmatmul.mubr.f32.gmra.mrb[20].mxu0 %v318_v46  ;;  %1064 = vperm.xlu0 %4891, %v5313_v6  }
  0xa5   : > { %454 = vmatprep.mubr.f32.mxu0 %v9814_v0  ;;  %1072 = vperm.xlu1 %4890, %v5299_v1  }
  0xa8   : > { %455 = vmatmul.mubr.f32.gmra.mrb[22].mxu0 %v319_v47  ;;  %1076 = vperm.xlu0 %4891, %v5329_v14  }
  0xa9   : > { %460 = vmatprep.mubr.f32.mxu0 %v9814_v0  ;;  %1080 = vperm.xlu1 %4890, %v5320_v10  }
  0xac   : > { %461 = vmatmul.mubr.f32.gmra.mrb[24].mxu0 %v320_v49  ;;  %1084 = vperm.xlu0 %4891, %v5345_v22  }
  0xad   : > { %466 = vmatprep.mubr.f32.mxu0 %v9814_v0  ;;  %1088 = vperm.xlu1 %4890, %v5336_v18  }
  0xb0   : > { %467 = vmatmul.mubr.f32.gmra.mrb[26].mxu0 %v321_v50  ;;  %1092 = vperm.xlu0 %4891, %v5359_v28  }
  0xb1   : > { %472 = vmatprep.mubr.f32.mxu0 %v9814_v0  ;;  %1096 = vperm.xlu1 %4890, %v5352_v26  }
  0xb4   : > { %473 = vmatmul.mubr.f32.gmra.mrb[28].mxu0 %v322_v51  ;;  %1100 = vperm.xlu0 %4891, %v5371_v31  }
  0xb5   : > { %478 = vmatprep.mubr.f32.mxu0 %v9814_v0  ;;  %1104 = vperm.xlu1 %4890, %v5364_v29  }
  0xb8   : > { %479 = vmatmul.mubr.f32.gmra.mrb[30].mxu0 %v323_v52  ;;  %1108 = vperm.xlu0 %4891, %v5384_v34  }
  0xb9   : > { %1112 = vperm.xlu1 %4890, %v5376_v32  }
  0xbc   : > { %1116 = vperm.xlu0 %4891, %v5397_v37  }
  0xbd   : > { %1120 = vperm.xlu1 %4890, %v5389_v35  }
  0xc0   : > { %4892 = vset.pattern.permute.xlu0 %v5064_v53 }
  0xc1   : > { %1188 = vperm.xlu0 %4892, %v5306_v4   ;;  %4893 = vset.pattern.permute.xlu1 %v5064_v53 }
  0xc2   : > { %1192 = vperm.xlu1 %4893, %v5313_v6  }
  0xc5   : > { %1200 = vperm.xlu0 %4892, %v5299_v1  }
  0xc6   : > { %1196 = vperm.xlu1 %4893, %v5291_v59  }
  0xc7   : > { %v5460_v54 = vpop.permute.xlu1 %497 }
  0xc9   : > { %1208 = vperm.xlu0 %4892, %v5320_v10  }
  0xca   : > { %1204 = vperm.xlu1 %4893, %v5329_v14  }
  0xcb   : > { %v5463_v56 = vpop.permute.xlu1 %502 }
  0xcd   : > { %1216 = vperm.xlu0 %4892, %v5336_v18  }
  0xce   : > { %1212 = vperm.xlu1 %4893, %v5345_v22  }
  0xd1   : > { %1224 = vperm.xlu0 %4892, %v5352_v26  }
  0xd2   : > { %1220 = vperm.xlu1 %4893, %v5359_v28  }
  0xd5   : > { %1232 = vperm.xlu0 %4892, %v5364_v29  }
  0xd6   : > { %1228 = vperm.xlu1 %4893, %v5371_v31  }
  0xd9   : > { %1240 = vperm.xlu0 %4892, %v5376_v32  }
  0xda   : > { %1236 = vperm.xlu1 %4893, %v5384_v34  }
  0xdd   : > { %1248 = vperm.xlu0 %4892, %v5389_v35  }
  0xde   : > { %1244 = vperm.xlu1 %4893, %v5397_v37  }
  0xe1   : > { %4895 = vset.pattern.permute.xlu0 %v5065_v55  ;;  %v488_v60 = vpop.permute.xlu0 %487 }
  0xe2   : > { %1774 = vperm.xlu0 %4895, %v5313_v6   ;;  %4894 = vset.pattern.permute.xlu1 %v5065_v55  ;;  %v5466_v57 = vpop.permute.xlu1 %512 }
  0xe3   : > { %1770 = vperm.xlu1 %4894, %v5306_v4  }
  0xe5   : > { %v493_v62 = vpop.permute.xlu0 %492 }
  0xe6   : > { %1786 = vperm.xlu0 %4895, %v5329_v14   ;;  %v5470_v58 = vpop.permute.xlu1 %522 }
  0xe7   : > { %1778 = vperm.xlu1 %4894, %v5291_v59  }
  0xe9   : > { %v5486_v59 = vpop.permute.xlu0 %507 }
  0xea   : > { %1794 = vperm.xlu0 %4895, %v5345_v22   ;;  %v5474_v61 = vpop.permute.xlu1 %532 }
  0xeb   : > { %1782 = vperm.xlu1 %4894, %v5299_v1  }
  0xed   : > { %v5492_v1 = vpop.permute.xlu0 %517 }
  0xee   : > { %1802 = vperm.xlu0 %4895, %v5359_v28   ;;  %v5478_v63 = vpop.permute.xlu1 %542 }
  0xef   : > { %1790 = vperm.xlu1 %4894, %v5320_v10  }
  0xf1   : > { %v5495_v5 = vpop.permute.xlu0 %527 }
  0xf2   : > { %1810 = vperm.xlu0 %4895, %v5371_v31   ;;  %v5482_v2 = vpop.permute.xlu1 %552 }
  0xf3   : > { %1798 = vperm.xlu1 %4894, %v5336_v18  }
  0xf5   : > { %v5499_v7 = vpop.permute.xlu0 %537 }
  0xf6   : > { %1818 = vperm.xlu0 %4895, %v5384_v34   ;;  %v5488_v3 = vpop.permute.xlu1 %562 }
  0xf7   : > { %1806 = vperm.xlu1 %4894, %v5352_v26  }
  0xf9   : > { %v5503_v9 = vpop.permute.xlu0 %547 }
  0xfa   : > { %1826 = vperm.xlu0 %4895, %v5397_v37  }
  0xfb   : > { %1814 = vperm.xlu1 %4894, %v5364_v29   ;;  %v603_v4 = vpop.permute.xlu1 %602 }
  0xfd   : > { %v5507_v11 = vpop.permute.xlu0 %557 }
  0xff   : > { %1822 = vperm.xlu1 %4894, %v5376_v32   ;;  %v607_v6 = vpop.permute.xlu1 %606 }
 0x102   : > { %v599_v13 = vpop.permute.xlu0 %598 }
 0x103   : > { %1830 = vperm.xlu1 %4894, %v5389_v35   ;;  %v5501_v8 = vpop.permute.xlu1 %614 }
 0x106   : > { %v5513_v15 = vpop.permute.xlu0 %610 }
 0x107   : > { %v5505_v10 = vpop.permute.xlu1 %622 }
 0x10a   : > { %v5517_v17 = vpop.permute.xlu0 %618 }
 0x10b   : > { %v5509_v12 = vpop.permute.xlu1 %630 }
 0x10e   : > { %v5521_v19 = vpop.permute.xlu0 %626 }
 0x10f   : > { %v5511_v14 = vpop.permute.xlu1 %638 }
 0x112   : > { %v5525_v21 = vpop.permute.xlu0 %634 }
 0x113   : > { %v5515_v16 = vpop.permute.xlu1 %646 }
 0x116   : > { %v5529_v23 = vpop.permute.xlu0 %642 }
 0x117   : > { %v5519_v18 = vpop.permute.xlu1 %654 }
 0x11a   : > { %v5533_v25 = vpop.permute.xlu0 %650 }
 0x11c   : > { %v5523_v20 = vpop.permute.xlu1 %1060 }
 0x11d   : > { %10076 = vst [vmem:[#allocation8_spill] sm:$0xff] %v5523_v20 }
 0x11e   : > { %v5537_v27 = vpop.permute.xlu0 %658 }
 0x120   : > { %v5527_v22 = vpop.permute.xlu1 %1068 }
 0x121   : > { %10077 = vst [vmem:[#allocation9_spill] sm:$0xff] %v5527_v22 }
 0x123   : > { %v5541_v30 = vpop.permute.xlu0 %1064 }
 0x124   : > { %v5531_v24 = vpop.permute.xlu1 %1072  ;;  %10081 = vst [vmem:[#allocation13_spill] sm:$0xff] %v5541_v30 }
 0x125   : > { %10078 = vst [vmem:[#allocation10_spill] sm:$0xff] %v5531_v24 }
 0x127   : > { %v5545_v43 = vpop.permute.xlu0 %1076 }
 0x128   : > { %v5535_v26 = vpop.permute.xlu1 %1080  ;;  %10083 = vst [vmem:[#allocation15_spill] sm:$0xff] %v5545_v43 }
 0x129   : > { %10079 = vst [vmem:[#allocation11_spill] sm:$0xff] %v5535_v26 }
 0x12c   : > { %v5539_v28 = vpop.permute.xlu1 %1088 }
 0x12d   : > { %10080 = vst [vmem:[#allocation12_spill] sm:$0xff] %v5539_v28 }
 0x130   : > { %v5543_v40 = vpop.permute.xlu1 %1096 }
 0x131   : > { %10082 = vst [vmem:[#allocation14_spill] sm:$0xff] %v5543_v40 }
 0x14f   : > { %v390_v29 = vpop.f32.mrb[0].mxu0 }
 0x150   : > { %v565_v31 = vmul.f32 %v488_v60, %v390_v29  ;;  %v392_v32 = vpop.f32.mrb[1].mxu0 }
 0x151   : > { %v566_v33 = vmul.f32 %v488_v60, %v392_v32 }
 0x152   : > { %v661_v34 = vadd.f32 %v599_v13, %v565_v31  ;;  %v5549_v31 = vpop.permute.xlu1 %1104 }
 0x153   : > { %v662_v35 = vadd.f32 %v599_v13, %v566_v33  ;;  %v396_v36 = vpop.f32.mrb[2].mxu0  ;;  %10084 = vst [vmem:[#allocation16_spill] sm:$0xff] %v5549_v31 }
 0x154   : > { %v693_v37 = vadd.f32 3.0, %v661_v34  ;;  %v567_v38 = vmul.f32 %v493_v62, %v396_v36  ;;  %v398_v39 = vpop.f32.mrb[3].mxu0 }
 0x155   : > { %v694_v41 = vadd.f32 3.0, %v662_v35  ;;  %v568_v42 = vmul.f32 %v493_v62, %v398_v39 }
 0x156   : > { %v725_v44 = vmax.f32 %v693_v37, 0.0  ;;  %v663_v45 = vadd.f32 %v603_v4, %v567_v38 }
 0x157   : > { %v726_v46 = vmax.f32 %v694_v41, 0.0  ;;  %v664_v47 = vadd.f32 %v603_v4, %v568_v42  ;;  %v402_v48 = vpop.f32.mrb[4].mxu0  ;;  %v5551_v4 = vpop.permute.xlu0 %1084 }
 0x158   : > { %v757_v49 = vmin.f32 %v725_v44, 6.0  ;;  %v695_v50 = vadd.f32 3.0, %v663_v45  ;;  %v569_v51 = vmul.f32 %v5460_v54, %v402_v48  ;;  %v404_v52 = vpop.f32.mrb[5].mxu0  ;;  %10085 = vst [vmem:[#allocation17_spill] sm:$0xff] %v5551_v4 }
 0x159   : > { %v758_v53 = vmin.f32 %v726_v46, 6.0  ;;  %v696_v55 = vadd.f32 3.0, %v664_v47  ;;  %v570_v60 = vmul.f32 %v5460_v54, %v404_v52 }
 0x15a   : > { %v727_v13 = vmax.f32 %v695_v50, 0.0  ;;  %v665_v29 = vadd.f32 %v607_v6, %v569_v51  ;;  %v789_v62 = vmul.f32 %v757_v49, %v661_v34 }
 0x15b   : > { %v728_v32 = vmax.f32 %v696_v55, 0.0  ;;  %v666_v33 = vadd.f32 %v607_v6, %v570_v60  ;;  %v408_v36 = vpop.f32.mrb[6].mxu0  ;;  %v790_v37 = vmul.f32 %v758_v53, %v662_v35  ;;  %v5560_v60 = vpop.permute.xlu1 %1112 }
 0x15c   : > { %v759_v38 = vmin.f32 %v727_v13, 6.0  ;;  %v697_v39 = vadd.f32 3.0, %v665_v29  ;;  %v571_v41 = vmul.f32 %v5463_v56, %v408_v36  ;;  %853 = vrot.lane.b32.xlu1 %v789_v62, %s5066_s9  ;;  %v410_v42 = vpop.f32.mrb[7].mxu0  ;;  %10086 = vst [vmem:[#allocation18_spill] sm:$0xff] %v5560_v60 }
 0x15d   : > { %v760_v54 = vmin.f32 %v728_v32, 6.0  ;;  %v698_v44 = vadd.f32 3.0, %v666_v33  ;;  %v572_v46 = vmul.f32 %v5463_v56, %v410_v42  ;;  %855 = vrot.lane.b32.xlu0 %v790_v37, %s5066_s9 }
 0x15e   : > { %v729_v34 = vmax.f32 %v697_v39, 0.0  ;;  %v667_v6 = vadd.f32 %v5513_v15, %v571_v41  ;;  %v791_v35 = vmul.f32 %v759_v38, %v663_v45  ;;  %v5565_v45 = vpop.permute.xlu0 %1092 }
 0x15f   : > { %v730_v48 = vmax.f32 %v698_v44, 0.0  ;;  %v668_v49 = vadd.f32 %v5513_v15, %v572_v46  ;;  %v414_v50 = vpop.f32.mrb[8].mxu0  ;;  %v792_v51 = vmul.f32 %v760_v54, %v664_v47  ;;  %10087 = vst [vmem:[#allocation19_spill] sm:$0xff] %v5565_v45 }
 0x160   : > { %v761_v52 = vmin.f32 %v729_v34, 6.0  ;;  %v699_v53 = vadd.f32 3.0, %v667_v6  ;;  %v573_v55 = vmul.f32 %v5486_v59, %v414_v50  ;;  %857 = vrot.lane.b32.xlu1 %v791_v35, %s5066_s9  ;;  %v416_v56 = vpop.f32.mrb[9].mxu0  ;;  %v5574_v50 = vpop.permute.xlu1 %1120 }
 0x161   : > { %v762_v13 = vmin.f32 %v730_v48, 6.0  ;;  %v700_v62 = vadd.f32 3.0, %v668_v49  ;;  %v574_v32 = vmul.f32 %v5486_v59, %v416_v56  ;;  %859 = vrot.lane.b32.xlu0 %v792_v51, %s5066_s9  ;;  %10088 = vst [vmem:[#allocation20_spill] sm:$0xff] %v5574_v50 }
 0x162   : > { %v731_v15 = vmax.f32 %v699_v53, 0.0  ;;  %v669_v47 = vadd.f32 %v5501_v8, %v573_v55  ;;  %v793_v36 = vmul.f32 %v761_v52, %v665_v29  ;;  %v5577_v55 = vpop.permute.xlu0 %1100 }
 0x163   : > { %v732_v37 = vmax.f32 %v700_v62, 0.0  ;;  %v670_v38 = vadd.f32 %v5501_v8, %v574_v32  ;;  %v420_v39 = vpop.f32.mrb[10].mxu0  ;;  %v794_v41 = vmul.f32 %v762_v13, %v666_v33  ;;  %10089 = vst [vmem:[#allocation21_spill] sm:$0xff] %v5577_v55 }
 0x164   : > { %v763_v42 = vmin.f32 %v731_v15, 6.0  ;;  %v701_v54 = vadd.f32 3.0, %v669_v47  ;;  %v575_v44 = vmul.f32 %v5466_v57, %v420_v39  ;;  %861 = vrot.lane.b32.xlu1 %v793_v36, %s5066_s9  ;;  %v422_v59 = vpop.f32.mrb[11].mxu0 }
 0x165   : > { %v764_v46 = vmin.f32 %v732_v37, 6.0  ;;  %v702_v34 = vadd.f32 3.0, %v670_v38  ;;  %v576_v35 = vmul.f32 %v5466_v57, %v422_v59  ;;  %863 = vrot.lane.b32.xlu0 %v794_v41, %s5066_s9  ;;  %v5584_v37 = vpop.permute.xlu1 %1192 }
 0x166   : > { %v733_v48 = vmax.f32 %v701_v54, 0.0  ;;  %v671_v29 = vadd.f32 %v5517_v17, %v575_v44  ;;  %v795_v8 = vmul.f32 %v763_v42, %v667_v6 }
 0x167   : > { %v734_v33 = vmax.f32 %v702_v34, 0.0  ;;  %v672_v51 = vadd.f32 %v5517_v17, %v576_v35  ;;  %v426_v52 = vpop.f32.mrb[12].mxu0  ;;  %v796_v53 = vmul.f32 %v764_v46, %v668_v49 }
 0x168   : > { %v765_v56 = vmin.f32 %v733_v48, 6.0  ;;  %v703_v13 = vadd.f32 3.0, %v671_v29  ;;  %v577_v62 = vmul.f32 %v5492_v1, %v426_v52  ;;  %865 = vrot.lane.b32.xlu1 %v795_v8, %s5066_s9  ;;  %v428_v57 = vpop.f32.mrb[13].mxu0  ;;  %v5591_v8 = vpop.permute.xlu0 %1108 }
 0x169   : > { %v766_v32 = vmin.f32 %v734_v33, 6.0  ;;  %v704_v15 = vadd.f32 3.0, %v672_v51  ;;  %v578_v36 = vmul.f32 %v5492_v1, %v428_v57  ;;  %867 = vrot.lane.b32.xlu0 %v796_v53, %s5066_s9  ;;  %10090 = vst [vmem:[#allocation22_spill] sm:$0xff] %v5591_v8  ;;  %v5595_v57 = vpop.permute.xlu1 %1196 }
 0x16a   : > { %v735_v6 = vmax.f32 %v703_v13, 0.0  ;;  %v673_v17 = vadd.f32 %v5505_v10, %v577_v62  ;;  %v797_v49 = vmul.f32 %v765_v56, %v669_v47 }
 0x16b   : > { %v736_v39 = vmax.f32 %v704_v15, 0.0  ;;  %v674_v41 = vadd.f32 %v5505_v10, %v578_v36  ;;  %v432_v42 = vpop.f32.mrb[14].mxu0  ;;  %v798_v54 = vmul.f32 %v766_v32, %v670_v38 }
 0x16c   : > { %v767_v44 = vmin.f32 %v735_v6, 6.0  ;;  %v705_v59 = vadd.f32 3.0, %v673_v17  ;;  %v579_v46 = vmul.f32 %v5470_v58, %v432_v42  ;;  %869 = vrot.lane.b32.xlu1 %v797_v49, %s5066_s9  ;;  %v434_v1 = vpop.f32.mrb[15].mxu0 }
 0x16d   : > { %v768_v34 = vmin.f32 %v736_v39, 6.0  ;;  %v706_v35 = vadd.f32 3.0, %v674_v41  ;;  %v580_v48 = vmul.f32 %v5470_v58, %v434_v1  ;;  %871 = vrot.lane.b32.xlu0 %v798_v54, %s5066_s9  ;;  %v5603_v54 = vpop.permute.xlu0 %1116 }
 0x16e   : > { %v737_v47 = vmax.f32 %v705_v59, 0.0  ;;  %v675_v10 = vadd.f32 %v5521_v19, %v579_v46  ;;  %v799_v33 = vmul.f32 %v767_v44, %v671_v29  ;;  %10091 = vst [vmem:[#allocation23_spill] sm:$0xff] %v5603_v54 }
 0x16f   : > { %v738_v38 = vmax.f32 %v706_v35, 0.0  ;;  %v676_v52 = vadd.f32 %v5521_v19, %v580_v48  ;;  %v438_v53 = vpop.f32.mrb[16].mxu0  ;;  %v800_v56 = vmul.f32 %v768_v34, %v672_v51 }
 0x170   : > { %v769_v13 = vmin.f32 %v737_v47, 6.0  ;;  %v707_v62 = vadd.f32 3.0, %v675_v10  ;;  %v581_v32 = vmul.f32 %v5495_v5, %v438_v53  ;;  %873 = vrot.lane.b32.xlu1 %v799_v33, %s5066_s9  ;;  %v440_v58 = vpop.f32.mrb[17].mxu0 }
 0x171   : > { %v770_v15 = vmin.f32 %v738_v38, 6.0  ;;  %v708_v36 = vadd.f32 3.0, %v676_v52  ;;  %v582_v6 = vmul.f32 %v5495_v5, %v440_v58  ;;  %875 = vrot.lane.b32.xlu0 %v800_v56, %s5066_s9 }
 0x172   : > { %v739_v29 = vmax.f32 %v707_v62, 0.0  ;;  %v677_v19 = vadd.f32 %v5509_v12, %v581_v32  ;;  %v801_v49 = vmul.f32 %v769_v13, %v673_v17 }
 0x173   : > { %v740_v51 = vmax.f32 %v708_v36, 0.0  ;;  %v678_v39 = vadd.f32 %v5509_v12, %v582_v6  ;;  %v444_v42 = vpop.f32.mrb[18].mxu0  ;;  %v802_v44 = vmul.f32 %v770_v15, %v674_v41  ;;  %v5609_v12 = vpop.permute.xlu1 %1204 }
 0x174   : > { %v771_v59 = vmin.f32 %v739_v29, 6.0  ;;  %v709_v46 = vadd.f32 3.0, %v677_v19  ;;  %v583_v1 = vmul.f32 %v5474_v61, %v444_v42  ;;  %877 = vrot.lane.b32.xlu1 %v801_v49, %s5066_s9  ;;  %v446_v5 = vpop.f32.mrb[19].mxu0  ;;  %v5616_v36 = vpop.permute.xlu0 %1188 }
 0x175   : > { %v772_v34 = vmin.f32 %v740_v51, 6.0  ;;  %v710_v35 = vadd.f32 3.0, %v678_v39  ;;  %v584_v48 = vmul.f32 %v5474_v61, %v446_v5  ;;  %879 = vrot.lane.b32.xlu0 %v802_v44, %s5066_s9 }
 0x176   : > { %v803_v17 = vmul.f32 %v771_v59, %v675_v10  ;;  %v741_v47 = vmax.f32 %v709_v46, 0.0  ;;  %v679_v33 = vadd.f32 %v5525_v21, %v583_v1 }
 0x177   : > { %v742_v41 = vmax.f32 %v710_v35, 0.0  ;;  %v680_v38 = vadd.f32 %v5525_v21, %v584_v48  ;;  %v450_v53 = vpop.f32.mrb[20].mxu0  ;;  %v804_v56 = vmul.f32 %v772_v34, %v676_v52  ;;  %v5621_v59 = vpop.permute.xlu1 %1212 }
 0x178   : > { %v773_v13 = vmin.f32 %v741_v47, 6.0  ;;  %v711_v62 = vadd.f32 3.0, %v679_v33  ;;  %v585_v32 = vmul.f32 %v5499_v7, %v450_v53  ;;  %881 = vrot.lane.b32.xlu1 %v803_v17, %s5066_s9  ;;  %v452_v61 = vpop.f32.mrb[21].mxu0  ;;  %v5629_v47 = vpop.permute.xlu0 %1200 }
 0x179   : > { %v774_v58 = vmin.f32 %v742_v41, 6.0  ;;  %v712_v15 = vadd.f32 3.0, %v680_v38  ;;  %v586_v10 = vmul.f32 %v5499_v7, %v452_v61  ;;  %883 = vrot.lane.b32.xlu0 %v804_v56, %s5066_s9 }
 0x17a   : > { %v805_v6 = vmul.f32 %v773_v13, %v677_v19  ;;  %v743_v29 = vmax.f32 %v711_v62, 0.0  ;;  %v681_v21 = vadd.f32 %v5511_v14, %v585_v32 }
 0x17b   : > { %v744_v52 = vmax.f32 %v712_v15, 0.0  ;;  %v682_v49 = vadd.f32 %v5511_v14, %v586_v10  ;;  %v456_v51 = vpop.f32.mrb[22].mxu0  ;;  %v806_v42 = vmul.f32 %v774_v58, %v678_v39  ;;  %v5635_v15 = vpop.permute.xlu1 %1220 }
 0x17c   : > { %v775_v44 = vmin.f32 %v743_v29, 6.0  ;;  %v713_v46 = vadd.f32 3.0, %v681_v21  ;;  %v587_v1 = vmul.f32 %v5478_v63, %v456_v51  ;;  %885 = vrot.lane.b32.xlu1 %v805_v6, %s5066_s9  ;;  %v458_v7 = vpop.f32.mrb[23].mxu0 }
 0x17d   : > { %v776_v5 = vmin.f32 %v744_v52, 6.0  ;;  %v714_v34 = vadd.f32 3.0, %v682_v49  ;;  %v588_v19 = vmul.f32 %v5478_v63, %v458_v7  ;;  %887 = vrot.lane.b32.xlu0 %v806_v42, %s5066_s9 }
 0x17e   : > { %v807_v35 = vmul.f32 %v775_v44, %v679_v33  ;;  %v745_v48 = vmax.f32 %v713_v46, 0.0  ;;  %v683_v14 = vadd.f32 %v5529_v23, %v587_v1 }
 0x17f   : > { %v746_v39 = vmax.f32 %v714_v34, 0.0  ;;  %v684_v17 = vadd.f32 %v5529_v23, %v588_v19  ;;  %v462_v41 = vpop.f32.mrb[24].mxu0  ;;  %v808_v53 = vmul.f32 %v776_v5, %v680_v38 }
 0x180   : > { %v777_v56 = vmin.f32 %v745_v48, 6.0  ;;  %v715_v13 = vadd.f32 3.0, %v683_v14  ;;  %v589_v62 = vmul.f32 %v5503_v9, %v462_v41  ;;  %889 = vrot.lane.b32.xlu1 %v807_v35, %s5066_s9  ;;  %v464_v63 = vpop.f32.mrb[25].mxu0 }
 0x181   : > { %v778_v32 = vmin.f32 %v746_v39, 6.0  ;;  %v716_v61 = vadd.f32 3.0, %v684_v17  ;;  %v590_v33 = vmul.f32 %v5503_v9, %v464_v63  ;;  %891 = vrot.lane.b32.xlu0 %v808_v53, %s5066_s9  ;;  %v5647_v39 = vpop.permute.xlu1 %1228 }
 0x182   : > { %v809_v58 = vmul.f32 %v777_v56, %v681_v21  ;;  %v747_v23 = vmax.f32 %v715_v13, 0.0  ;;  %v685_v10 = vadd.f32 %v5515_v16, %v589_v62  ;;  %v5641_v21 = vpop.permute.xlu0 %1208 }
 0x183   : > { %v748_v38 = vmax.f32 %v716_v61, 0.0  ;;  %v686_v6 = vadd.f32 %v5515_v16, %v590_v33  ;;  %v468_v29 = vpop.f32.mrb[26].mxu0  ;;  %v810_v52 = vmul.f32 %v778_v32, %v682_v49 }
 0x184   : > { %v779_v51 = vmin.f32 %v747_v23, 6.0  ;;  %v717_v42 = vadd.f32 3.0, %v685_v10  ;;  %v591_v44 = vmul.f32 %v5482_v2, %v468_v29  ;;  %893 = vrot.lane.b32.xlu1 %v809_v58, %s5066_s9  ;;  %v470_v9 = vpop.f32.mrb[27].mxu0 }
 0x185   : > { %v780_v46 = vmin.f32 %v748_v38, 6.0  ;;  %v718_v1 = vadd.f32 3.0, %v686_v6  ;;  %v592_v7 = vmul.f32 %v5482_v2, %v470_v9  ;;  %895 = vrot.lane.b32.xlu0 %v810_v52, %s5066_s9 }
 0x186   : > { %v811_v5 = vmul.f32 %v779_v51, %v683_v14  ;;  %v749_v34 = vmax.f32 %v717_v42, 0.0  ;;  %v687_v16 = vadd.f32 %v5533_v25, %v591_v44  ;;  %v5654_v33 = vpop.permute.xlu0 %1216 }
 0x187   : > { %v812_v49 = vmul.f32 %v780_v46, %v684_v17  ;;  %v750_v19 = vmax.f32 %v718_v1, 0.0  ;;  %v688_v35 = vadd.f32 %v5533_v25, %v592_v7  ;;  %v474_v48 = vpop.f32.mrb[28].mxu0 }
 0x188   : > { %v781_v41 = vmin.f32 %v749_v34, 6.0  ;;  %v719_v53 = vadd.f32 3.0, %v687_v16  ;;  %v593_v56 = vmul.f32 %v5507_v11, %v474_v48  ;;  %897 = vrot.lane.b32.xlu1 %v811_v5, %s5066_s9  ;;  %v476_v2 = vpop.f32.mrb[29].mxu0 }
 0x189   : > { %v782_v13 = vmin.f32 %v750_v19, 6.0  ;;  %v720_v62 = vadd.f32 3.0, %v688_v35  ;;  %v594_v14 = vmul.f32 %v5507_v11, %v476_v2  ;;  %899 = vrot.lane.b32.xlu0 %v812_v49, %s5066_s9 }
 0x18a   : > { %v813_v17 = vmul.f32 %v781_v41, %v685_v10  ;;  %v751_v63 = vmax.f32 %v719_v53, 0.0  ;;  %v689_v25 = vadd.f32 %v5519_v18, %v593_v56  ;;  %v5666_v19 = vpop.permute.xlu0 %1224 }
 0x18b   : > { %v814_v32 = vmul.f32 %v782_v13, %v686_v6  ;;  %v752_v61 = vmax.f32 %v720_v62, 0.0  ;;  %v690_v58 = vadd.f32 %v5519_v18, %v594_v14  ;;  %v480_v23 = vpop.f32.mrb[30].mxu0  ;;  %v5661_v6 = vpop.permute.xlu1 %1236 }
 0x18c   : > { %v783_v38 = vmin.f32 %v751_v63, 6.0  ;;  %v721_v29 = vadd.f32 3.0, %v689_v25  ;;  %v595_v52 = vmul.f32 %v5488_v3, %v480_v23  ;;  %901 = vrot.lane.b32.xlu1 %v813_v17, %s5066_s9  ;;  %v482_v11 = vpop.f32.mrb[31].mxu0 }
 0x18d   : > { %v784_v51 = vmin.f32 %v752_v61, 6.0  ;;  %v722_v42 = vadd.f32 3.0, %v690_v58  ;;  %v596_v10 = vmul.f32 %v5488_v3, %v482_v11  ;;  %903 = vrot.lane.b32.xlu0 %v814_v32, %s5066_s9 }
 0x18e   : > { %v815_v44 = vmul.f32 %v783_v38, %v687_v16  ;;  %v753_v9 = vmax.f32 %v721_v29, 0.0  ;;  %v691_v18 = vadd.f32 %v5537_v27, %v595_v52  ;;  %v5673_v62 = vpop.permute.xlu0 %1232 }
 0x18f   : > { %v816_v46 = vmul.f32 %v784_v51, %v688_v35  ;;  %v754_v1 = vmax.f32 %v722_v42, 0.0  ;;  %v692_v7 = vadd.f32 %v5537_v27, %v596_v10  ;;  %v5669_v56 = vpop.permute.xlu1 %1244 }
 0x190   : > { %v785_v5 = vmin.f32 %v753_v9, 6.0  ;;  %v723_v34 = vadd.f32 3.0, %v691_v18  ;;  %905 = vrot.lane.b32.xlu1 %v815_v44, %s5066_s9 }
 0x191   : > { %v786_v49 = vmin.f32 %v754_v1, 6.0  ;;  %v724_v3 = vadd.f32 3.0, %v692_v7  ;;  %907 = vrot.lane.b32.xlu0 %v816_v46, %s5066_s9 }
 0x192   : > { %v817_v48 = vmul.f32 %v785_v5, %v689_v25  ;;  %v755_v41 = vmax.f32 %v723_v34, 0.0  ;;  %v5679_v17 = vpop.permute.xlu0 %1240 }
 0x193   : > { %v818_v16 = vmul.f32 %v786_v49, %v690_v58  ;;  %v756_v53 = vmax.f32 %v724_v3, 0.0  ;;  %v5677_v14 = vpop.permute.xlu1 %1770 }
 0x194   : > { %v787_v35 = vmin.f32 %v755_v41, 6.0  ;;  %909 = vrot.lane.b32.xlu1 %v817_v48, %s5066_s9  ;;  %10092 = vst [vmem:[#allocation24_spill] sm:$0xff] %v5677_v14 }
 0x195   : > { %v788_v27 = vmin.f32 %v756_v53, 6.0  ;;  %911 = vrot.lane.b32.xlu0 %v818_v16, %s5066_s9 }
 0x196   : > { %v819_v2 = vmul.f32 %v787_v35, %v691_v18  ;;  %v5683_v25 = vpop.permute.xlu0 %1248 }
 0x197   : > { %v820_v13 = vmul.f32 %v788_v27, %v692_v7  ;;  %v5681_v63 = vpop.permute.xlu1 %1778 }
 0x198   : > { %913 = vrot.lane.b32.xlu1 %v819_v2, %s5066_s9  ;;  %10093 = vst [vmem:[#allocation25_spill] sm:$0xff] %v5681_v63 }
 0x199   : > { %915 = vrot.lane.b32.xlu0 %v820_v13, %s5066_s9 }
 0x19a   : > { %v5687_v61 = vpop.permute.xlu0 %1774 }
 0x19b   : > { %v5685_v32 = vpop.permute.xlu1 %1782  ;;  %10095 = vst [vmem:[#allocation27_spill] sm:$0xff] %v5687_v61 }
 0x19c   : > { %10094 = vst [vmem:[#allocation26_spill] sm:$0xff] %v5685_v32 }
 0x19e   : > { %v5691_v23 = vpop.permute.xlu0 %1786 }
 0x19f   : > { %v5689_v58 = vpop.permute.xlu1 %1790  ;;  %10097 = vst [vmem:[#allocation29_spill] sm:$0xff] %v5691_v23 }
 0x1a0   : > { %10096 = vst [vmem:[#allocation28_spill] sm:$0xff] %v5689_v58 }
 0x1a2   : > { %v5695_v29 = vpop.permute.xlu0 %1794 }
 0x1a3   : > { %v5693_v38 = vpop.permute.xlu1 %1798  ;;  %10099 = vst [vmem:[#allocation31_spill] sm:$0xff] %v5695_v29 }
 0x1a4   : > { %10098 = vst [vmem:[#allocation30_spill] sm:$0xff] %v5693_v38 }
 0x1a6   : > { %v5699_v11 = vpop.permute.xlu0 %1802 }
 0x1a7   : > { %v5697_v52 = vpop.permute.xlu1 %1806  ;;  %10101 = vst [vmem:[#allocation33_spill] sm:$0xff] %v5699_v11 }
 0x1a8   : > { %10100 = vst [vmem:[#allocation32_spill] sm:$0xff] %v5697_v52 }
 0x1aa   : > { %v5703_v42 = vpop.permute.xlu0 %1810 }
 0x1ab   : > { %v5701_v51 = vpop.permute.xlu1 %1814  ;;  %10103 = vst [vmem:[#allocation35_spill] sm:$0xff] %v5703_v42 }
 0x1ac   : > { %10102 = vst [vmem:[#allocation34_spill] sm:$0xff] %v5701_v51 }
 0x1ae   : > { %v5707_v44 = vpop.permute.xlu0 %1818 }
 0x1af   : > { %v5705_v10 = vpop.permute.xlu1 %1822  ;;  %10105 = vst [vmem:[#allocation37_spill] sm:$0xff] %v5707_v44 }
 0x1b0   : > { %10104 = vst [vmem:[#allocation36_spill] sm:$0xff] %v5705_v10 }
 0x1b2   : > { %v5711_v18 = vpop.permute.xlu0 %1826 }
 0x1b3   : > { %v5709_v9 = vpop.permute.xlu1 %1830  ;;  %10107 = vst [vmem:[#allocation39_spill] sm:$0xff] %v5711_v18 }
 0x1b4   : > { %10106 = vst [vmem:[#allocation38_spill] sm:$0xff] %v5709_v9 }
 0x1ce   : > { %v854_v46 = vpop.permute.xlu1 %853 }
 0x1cf   : > { %v5714_v1 = vsel %vm917_vm0, 0.0, %v854_v46  ;;  %v856_v7 = vpop.permute.xlu0 %855 }
 0x1d0   : > { %1576 = vrot.lane.b32.xlu1 %v5714_v1, %s5067_s10  ;;  %1897 = vrot.lane.b32.xlu0 %v5714_v1, %s5068_s11  ;;  %v5721_v34 = vsel %vm917_vm0, %v854_v46, %v856_v7  ;;  %v5724_v49 = vsel %vm917_vm0, %v856_v7, 0.0  ;;  %v1251_v53 = vmul.f32 %v5616_v36, %v5714_v1 }
 0x1d1   : > { %v1252_v35 = vmul.f32 %v5616_v36, %v5721_v34  ;;  %v1253_v13 = vmul.f32 %v5616_v36, %v5724_v49 }
 0x1d2   : > { %v858_v5 = vpop.permute.xlu1 %857 }
 0x1d3   : > { %v860_v3 = vpop.permute.xlu0 %859  ;;  %v5749_v46 = vsel %vm917_vm0, 0.0, %v858_v5 }
 0x1d4   : > { %1580 = vrot.lane.b32.xlu1 %v5724_v49, %s5067_s10  ;;  %1578 = vrot.lane.b32.xlu0 %v5721_v34, %s5067_s10  ;;  %v1254_v10 = vmul.f32 %v5584_v37, %v5749_v46 }
 0x1d6   : > { %v862_v48 = vpop.permute.xlu1 %861 }
 0x1d7   : > { %v864_v41 = vpop.permute.xlu0 %863  ;;  %v5800_v52 = vsel %vm917_vm0, 0.0, %v862_v48 }
 0x1d8   : > { %1899 = vrot.lane.b32.xlu1 %v5721_v34, %s5068_s11  ;;  %1901 = vrot.lane.b32.xlu0 %v5724_v49, %s5068_s11  ;;  %v5811_v11 = vsel %vm917_vm0, %v862_v48, %v864_v41 }
 0x1d9   : > { %v1258_v58 = vmul.f32 %v5595_v57, %v5811_v11 }
 0x1da   : > { %v5734_v16 = vpop.permute.xlu1 %865 }
 0x1db   : > { %v5740_v27 = vpop.permute.xlu0 %867  ;;  %v5846_v61 = vsel %vm917_vm0, 0.0, %v5734_v16 }
 0x1dc   : > { %1347 = vrot.lane.b32.xlu1 %v1251_v53, %s5069_s12  ;;  %1349 = vrot.lane.b32.xlu0 %v1252_v35, %s5069_s12  ;;  %v5759_v53 = vsel %vm917_vm0, %v860_v3, 0.0 }
 0x1dd   : > { %v1256_v51 = vmul.f32 %v5584_v37, %v5759_v53 }
 0x1de   : > { %v5744_v2 = vpop.permute.xlu1 %869 }
 0x1df   : > { %v5751_v7 = vpop.permute.xlu0 %871 }
 0x1e0   : > { %1351 = vrot.lane.b32.xlu1 %v1253_v13, %s5069_s12  ;;  %1582 = vrot.lane.b32.xlu0 %v5749_v46, %s5067_s10  ;;  %v5770_v13 = vsel %vm917_vm0, %v858_v5, %v860_v3  ;;  %v5893_v60 = vsel %vm917_vm0, %v5744_v2, %v5751_v7 }
 0x1e1   : > { %v1255_v3 = vmul.f32 %v5584_v37, %v5770_v13 }
 0x1e2   : > { %v5756_v0 = vpop.permute.xlu1 %873 }
 0x1e3   : > { %v5761_v35 = vpop.permute.xlu0 %875 }
 0x1e4   : > { %1903 = vrot.lane.b32.xlu1 %v5749_v46, %s5068_s11  ;;  %1586 = vrot.lane.b32.xlu0 %v5759_v53, %s5067_s10 }
 0x1e6   : > { %v5767_v36 = vpop.permute.xlu1 %877 }
 0x1e7   : > { %v5772_v9 = vpop.permute.xlu0 %879  ;;  %v5944_v8 = vsel %vm917_vm0, 0.0, %v5767_v36 }
 0x1e8   : > { %1584 = vrot.lane.b32.xlu1 %v5770_v13, %s5067_s10  ;;  %1905 = vrot.lane.b32.xlu0 %v5770_v13, %s5068_s11 }
 0x1ea   : > { %v5778_v18 = vpop.permute.xlu1 %881 }
 0x1eb   : > { %v5782_v44 = vpop.permute.xlu0 %883 }
 0x1ec   : > { %1907 = vrot.lane.b32.xlu1 %v5759_v53, %s5068_s11  ;;  %1353 = vrot.lane.b32.xlu0 %v1254_v10, %s5069_s12 }
 0x1ee   : > { %v5787_v5 = vpop.permute.xlu1 %885 }
 0x1ef   : > { %v5793_v42 = vpop.permute.xlu0 %887 }
 0x1f0   : > { %1355 = vrot.lane.b32.xlu1 %v1255_v3, %s5069_s12  ;;  %1357 = vrot.lane.b32.xlu0 %v1256_v51, %s5069_s12  ;;  %v5814_v51 = vsel %vm917_vm0, %v864_v41, 0.0  ;;  %v1257_v41 = vmul.f32 %v5595_v57, %v5800_v52 }
 0x1f1   : > { %v1259_v32 = vmul.f32 %v5595_v57, %v5814_v51  ;;  %v5869_v57 = vsel %vm917_vm0, %v5734_v16, %v5740_v27 }
 0x1f2   : > { %v5797_v50 = vpop.permute.xlu1 %889 }
 0x1f3   : > { %v5802_v10 = vpop.permute.xlu0 %891 }
 0x1f4   : > { %1588 = vrot.lane.b32.xlu1 %v5800_v52, %s5067_s10  ;;  %1909 = vrot.lane.b32.xlu0 %v5800_v52, %s5068_s11 }
 0x1f6   : > { %v5808_v37 = vpop.permute.xlu1 %893 }
 0x1f7   : > { %v5816_v3 = vpop.permute.xlu0 %895 }
 0x1f8   : > { %1592 = vrot.lane.b32.xlu1 %v5814_v51, %s5067_s10  ;;  %1590 = vrot.lane.b32.xlu0 %v5811_v11, %s5067_s10 }
 0x1fa   : > { %v5822_v38 = vpop.permute.xlu1 %897 }
 0x1fb   : > { %v5824_v29 = vpop.permute.xlu0 %899 }
 0x1fc   : > { %1911 = vrot.lane.b32.xlu1 %v5811_v11, %s5068_s11  ;;  %1913 = vrot.lane.b32.xlu0 %v5814_v51, %s5068_s11 }
 0x1fe   : > { %v5830_v48 = vpop.permute.xlu1 %901 }
 0x1ff   : > { %v5836_v23 = vpop.permute.xlu0 %903 }
 0x200   : > { %1359 = vrot.lane.b32.xlu1 %v1257_v41, %s5069_s12  ;;  %1361 = vrot.lane.b32.xlu0 %v1258_v58, %s5069_s12  ;;  %v5860_v58 = vsel %vm917_vm0, %v5740_v27, 0.0  ;;  %v1261_v41 = vmul.f32 %v5629_v47, %v5869_v57  ;;  %v5888_v27 = vsel %vm917_vm0, 0.0, %v5744_v2 }
 0x201   : > { %v1262_v16 = vmul.f32 %v5629_v47, %v5860_v58  ;;  %v1263_v2 = vmul.f32 %v5609_v12, %v5888_v27 }
 0x202   : > { %v5840_v63 = vpop.permute.xlu1 %905 }
 0x203   : > { %v5848_v14 = vpop.permute.xlu0 %907 }
 0x204   : > { %v5853_v54 = vsel %vm917_vm0, %v5840_v63, %v5848_v14  ;;  %1363 = vrot.lane.b32.xlu1 %v1259_v32, %s5069_s12  ;;  %1594 = vrot.lane.b32.xlu0 %v5846_v61, %s5067_s10  ;;  %v1260_v32 = vmul.f32 %v5629_v47, %v5846_v61  ;;  %v1264_v47 = vmul.f32 %v5609_v12, %v5893_v60 }
 0x205   : > { %10108 = vst [vmem:[#allocation40_spill] sm:$0xff] %v5853_v54 }
 0x208   : > { %1915 = vrot.lane.b32.xlu1 %v5846_v61, %s5068_s11  ;;  %1598 = vrot.lane.b32.xlu0 %v5860_v58, %s5067_s10 }
 0x20c   : > { %1596 = vrot.lane.b32.xlu1 %v5869_v57, %s5067_s10  ;;  %1917 = vrot.lane.b32.xlu0 %v5869_v57, %s5068_s11 }
 0x210   : > { %1919 = vrot.lane.b32.xlu1 %v5860_v58, %s5068_s11  ;;  %1365 = vrot.lane.b32.xlu0 %v1260_v32, %s5069_s12  ;;  %v5903_v32 = vsel %vm917_vm0, %v5751_v7, 0.0 }
 0x211   : > { %v1265_v7 = vmul.f32 %v5609_v12, %v5903_v32 }
 0x214   : > { %1367 = vrot.lane.b32.xlu1 %v1261_v41, %s5069_s12  ;;  %1369 = vrot.lane.b32.xlu0 %v1262_v16, %s5069_s12  ;;  %v5912_v41 = vsel %vm917_vm0, 0.0, %v5756_v0  ;;  %v5921_v16 = vsel %vm917_vm0, %v5761_v35, 0.0 }
 0x218   : > { %1600 = vrot.lane.b32.xlu1 %v5888_v27, %s5067_s10  ;;  %1602 = vrot.lane.b32.xlu0 %v5893_v60, %s5067_s10 }
 0x21c   : > { %1604 = vrot.lane.b32.xlu1 %v5903_v32, %s5067_s10  ;;  %1373 = vrot.lane.b32.xlu0 %v1264_v47, %s5069_s12  ;;  %v1266_v47 = vmul.f32 %v5641_v21, %v5912_v41 }
 0x220   : > { %1371 = vrot.lane.b32.xlu1 %v1263_v2, %s5069_s12  ;;  %1606 = vrot.lane.b32.xlu0 %v5912_v41, %s5067_s10  ;;  %v5931_v2 = vsel %vm917_vm0, %v5756_v0, %v5761_v35  ;;  %v5949_v0 = vsel %vm917_vm0, %v5767_v36, %v5772_v9  ;;  %v5959_v35 = vsel %vm917_vm0, %v5772_v9, 0.0  ;;  %v1269_v36 = vmul.f32 %v5621_v59, %v5944_v8 }
 0x221   : > { %v1267_v12 = vmul.f32 %v5641_v21, %v5931_v2  ;;  %v1271_v9 = vmul.f32 %v5621_v59, %v5959_v35 }
 0x224   : > { %1375 = vrot.lane.b32.xlu1 %v1265_v7, %s5069_s12  ;;  %1610 = vrot.lane.b32.xlu0 %v5921_v16, %s5067_s10  ;;  %v1268_v7 = vmul.f32 %v5641_v21, %v5921_v16  ;;  %v1270_v21 = vmul.f32 %v5621_v59, %v5949_v0  ;;  %v5995_v59 = vsel %vm917_vm0, %v5778_v18, %v5782_v44 }
 0x225   : > { %v1273_v45 = vmul.f32 %v5654_v33, %v5995_v59 }
 0x228   : > { %1608 = vrot.lane.b32.xlu1 %v5931_v2, %s5067_s10  ;;  %1377 = vrot.lane.b32.xlu0 %v1266_v47, %s5069_s12  ;;  %v5968_v47 = vsel %vm917_vm0, 0.0, %v5778_v18 }
 0x22c   : > { %1379 = vrot.lane.b32.xlu1 %v1267_v12, %s5069_s12  ;;  %1381 = vrot.lane.b32.xlu0 %v1268_v7, %s5069_s12  ;;  %v5970_v12 = vpop.permute.xlu1 %909  ;;  %v5972_v7 = vpop.permute.xlu0 %911 }
 0x230   : > { %1612 = vrot.lane.b32.xlu1 %v5944_v8, %s5067_s10  ;;  %1614 = vrot.lane.b32.xlu0 %v5949_v0, %s5067_s10  ;;  %v5986_v31 = vpop.permute.xlu1 %913  ;;  %v5988_v55 = vpop.permute.xlu0 %915 }
 0x234   : > { %1616 = vrot.lane.b32.xlu1 %v5959_v35, %s5067_s10  ;;  %1385 = vrot.lane.b32.xlu0 %v1270_v21, %s5069_s12  ;;  %v5981_v21 = vsel %vm917_vm0, %v5782_v44, 0.0 }
 0x235   : > { %v1274_v28 = vmul.f32 %v5654_v33, %v5981_v21 }
 0x238   : > { %1383 = vrot.lane.b32.xlu1 %v1269_v36, %s5069_s12  ;;  %1618 = vrot.lane.b32.xlu0 %v5968_v47, %s5067_s10  ;;  %v1272_v36 = vmul.f32 %v5654_v33, %v5968_v47 }
 0x23c   : > { %1387 = vrot.lane.b32.xlu1 %v1271_v9, %s5069_s12  ;;  %1622 = vrot.lane.b32.xlu0 %v5981_v21, %s5067_s10 }
 0x240   : > { %1620 = vrot.lane.b32.xlu1 %v5995_v59, %s5067_s10  ;;  %1389 = vrot.lane.b32.xlu0 %v1272_v36, %s5069_s12  ;;  %v6016_v36 = vsel %vm917_vm0, 0.0, %v5787_v5 }
 0x242   : > { %v6000_v9 = vpop.permute.xlu1 %1576  ;;  %v6002_v40 = vpop.permute.xlu0 %1897 }
 0x243   : > { %10109 = vst [vmem:[#allocation41_spill] sm:$0xff] %v6000_v9  ;;  %10110 = vst [vmem:[#allocation42_spill] sm:$0xff] %v6002_v40  ;;  %v6021_v40 = vsel %vm917_vm0, %v5787_v5, %v5793_v42 }
 0x244   : > { %1391 = vrot.lane.b32.xlu1 %v1273_v45, %s5069_s12  ;;  %1393 = vrot.lane.b32.xlu0 %v1274_v28, %s5069_s12  ;;  %v1276_v33 = vmul.f32 %v5635_v15, %v6021_v40 }
 0x246   : > { %v6010_v44 = vpop.permute.xlu1 %1580  ;;  %v6012_v18 = vpop.permute.xlu0 %1578 }
 0x247   : > { %10111 = vst [vmem:[#allocation43_spill] sm:$0xff] %v6010_v44  ;;  %10112 = vst [vmem:[#allocation44_spill] sm:$0xff] %v6012_v18  ;;  %v6035_v44 = vsel %vm917_vm0, %v5793_v42, 0.0 }
 0x248   : > { %1624 = vrot.lane.b32.xlu1 %v6016_v36, %s5067_s10  ;;  %1626 = vrot.lane.b32.xlu0 %v6021_v40, %s5067_s10 }
 0x24a   : > { %v6027_v28 = vpop.permute.xlu1 %1899  ;;  %v6029_v45 = vpop.permute.xlu0 %1901 }
 0x24b   : > { %10113 = vst [vmem:[#allocation45_spill] sm:$0xff] %v6027_v28  ;;  %10114 = vst [vmem:[#allocation46_spill] sm:$0xff] %v6029_v45  ;;  %v1275_v28 = vmul.f32 %v5635_v15, %v6016_v36  ;;  %v6048_v45 = vsel %vm917_vm0, 0.0, %v5797_v50 }
 0x24c   : > { %1628 = vrot.lane.b32.xlu1 %v6035_v44, %s5067_s10  ;;  %1397 = vrot.lane.b32.xlu0 %v1276_v33, %s5069_s12  ;;  %v1277_v33 = vmul.f32 %v5635_v15, %v6035_v44  ;;  %v6075_v15 = vsel %vm917_vm0, %v5797_v50, %v5802_v10 }
 0x24e   : > { %v6040_v5 = vpop.permute.xlu1 %1347  ;;  %v6042_v9 = vpop.permute.xlu0 %1349 }
 0x24f   : > { %10115 = vst [vmem:[#allocation47_spill] sm:$0xff] %v6040_v5  ;;  %10116 = vst [vmem:[#allocation48_spill] sm:$0xff] %v6042_v9  ;;  %v6061_v5 = vsel %vm917_vm0, %v5802_v10, 0.0 }
 0x250   : > { %1395 = vrot.lane.b32.xlu1 %v1275_v28, %s5069_s12  ;;  %1630 = vrot.lane.b32.xlu0 %v6048_v45, %s5067_s10 }
 0x252   : > { %v6053_v42 = vpop.permute.xlu1 %1351  ;;  %v6055_v18 = vpop.permute.xlu0 %1582 }
 0x253   : > { %10117 = vst [vmem:[#allocation49_spill] sm:$0xff] %v6053_v42  ;;  %10118 = vst [vmem:[#allocation50_spill] sm:$0xff] %v6055_v18  ;;  %v1278_v42 = vmul.f32 %v5666_v19, %v6048_v45 }
 0x254   : > { %1399 = vrot.lane.b32.xlu1 %v1277_v33, %s5069_s12  ;;  %1634 = vrot.lane.b32.xlu0 %v6061_v5, %s5067_s10 }
 0x256   : > { %v6066_v28 = vpop.permute.xlu1 %1903  ;;  %v6068_v9 = vpop.permute.xlu0 %1586 }
 0x257   : > { %10119 = vst [vmem:[#allocation51_spill] sm:$0xff] %v6066_v28  ;;  %10120 = vst [vmem:[#allocation52_spill] sm:$0xff] %v6068_v9  ;;  %v1279_v28 = vmul.f32 %v5666_v19, %v6075_v15  ;;  %v1280_v9 = vmul.f32 %v5666_v19, %v6061_v5 }
 0x258   : > { %1632 = vrot.lane.b32.xlu1 %v6075_v15, %s5067_s10  ;;  %1401 = vrot.lane.b32.xlu0 %v1278_v42, %s5069_s12  ;;  %v6096_v42 = vsel %vm917_vm0, 0.0, %v5808_v37 }
 0x259   : > { %10125 = vst [vmem:[#allocation57_spill] sm:$0xff] %v6096_v42 }
 0x25a   : > { %v6080_v33 = vpop.permute.xlu1 %1584  ;;  %v6082_v18 = vpop.permute.xlu0 %1905 }
 0x25b   : > { %10121 = vst [vmem:[#allocation53_spill] sm:$0xff] %v6080_v33  ;;  %10122 = vst [vmem:[#allocation54_spill] sm:$0xff] %v6082_v18  ;;  %v6101_v18 = vsel %vm917_vm0, %v5808_v37, %v5816_v3 }
 0x25c   : > { %1403 = vrot.lane.b32.xlu1 %v1279_v28, %s5069_s12  ;;  %1405 = vrot.lane.b32.xlu0 %v1280_v9, %s5069_s12  ;;  %v1282_v28 = vmul.f32 %v5647_v39, %v6101_v18 }
 0x25e   : > { %v6090_v50 = vpop.permute.xlu1 %1907  ;;  %v6092_v10 = vpop.permute.xlu0 %1353 }
 0x25f   : > { %10123 = vst [vmem:[#allocation55_spill] sm:$0xff] %v6090_v50  ;;  %10124 = vst [vmem:[#allocation56_spill] sm:$0xff] %v6092_v10  ;;  %v6115_v50 = vsel %vm917_vm0, %v5816_v3, 0.0 }
 0x260   : > { %1636 = vrot.lane.b32.xlu1 %v6096_v42, %s5067_s10  ;;  %1638 = vrot.lane.b32.xlu0 %v6101_v18, %s5067_s10 }
 0x262   : > { %v6107_v19 = vpop.permute.xlu1 %1355  ;;  %v6109_v9 = vpop.permute.xlu0 %1357 }
 0x263   : > { %10126 = vst [vmem:[#allocation58_spill] sm:$0xff] %v6107_v19  ;;  %10127 = vst [vmem:[#allocation59_spill] sm:$0xff] %v6109_v9  ;;  %v1281_v19 = vmul.f32 %v5647_v39, %v6096_v42  ;;  %v6128_v9 = vsel %vm917_vm0, 0.0, %v5822_v38 }
 0x264   : > { %1640 = vrot.lane.b32.xlu1 %v6115_v50, %s5067_s10  ;;  %1409 = vrot.lane.b32.xlu0 %v1282_v28, %s5069_s12  ;;  %v1283_v28 = vmul.f32 %v5647_v39, %v6115_v50  ;;  %v6155_v39 = vsel %vm917_vm0, %v5822_v38, %v5824_v29 }
 0x265   : > { %10134 = vst [vmem:[#allocation66_spill] sm:$0xff] %v6155_v39 }
 0x266   : > { %v6120_v37 = vpop.permute.xlu1 %1588  ;;  %v6122_v10 = vpop.permute.xlu0 %1909 }
 0x267   : > { %10128 = vst [vmem:[#allocation60_spill] sm:$0xff] %v6120_v37  ;;  %10129 = vst [vmem:[#allocation61_spill] sm:$0xff] %v6122_v10  ;;  %v6141_v10 = vsel %vm917_vm0, %v5824_v29, 0.0 }
 0x268   : > { %1407 = vrot.lane.b32.xlu1 %v1281_v19, %s5069_s12  ;;  %1642 = vrot.lane.b32.xlu0 %v6128_v9, %s5067_s10  ;;  %v1286_v4 = vmul.f32 %v5673_v62, %v6141_v10 }
 0x26a   : > { %v6133_v3 = vpop.permute.xlu1 %1592  ;;  %v6135_v33 = vpop.permute.xlu0 %1590 }
 0x26b   : > { %10130 = vst [vmem:[#allocation62_spill] sm:$0xff] %v6133_v3  ;;  %10131 = vst [vmem:[#allocation63_spill] sm:$0xff] %v6135_v33  ;;  %v1284_v3 = vmul.f32 %v5673_v62, %v6128_v9  ;;  %v5070_v33 = vmov 3  }
 0x26c   : > { %1411 = vrot.lane.b32.xlu1 %v1283_v28, %s5069_s12  ;;  %1646 = vrot.lane.b32.xlu0 %v6141_v10, %s5067_s10 }
 0x26d   : > { %4897 = vset.pattern.permute.xlu1 %v5070_v33  ;;  %4896 = vset.pattern.permute.xlu0 %v5070_v33  ;;  %v6176_v33 = vsel %vm917_vm0, 0.0, %v5830_v48 }
 0x26e   : > { %v6146_v19 = vpop.permute.xlu1 %1911  ;;  %v6148_v37 = vpop.permute.xlu0 %1913  ;;  %10139 = vst [vmem:[#allocation71_spill] sm:$0xff] %v6176_v33 }
 0x26f   : > { %10132 = vst [vmem:[#allocation64_spill] sm:$0xff] %v6146_v19  ;;  %10133 = vst [vmem:[#allocation65_spill] sm:$0xff] %v6148_v37  ;;  %v1285_v37 = vmul.f32 %v5673_v62, %v6155_v39 }
 0x270   : > { %1644 = vrot.lane.b32.xlu1 %v6155_v39, %s5067_s10  ;;  %1413 = vrot.lane.b32.xlu0 %v1284_v3, %s5069_s12  ;;  %v6181_v3 = vsel %vm917_vm0, %v5830_v48, %v5836_v23 }
 0x271   : > { %10140 = vst [vmem:[#allocation72_spill] sm:$0xff] %v6181_v3 }
 0x272   : > { %v6160_v28 = vpop.permute.xlu1 %1359  ;;  %v6162_v19 = vpop.permute.xlu0 %1361 }
 0x273   : > { %10135 = vst [vmem:[#allocation67_spill] sm:$0xff] %v6160_v28  ;;  %10136 = vst [vmem:[#allocation68_spill] sm:$0xff] %v6162_v19  ;;  %v1287_v19 = vmul.f32 %v5661_v6, %v6176_v33 }
 0x274   : > { %1415 = vrot.lane.b32.xlu1 %v1285_v37, %s5069_s12  ;;  %1417 = vrot.lane.b32.xlu0 %v1286_v4, %s5069_s12  ;;  %v1288_v37 = vmul.f32 %v5661_v6, %v6181_v3 }
 0x276   : > { %v6170_v38 = vpop.permute.xlu1 %1363  ;;  %v6172_v29 = vpop.permute.xlu0 %1594 }
 0x277   : > { %10137 = vst [vmem:[#allocation69_spill] sm:$0xff] %v6170_v38  ;;  %10138 = vst [vmem:[#allocation70_spill] sm:$0xff] %v6172_v29  ;;  %v6195_v38 = vsel %vm917_vm0, %v5836_v23, 0.0 }
 0x278   : > { %1648 = vrot.lane.b32.xlu1 %v6176_v33, %s5067_s10  ;;  %1650 = vrot.lane.b32.xlu0 %v6181_v3, %s5067_s10 }
 0x27a   : > { %v6187_v4 = vpop.permute.xlu1 %1915  ;;  %v6189_v62 = vpop.permute.xlu0 %1598 }
 0x27b   : > { %10141 = vst [vmem:[#allocation73_spill] sm:$0xff] %v6187_v4  ;;  %10142 = vst [vmem:[#allocation74_spill] sm:$0xff] %v6189_v62  ;;  %v6208_v62 = vsel %vm917_vm0, 0.0, %v5840_v63 }
 0x27c   : > { %1652 = vrot.lane.b32.xlu1 %v6195_v38, %s5067_s10  ;;  %1421 = vrot.lane.b32.xlu0 %v1288_v37, %s5069_s12  ;;  %v1289_v37 = vmul.f32 %v5661_v6, %v6195_v38 }
 0x27e   : > { %v6200_v48 = vpop.permute.xlu1 %1596  ;;  %v6202_v28 = vpop.permute.xlu0 %1917 }
 0x27f   : > { %10143 = vst [vmem:[#allocation75_spill] sm:$0xff] %v6200_v48  ;;  %10144 = vst [vmem:[#allocation76_spill] sm:$0xff] %v6202_v28  ;;  %v6221_v28 = vsel %vm917_vm0, %v5848_v14, 0.0 }
 0x280   : > { %1419 = vrot.lane.b32.xlu1 %v1287_v19, %s5069_s12  ;;  %1654 = vrot.lane.b32.xlu0 %v6208_v62, %s5067_s10  ;;  %10147 = vst [vmem:[#allocation79_spill] sm:$0xff] %v6221_v28 }
 0x282   : > { %v6213_v23 = vpop.permute.xlu1 %1919  ;;  %v6215_v4 = vpop.permute.xlu0 %1365 }
 0x283   : > { %10145 = vst [vmem:[#allocation77_spill] sm:$0xff] %v6213_v23  ;;  %10146 = vst [vmem:[#allocation78_spill] sm:$0xff] %v6215_v4  ;;  %v1290_v23 = vmul.f32 %v5679_v17, %v6208_v62  ;;  %v1292_v4 = vmul.f32 %v5679_v17, %v6221_v28 }
 0x284   : > { %1423 = vrot.lane.b32.xlu1 %v1289_v37, %s5069_s12  ;;  %1658 = vrot.lane.b32.xlu0 %v6221_v28, %s5067_s10  ;;  %v1291_v37 = vmul.f32 %v5679_v17, %v5853_v54 }
 0x286   : > { %v6226_v63 = vpop.permute.xlu1 %1367  ;;  %v6228_v19 = vpop.permute.xlu0 %1369 }
 0x287   : > { %10148 = vst [vmem:[#allocation80_spill] sm:$0xff] %v6226_v63  ;;  %10149 = vst [vmem:[#allocation81_spill] sm:$0xff] %v6228_v19 }
 0x288   : > { %1656 = vrot.lane.b32.xlu1 %v5853_v54, %s5067_s10  ;;  %1425 = vrot.lane.b32.xlu0 %v1290_v23, %s5069_s12  ;;  %v6251_v23 = vsel %vm917_vm0, 0.0, %v5970_v12 }
 0x289   : > { %10154 = vst [vmem:[#allocation86_spill] sm:$0xff] %v6251_v23 }
 0x28a   : > { %v6235_v6 = vpop.permute.xlu1 %1600  ;;  %v6237_v14 = vpop.permute.xlu0 %1602 }
 0x28b   : > { %10150 = vst [vmem:[#allocation82_spill] sm:$0xff] %v6235_v6  ;;  %10151 = vst [vmem:[#allocation83_spill] sm:$0xff] %v6237_v14  ;;  %v6256_v6 = vsel %vm917_vm0, %v5970_v12, %v5972_v7 }
 0x28c   : > { %1427 = vrot.lane.b32.xlu1 %v1291_v37, %s5069_s12  ;;  %1429 = vrot.lane.b32.xlu0 %v1292_v4, %s5069_s12  ;;  %10155 = vst [vmem:[#allocation87_spill] sm:$0xff] %v6256_v6  ;;  %v1294_v37 = vmul.f32 %v5669_v56, %v6256_v6 }
 0x28e   : > { %v6245_v19 = vpop.permute.xlu1 %1604  ;;  %v6247_v63 = vpop.permute.xlu0 %1373 }
 0x28f   : > { %10152 = vst [vmem:[#allocation84_spill] sm:$0xff] %v6245_v19  ;;  %10153 = vst [vmem:[#allocation85_spill] sm:$0xff] %v6247_v63  ;;  %v6270_v63 = vsel %vm917_vm0, %v5972_v7, 0.0 }
 0x290   : > { %1660 = vrot.lane.b32.xlu1 %v6251_v23, %s5067_s10  ;;  %1662 = vrot.lane.b32.xlu0 %v6256_v6, %s5067_s10  ;;  %10158 = vst [vmem:[#allocation90_spill] sm:$0xff] %v6270_v63 }
 0x292   : > { %v6262_v17 = vpop.permute.xlu1 %1371  ;;  %v6264_v4 = vpop.permute.xlu0 %1606 }
 0x293   : > { %10156 = vst [vmem:[#allocation88_spill] sm:$0xff] %v6262_v17  ;;  %10157 = vst [vmem:[#allocation89_spill] sm:$0xff] %v6264_v4  ;;  %v1293_v17 = vmul.f32 %v5669_v56, %v6251_v23  ;;  %v6283_v4 = vsel %vm917_vm0, 0.0, %v5986_v31 }
 0x294   : > { %1664 = vrot.lane.b32.xlu1 %v6270_v63, %s5067_s10  ;;  %1433 = vrot.lane.b32.xlu0 %v1294_v37, %s5069_s12  ;;  %10161 = vst [vmem:[#allocation93_spill] sm:$0xff] %v6283_v4  ;;  %v1295_v37 = vmul.f32 %v5669_v56, %v6270_v63  ;;  %v6310_v56 = vsel %vm917_vm0, %v5986_v31, %v5988_v55 }
 0x295   : > { %10167 = vst [vmem:[#allocation99_spill] sm:$0xff] %v6310_v56 }
 0x296   : > { %v6275_v12 = vpop.permute.xlu1 %1375  ;;  %v6277_v19 = vpop.permute.xlu0 %1610 }
 0x297   : > { %10159 = vst [vmem:[#allocation91_spill] sm:$0xff] %v6275_v12  ;;  %10160 = vst [vmem:[#allocation92_spill] sm:$0xff] %v6277_v19  ;;  %v6296_v19 = vsel %vm917_vm0, %v5988_v55, 0.0 }
 0x298   : > { %1431 = vrot.lane.b32.xlu1 %v1293_v17, %s5069_s12  ;;  %1666 = vrot.lane.b32.xlu0 %v6283_v4, %s5067_s10  ;;  %10164 = vst [vmem:[#allocation96_spill] sm:$0xff] %v6296_v19 }
 0x29a   : > { %v6288_v7 = vpop.permute.xlu1 %1608  ;;  %v6290_v14 = vpop.permute.xlu0 %1377 }
 0x29b   : > { %10162 = vst [vmem:[#allocation94_spill] sm:$0xff] %v6288_v7  ;;  %10163 = vst [vmem:[#allocation95_spill] sm:$0xff] %v6290_v14  ;;  %v1296_v7 = vmul.f32 %v5683_v25, %v6283_v4 }
 0x29c   : > { %1435 = vrot.lane.b32.xlu1 %v1295_v37, %s5069_s12  ;;  %1670 = vrot.lane.b32.xlu0 %v6296_v19, %s5067_s10 }
 0x29e   : > { %v6301_v17 = vpop.permute.xlu1 %1379  ;;  %v6303_v12 = vpop.permute.xlu0 %1381 }
 0x29f   : > { %10165 = vst [vmem:[#allocation97_spill] sm:$0xff] %v6301_v17  ;;  %10166 = vst [vmem:[#allocation98_spill] sm:$0xff] %v6303_v12  ;;  %v1297_v12 = vmul.f32 %v5683_v25, %v6310_v56  ;;  %v1298_v17 = vmul.f32 %v5683_v25, %v6296_v19 }
 0x2a0   : > { %1668 = vrot.lane.b32.xlu1 %v6310_v56, %s5067_s10  ;;  %1437 = vrot.lane.b32.xlu0 %v1296_v7, %s5069_s12 }
 0x2a2   : > { %v6315_v37 = vpop.permute.xlu1 %1612  ;;  %v6317_v14 = vpop.permute.xlu0 %1614 }
 0x2a3   : > { %10168 = vst [vmem:[#allocation100_spill] sm:$0xff] %v6315_v37  ;;  %10169 = vst [vmem:[#allocation101_spill] sm:$0xff] %v6317_v14 }
 0x2a4   : > { %1439 = vrot.lane.b32.xlu1 %v1297_v12, %s5069_s12  ;;  %1441 = vrot.lane.b32.xlu0 %v1298_v17, %s5069_s12 }
 0x2a6   : > { %v6325_v31 = vpop.permute.xlu1 %1616  ;;  %v6327_v55 = vpop.permute.xlu0 %1385 }
 0x2a7   : > { %10170 = vst [vmem:[#allocation102_spill] sm:$0xff] %v6325_v31  ;;  %10171 = vst [vmem:[#allocation103_spill] sm:$0xff] %v6327_v55 }
 0x2a8   : > { %1923 = vrot.lane.b32.xlu1 %v5893_v60, %s5068_s11  ;;  %1921 = vrot.lane.b32.xlu0 %v5888_v27, %s5068_s11 }
 0x2aa   : > { %v6333_v7 = vpop.permute.xlu1 %1383  ;;  %v6335_v37 = vpop.permute.xlu0 %1618 }
 0x2ab   : > { %10172 = vst [vmem:[#allocation104_spill] sm:$0xff] %v6333_v7  ;;  %10173 = vst [vmem:[#allocation105_spill] sm:$0xff] %v6335_v37 }
 0x2ac   : > { %1927 = vrot.lane.b32.xlu1 %v5912_v41, %s5068_s11  ;;  %1925 = vrot.lane.b32.xlu0 %v5903_v32, %s5068_s11 }
 0x2ae   : > { %v6341_v25 = vpop.permute.xlu1 %1387  ;;  %v6343_v12 = vpop.permute.xlu0 %1622 }
 0x2af   : > { %10174 = vst [vmem:[#allocation106_spill] sm:$0xff] %v6341_v25  ;;  %10175 = vst [vmem:[#allocation107_spill] sm:$0xff] %v6343_v12 }
 0x2b0   : > { %1931 = vrot.lane.b32.xlu1 %v5921_v16, %s5068_s11  ;;  %1929 = vrot.lane.b32.xlu0 %v5931_v2, %s5068_s11 }
 0x2b2   : > { %v6349_v17 = vpop.permute.xlu1 %1620  ;;  %v6351_v7 = vpop.permute.xlu0 %1389 }
 0x2b3   : > { %10176 = vst [vmem:[#allocation108_spill] sm:$0xff] %v6349_v17  ;;  %10177 = vst [vmem:[#allocation109_spill] sm:$0xff] %v6351_v7 }
 0x2b4   : > { %1935 = vrot.lane.b32.xlu1 %v5949_v0, %s5068_s11  ;;  %1933 = vrot.lane.b32.xlu0 %v5944_v8, %s5068_s11 }
 0x2b6   : > { %v6357_v37 = vpop.permute.xlu1 %1391  ;;  %v6359_v25 = vpop.permute.xlu0 %1393 }
 0x2b7   : > { %10178 = vst [vmem:[#allocation110_spill] sm:$0xff] %v6357_v37  ;;  %10179 = vst [vmem:[#allocation111_spill] sm:$0xff] %v6359_v25 }
 0x2b8   : > { %1939 = vrot.lane.b32.xlu1 %v5968_v47, %s5068_s11  ;;  %1937 = vrot.lane.b32.xlu0 %v5959_v35, %s5068_s11 }
 0x2ba   : > { %v6365_v12 = vpop.permute.xlu1 %1624  ;;  %v6367_v17 = vpop.permute.xlu0 %1626 }
 0x2bb   : > { %10180 = vst [vmem:[#allocation112_spill] sm:$0xff] %v6365_v12  ;;  %10181 = vst [vmem:[#allocation113_spill] sm:$0xff] %v6367_v17 }
 0x2bc   : > { %1943 = vrot.lane.b32.xlu1 %v5981_v21, %s5068_s11  ;;  %1941 = vrot.lane.b32.xlu0 %v5995_v59, %s5068_s11 }
 0x2be   : > { %v6373_v7 = vpop.permute.xlu1 %1628  ;;  %v6375_v37 = vpop.permute.xlu0 %1397 }
 0x2bf   : > { %10182 = vst [vmem:[#allocation114_spill] sm:$0xff] %v6373_v7  ;;  %10183 = vst [vmem:[#allocation115_spill] sm:$0xff] %v6375_v37 }
 0x2c0   : > { %1947 = vrot.lane.b32.xlu1 %v6021_v40, %s5068_s11  ;;  %1945 = vrot.lane.b32.xlu0 %v6016_v36, %s5068_s11 }
 0x2c2   : > { %v6381_v25 = vpop.permute.xlu1 %1395  ;;  %v6383_v12 = vpop.permute.xlu0 %1630 }
 0x2c3   : > { %10184 = vst [vmem:[#allocation116_spill] sm:$0xff] %v6381_v25  ;;  %10185 = vst [vmem:[#allocation117_spill] sm:$0xff] %v6383_v12 }
 0x2c4   : > { %1951 = vrot.lane.b32.xlu1 %v6048_v45, %s5068_s11  ;;  %1949 = vrot.lane.b32.xlu0 %v6035_v44, %s5068_s11 }
 0x2c6   : > { %v6389_v17 = vpop.permute.xlu1 %1399  ;;  %v6391_v7 = vpop.permute.xlu0 %1634 }
 0x2c7   : > { %10186 = vst [vmem:[#allocation118_spill] sm:$0xff] %v6389_v17  ;;  %10187 = vst [vmem:[#allocation119_spill] sm:$0xff] %v6391_v7 }
 0x2c8   : > { %1955 = vrot.lane.b32.xlu1 %v6061_v5, %s5068_s11  ;;  %1953 = vrot.lane.b32.xlu0 %v6075_v15, %s5068_s11 }
 0x2ca   : > { %v6397_v37 = vpop.permute.xlu1 %1632  ;;  %v6399_v25 = vpop.permute.xlu0 %1401 }
 0x2cb   : > { %10188 = vst [vmem:[#allocation120_spill] sm:$0xff] %v6397_v37  ;;  %10189 = vst [vmem:[#allocation121_spill] sm:$0xff] %v6399_v25 }
 0x2cc   : > { %1959 = vrot.lane.b32.xlu1 %v6101_v18, %s5068_s11  ;;  %1957 = vrot.lane.b32.xlu0 %v6096_v42, %s5068_s11 }
 0x2ce   : > { %v6405_v12 = vpop.permute.xlu1 %1403  ;;  %v6407_v17 = vpop.permute.xlu0 %1405 }
 0x2cf   : > { %10190 = vst [vmem:[#allocation122_spill] sm:$0xff] %v6405_v12  ;;  %10191 = vst [vmem:[#allocation123_spill] sm:$0xff] %v6407_v17 }
 0x2d0   : > { %1963 = vrot.lane.b32.xlu1 %v6128_v9, %s5068_s11  ;;  %1961 = vrot.lane.b32.xlu0 %v6115_v50, %s5068_s11 }
 0x2d2   : > { %v6413_v7 = vpop.permute.xlu1 %1636  ;;  %v6415_v37 = vpop.permute.xlu0 %1638 }
 0x2d3   : > { %10192 = vst [vmem:[#allocation124_spill] sm:$0xff] %v6413_v7  ;;  %10193 = vst [vmem:[#allocation125_spill] sm:$0xff] %v6415_v37 }
 0x2d4   : > { %1967 = vrot.lane.b32.xlu1 %v6141_v10, %s5068_s11  ;;  %1965 = vrot.lane.b32.xlu0 %v6155_v39, %s5068_s11 }
 0x2d6   : > { %v6421_v25 = vpop.permute.xlu1 %1640  ;;  %v6423_v12 = vpop.permute.xlu0 %1409 }
 0x2d7   : > { %10194 = vst [vmem:[#allocation126_spill] sm:$0xff] %v6421_v25  ;;  %10195 = vst [vmem:[#allocation127_spill] sm:$0xff] %v6423_v12 }
 0x2d8   : > { %1971 = vrot.lane.b32.xlu1 %v6181_v3, %s5068_s11  ;;  %1969 = vrot.lane.b32.xlu0 %v6176_v33, %s5068_s11 }
 0x2da   : > { %v6429_v17 = vpop.permute.xlu1 %1407  ;;  %v6431_v7 = vpop.permute.xlu0 %1642 }
 0x2db   : > { %10196 = vst [vmem:[#allocation128_spill] sm:$0xff] %v6429_v17  ;;  %10197 = vst [vmem:[#allocation129_spill] sm:$0xff] %v6431_v7 }
 0x2dc   : > { %1975 = vrot.lane.b32.xlu1 %v6208_v62, %s5068_s11  ;;  %1973 = vrot.lane.b32.xlu0 %v6195_v38, %s5068_s11 }
 0x2de   : > { %v6437_v37 = vpop.permute.xlu1 %1411  ;;  %v6439_v25 = vpop.permute.xlu0 %1646 }
 0x2df   : > { %10198 = vst [vmem:[#allocation130_spill] sm:$0xff] %v6437_v37  ;;  %10199 = vst [vmem:[#allocation131_spill] sm:$0xff] %v6439_v25 }
 0x2e0   : > { %1979 = vrot.lane.b32.xlu1 %v6221_v28, %s5068_s11  ;;  %1977 = vrot.lane.b32.xlu0 %v5853_v54, %s5068_s11 }
 0x2e2   : > { %v6445_v12 = vpop.permute.xlu1 %1644  ;;  %v6447_v17 = vpop.permute.xlu0 %1413 }
 0x2e3   : > { %10200 = vst [vmem:[#allocation132_spill] sm:$0xff] %v6445_v12  ;;  %10201 = vst [vmem:[#allocation133_spill] sm:$0xff] %v6447_v17 }
 0x2e4   : > { %1983 = vrot.lane.b32.xlu1 %v6256_v6, %s5068_s11  ;;  %1981 = vrot.lane.b32.xlu0 %v6251_v23, %s5068_s11 }
 0x2e6   : > { %v6453_v7 = vpop.permute.xlu1 %1415  ;;  %v6455_v37 = vpop.permute.xlu0 %1417 }
 0x2e7   : > { %10202 = vst [vmem:[#allocation134_spill] sm:$0xff] %v6453_v7  ;;  %10203 = vst [vmem:[#allocation135_spill] sm:$0xff] %v6455_v37  ;;  %v6476_v37 = vld [vmem:[%s9810_s3 + $0x8] sm:$0xff] }
 0x2e8   : > { %1987 = vrot.lane.b32.xlu1 %v6283_v4, %s5068_s11  ;;  %1985 = vrot.lane.b32.xlu0 %v6270_v63, %s5068_s11 }
 0x2ea   : > { %v6461_v25 = vpop.permute.xlu1 %1648  ;;  %v6463_v12 = vpop.permute.xlu0 %1650 }
 0x2eb   : > { %10204 = vst [vmem:[#allocation136_spill] sm:$0xff] %v6461_v25  ;;  %10205 = vst [vmem:[#allocation137_spill] sm:$0xff] %v6463_v12  ;;  %v6482_v25 = vld [vmem:[%s9810_s3] sm:$0xff] }
 0x2ec   : > { %1991 = vrot.lane.b32.xlu1 %v6296_v19, %s5068_s11  ;;  %1989 = vrot.lane.b32.xlu0 %v6310_v56, %s5068_s11 }
 0x2ee   : > { %v6469_v17 = vpop.permute.xlu1 %1652  ;;  %v6471_v7 = vpop.permute.xlu0 %1421 }
 0x2ef   : > { %10206 = vst [vmem:[#allocation138_spill] sm:$0xff] %v6469_v17  ;;  %10207 = vst [vmem:[#allocation139_spill] sm:$0xff] %v6471_v7  ;;  %v6492_v17 = vld [vmem:[%s9810_s3 + $0x10] sm:$0xff]  ;;  %v6498_v7 = vld [vmem:[%s9810_s3 + $0x18] sm:$0xff] }
 0x2f0   : > { %2095 = vperm.xlu1 %4897, %v6476_v37   ;;  %2091 = vperm.xlu0 %4896, %v6482_v25  }
 0x2f2   : > { %v6485_v12 = vpop.permute.xlu1 %1419  ;;  %v6487_v55 = vpop.permute.xlu0 %1654 }
 0x2f3   : > { %10208 = vst [vmem:[#allocation140_spill] sm:$0xff] %v6485_v12  ;;  %10209 = vst [vmem:[#allocation141_spill] sm:$0xff] %v6487_v55  ;;  %v6508_v55 = vld [vmem:[%s9810_s3 + $0x20] sm:$0xff]  ;;  %v6514_v12 = vld [vmem:[%s9810_s3 + $0x28] sm:$0xff] }
 0x2f4   : > { %2099 = vperm.xlu1 %4897, %v6492_v17   ;;  %2103 = vperm.xlu0 %4896, %v6498_v7   ;;  %10212 = vst [vmem:[#allocation144_spill] sm:$0xff] %v6514_v12 }
 0x2f6   : > { %v6501_v31 = vpop.permute.xlu1 %1423  ;;  %v6503_v14 = vpop.permute.xlu0 %1658 }
 0x2f7   : > { %10210 = vst [vmem:[#allocation142_spill] sm:$0xff] %v6501_v31  ;;  %10211 = vst [vmem:[#allocation143_spill] sm:$0xff] %v6503_v14  ;;  %v6524_v14 = vld [vmem:[%s9810_s3 + $0x30] sm:$0xff]  ;;  %v6530_v31 = vld [vmem:[%s9810_s3 + $0x38] sm:$0xff] }
 0x2f8   : > { %2107 = vperm.xlu1 %4897, %v6508_v55   ;;  %2111 = vperm.xlu0 %4896, %v6514_v12   ;;  %10215 = vst [vmem:[#allocation147_spill] sm:$0xff] %v6524_v14  ;;  %10216 = vst [vmem:[#allocation148_spill] sm:$0xff] %v6530_v31 }
 0x2fa   : > { %v6517_v29 = vpop.permute.xlu1 %1656  ;;  %v6519_v48 = vpop.permute.xlu0 %1425 }
 0x2fb   : > { %10213 = vst [vmem:[#allocation145_spill] sm:$0xff] %v6517_v29  ;;  %10214 = vst [vmem:[#allocation146_spill] sm:$0xff] %v6519_v48  ;;  %v6540_v48 = vld [vmem:[%s9810_s3 + $0x40] sm:$0xff]  ;;  %v6546_v29 = vld [vmem:[%s9810_s3 + $0x48] sm:$0xff] }
 0x2fc   : > { %2115 = vperm.xlu1 %4897, %v6524_v14   ;;  %2119 = vperm.xlu0 %4896, %v6530_v31   ;;  %10219 = vst [vmem:[#allocation151_spill] sm:$0xff] %v6540_v48  ;;  %10220 = vst [vmem:[#allocation152_spill] sm:$0xff] %v6546_v29 }
 0x2fe   : > { %v6533_v26 = vpop.permute.xlu1 %1427  ;;  %v6535_v43 = vpop.permute.xlu0 %1429 }
 0x2ff   : > { %10217 = vst [vmem:[#allocation149_spill] sm:$0xff] %v6533_v26  ;;  %10218 = vst [vmem:[#allocation150_spill] sm:$0xff] %v6535_v43  ;;  %v6556_v43 = vld [vmem:[%s9810_s3 + $0x50] sm:$0xff]  ;;  %v6562_v26 = vld [vmem:[%s9810_s3 + $0x58] sm:$0xff] }
 0x300   : > { %2123 = vperm.xlu1 %4897, %v6540_v48   ;;  %2127 = vperm.xlu0 %4896, %v6546_v29   ;;  %10223 = vst [vmem:[#allocation155_spill] sm:$0xff] %v6556_v43  ;;  %10224 = vst [vmem:[#allocation156_spill] sm:$0xff] %v6562_v26 }
 0x302   : > { %v6549_v24 = vpop.permute.xlu1 %1660  ;;  %v6551_v22 = vpop.permute.xlu0 %1662 }
 0x303   : > { %10221 = vst [vmem:[#allocation153_spill] sm:$0xff] %v6549_v24  ;;  %10222 = vst [vmem:[#allocation154_spill] sm:$0xff] %v6551_v22  ;;  %v6572_v24 = vld [vmem:[%s9810_s3 + $0x60] sm:$0xff]  ;;  %v6578_v22 = vld [vmem:[%s9810_s3 + $0x68] sm:$0xff] }
 0x304   : > { %2131 = vperm.xlu1 %4897, %v6556_v43   ;;  %2135 = vperm.xlu0 %4896, %v6562_v26   ;;  %10227 = vst [vmem:[#allocation159_spill] sm:$0xff] %v6572_v24  ;;  %10228 = vst [vmem:[#allocation160_spill] sm:$0xff] %v6578_v22 }
 0x306   : > { %v6565_v30 = vpop.permute.xlu1 %1664  ;;  %v6567_v20 = vpop.permute.xlu0 %1433 }
 0x307   : > { %10225 = vst [vmem:[#allocation157_spill] sm:$0xff] %v6565_v30  ;;  %10226 = vst [vmem:[#allocation158_spill] sm:$0xff] %v6567_v20  ;;  %v6588_v20 = vld [vmem:[%s9810_s3 + $0x70] sm:$0xff]  ;;  %v6594_v30 = vld [vmem:[%s9810_s3 + $0x78] sm:$0xff] }
 0x308   : > { %2139 = vperm.xlu1 %4897, %v6572_v24   ;;  %2143 = vperm.xlu0 %4896, %v6578_v22   ;;  %10231 = vst [vmem:[#allocation163_spill] sm:$0xff] %v6588_v20  ;;  %10232 = vst [vmem:[#allocation164_spill] sm:$0xff] %v6594_v30 }
 0x30a   : > { %v6581_v19 = vpop.permute.xlu1 %1431  ;;  %v6583_v56 = vpop.permute.xlu0 %1666 }
 0x30b   : > { %10229 = vst [vmem:[#allocation161_spill] sm:$0xff] %v6581_v19  ;;  %10230 = vst [vmem:[#allocation162_spill] sm:$0xff] %v6583_v56  ;;  %v5071_v19 = vmov 4  }
 0x30c   : > { %2147 = vperm.xlu1 %4897, %v6588_v20   ;;  %2151 = vperm.xlu0 %4896, %v6594_v30  }
 0x30e   : > { %v6597_v4 = vpop.permute.xlu1 %1435  ;;  %v6599_v63 = vpop.permute.xlu0 %1670 }
 0x30f   : > { %10233 = vst [vmem:[#allocation165_spill] sm:$0xff] %v6597_v4  ;;  %10234 = vst [vmem:[#allocation166_spill] sm:$0xff] %v6599_v63 }
 0x310   : > { %4898 = vset.pattern.permute.xlu1 %v5071_v19  ;;  %4899 = vset.pattern.permute.xlu0 %v5071_v19 }
 0x311   : > { %2219 = vperm.xlu1 %4898, %v6482_v25   ;;  %2223 = vperm.xlu0 %4899, %v6476_v37  }
 0x312   : > { %v6603_v56 = vpop.permute.xlu1 %1668  ;;  %v6605_v6 = vpop.permute.xlu0 %1437 }
 0x313   : > { %10235 = vst [vmem:[#allocation167_spill] sm:$0xff] %v6603_v56  ;;  %10236 = vst [vmem:[#allocation168_spill] sm:$0xff] %v6605_v6 }
 0x315   : > { %2227 = vperm.xlu1 %4898, %v6492_v17   ;;  %2235 = vperm.xlu0 %4899, %v6508_v55  }
 0x316   : > { %v6609_v23 = vpop.permute.xlu1 %1439  ;;  %v6611_v4 = vpop.permute.xlu0 %1441 }
 0x317   : > { %10237 = vst [vmem:[#allocation169_spill] sm:$0xff] %v6609_v23  ;;  %10238 = vst [vmem:[#allocation170_spill] sm:$0xff] %v6611_v4 }
 0x319   : > { %2231 = vperm.xlu1 %4898, %v6498_v7   ;;  %2243 = vperm.xlu0 %4899, %v6524_v14  }
 0x31a   : > { %v6615_v19 = vpop.permute.xlu1 %1923  ;;  %v6617_v63 = vpop.permute.xlu0 %1921 }
 0x31b   : > { %10239 = vst [vmem:[#allocation171_spill] sm:$0xff] %v6615_v19  ;;  %10240 = vst [vmem:[#allocation172_spill] sm:$0xff] %v6617_v63 }
 0x31d   : > { %2239 = vperm.xlu1 %4898, %v6514_v12   ;;  %2251 = vperm.xlu0 %4899, %v6540_v48  }
 0x31e   : > { %v6621_v6 = vpop.permute.xlu1 %1927  ;;  %v6623_v56 = vpop.permute.xlu0 %1925 }
 0x31f   : > { %10241 = vst [vmem:[#allocation173_spill] sm:$0xff] %v6621_v6  ;;  %10242 = vst [vmem:[#allocation174_spill] sm:$0xff] %v6623_v56 }
 0x321   : > { %2247 = vperm.xlu1 %4898, %v6530_v31   ;;  %2259 = vperm.xlu0 %4899, %v6556_v43   ;;  %v10294_v43 = vld [vmem:[#allocation93_spill] sm:$0xff] }
 0x322   : > { %v6627_v4 = vpop.permute.xlu1 %1931  ;;  %v6629_v23 = vpop.permute.xlu0 %1929 }
 0x323   : > { %10243 = vst [vmem:[#allocation175_spill] sm:$0xff] %v6627_v4  ;;  %10244 = vst [vmem:[#allocation176_spill] sm:$0xff] %v6629_v23 }
 0x325   : > { %2255 = vperm.xlu1 %4898, %v6546_v29   ;;  %2267 = vperm.xlu0 %4899, %v6572_v24  }
 0x326   : > { %v6633_v63 = vpop.permute.xlu1 %1935  ;;  %v6635_v19 = vpop.permute.xlu0 %1933 }
 0x327   : > { %10245 = vst [vmem:[#allocation177_spill] sm:$0xff] %v6633_v63  ;;  %10246 = vst [vmem:[#allocation178_spill] sm:$0xff] %v6635_v19 }
 0x329   : > { %2263 = vperm.xlu1 %4898, %v6562_v26   ;;  %2275 = vperm.xlu0 %4899, %v6588_v20  }
 0x32a   : > { %v6639_v6 = vpop.permute.xlu1 %1939  ;;  %v6641_v56 = vpop.permute.xlu0 %1937 }
 0x32b   : > { %10247 = vst [vmem:[#allocation179_spill] sm:$0xff] %v6639_v6  ;;  %10248 = vst [vmem:[#allocation180_spill] sm:$0xff] %v6641_v56 }
 0x32d   : > { %2271 = vperm.xlu1 %4898, %v6578_v22  }
 0x32e   : > { %v6644_v4 = vpop.permute.xlu1 %1943  ;;  %v6646_v23 = vpop.permute.xlu0 %1941 }
 0x32f   : > { %10249 = vst [vmem:[#allocation181_spill] sm:$0xff] %v6644_v4  ;;  %10250 = vst [vmem:[#allocation182_spill] sm:$0xff] %v6646_v23 }
 0x331   : > { %2279 = vperm.xlu1 %4898, %v6594_v30  }
 0x332   : > { %v6649_v24 = vpop.permute.xlu1 %1947  ;;  %v6651_v63 = vpop.permute.xlu0 %1945 }
 0x333   : > { %10251 = vst [vmem:[#allocation183_spill] sm:$0xff] %v6649_v24  ;;  %10252 = vst [vmem:[#allocation184_spill] sm:$0xff] %v6651_v63 }
 0x336   : > { %v6653_v19 = vpop.permute.xlu1 %1951  ;;  %v6655_v26 = vpop.permute.xlu0 %1949 }
 0x337   : > { %10253 = vst [vmem:[#allocation185_spill] sm:$0xff] %v6653_v19  ;;  %10254 = vst [vmem:[#allocation186_spill] sm:$0xff] %v6655_v26 }
 0x33a   : > { %v6657_v20 = vpop.permute.xlu1 %1955  ;;  %v6659_v6 = vpop.permute.xlu0 %1953 }
 0x33b   : > { %10255 = vst [vmem:[#allocation187_spill] sm:$0xff] %v6657_v20  ;;  %10256 = vst [vmem:[#allocation188_spill] sm:$0xff] %v6659_v6 }
 0x33e   : > { %v6661_v56 = vpop.permute.xlu1 %1959  ;;  %v6663_v22 = vpop.permute.xlu0 %1957 }
 0x33f   : > { %10257 = vst [vmem:[#allocation189_spill] sm:$0xff] %v6661_v56  ;;  %10258 = vst [vmem:[#allocation190_spill] sm:$0xff] %v6663_v22 }
 0x342   : > { %v6665_v4 = vpop.permute.xlu1 %1963  ;;  %v6667_v23 = vpop.permute.xlu0 %1961 }
 0x343   : > { %10259 = vst [vmem:[#allocation191_spill] sm:$0xff] %v6665_v4  ;;  %10260 = vst [vmem:[#allocation192_spill] sm:$0xff] %v6667_v23 }
 0x346   : > { %v6669_v30 = vpop.permute.xlu1 %1967  ;;  %v6671_v24 = vpop.permute.xlu0 %1965 }
 0x347   : > { %10261 = vst [vmem:[#allocation193_spill] sm:$0xff] %v6669_v30  ;;  %10262 = vst [vmem:[#allocation194_spill] sm:$0xff] %v6671_v24 }
 0x34a   : > { %v6673_v63 = vpop.permute.xlu1 %1971  ;;  %v6675_v19 = vpop.permute.xlu0 %1969 }
 0x34b   : > { %10263 = vst [vmem:[#allocation195_spill] sm:$0xff] %v6673_v63  ;;  %10264 = vst [vmem:[#allocation196_spill] sm:$0xff] %v6675_v19 }
 0x34e   : > { %v6677_v26 = vpop.permute.xlu1 %1975  ;;  %v6679_v20 = vpop.permute.xlu0 %1973 }
 0x34f   : > { %10265 = vst [vmem:[#allocation197_spill] sm:$0xff] %v6677_v26  ;;  %10266 = vst [vmem:[#allocation198_spill] sm:$0xff] %v6679_v20 }
 0x352   : > { %v6681_v6 = vpop.permute.xlu1 %1979  ;;  %v6683_v56 = vpop.permute.xlu0 %1977 }
 0x353   : > { %10267 = vst [vmem:[#allocation199_spill] sm:$0xff] %v6681_v6  ;;  %10268 = vst [vmem:[#allocation200_spill] sm:$0xff] %v6683_v56 }
 0x356   : > { %v6685_v22 = vpop.permute.xlu1 %1983  ;;  %v6687_v4 = vpop.permute.xlu0 %1981 }
 0x357   : > { %10269 = vst [vmem:[#allocation201_spill] sm:$0xff] %v6685_v22  ;;  %10270 = vst [vmem:[#allocation202_spill] sm:$0xff] %v6687_v4 }
 0x35a   : > { %v6689_v23 = vpop.permute.xlu1 %1987  ;;  %v6691_v30 = vpop.permute.xlu0 %1985 }
 0x35b   : > { %10271 = vst [vmem:[#allocation203_spill] sm:$0xff] %v6689_v23  ;;  %10272 = vst [vmem:[#allocation204_spill] sm:$0xff] %v6691_v30 }
 0x35e   : > { %v6693_v24 = vpop.permute.xlu1 %1991  ;;  %v6695_v63 = vpop.permute.xlu0 %1989 }
 0x35f   : > { %10273 = vst [vmem:[#allocation205_spill] sm:$0xff] %v6693_v24  ;;  %10274 = vst [vmem:[#allocation206_spill] sm:$0xff] %v6695_v63 }
 0x36f   : > { %v6697_v19 = vpop.permute.xlu1 %2095  ;;  %v6699_v26 = vpop.permute.xlu0 %2091 }
 0x370   : > { %10275 = vst [vmem:[#allocation207_spill] sm:$0xff] %v6697_v19  ;;  %10276 = vst [vmem:[#allocation208_spill] sm:$0xff] %v6699_v26 }
 0x373   : > { %v6701_v20 = vpop.permute.xlu1 %2099  ;;  %v6703_v6 = vpop.permute.xlu0 %2103 }
 0x374   : > { %10277 = vst [vmem:[#allocation209_spill] sm:$0xff] %v6701_v20  ;;  %10278 = vst [vmem:[#allocation210_spill] sm:$0xff] %v6703_v6 }
 0x377   : > { %v6705_v56 = vpop.permute.xlu1 %2107  ;;  %v6707_v22 = vpop.permute.xlu0 %2111 }
 0x378   : > { %10279 = vst [vmem:[#allocation211_spill] sm:$0xff] %v6705_v56  ;;  %10280 = vst [vmem:[#allocation212_spill] sm:$0xff] %v6707_v22 }
 0x37b   : > { %v6709_v4 = vpop.permute.xlu1 %2115  ;;  %v6711_v23 = vpop.permute.xlu0 %2119 }
 0x37c   : > { %10281 = vst [vmem:[#allocation213_spill] sm:$0xff] %v6709_v4  ;;  %10282 = vst [vmem:[#allocation214_spill] sm:$0xff] %v6711_v23 }
 0x37f   : > { %v6713_v30 = vpop.permute.xlu1 %2123  ;;  %v6715_v24 = vpop.permute.xlu0 %2127 }
 0x380   : > { %10283 = vst [vmem:[#allocation215_spill] sm:$0xff] %v6713_v30  ;;  %10284 = vst [vmem:[#allocation216_spill] sm:$0xff] %v6715_v24 }
 0x383   : > { %v6717_v63 = vpop.permute.xlu1 %2131  ;;  %v6719_v19 = vpop.permute.xlu0 %2135 }
 0x384   : > { %10285 = vst [vmem:[#allocation217_spill] sm:$0xff] %v6717_v63  ;;  %10286 = vst [vmem:[#allocation218_spill] sm:$0xff] %v6719_v19 }
 0x387   : > { %v6721_v26 = vpop.permute.xlu1 %2139  ;;  %v6723_v20 = vpop.permute.xlu0 %2143 }
 0x388   : > { %10287 = vst [vmem:[#allocation219_spill] sm:$0xff] %v6721_v26  ;;  %10288 = vst [vmem:[#allocation220_spill] sm:$0xff] %v6723_v20 }
 0x38b   : > { %v6725_v6 = vpop.permute.xlu1 %2147  ;;  %v6727_v56 = vpop.permute.xlu0 %2151 }
 0x38c   : > { %10289 = vst [vmem:[#allocation221_spill] sm:$0xff] %v6725_v6  ;;  %10290 = vst [vmem:[#allocation222_spill] sm:$0xff] %v6727_v56 }
 0x390   : > { %v2220_v22 = vpop.permute.xlu1 %2219  ;;  %v2224_v30 = vpop.permute.xlu0 %2223 }
 0x391   : > { %v2282_v4 = vmul.f32 %v2220_v22, %v5714_v1  ;;  %v2283_v23 = vmul.f32 %v2220_v22, %v5721_v34  ;;  %v2284_v19 = vmul.f32 %v2220_v22, %v5724_v49  ;;  %v2285_v26 = vmul.f32 %v2224_v30, %v5749_v46 }
 0x392   : > { %v2286_v56 = vmul.f32 %v2224_v30, %v5770_v13  ;;  %v2287_v20 = vmul.f32 %v2224_v30, %v5759_v53 }
 0x393   : > { %2380 = vrot.lane.b32.xlu1 %v2283_v23, %s5072_s22  ;;  %2378 = vrot.lane.b32.xlu0 %v2282_v4, %s5072_s22 }
 0x394   : > { %v2228_v6 = vpop.permute.xlu1 %2227 }
 0x395   : > { %v2288_v23 = vmul.f32 %v2228_v6, %v5800_v52  ;;  %v2289_v4 = vmul.f32 %v2228_v6, %v5811_v11 }
 0x397   : > { %2382 = vrot.lane.b32.xlu0 %v2284_v19, %s5072_s22  ;;  %2384 = vrot.lane.b32.xlu1 %v2285_v26, %s5072_s22  ;;  %v2290_v26 = vmul.f32 %v2228_v6, %v5814_v51 }
 0x398   : > { %v2232_v22 = vpop.permute.xlu1 %2231 }
 0x399   : > { %v2291_v19 = vmul.f32 %v2232_v22, %v5846_v61  ;;  %v2292_v30 = vmul.f32 %v2232_v22, %v5869_v57 }
 0x39b   : > { %2386 = vrot.lane.b32.xlu0 %v2286_v56, %s5072_s22  ;;  %2388 = vrot.lane.b32.xlu1 %v2287_v20, %s5072_s22  ;;  %v2293_v20 = vmul.f32 %v2232_v22, %v5860_v58  ;;  %v2236_v56 = vpop.permute.xlu0 %2235 }
 0x39c   : > { %v2240_v6 = vpop.permute.xlu1 %2239 }
 0x39d   : > { %v2298_v22 = vmul.f32 %v2240_v6, %v5931_v2 }
 0x39f   : > { %2390 = vrot.lane.b32.xlu0 %v2288_v23, %s5072_s22  ;;  %2392 = vrot.lane.b32.xlu1 %v2289_v4, %s5072_s22  ;;  %v2294_v23 = vmul.f32 %v2236_v56, %v5888_v27  ;;  %v2295_v4 = vmul.f32 %v2236_v56, %v5893_v60 }
 0x3a3   : > { %2394 = vrot.lane.b32.xlu0 %v2290_v26, %s5072_s22  ;;  %2396 = vrot.lane.b32.xlu1 %v2291_v19, %s5072_s22  ;;  %v2296_v26 = vmul.f32 %v2236_v56, %v5903_v32  ;;  %v2297_v19 = vmul.f32 %v2240_v6, %v5912_v41  ;;  %v2248_v56 = vpop.permute.xlu1 %2247 }
 0x3a7   : > { %2398 = vrot.lane.b32.xlu0 %v2292_v30, %s5072_s22  ;;  %2400 = vrot.lane.b32.xlu1 %v2293_v20, %s5072_s22  ;;  %v2299_v30 = vmul.f32 %v2240_v6, %v5921_v16  ;;  %v2244_v20 = vpop.permute.xlu0 %2243  ;;  %v2304_v6 = vmul.f32 %v2248_v56, %v5995_v59 }
 0x3ab   : > { %2404 = vrot.lane.b32.xlu1 %v2295_v4, %s5072_s22  ;;  %2402 = vrot.lane.b32.xlu0 %v2294_v23, %s5072_s22  ;;  %v2300_v4 = vmul.f32 %v2244_v20, %v5944_v8  ;;  %v2301_v23 = vmul.f32 %v2244_v20, %v5949_v0 }
 0x3af   : > { %2408 = vrot.lane.b32.xlu1 %v2297_v19, %s5072_s22  ;;  %2406 = vrot.lane.b32.xlu0 %v2296_v26, %s5072_s22  ;;  %v2302_v26 = vmul.f32 %v2244_v20, %v5959_v35  ;;  %v2303_v19 = vmul.f32 %v2248_v56, %v5968_v47  ;;  %v2256_v20 = vpop.permute.xlu1 %2255 }
 0x3b3   : > { %2412 = vrot.lane.b32.xlu1 %v2299_v30, %s5072_s22  ;;  %2410 = vrot.lane.b32.xlu0 %v2298_v22, %s5072_s22  ;;  %v2305_v22 = vmul.f32 %v2248_v56, %v5981_v21  ;;  %v2252_v30 = vpop.permute.xlu0 %2251  ;;  %v2310_v56 = vmul.f32 %v2256_v20, %v6075_v15 }
 0x3b7   : > { %2416 = vrot.lane.b32.xlu1 %v2301_v23, %s5072_s22  ;;  %2414 = vrot.lane.b32.xlu0 %v2300_v4, %s5072_s22  ;;  %v2306_v23 = vmul.f32 %v2252_v30, %v6016_v36  ;;  %v2307_v4 = vmul.f32 %v2252_v30, %v6021_v40 }
 0x3bb   : > { %2420 = vrot.lane.b32.xlu1 %v2303_v19, %s5072_s22  ;;  %2418 = vrot.lane.b32.xlu0 %v2302_v26, %s5072_s22  ;;  %v2308_v26 = vmul.f32 %v2252_v30, %v6035_v44  ;;  %v2309_v19 = vmul.f32 %v2256_v20, %v6048_v45  ;;  %v2264_v30 = vpop.permute.xlu1 %2263 }
 0x3bf   : > { %2424 = vrot.lane.b32.xlu1 %v2305_v22, %s5072_s22  ;;  %2422 = vrot.lane.b32.xlu0 %v2304_v6, %s5072_s22  ;;  %v2311_v6 = vmul.f32 %v2256_v20, %v6061_v5  ;;  %v2260_v22 = vpop.permute.xlu0 %2259  ;;  %v5073_v20 = vmov 5  }
 0x3c0   : > { %4901 = vset.pattern.permute.xlu1 %v5073_v20  ;;  %4900 = vset.pattern.permute.xlu0 %v5073_v20 }
 0x3c3   : > { %2428 = vrot.lane.b32.xlu1 %v2307_v4, %s5072_s22  ;;  %2426 = vrot.lane.b32.xlu0 %v2306_v23, %s5072_s22  ;;  %v2312_v4 = vmul.f32 %v2260_v22, %v6096_v42  ;;  %v2313_v23 = vmul.f32 %v2260_v22, %v6101_v18  ;;  %v2268_v63 = vpop.permute.xlu0 %2267 }
 0x3c7   : > { %2432 = vrot.lane.b32.xlu1 %v2309_v19, %s5072_s22  ;;  %2430 = vrot.lane.b32.xlu0 %v2308_v26, %s5072_s22  ;;  %v2314_v26 = vmul.f32 %v2260_v22, %v6115_v50  ;;  %v2315_v19 = vmul.f32 %v2264_v30, %v6128_v9  ;;  %v2318_v22 = vmul.f32 %v2268_v63, %v6176_v33 }
 0x3cb   : > { %2436 = vrot.lane.b32.xlu1 %v2311_v6, %s5072_s22  ;;  %2434 = vrot.lane.b32.xlu0 %v2310_v56, %s5072_s22  ;;  %v2316_v56 = vmul.f32 %v2264_v30, %v6155_v39  ;;  %v2317_v6 = vmul.f32 %v2264_v30, %v6141_v10 }
 0x3cf   : > { %2440 = vrot.lane.b32.xlu1 %v2313_v23, %s5072_s22  ;;  %2438 = vrot.lane.b32.xlu0 %v2312_v4, %s5072_s22  ;;  %v2319_v4 = vmul.f32 %v2268_v63, %v6181_v3  ;;  %v2272_v23 = vpop.permute.xlu1 %2271 }
 0x3d0   : > { %v2322_v30 = vmul.f32 %v2272_v23, %v5853_v54  ;;  %v2323_v20 = vmul.f32 %v2272_v23, %v6221_v28 }
 0x3d3   : > { %2444 = vrot.lane.b32.xlu1 %v2315_v19, %s5072_s22  ;;  %2442 = vrot.lane.b32.xlu0 %v2314_v26, %s5072_s22  ;;  %v2320_v26 = vmul.f32 %v2268_v63, %v6195_v38  ;;  %v2321_v19 = vmul.f32 %v2272_v23, %v6208_v62  ;;  %v2280_v63 = vpop.permute.xlu1 %2279  ;;  %v10295_v23 = vld [vmem:[#allocation99_spill] sm:$0xff] }
 0x3d4   : > { %v2327_v29 = vmul.f32 %v2280_v63, %v10294_v43 }
 0x3d7   : > { %2448 = vrot.lane.b32.xlu1 %v2317_v6, %s5072_s22  ;;  %2446 = vrot.lane.b32.xlu0 %v2316_v56, %s5072_s22  ;;  %v2276_v56 = vpop.permute.xlu0 %2275  ;;  %v10291_v6 = vld [vmem:[#allocation86_spill] sm:$0xff] }
 0x3db   : > { %2452 = vrot.lane.b32.xlu1 %v2319_v4, %s5072_s22  ;;  %2450 = vrot.lane.b32.xlu0 %v2318_v22, %s5072_s22  ;;  %v2324_v4 = vmul.f32 %v2276_v56, %v10291_v6  ;;  %v10292_v22 = vld [vmem:[#allocation87_spill] sm:$0xff] }
 0x3dc   : > { %v2325_v24 = vmul.f32 %v2276_v56, %v10292_v22 }
 0x3df   : > { %2456 = vrot.lane.b32.xlu1 %v2321_v19, %s5072_s22  ;;  %2454 = vrot.lane.b32.xlu0 %v2320_v26, %s5072_s22  ;;  %v10293_v19 = vld [vmem:[#allocation90_spill] sm:$0xff] }
 0x3e0   : > { %v2326_v26 = vmul.f32 %v2276_v56, %v10293_v19 }
 0x3e3   : > { %2460 = vrot.lane.b32.xlu1 %v2323_v20, %s5072_s22  ;;  %2458 = vrot.lane.b32.xlu0 %v2322_v30, %s5072_s22  ;;  %v2328_v20 = vmul.f32 %v2280_v63, %v10295_v23  ;;  %v10296_v30 = vld [vmem:[#allocation96_spill] sm:$0xff] }
 0x3e4   : > { %v2329_v48 = vmul.f32 %v2280_v63, %v10296_v30 }
 0x3e7   : > { %2464 = vrot.lane.b32.xlu1 %v2325_v24, %s5072_s22  ;;  %2462 = vrot.lane.b32.xlu0 %v2324_v4, %s5072_s22 }
 0x3eb   : > { %2468 = vrot.lane.b32.xlu1 %v2327_v29, %s5072_s22  ;;  %2466 = vrot.lane.b32.xlu0 %v2326_v26, %s5072_s22 }
 0x3ef   : > { %2472 = vrot.lane.b32.xlu1 %v2329_v48, %s5072_s22  ;;  %2470 = vrot.lane.b32.xlu0 %v2328_v20, %s5072_s22 }
 0x3f3   : > { %2573 = vrot.lane.b32.xlu1 %v5721_v34, %s5074_s25  ;;  %2571 = vrot.lane.b32.xlu0 %v5714_v1, %s5074_s25 }
 0x3f7   : > { %2577 = vrot.lane.b32.xlu1 %v5749_v46, %s5074_s25  ;;  %2575 = vrot.lane.b32.xlu0 %v5724_v49, %s5074_s25 }
 0x3fb   : > { %2581 = vrot.lane.b32.xlu1 %v5759_v53, %s5074_s25  ;;  %2579 = vrot.lane.b32.xlu0 %v5770_v13, %s5074_s25 }
 0x3ff   : > { %2585 = vrot.lane.b32.xlu1 %v5811_v11, %s5074_s25  ;;  %2583 = vrot.lane.b32.xlu0 %v5800_v52, %s5074_s25 }
 0x403   : > { %2589 = vrot.lane.b32.xlu1 %v5846_v61, %s5074_s25  ;;  %2587 = vrot.lane.b32.xlu0 %v5814_v51, %s5074_s25 }
 0x405   : > { %v6845_v24 = vpop.permute.xlu1 %2380  ;;  %v6847_v29 = vpop.permute.xlu0 %2378 }
 0x406   : > { %10297 = vst [vmem:[#allocation223_spill] sm:$0xff] %v6845_v24  ;;  %10298 = vst [vmem:[#allocation224_spill] sm:$0xff] %v6847_v29  ;;  %v10345_v29 = vld [vmem:[#allocation151_spill] sm:$0xff] }
 0x407   : > { %2593 = vrot.lane.b32.xlu1 %v5860_v58, %s5074_s25  ;;  %2591 = vrot.lane.b32.xlu0 %v5869_v57, %s5074_s25 }
 0x409   : > { %v6853_v48 = vpop.permute.xlu1 %2384  ;;  %v6855_v56 = vpop.permute.xlu0 %2382 }
 0x40a   : > { %10299 = vst [vmem:[#allocation225_spill] sm:$0xff] %v6853_v48  ;;  %10300 = vst [vmem:[#allocation226_spill] sm:$0xff] %v6855_v56 }
 0x40b   : > { %2597 = vrot.lane.b32.xlu1 %v5893_v60, %s5074_s25  ;;  %2595 = vrot.lane.b32.xlu0 %v5888_v27, %s5074_s25 }
 0x40d   : > { %v6861_v4 = vpop.permute.xlu1 %2388  ;;  %v6863_v63 = vpop.permute.xlu0 %2386 }
 0x40e   : > { %10301 = vst [vmem:[#allocation227_spill] sm:$0xff] %v6861_v4  ;;  %10302 = vst [vmem:[#allocation228_spill] sm:$0xff] %v6863_v63 }
 0x40f   : > { %2601 = vrot.lane.b32.xlu1 %v5912_v41, %s5074_s25  ;;  %2599 = vrot.lane.b32.xlu0 %v5903_v32, %s5074_s25 }
 0x411   : > { %v6869_v26 = vpop.permute.xlu1 %2392  ;;  %v6871_v20 = vpop.permute.xlu0 %2390 }
 0x412   : > { %10303 = vst [vmem:[#allocation229_spill] sm:$0xff] %v6869_v26  ;;  %10304 = vst [vmem:[#allocation230_spill] sm:$0xff] %v6871_v20 }
 0x413   : > { %2605 = vrot.lane.b32.xlu1 %v5921_v16, %s5074_s25  ;;  %2603 = vrot.lane.b32.xlu0 %v5931_v2, %s5074_s25 }
 0x415   : > { %v6877_v48 = vpop.permute.xlu1 %2396  ;;  %v6879_v4 = vpop.permute.xlu0 %2394 }
 0x416   : > { %10305 = vst [vmem:[#allocation231_spill] sm:$0xff] %v6877_v48  ;;  %10306 = vst [vmem:[#allocation232_spill] sm:$0xff] %v6879_v4 }
 0x417   : > { %2609 = vrot.lane.b32.xlu1 %v5949_v0, %s5074_s25  ;;  %2607 = vrot.lane.b32.xlu0 %v5944_v8, %s5074_s25 }
 0x419   : > { %v6885_v63 = vpop.permute.xlu1 %2400  ;;  %v6887_v26 = vpop.permute.xlu0 %2398 }
 0x41a   : > { %10307 = vst [vmem:[#allocation233_spill] sm:$0xff] %v6885_v63  ;;  %10308 = vst [vmem:[#allocation234_spill] sm:$0xff] %v6887_v26 }
 0x41b   : > { %2613 = vrot.lane.b32.xlu1 %v5968_v47, %s5074_s25  ;;  %2611 = vrot.lane.b32.xlu0 %v5959_v35, %s5074_s25 }
 0x41d   : > { %v6893_v20 = vpop.permute.xlu1 %2404  ;;  %v6895_v48 = vpop.permute.xlu0 %2402 }
 0x41e   : > { %10309 = vst [vmem:[#allocation235_spill] sm:$0xff] %v6893_v20  ;;  %10310 = vst [vmem:[#allocation236_spill] sm:$0xff] %v6895_v48 }
 0x41f   : > { %2617 = vrot.lane.b32.xlu1 %v5981_v21, %s5074_s25  ;;  %2615 = vrot.lane.b32.xlu0 %v5995_v59, %s5074_s25 }
 0x421   : > { %v6901_v4 = vpop.permute.xlu1 %2408  ;;  %v6903_v63 = vpop.permute.xlu0 %2406 }
 0x422   : > { %10311 = vst [vmem:[#allocation237_spill] sm:$0xff] %v6901_v4  ;;  %10312 = vst [vmem:[#allocation238_spill] sm:$0xff] %v6903_v63 }
 0x423   : > { %2621 = vrot.lane.b32.xlu1 %v6021_v40, %s5074_s25  ;;  %2619 = vrot.lane.b32.xlu0 %v6016_v36, %s5074_s25 }
 0x425   : > { %v6909_v26 = vpop.permute.xlu1 %2412  ;;  %v6911_v20 = vpop.permute.xlu0 %2410 }
 0x426   : > { %10313 = vst [vmem:[#allocation239_spill] sm:$0xff] %v6909_v26  ;;  %10314 = vst [vmem:[#allocation240_spill] sm:$0xff] %v6911_v20 }
 0x427   : > { %2625 = vrot.lane.b32.xlu1 %v6048_v45, %s5074_s25  ;;  %2623 = vrot.lane.b32.xlu0 %v6035_v44, %s5074_s25 }
 0x429   : > { %v6917_v48 = vpop.permute.xlu1 %2416  ;;  %v6919_v4 = vpop.permute.xlu0 %2414 }
 0x42a   : > { %10315 = vst [vmem:[#allocation241_spill] sm:$0xff] %v6917_v48  ;;  %10316 = vst [vmem:[#allocation242_spill] sm:$0xff] %v6919_v4 }
 0x42b   : > { %2629 = vrot.lane.b32.xlu1 %v6061_v5, %s5074_s25  ;;  %2627 = vrot.lane.b32.xlu0 %v6075_v15, %s5074_s25 }
 0x42d   : > { %v6925_v63 = vpop.permute.xlu1 %2420  ;;  %v6927_v26 = vpop.permute.xlu0 %2418 }
 0x42e   : > { %10317 = vst [vmem:[#allocation243_spill] sm:$0xff] %v6925_v63  ;;  %10318 = vst [vmem:[#allocation244_spill] sm:$0xff] %v6927_v26 }
 0x42f   : > { %2633 = vrot.lane.b32.xlu1 %v6101_v18, %s5074_s25  ;;  %2631 = vrot.lane.b32.xlu0 %v6096_v42, %s5074_s25 }
 0x431   : > { %v6933_v20 = vpop.permute.xlu1 %2424  ;;  %v6935_v48 = vpop.permute.xlu0 %2422 }
 0x432   : > { %10319 = vst [vmem:[#allocation245_spill] sm:$0xff] %v6933_v20  ;;  %10320 = vst [vmem:[#allocation246_spill] sm:$0xff] %v6935_v48 }
 0x433   : > { %2637 = vrot.lane.b32.xlu1 %v6128_v9, %s5074_s25  ;;  %2635 = vrot.lane.b32.xlu0 %v6115_v50, %s5074_s25 }
 0x435   : > { %v6941_v4 = vpop.permute.xlu1 %2428  ;;  %v6943_v63 = vpop.permute.xlu0 %2426 }
 0x436   : > { %10321 = vst [vmem:[#allocation247_spill] sm:$0xff] %v6941_v4  ;;  %10322 = vst [vmem:[#allocation248_spill] sm:$0xff] %v6943_v63 }
 0x437   : > { %2641 = vrot.lane.b32.xlu1 %v6141_v10, %s5074_s25  ;;  %2639 = vrot.lane.b32.xlu0 %v6155_v39, %s5074_s25 }
 0x439   : > { %v6949_v26 = vpop.permute.xlu1 %2432  ;;  %v6951_v20 = vpop.permute.xlu0 %2430 }
 0x43a   : > { %10323 = vst [vmem:[#allocation249_spill] sm:$0xff] %v6949_v26  ;;  %10324 = vst [vmem:[#allocation250_spill] sm:$0xff] %v6951_v20 }
 0x43b   : > { %2645 = vrot.lane.b32.xlu1 %v6181_v3, %s5074_s25  ;;  %2643 = vrot.lane.b32.xlu0 %v6176_v33, %s5074_s25 }
 0x43d   : > { %v6957_v48 = vpop.permute.xlu1 %2436  ;;  %v6959_v4 = vpop.permute.xlu0 %2434 }
 0x43e   : > { %10325 = vst [vmem:[#allocation251_spill] sm:$0xff] %v6957_v48  ;;  %10326 = vst [vmem:[#allocation252_spill] sm:$0xff] %v6959_v4 }
 0x43f   : > { %2649 = vrot.lane.b32.xlu1 %v6208_v62, %s5074_s25  ;;  %2647 = vrot.lane.b32.xlu0 %v6195_v38, %s5074_s25 }
 0x441   : > { %v6965_v63 = vpop.permute.xlu1 %2440  ;;  %v6967_v26 = vpop.permute.xlu0 %2438 }
 0x442   : > { %10327 = vst [vmem:[#allocation253_spill] sm:$0xff] %v6965_v63  ;;  %10328 = vst [vmem:[#allocation254_spill] sm:$0xff] %v6967_v26 }
 0x443   : > { %2653 = vrot.lane.b32.xlu1 %v6221_v28, %s5074_s25  ;;  %2651 = vrot.lane.b32.xlu0 %v5853_v54, %s5074_s25 }
 0x445   : > { %v6973_v20 = vpop.permute.xlu1 %2444  ;;  %v6975_v48 = vpop.permute.xlu0 %2442 }
 0x446   : > { %10329 = vst [vmem:[#allocation255_spill] sm:$0xff] %v6973_v20  ;;  %10330 = vst [vmem:[#allocation256_spill] sm:$0xff] %v6975_v48 }
 0x447   : > { %2657 = vrot.lane.b32.xlu1 %v10292_v22, %s5074_s25  ;;  %2655 = vrot.lane.b32.xlu0 %v10291_v6, %s5074_s25 }
 0x449   : > { %v6981_v4 = vpop.permute.xlu1 %2448  ;;  %v6983_v63 = vpop.permute.xlu0 %2446 }
 0x44a   : > { %10331 = vst [vmem:[#allocation257_spill] sm:$0xff] %v6981_v4  ;;  %10332 = vst [vmem:[#allocation258_spill] sm:$0xff] %v6983_v63 }
 0x44b   : > { %2661 = vrot.lane.b32.xlu1 %v10294_v43, %s5074_s25  ;;  %2659 = vrot.lane.b32.xlu0 %v10293_v19, %s5074_s25 }
 0x44d   : > { %v6989_v26 = vpop.permute.xlu1 %2452  ;;  %v6991_v20 = vpop.permute.xlu0 %2450 }
 0x44e   : > { %10333 = vst [vmem:[#allocation259_spill] sm:$0xff] %v6989_v26  ;;  %10334 = vst [vmem:[#allocation260_spill] sm:$0xff] %v6991_v20 }
 0x44f   : > { %2665 = vrot.lane.b32.xlu1 %v10296_v30, %s5074_s25  ;;  %2663 = vrot.lane.b32.xlu0 %v10295_v23, %s5074_s25 }
 0x451   : > { %v6997_v48 = vpop.permute.xlu1 %2456  ;;  %v6999_v4 = vpop.permute.xlu0 %2454 }
 0x452   : > { %10335 = vst [vmem:[#allocation261_spill] sm:$0xff] %v6997_v48  ;;  %10336 = vst [vmem:[#allocation262_spill] sm:$0xff] %v6999_v4 }
 0x453   : > { %2769 = vperm.xlu1 %4901, %v6476_v37   ;;  %2765 = vperm.xlu0 %4900, %v6482_v25  }
 0x455   : > { %v7003_v63 = vpop.permute.xlu1 %2460  ;;  %v7005_v56 = vpop.permute.xlu0 %2458 }
 0x456   : > { %10337 = vst [vmem:[#allocation263_spill] sm:$0xff] %v7003_v63  ;;  %10338 = vst [vmem:[#allocation264_spill] sm:$0xff] %v7005_v56 }
 0x457   : > { %2773 = vperm.xlu1 %4901, %v6492_v17   ;;  %2777 = vperm.xlu0 %4900, %v6498_v7  }
 0x459   : > { %v7009_v20 = vpop.permute.xlu1 %2464  ;;  %v7011_v26 = vpop.permute.xlu0 %2462 }
 0x45a   : > { %10339 = vst [vmem:[#allocation265_spill] sm:$0xff] %v7009_v20  ;;  %10340 = vst [vmem:[#allocation266_spill] sm:$0xff] %v7011_v26  ;;  %v10346_v20 = vld [vmem:[#allocation152_spill] sm:$0xff] }
 0x45b   : > { %2781 = vperm.xlu1 %4901, %v6508_v55   ;;  %2785 = vperm.xlu0 %4900, %v6514_v12   ;;  %v10349_v12 = vld [vmem:[#allocation155_spill] sm:$0xff] }
 0x45d   : > { %v7015_v48 = vpop.permute.xlu1 %2468  ;;  %v7017_v4 = vpop.permute.xlu0 %2466 }
 0x45e   : > { %10341 = vst [vmem:[#allocation267_spill] sm:$0xff] %v7015_v48  ;;  %10342 = vst [vmem:[#allocation268_spill] sm:$0xff] %v7017_v4  ;;  %v10350_v48 = vld [vmem:[#allocation156_spill] sm:$0xff] }
 0x45f   : > { %2789 = vperm.xlu1 %4901, %v6524_v14   ;;  %2793 = vperm.xlu0 %4900, %v6530_v31   ;;  %v10353_v31 = vld [vmem:[#allocation159_spill] sm:$0xff] }
 0x461   : > { %v7021_v63 = vpop.permute.xlu1 %2472  ;;  %v7023_v56 = vpop.permute.xlu0 %2470 }
 0x462   : > { %10343 = vst [vmem:[#allocation269_spill] sm:$0xff] %v7021_v63  ;;  %10344 = vst [vmem:[#allocation270_spill] sm:$0xff] %v7023_v56  ;;  %v10354_v63 = vld [vmem:[#allocation160_spill] sm:$0xff] }
 0x463   : > { %2797 = vperm.xlu1 %4901, %v10345_v29   ;;  %2801 = vperm.xlu0 %4900, %v10346_v20   ;;  %v10357_v20 = vld [vmem:[#allocation163_spill] sm:$0xff] }
 0x465   : > { %v7027_v26 = vpop.permute.xlu1 %2573  ;;  %v7029_v24 = vpop.permute.xlu0 %2571 }
 0x466   : > { %10347 = vst [vmem:[#allocation271_spill] sm:$0xff] %v7027_v26  ;;  %10348 = vst [vmem:[#allocation272_spill] sm:$0xff] %v7029_v24  ;;  %v10358_v26 = vld [vmem:[#allocation164_spill] sm:$0xff] }
 0x467   : > { %2805 = vperm.xlu1 %4901, %v10349_v12   ;;  %2809 = vperm.xlu0 %4900, %v10350_v48  }
 0x469   : > { %v7033_v4 = vpop.permute.xlu1 %2577  ;;  %v7035_v14 = vpop.permute.xlu0 %2575 }
 0x46a   : > { %10351 = vst [vmem:[#allocation156_spill] sm:$0xff] %v7033_v4  ;;  %10352 = vst [vmem:[#allocation273_spill] sm:$0xff] %v7035_v14  ;;  %v5076_v4 = vmov 6  }
 0x46b   : > { %2813 = vperm.xlu1 %4901, %v10353_v31   ;;  %2817 = vperm.xlu0 %4900, %v10354_v63  }
 0x46d   : > { %v7039_v56 = vpop.permute.xlu1 %2581  ;;  %v7041_v29 = vpop.permute.xlu0 %2579 }
 0x46e   : > { %10355 = vst [vmem:[#allocation159_spill] sm:$0xff] %v7039_v56  ;;  %10356 = vst [vmem:[#allocation160_spill] sm:$0xff] %v7041_v29 }
 0x46f   : > { %2821 = vperm.xlu1 %4901, %v10357_v20   ;;  %2825 = vperm.xlu0 %4900, %v10358_v26  }
 0x471   : > { %v7045_v24 = vpop.permute.xlu1 %2585  ;;  %v7047_v12 = vpop.permute.xlu0 %2583 }
 0x472   : > { %10359 = vst [vmem:[#allocation163_spill] sm:$0xff] %v7045_v24  ;;  %10360 = vst [vmem:[#allocation164_spill] sm:$0xff] %v7047_v12 }
 0x473   : > { %2892 = vrot.lane.b32.xlu1 %v5714_v1, %s5075_s24  ;;  %2894 = vrot.lane.b32.xlu0 %v5721_v34, %s5075_s24 }
 0x474   : > { %4902 = vset.pattern.permute.xlu1 %v5076_v4  ;;  %4903 = vset.pattern.permute.xlu0 %v5076_v4 }
 0x475   : > { %v7053_v56 = vpop.permute.xlu1 %2589  ;;  %v7055_v29 = vpop.permute.xlu0 %2587 }
 0x476   : > { %10361 = vst [vmem:[#allocation274_spill] sm:$0xff] %v7053_v56  ;;  %10362 = vst [vmem:[#allocation275_spill] sm:$0xff] %v7055_v29 }
 0x477   : > { %2896 = vrot.lane.b32.xlu1 %v5724_v49, %s5075_s24  ;;  %2898 = vrot.lane.b32.xlu0 %v5749_v46, %s5075_s24 }
 0x479   : > { %v7061_v12 = vpop.permute.xlu1 %2593  ;;  %v7063_v24 = vpop.permute.xlu0 %2591 }
 0x47a   : > { %10363 = vst [vmem:[#allocation276_spill] sm:$0xff] %v7061_v12  ;;  %10364 = vst [vmem:[#allocation277_spill] sm:$0xff] %v7063_v24 }
 0x47b   : > { %2900 = vrot.lane.b32.xlu1 %v5770_v13, %s5075_s24  ;;  %2902 = vrot.lane.b32.xlu0 %v5759_v53, %s5075_s24 }
 0x47d   : > { %v7069_v4 = vpop.permute.xlu1 %2597  ;;  %v7071_v56 = vpop.permute.xlu0 %2595 }
 0x47e   : > { %10365 = vst [vmem:[#allocation278_spill] sm:$0xff] %v7069_v4  ;;  %10366 = vst [vmem:[#allocation279_spill] sm:$0xff] %v7071_v56 }
 0x47f   : > { %2904 = vrot.lane.b32.xlu1 %v5800_v52, %s5075_s24  ;;  %2906 = vrot.lane.b32.xlu0 %v5811_v11, %s5075_s24 }
 0x481   : > { %v7077_v29 = vpop.permute.xlu1 %2601  ;;  %v7079_v12 = vpop.permute.xlu0 %2599 }
 0x482   : > { %10367 = vst [vmem:[#allocation280_spill] sm:$0xff] %v7077_v29  ;;  %10368 = vst [vmem:[#allocation281_spill] sm:$0xff] %v7079_v12 }
 0x483   : > { %2908 = vrot.lane.b32.xlu1 %v5814_v51, %s5075_s24  ;;  %2910 = vrot.lane.b32.xlu0 %v5846_v61, %s5075_s24 }
 0x485   : > { %v7085_v24 = vpop.permute.xlu1 %2605  ;;  %v7087_v4 = vpop.permute.xlu0 %2603 }
 0x486   : > { %10369 = vst [vmem:[#allocation282_spill] sm:$0xff] %v7085_v24  ;;  %10370 = vst [vmem:[#allocation283_spill] sm:$0xff] %v7087_v4 }
 0x487   : > { %2912 = vrot.lane.b32.xlu1 %v5869_v57, %s5075_s24  ;;  %2914 = vrot.lane.b32.xlu0 %v5860_v58, %s5075_s24 }
 0x489   : > { %v7093_v56 = vpop.permute.xlu1 %2609  ;;  %v7095_v29 = vpop.permute.xlu0 %2607 }
 0x48a   : > { %10371 = vst [vmem:[#allocation284_spill] sm:$0xff] %v7093_v56  ;;  %10372 = vst [vmem:[#allocation285_spill] sm:$0xff] %v7095_v29 }
 0x48b   : > { %2916 = vrot.lane.b32.xlu1 %v5888_v27, %s5075_s24  ;;  %2918 = vrot.lane.b32.xlu0 %v5893_v60, %s5075_s24 }
 0x48d   : > { %v7101_v12 = vpop.permute.xlu1 %2613  ;;  %v7103_v24 = vpop.permute.xlu0 %2611 }
 0x48e   : > { %10373 = vst [vmem:[#allocation286_spill] sm:$0xff] %v7101_v12  ;;  %10374 = vst [vmem:[#allocation287_spill] sm:$0xff] %v7103_v24 }
 0x48f   : > { %2920 = vrot.lane.b32.xlu1 %v5903_v32, %s5075_s24  ;;  %2922 = vrot.lane.b32.xlu0 %v5912_v41, %s5075_s24 }
 0x491   : > { %v7109_v4 = vpop.permute.xlu1 %2617  ;;  %v7111_v56 = vpop.permute.xlu0 %2615 }
 0x492   : > { %10375 = vst [vmem:[#allocation288_spill] sm:$0xff] %v7109_v4  ;;  %10376 = vst [vmem:[#allocation289_spill] sm:$0xff] %v7111_v56 }
 0x493   : > { %2924 = vrot.lane.b32.xlu1 %v5931_v2, %s5075_s24  ;;  %2926 = vrot.lane.b32.xlu0 %v5921_v16, %s5075_s24 }
 0x495   : > { %v7117_v29 = vpop.permute.xlu1 %2621  ;;  %v7119_v12 = vpop.permute.xlu0 %2619 }
 0x496   : > { %10377 = vst [vmem:[#allocation290_spill] sm:$0xff] %v7117_v29  ;;  %10378 = vst [vmem:[#allocation291_spill] sm:$0xff] %v7119_v12 }
 0x497   : > { %2928 = vrot.lane.b32.xlu1 %v5944_v8, %s5075_s24  ;;  %2930 = vrot.lane.b32.xlu0 %v5949_v0, %s5075_s24 }
 0x499   : > { %v7125_v24 = vpop.permute.xlu1 %2625  ;;  %v7127_v4 = vpop.permute.xlu0 %2623 }
 0x49a   : > { %10379 = vst [vmem:[#allocation292_spill] sm:$0xff] %v7125_v24  ;;  %10380 = vst [vmem:[#allocation293_spill] sm:$0xff] %v7127_v4 }
 0x49b   : > { %2932 = vrot.lane.b32.xlu1 %v5959_v35, %s5075_s24  ;;  %2934 = vrot.lane.b32.xlu0 %v5968_v47, %s5075_s24 }
 0x49d   : > { %v7133_v56 = vpop.permute.xlu1 %2629  ;;  %v7135_v29 = vpop.permute.xlu0 %2627 }
 0x49e   : > { %10381 = vst [vmem:[#allocation294_spill] sm:$0xff] %v7133_v56  ;;  %10382 = vst [vmem:[#allocation295_spill] sm:$0xff] %v7135_v29 }
 0x49f   : > { %2936 = vrot.lane.b32.xlu1 %v5995_v59, %s5075_s24  ;;  %2938 = vrot.lane.b32.xlu0 %v5981_v21, %s5075_s24 }
 0x4a1   : > { %v7141_v12 = vpop.permute.xlu1 %2633  ;;  %v7143_v24 = vpop.permute.xlu0 %2631 }
 0x4a2   : > { %10383 = vst [vmem:[#allocation296_spill] sm:$0xff] %v7141_v12  ;;  %10384 = vst [vmem:[#allocation297_spill] sm:$0xff] %v7143_v24 }
 0x4a3   : > { %2940 = vrot.lane.b32.xlu1 %v6016_v36, %s5075_s24  ;;  %2942 = vrot.lane.b32.xlu0 %v6021_v40, %s5075_s24 }
 0x4a5   : > { %v7149_v4 = vpop.permute.xlu1 %2637  ;;  %v7151_v56 = vpop.permute.xlu0 %2635 }
 0x4a6   : > { %10385 = vst [vmem:[#allocation298_spill] sm:$0xff] %v7149_v4  ;;  %10386 = vst [vmem:[#allocation299_spill] sm:$0xff] %v7151_v56 }
 0x4a7   : > { %2944 = vrot.lane.b32.xlu1 %v6035_v44, %s5075_s24  ;;  %2946 = vrot.lane.b32.xlu0 %v6048_v45, %s5075_s24 }
 0x4a9   : > { %v7157_v29 = vpop.permute.xlu1 %2641  ;;  %v7159_v12 = vpop.permute.xlu0 %2639 }
 0x4aa   : > { %10387 = vst [vmem:[#allocation300_spill] sm:$0xff] %v7157_v29  ;;  %10388 = vst [vmem:[#allocation301_spill] sm:$0xff] %v7159_v12 }
 0x4ab   : > { %2948 = vrot.lane.b32.xlu1 %v6075_v15, %s5075_s24  ;;  %2950 = vrot.lane.b32.xlu0 %v6061_v5, %s5075_s24 }
 0x4ad   : > { %v7169_v24 = vpop.permute.xlu1 %2645  ;;  %v7171_v4 = vpop.permute.xlu0 %2643 }
 0x4ae   : > { %10389 = vst [vmem:[#allocation302_spill] sm:$0xff] %v7169_v24  ;;  %10390 = vst [vmem:[#allocation303_spill] sm:$0xff] %v7171_v4 }
 0x4af   : > { %2952 = vrot.lane.b32.xlu1 %v6096_v42, %s5075_s24  ;;  %2954 = vrot.lane.b32.xlu0 %v6101_v18, %s5075_s24 }
 0x4b1   : > { %v7177_v29 = vpop.permute.xlu1 %2649  ;;  %v7179_v12 = vpop.permute.xlu0 %2647 }
 0x4b2   : > { %10391 = vst [vmem:[#allocation304_spill] sm:$0xff] %v7177_v29  ;;  %10392 = vst [vmem:[#allocation305_spill] sm:$0xff] %v7179_v12 }
 0x4b3   : > { %2956 = vrot.lane.b32.xlu1 %v6115_v50, %s5075_s24  ;;  %2958 = vrot.lane.b32.xlu0 %v6128_v9, %s5075_s24 }
 0x4b5   : > { %v7189_v4 = vpop.permute.xlu1 %2653  ;;  %v7191_v24 = vpop.permute.xlu0 %2651 }
 0x4b6   : > { %10393 = vst [vmem:[#allocation306_spill] sm:$0xff] %v7189_v4  ;;  %10394 = vst [vmem:[#allocation307_spill] sm:$0xff] %v7191_v24 }
 0x4b7   : > { %2960 = vrot.lane.b32.xlu1 %v6155_v39, %s5075_s24  ;;  %2962 = vrot.lane.b32.xlu0 %v6141_v10, %s5075_s24 }
 0x4b9   : > { %v7197_v29 = vpop.permute.xlu1 %2657  ;;  %v7199_v12 = vpop.permute.xlu0 %2655 }
 0x4ba   : > { %10395 = vst [vmem:[#allocation308_spill] sm:$0xff] %v7197_v29  ;;  %10396 = vst [vmem:[#allocation309_spill] sm:$0xff] %v7199_v12 }
 0x4bb   : > { %2964 = vrot.lane.b32.xlu1 %v6176_v33, %s5075_s24  ;;  %2966 = vrot.lane.b32.xlu0 %v6181_v3, %s5075_s24 }
 0x4bd   : > { %v7209_v4 = vpop.permute.xlu1 %2661  ;;  %v7211_v24 = vpop.permute.xlu0 %2659 }
 0x4be   : > { %10397 = vst [vmem:[#allocation310_spill] sm:$0xff] %v7209_v4  ;;  %10398 = vst [vmem:[#allocation311_spill] sm:$0xff] %v7211_v24 }
 0x4bf   : > { %2968 = vrot.lane.b32.xlu1 %v6195_v38, %s5075_s24  ;;  %2970 = vrot.lane.b32.xlu0 %v6208_v62, %s5075_s24 }
 0x4c1   : > { %v7217_v12 = vpop.permute.xlu1 %2665  ;;  %v7219_v29 = vpop.permute.xlu0 %2663 }
 0x4c2   : > { %10399 = vst [vmem:[#allocation312_spill] sm:$0xff] %v7217_v12  ;;  %10400 = vst [vmem:[#allocation313_spill] sm:$0xff] %v7219_v29 }
 0x4c3   : > { %2972 = vrot.lane.b32.xlu1 %v5853_v54, %s5075_s24  ;;  %2974 = vrot.lane.b32.xlu0 %v6221_v28, %s5075_s24 }
 0x4c7   : > { %2976 = vrot.lane.b32.xlu1 %v10291_v6, %s5075_s24  ;;  %2978 = vrot.lane.b32.xlu0 %v10292_v22, %s5075_s24  ;;  %v10418_v6 = vld [vmem:[#allocation152_spill] sm:$0xff] }
 0x4cb   : > { %2980 = vrot.lane.b32.xlu1 %v10293_v19, %s5075_s24  ;;  %2982 = vrot.lane.b32.xlu0 %v10294_v43, %s5075_s24  ;;  %v10414_v19 = vld [vmem:[#allocation148_spill] sm:$0xff] }
 0x4cf   : > { %2984 = vrot.lane.b32.xlu1 %v10295_v23, %s5075_s24  ;;  %2986 = vrot.lane.b32.xlu0 %v10296_v30, %s5075_s24  ;;  %v10410_v23 = vld [vmem:[#allocation144_spill] sm:$0xff] }
 0x4d2   : > { %v7225_v56 = vpop.permute.xlu1 %2769  ;;  %v7227_v4 = vpop.permute.xlu0 %2765 }
 0x4d3   : > { %10401 = vst [vmem:[#allocation314_spill] sm:$0xff] %v7225_v56  ;;  %10402 = vst [vmem:[#allocation315_spill] sm:$0xff] %v7227_v4  ;;  %3086 = vperm.xlu1 %4902, %v6482_v25   ;;  %3090 = vperm.xlu0 %4903, %v6476_v37   ;;  %v10407_v56 = vld [vmem:[#allocation147_spill] sm:$0xff] }
 0x4d6   : > { %v7231_v24 = vpop.permute.xlu1 %2773  ;;  %v7233_v14 = vpop.permute.xlu0 %2777 }
 0x4d7   : > { %10403 = vst [vmem:[#allocation316_spill] sm:$0xff] %v7231_v24  ;;  %10404 = vst [vmem:[#allocation317_spill] sm:$0xff] %v7233_v14  ;;  %3094 = vperm.xlu1 %4902, %v6492_v17   ;;  %3102 = vperm.xlu0 %4903, %v6508_v55   ;;  %v10411_v24 = vld [vmem:[#allocation151_spill] sm:$0xff] }
 0x4da   : > { %v7237_v29 = vpop.permute.xlu1 %2781  ;;  %v7239_v12 = vpop.permute.xlu0 %2785 }
 0x4db   : > { %10405 = vst [vmem:[#allocation318_spill] sm:$0xff] %v7237_v29  ;;  %10406 = vst [vmem:[#allocation319_spill] sm:$0xff] %v7239_v12  ;;  %3098 = vperm.xlu1 %4902, %v6498_v7   ;;  %3110 = vperm.xlu0 %4903, %v10407_v56   ;;  %v10415_v29 = vld [vmem:[#allocation155_spill] sm:$0xff] }
 0x4de   : > { %v7243_v4 = vpop.permute.xlu1 %2789  ;;  %v7245_v30 = vpop.permute.xlu0 %2793 }
 0x4df   : > { %10408 = vst [vmem:[#allocation147_spill] sm:$0xff] %v7243_v4  ;;  %10409 = vst [vmem:[#allocation320_spill] sm:$0xff] %v7245_v30  ;;  %3106 = vperm.xlu1 %4902, %v10410_v23   ;;  %3118 = vperm.xlu0 %4903, %v10411_v24  }
 0x4e2   : > { %v7249_v14 = vpop.permute.xlu1 %2797  ;;  %v7251_v43 = vpop.permute.xlu0 %2801 }
 0x4e3   : > { %10412 = vst [vmem:[#allocation144_spill] sm:$0xff] %v7249_v14  ;;  %10413 = vst [vmem:[#allocation151_spill] sm:$0xff] %v7251_v43  ;;  %3114 = vperm.xlu1 %4902, %v10414_v19   ;;  %3126 = vperm.xlu0 %4903, %v10415_v29  }
 0x4e6   : > { %v7255_v12 = vpop.permute.xlu1 %2805  ;;  %v7257_v22 = vpop.permute.xlu0 %2809 }
 0x4e7   : > { %10416 = vst [vmem:[#allocation148_spill] sm:$0xff] %v7255_v12  ;;  %10417 = vst [vmem:[#allocation155_spill] sm:$0xff] %v7257_v22  ;;  %3122 = vperm.xlu1 %4902, %v10418_v6   ;;  %3134 = vperm.xlu0 %4903, %v10353_v31   ;;  %v5077_v12 = vmov 7  }
 0x4ea   : > { %v7261_v30 = vpop.permute.xlu1 %2813  ;;  %v7263_v4 = vpop.permute.xlu0 %2817 }
 0x4eb   : > { %10419 = vst [vmem:[#allocation152_spill] sm:$0xff] %v7261_v30  ;;  %10420 = vst [vmem:[#allocation321_spill] sm:$0xff] %v7263_v4  ;;  %3130 = vperm.xlu1 %4902, %v10350_v48   ;;  %3142 = vperm.xlu0 %4903, %v10357_v20  }
 0x4ee   : > { %v7267_v43 = vpop.permute.xlu1 %2821  ;;  %v7269_v14 = vpop.permute.xlu0 %2825 }
 0x4ef   : > { %10421 = vst [vmem:[#allocation322_spill] sm:$0xff] %v7267_v43  ;;  %10422 = vst [vmem:[#allocation323_spill] sm:$0xff] %v7269_v14  ;;  %3138 = vperm.xlu1 %4902, %v10354_v63   ;;  %4904 = vset.pattern.permute.xlu0 %v5077_v12 }
 0x4f0   : > { %3214 = vperm.xlu0 %4904, %v6482_v25  }
 0x4f2   : > { %v7273_v22 = vpop.permute.xlu1 %2892  ;;  %v7275_v28 = vpop.permute.xlu0 %2894 }
 0x4f3   : > { %3146 = vperm.xlu1 %4902, %v10358_v26  }
 0x4f4   : > { %3226 = vperm.xlu0 %4904, %v6498_v7  }
 0x4f6   : > { %v7279_v4 = vpop.permute.xlu1 %2896  ;;  %v7281_v30 = vpop.permute.xlu0 %2898 }
 0x4f7   : > { %4905 = vset.pattern.permute.xlu1 %v5077_v12 }
 0x4f8   : > { %3218 = vperm.xlu1 %4905, %v6476_v37   ;;  %3234 = vperm.xlu0 %4904, %v10410_v23  }
 0x4fa   : > { %v7285_v14 = vpop.permute.xlu1 %2900  ;;  %v7287_v25 = vpop.permute.xlu0 %2902 }
 0x4fc   : > { %3222 = vperm.xlu1 %4905, %v6492_v17   ;;  %3242 = vperm.xlu0 %4904, %v10414_v19  }
 0x4fe   : > { %v7291_v43 = vpop.permute.xlu1 %2904  ;;  %v7293_v7 = vpop.permute.xlu0 %2906 }
 0x4ff   : > { %10423 = vst [vmem:[#allocation324_spill] sm:$0xff] %v7291_v43  ;;  %10424 = vst [vmem:[#allocation325_spill] sm:$0xff] %v7293_v7 }
 0x500   : > { %3230 = vperm.xlu1 %4905, %v6508_v55   ;;  %3250 = vperm.xlu0 %4904, %v10418_v6  }
 0x502   : > { %v7297_v12 = vpop.permute.xlu1 %2908  ;;  %v7299_v37 = vpop.permute.xlu0 %2910 }
 0x503   : > { %10425 = vst [vmem:[#allocation326_spill] sm:$0xff] %v7297_v12 }
 0x504   : > { %3238 = vperm.xlu1 %4905, %v10407_v56   ;;  %3258 = vperm.xlu0 %4904, %v10350_v48  }
 0x506   : > { %v7303_v23 = vpop.permute.xlu1 %2912  ;;  %v7305_v17 = vpop.permute.xlu0 %2914 }
 0x507   : > { %10426 = vst [vmem:[#allocation327_spill] sm:$0xff] %v7305_v17  ;;  %v10482_v17 = vld [vmem:[#allocation90_spill] sm:$0xff] }
 0x508   : > { %3246 = vperm.xlu1 %4905, %v10411_v24   ;;  %3266 = vperm.xlu0 %4904, %v10354_v63  }
 0x50a   : > { %v7309_v19 = vpop.permute.xlu1 %2916  ;;  %v7311_v55 = vpop.permute.xlu0 %2918 }
 0x50b   : > { %10427 = vst [vmem:[#allocation328_spill] sm:$0xff] %v7309_v19  ;;  %10428 = vst [vmem:[#allocation329_spill] sm:$0xff] %v7311_v55 }
 0x50c   : > { %3254 = vperm.xlu1 %4905, %v10415_v29   ;;  %3274 = vperm.xlu0 %4904, %v10358_v26  }
 0x50e   : > { %v7315_v6 = vpop.permute.xlu1 %2920  ;;  %v7317_v56 = vpop.permute.xlu0 %2922 }
 0x50f   : > { %10429 = vst [vmem:[#allocation330_spill] sm:$0xff] %v7315_v6  ;;  %10430 = vst [vmem:[#allocation331_spill] sm:$0xff] %v7317_v56 }
 0x510   : > { %3262 = vperm.xlu1 %4905, %v10353_v31  }
 0x512   : > { %v7320_v48 = vpop.permute.xlu1 %2924  ;;  %v7322_v12 = vpop.permute.xlu0 %2926 }
 0x513   : > { %10431 = vst [vmem:[#allocation332_spill] sm:$0xff] %v7320_v48  ;;  %10432 = vst [vmem:[#allocation333_spill] sm:$0xff] %v7322_v12 }
 0x514   : > { %3270 = vperm.xlu1 %4905, %v10357_v20  }
 0x516   : > { %v7325_v24 = vpop.permute.xlu1 %2928  ;;  %v7327_v63 = vpop.permute.xlu0 %2930 }
 0x517   : > { %10433 = vst [vmem:[#allocation334_spill] sm:$0xff] %v7325_v24  ;;  %10434 = vst [vmem:[#allocation335_spill] sm:$0xff] %v7327_v63 }
 0x51a   : > { %v7329_v43 = vpop.permute.xlu1 %2932  ;;  %v7331_v29 = vpop.permute.xlu0 %2934 }
 0x51b   : > { %10435 = vst [vmem:[#allocation336_spill] sm:$0xff] %v7329_v43  ;;  %10436 = vst [vmem:[#allocation337_spill] sm:$0xff] %v7331_v29 }
 0x51e   : > { %v7333_v26 = vpop.permute.xlu1 %2936  ;;  %v7335_v7 = vpop.permute.xlu0 %2938 }
 0x51f   : > { %10437 = vst [vmem:[#allocation338_spill] sm:$0xff] %v7333_v26  ;;  %10438 = vst [vmem:[#allocation339_spill] sm:$0xff] %v7335_v7 }
 0x522   : > { %v7337_v56 = vpop.permute.xlu1 %2940  ;;  %v7339_v31 = vpop.permute.xlu0 %2942 }
 0x523   : > { %10439 = vst [vmem:[#allocation340_spill] sm:$0xff] %v7337_v56  ;;  %10440 = vst [vmem:[#allocation341_spill] sm:$0xff] %v7339_v31 }
 0x526   : > { %v7341_v48 = vpop.permute.xlu1 %2944  ;;  %v7343_v12 = vpop.permute.xlu0 %2946 }
 0x527   : > { %10441 = vst [vmem:[#allocation342_spill] sm:$0xff] %v7341_v48  ;;  %10442 = vst [vmem:[#allocation343_spill] sm:$0xff] %v7343_v12 }
 0x52a   : > { %v7345_v20 = vpop.permute.xlu1 %2948  ;;  %v7347_v24 = vpop.permute.xlu0 %2950 }
 0x52b   : > { %10443 = vst [vmem:[#allocation344_spill] sm:$0xff] %v7345_v20  ;;  %10444 = vst [vmem:[#allocation345_spill] sm:$0xff] %v7347_v24 }
 0x52e   : > { %v7349_v63 = vpop.permute.xlu1 %2952  ;;  %v7351_v43 = vpop.permute.xlu0 %2954 }
 0x52f   : > { %10445 = vst [vmem:[#allocation346_spill] sm:$0xff] %v7349_v63  ;;  %10446 = vst [vmem:[#allocation347_spill] sm:$0xff] %v7351_v43 }
 0x532   : > { %v7353_v29 = vpop.permute.xlu1 %2956  ;;  %v7355_v26 = vpop.permute.xlu0 %2958 }
 0x533   : > { %10447 = vst [vmem:[#allocation348_spill] sm:$0xff] %v7353_v29  ;;  %10448 = vst [vmem:[#allocation349_spill] sm:$0xff] %v7355_v26 }
 0x536   : > { %v7357_v7 = vpop.permute.xlu1 %2960  ;;  %v7359_v56 = vpop.permute.xlu0 %2962 }
 0x537   : > { %10449 = vst [vmem:[#allocation350_spill] sm:$0xff] %v7357_v7  ;;  %10450 = vst [vmem:[#allocation351_spill] sm:$0xff] %v7359_v56 }
 0x53a   : > { %v7361_v31 = vpop.permute.xlu1 %2964  ;;  %v7363_v48 = vpop.permute.xlu0 %2966 }
 0x53b   : > { %10451 = vst [vmem:[#allocation352_spill] sm:$0xff] %v7361_v31  ;;  %10452 = vst [vmem:[#allocation353_spill] sm:$0xff] %v7363_v48 }
 0x53e   : > { %v7365_v12 = vpop.permute.xlu1 %2968  ;;  %v7367_v20 = vpop.permute.xlu0 %2970 }
 0x53f   : > { %10453 = vst [vmem:[#allocation354_spill] sm:$0xff] %v7365_v12  ;;  %10454 = vst [vmem:[#allocation355_spill] sm:$0xff] %v7367_v20 }
 0x542   : > { %v7369_v24 = vpop.permute.xlu1 %2972  ;;  %v7371_v63 = vpop.permute.xlu0 %2974 }
 0x543   : > { %10455 = vst [vmem:[#allocation356_spill] sm:$0xff] %v7369_v24  ;;  %10456 = vst [vmem:[#allocation357_spill] sm:$0xff] %v7371_v63 }
 0x546   : > { %v7373_v43 = vpop.permute.xlu1 %2976  ;;  %v7375_v29 = vpop.permute.xlu0 %2978 }
 0x547   : > { %10457 = vst [vmem:[#allocation358_spill] sm:$0xff] %v7373_v43  ;;  %10458 = vst [vmem:[#allocation359_spill] sm:$0xff] %v7375_v29 }
 0x54a   : > { %v7377_v26 = vpop.permute.xlu1 %2980  ;;  %v7379_v7 = vpop.permute.xlu0 %2982 }
 0x54b   : > { %10459 = vst [vmem:[#allocation360_spill] sm:$0xff] %v7377_v26  ;;  %10460 = vst [vmem:[#allocation361_spill] sm:$0xff] %v7379_v7 }
 0x54e   : > { %v7381_v56 = vpop.permute.xlu1 %2984  ;;  %v7383_v31 = vpop.permute.xlu0 %2986 }
 0x54f   : > { %10461 = vst [vmem:[#allocation362_spill] sm:$0xff] %v7381_v56  ;;  %10462 = vst [vmem:[#allocation363_spill] sm:$0xff] %v7383_v31 }
 0x552   : > { %v7385_v48 = vpop.permute.xlu1 %3086  ;;  %v7387_v12 = vpop.permute.xlu0 %3090 }
 0x553   : > { %10463 = vst [vmem:[#allocation364_spill] sm:$0xff] %v7385_v48  ;;  %10464 = vst [vmem:[#allocation365_spill] sm:$0xff] %v7387_v12 }
 0x556   : > { %v7389_v20 = vpop.permute.xlu1 %3094  ;;  %v7391_v24 = vpop.permute.xlu0 %3102 }
 0x557   : > { %10465 = vst [vmem:[#allocation366_spill] sm:$0xff] %v7389_v20  ;;  %10466 = vst [vmem:[#allocation367_spill] sm:$0xff] %v7391_v24  ;;  %v10023_v20 = vmov 8  }
 0x558   : > { %4907 = vset.pattern.permute.xlu1 %v10023_v20  ;;  %4906 = vset.pattern.permute.xlu0 %v10023_v20 }
 0x55a   : > { %v7393_v63 = vpop.permute.xlu1 %3098  ;;  %v7395_v43 = vpop.permute.xlu0 %3110 }
 0x55b   : > { %10467 = vst [vmem:[#allocation368_spill] sm:$0xff] %v7393_v63  ;;  %10468 = vst [vmem:[#allocation369_spill] sm:$0xff] %v7395_v43 }
 0x55e   : > { %v7397_v29 = vpop.permute.xlu1 %3106  ;;  %v7399_v26 = vpop.permute.xlu0 %3118 }
 0x55f   : > { %10469 = vst [vmem:[#allocation370_spill] sm:$0xff] %v7397_v29  ;;  %10470 = vst [vmem:[#allocation371_spill] sm:$0xff] %v7399_v26 }
 0x562   : > { %v7401_v7 = vpop.permute.xlu1 %3114  ;;  %v7403_v56 = vpop.permute.xlu0 %3126 }
 0x563   : > { %10471 = vst [vmem:[#allocation372_spill] sm:$0xff] %v7401_v7  ;;  %10472 = vst [vmem:[#allocation373_spill] sm:$0xff] %v7403_v56 }
 0x566   : > { %v7405_v31 = vpop.permute.xlu1 %3122  ;;  %v7407_v19 = vpop.permute.xlu0 %3134 }
 0x567   : > { %10473 = vst [vmem:[#allocation374_spill] sm:$0xff] %v7405_v31  ;;  %10474 = vst [vmem:[#allocation375_spill] sm:$0xff] %v7407_v19  ;;  %v10480_v31 = vld [vmem:[#allocation86_spill] sm:$0xff] }
 0x56a   : > { %v7409_v55 = vpop.permute.xlu1 %3130  ;;  %v7413_v43 = vpop.permute.xlu0 %3142 }
 0x56b   : > { %10475 = vst [vmem:[#allocation376_spill] sm:$0xff] %v7409_v55  ;;  %10476 = vst [vmem:[#allocation377_spill] sm:$0xff] %v7413_v43 }
 0x56e   : > { %v7415_v29 = vpop.permute.xlu1 %3138 }
 0x56f   : > { %10477 = vst [vmem:[#allocation378_spill] sm:$0xff] %v7415_v29  ;;  %v3215_v26 = vpop.permute.xlu0 %3214 }
 0x570   : > { %v3277_v7 = vmul.f32 %v3215_v26, %v5714_v1  ;;  %v3278_v56 = vmul.f32 %v3215_v26, %v5721_v34  ;;  %v3279_v19 = vmul.f32 %v3215_v26, %v5724_v49 }
 0x572   : > { %v7419_v24 = vpop.permute.xlu1 %3146  ;;  %3375 = vrot.lane.b32.xlu0 %v3278_v56, %s5079_s26  ;;  %3373 = vrot.lane.b32.xlu1 %v3277_v7, %s5079_s26 }
 0x573   : > { %10478 = vst [vmem:[#allocation379_spill] sm:$0xff] %v7419_v24 }
 0x576   : > { %3377 = vrot.lane.b32.xlu1 %v3279_v19, %s5079_s26  ;;  %v3227_v19 = vpop.permute.xlu0 %3226 }
 0x577   : > { %v3219_v20 = vpop.permute.xlu1 %3218 }
 0x578   : > { %v3280_v43 = vmul.f32 %v3219_v20, %v5749_v46  ;;  %v3281_v29 = vmul.f32 %v3219_v20, %v5770_v13  ;;  %v3282_v24 = vmul.f32 %v3219_v20, %v5759_v53 }
 0x57a   : > { %3379 = vrot.lane.b32.xlu0 %v3280_v43, %s5079_s26  ;;  %3381 = vrot.lane.b32.xlu1 %v3281_v29, %s5079_s26  ;;  %v3286_v43 = vmul.f32 %v3227_v19, %v5846_v61  ;;  %v3287_v29 = vmul.f32 %v3227_v19, %v5869_v57 }
 0x57b   : > { %v3223_v55 = vpop.permute.xlu1 %3222 }
 0x57c   : > { %v3283_v56 = vmul.f32 %v3223_v55, %v5800_v52  ;;  %v3284_v7 = vmul.f32 %v3223_v55, %v5811_v11  ;;  %v3285_v26 = vmul.f32 %v3223_v55, %v5814_v51 }
 0x57e   : > { %3383 = vrot.lane.b32.xlu0 %v3282_v24, %s5079_s26  ;;  %3385 = vrot.lane.b32.xlu1 %v3283_v56, %s5079_s26  ;;  %v3288_v24 = vmul.f32 %v3227_v19, %v5860_v58 }
 0x57f   : > { %v3231_v20 = vpop.permute.xlu1 %3230 }
 0x580   : > { %v3289_v56 = vmul.f32 %v3231_v20, %v5888_v27  ;;  %v3290_v55 = vmul.f32 %v3231_v20, %v5893_v60 }
 0x582   : > { %3387 = vrot.lane.b32.xlu0 %v3284_v7, %s5079_s26  ;;  %3389 = vrot.lane.b32.xlu1 %v3285_v26, %s5079_s26  ;;  %v3235_v7 = vpop.permute.xlu0 %3234  ;;  %v3291_v26 = vmul.f32 %v3231_v20, %v5903_v32 }
 0x583   : > { %v3239_v19 = vpop.permute.xlu1 %3238 }
 0x584   : > { %v3296_v20 = vmul.f32 %v3239_v19, %v5949_v0 }
 0x586   : > { %3391 = vrot.lane.b32.xlu0 %v3286_v43, %s5079_s26  ;;  %3393 = vrot.lane.b32.xlu1 %v3287_v29, %s5079_s26  ;;  %v3292_v43 = vmul.f32 %v3235_v7, %v5912_v41  ;;  %v3293_v29 = vmul.f32 %v3235_v7, %v5931_v2 }
 0x58a   : > { %3395 = vrot.lane.b32.xlu0 %v3288_v24, %s5079_s26  ;;  %3397 = vrot.lane.b32.xlu1 %v3289_v56, %s5079_s26  ;;  %v3294_v24 = vmul.f32 %v3235_v7, %v5921_v16  ;;  %v3295_v56 = vmul.f32 %v3239_v19, %v5944_v8  ;;  %v3247_v7 = vpop.permute.xlu1 %3246 }
 0x58e   : > { %3399 = vrot.lane.b32.xlu0 %v3290_v55, %s5079_s26  ;;  %3401 = vrot.lane.b32.xlu1 %v3291_v26, %s5079_s26  ;;  %v3243_v55 = vpop.permute.xlu0 %3242  ;;  %v3297_v26 = vmul.f32 %v3239_v19, %v5959_v35  ;;  %v3302_v19 = vmul.f32 %v3247_v7, %v6021_v40 }
 0x592   : > { %3403 = vrot.lane.b32.xlu0 %v3292_v43, %s5079_s26  ;;  %3405 = vrot.lane.b32.xlu1 %v3293_v29, %s5079_s26  ;;  %v3298_v43 = vmul.f32 %v3243_v55, %v5968_v47  ;;  %v3299_v29 = vmul.f32 %v3243_v55, %v5995_v59 }
 0x596   : > { %3407 = vrot.lane.b32.xlu0 %v3294_v24, %s5079_s26  ;;  %3409 = vrot.lane.b32.xlu1 %v3295_v56, %s5079_s26  ;;  %v3300_v24 = vmul.f32 %v3243_v55, %v5981_v21  ;;  %v3301_v56 = vmul.f32 %v3247_v7, %v6016_v36  ;;  %v3255_v55 = vpop.permute.xlu1 %3254 }
 0x59a   : > { %3411 = vrot.lane.b32.xlu0 %v3296_v20, %s5079_s26  ;;  %3413 = vrot.lane.b32.xlu1 %v3297_v26, %s5079_s26  ;;  %v3251_v20 = vpop.permute.xlu0 %3250  ;;  %v3303_v26 = vmul.f32 %v3247_v7, %v6035_v44  ;;  %v3308_v7 = vmul.f32 %v3255_v55, %v6101_v18 }
 0x59e   : > { %3415 = vrot.lane.b32.xlu0 %v3298_v43, %s5079_s26  ;;  %3417 = vrot.lane.b32.xlu1 %v3299_v29, %s5079_s26  ;;  %v3304_v43 = vmul.f32 %v3251_v20, %v6048_v45  ;;  %v3305_v29 = vmul.f32 %v3251_v20, %v6075_v15 }
 0x5a2   : > { %3419 = vrot.lane.b32.xlu0 %v3300_v24, %s5079_s26  ;;  %3421 = vrot.lane.b32.xlu1 %v3301_v56, %s5079_s26  ;;  %v3306_v24 = vmul.f32 %v3251_v20, %v6061_v5  ;;  %v3307_v56 = vmul.f32 %v3255_v55, %v6096_v42  ;;  %v3263_v20 = vpop.permute.xlu1 %3262 }
 0x5a6   : > { %3423 = vrot.lane.b32.xlu0 %v3302_v19, %s5079_s26  ;;  %3425 = vrot.lane.b32.xlu1 %v3303_v26, %s5079_s26  ;;  %v3259_v19 = vpop.permute.xlu0 %3258  ;;  %v3309_v26 = vmul.f32 %v3255_v55, %v6115_v50  ;;  %v3314_v55 = vmul.f32 %v3263_v20, %v6181_v3 }
 0x5aa   : > { %3427 = vrot.lane.b32.xlu0 %v3304_v43, %s5079_s26  ;;  %3429 = vrot.lane.b32.xlu1 %v3305_v29, %s5079_s26  ;;  %v3310_v43 = vmul.f32 %v3259_v19, %v6128_v9  ;;  %v3311_v29 = vmul.f32 %v3259_v19, %v6155_v39 }
 0x5ae   : > { %3431 = vrot.lane.b32.xlu0 %v3306_v24, %s5079_s26  ;;  %3433 = vrot.lane.b32.xlu1 %v3307_v56, %s5079_s26  ;;  %v3312_v24 = vmul.f32 %v3259_v19, %v6141_v10  ;;  %v3313_v56 = vmul.f32 %v3263_v20, %v6176_v33  ;;  %v3271_v19 = vpop.permute.xlu1 %3270 }
 0x5af   : > { %v3319_v6 = vmul.f32 %v3271_v19, %v10480_v31  ;;  %v3321_v63 = vmul.f32 %v3271_v19, %v10482_v17  ;;  %v10034_v17 = vmov 11  }
 0x5b2   : > { %3435 = vrot.lane.b32.xlu0 %v3308_v7, %s5079_s26  ;;  %3437 = vrot.lane.b32.xlu1 %v3309_v26, %s5079_s26  ;;  %v3267_v7 = vpop.permute.xlu0 %3266  ;;  %v3315_v26 = vmul.f32 %v3263_v20, %v6195_v38  ;;  %v10481_v20 = vld [vmem:[#allocation87_spill] sm:$0xff] }
 0x5b6   : > { %3439 = vrot.lane.b32.xlu0 %v3310_v43, %s5079_s26  ;;  %3441 = vrot.lane.b32.xlu1 %v3311_v29, %s5079_s26  ;;  %v3316_v43 = vmul.f32 %v3267_v7, %v6208_v62  ;;  %v3317_v29 = vmul.f32 %v3267_v7, %v5853_v54 }
 0x5ba   : > { %3443 = vrot.lane.b32.xlu0 %v3312_v24, %s5079_s26  ;;  %3445 = vrot.lane.b32.xlu1 %v3313_v56, %s5079_s26  ;;  %v10479_v24 = vld [vmem:[#allocation79_spill] sm:$0xff] }
 0x5bb   : > { %v3318_v56 = vmul.f32 %v3267_v7, %v10479_v24  ;;  %v10485_v7 = vld [vmem:[#allocation96_spill] sm:$0xff] }
 0x5be   : > { %3447 = vrot.lane.b32.xlu0 %v3314_v55, %s5079_s26  ;;  %3449 = vrot.lane.b32.xlu1 %v3315_v26, %s5079_s26  ;;  %v3320_v55 = vmul.f32 %v3271_v19, %v10481_v20  ;;  %v3275_v26 = vpop.permute.xlu0 %3274  ;;  %v7556_v19 = vld [vmem:[%s9810_s3 + $0x18] sm:$0xff] }
 0x5c2   : > { %3451 = vrot.lane.b32.xlu0 %v3316_v43, %s5079_s26  ;;  %3453 = vrot.lane.b32.xlu1 %v3317_v29, %s5079_s26  ;;  %v10483_v43 = vld [vmem:[#allocation93_spill] sm:$0xff]  ;;  %v10484_v29 = vld [vmem:[#allocation99_spill] sm:$0xff] }
 0x5c3   : > { %v3322_v12 = vmul.f32 %v3275_v26, %v10483_v43  ;;  %v3323_v48 = vmul.f32 %v3275_v26, %v10484_v29 }
 0x5c6   : > { %3455 = vrot.lane.b32.xlu0 %v3318_v56, %s5079_s26  ;;  %3457 = vrot.lane.b32.xlu1 %v3319_v6, %s5079_s26  ;;  %v3324_v56 = vmul.f32 %v3275_v26, %v10485_v7  ;;  %v4952_v6 = vld [vmem:[%s9810_s3] sm:$0xff] }
 0x5c7   : > { %v7569_v7 = vld [vmem:[%s9810_s3 + $0x20] sm:$0xff] }
 0x5ca   : > { %3459 = vrot.lane.b32.xlu0 %v3320_v55, %s5079_s26  ;;  %3461 = vrot.lane.b32.xlu1 %v3321_v63, %s5079_s26  ;;  %v4955_v55 = vld [vmem:[%s9810_s3 + $0x10] sm:$0xff] }
 0x5ce   : > { %3463 = vrot.lane.b32.xlu0 %v3322_v12, %s5079_s26  ;;  %3465 = vrot.lane.b32.xlu1 %v3323_v48, %s5079_s26 }
 0x5d2   : > { %3467 = vrot.lane.b32.xlu0 %v3324_v56, %s5079_s26  ;;  %3566 = vrot.lane.b32.xlu1 %v5714_v1, %s5080_s16 }
 0x5d6   : > { %3568 = vrot.lane.b32.xlu0 %v5721_v34, %s5080_s16  ;;  %3570 = vrot.lane.b32.xlu1 %v5724_v49, %s5080_s16 }
 0x5da   : > { %3572 = vrot.lane.b32.xlu0 %v5749_v46, %s5080_s16  ;;  %3574 = vrot.lane.b32.xlu1 %v5770_v13, %s5080_s16 }
 0x5de   : > { %3576 = vrot.lane.b32.xlu0 %v5759_v53, %s5080_s16  ;;  %3578 = vrot.lane.b32.xlu1 %v5800_v52, %s5080_s16 }
 0x5e2   : > { %3580 = vrot.lane.b32.xlu0 %v5811_v11, %s5080_s16  ;;  %3582 = vrot.lane.b32.xlu1 %v5814_v51, %s5080_s16  ;;  %v4953_v51 = vld [vmem:[%s9810_s3 + $0x8] sm:$0xff] }
 0x5e4   : > { %v7533_v12 = vpop.permute.xlu1 %3373  ;;  %v7539_v49 = vpop.permute.xlu0 %3375 }
 0x5e5   : > { %10486 = vst [vmem:[#allocation79_spill] sm:$0xff] %v7533_v12  ;;  %10487 = vst [vmem:[#allocation86_spill] sm:$0xff] %v7539_v49 }
 0x5e6   : > { %3584 = vrot.lane.b32.xlu0 %v5846_v61, %s5080_s16  ;;  %3586 = vrot.lane.b32.xlu1 %v5869_v57, %s5080_s16 }
 0x5e8   : > { %v7541_v53 = vpop.permute.xlu1 %3377 }
 0x5e9   : > { %10488 = vst [vmem:[#allocation87_spill] sm:$0xff] %v7541_v53 }
 0x5ea   : > { %3760 = vperm.xlu0 %4906, %v4952_v6   ;;  %3764 = vperm.xlu1 %4907, %v4953_v51  }
 0x5ec   : > { %v7549_v48 = vpop.permute.xlu0 %3379  ;;  %v7551_v63 = vpop.permute.xlu1 %3381 }
 0x5ed   : > { %10489 = vst [vmem:[#allocation380_spill] sm:$0xff] %v7549_v48  ;;  %10490 = vst [vmem:[#allocation381_spill] sm:$0xff] %v7551_v63 }
 0x5ee   : > { %3772 = vperm.xlu0 %4906, %v7556_v19   ;;  %3768 = vperm.xlu1 %4907, %v4955_v55  }
 0x5f0   : > { %v7562_v26 = vpop.permute.xlu0 %3383  ;;  %v7564_v56 = vpop.permute.xlu1 %3385 }
 0x5f1   : > { %10491 = vst [vmem:[#allocation382_spill] sm:$0xff] %v7562_v26  ;;  %10492 = vst [vmem:[#allocation383_spill] sm:$0xff] %v7564_v56  ;;  %v10037_v26 = vmov 12  }
 0x5f2   : > { %3776 = vperm.xlu0 %4906, %v7569_v7   ;;  %4908 = vset.pattern.permute.xlu1 %v10034_v17 }
 0x5f3   : > { %3888 = vperm.xlu1 %4908, %v4952_v6  }
 0x5f4   : > { %v7573_v43 = vpop.permute.xlu0 %3387  ;;  %v7575_v48 = vpop.permute.xlu1 %3389 }
 0x5f5   : > { %10493 = vst [vmem:[#allocation384_spill] sm:$0xff] %v7573_v43  ;;  %10494 = vst [vmem:[#allocation385_spill] sm:$0xff] %v7575_v48  ;;  %v10501_v43 = vmov 8  }
 0x5f6   : > { %4910 = vset.pattern.permute.xlu0 %v10034_v17 }
 0x5f7   : > { %3892 = vperm.xlu0 %4910, %v4953_v51   ;;  %4909 = vset.pattern.permute.xlu1 %v10037_v26  ;;  %v7597_v26 = vld [vmem:[%s9810_s3 + $0x28] sm:$0xff] }
 0x5f8   : > { %v7579_v56 = vpop.permute.xlu0 %3391  ;;  %v7581_v63 = vpop.permute.xlu1 %3393  ;;  %3984 = vperm.xlu1 %4909, %v4952_v6  }
 0x5f9   : > { %10495 = vst [vmem:[#allocation386_spill] sm:$0xff] %v7579_v56  ;;  %10496 = vst [vmem:[#allocation387_spill] sm:$0xff] %v7581_v63  ;;  %v10549_v56 = vld [vmem:[#allocation13_spill] sm:$0xff] }
 0x5fb   : > { %3900 = vperm.xlu0 %4910, %v7556_v19  }
 0x5fc   : > { %v7584_v53 = vpop.permute.xlu0 %3395  ;;  %v7586_v12 = vpop.permute.xlu1 %3397  ;;  %3988 = vperm.xlu1 %4909, %v4953_v51  }
 0x5fd   : > { %10497 = vst [vmem:[#allocation388_spill] sm:$0xff] %v7584_v53  ;;  %10498 = vst [vmem:[#allocation389_spill] sm:$0xff] %v7586_v12  ;;  %v10504_v12 = vmov 11  }
 0x5ff   : > { %3904 = vperm.xlu0 %4910, %v7569_v7  }
 0x600   : > { %v7589_v48 = vpop.permute.xlu0 %3399  ;;  %v7591_v17 = vpop.permute.xlu1 %3401  ;;  %4911 = vset.pattern.permute.xlu1 %v10501_v43 }
 0x601   : > { %10499 = vst [vmem:[#allocation390_spill] sm:$0xff] %v7589_v48  ;;  %10500 = vst [vmem:[#allocation391_spill] sm:$0xff] %v7591_v17  ;;  %3780 = vperm.xlu1 %4911, %v7597_v26  }
 0x603   : > { %3594 = vrot.lane.b32.xlu0 %v5903_v32, %s5080_s16 }
 0x604   : > { %v7602_v6 = vpop.permute.xlu0 %3403  ;;  %v7604_v51 = vpop.permute.xlu1 %3405 }
 0x605   : > { %10502 = vst [vmem:[#allocation392_spill] sm:$0xff] %v7602_v6  ;;  %10503 = vst [vmem:[#allocation393_spill] sm:$0xff] %v7604_v51  ;;  %4912 = vset.pattern.permute.xlu1 %v10504_v12  ;;  %v10508_v6 = vmov 12  }
 0x606   : > { %3896 = vperm.xlu1 %4912, %v4955_v55  }
 0x607   : > { %3600 = vrot.lane.b32.xlu0 %v5921_v16, %s5080_s16  ;;  %v7625_v16 = vld [vmem:[%s9810_s3 + $0x30] sm:$0xff] }
 0x608   : > { %v7609_v48 = vpop.permute.xlu0 %3407  ;;  %v7611_v17 = vpop.permute.xlu1 %3409 }
 0x609   : > { %10505 = vst [vmem:[#allocation394_spill] sm:$0xff] %v7609_v48  ;;  %10506 = vst [vmem:[#allocation395_spill] sm:$0xff] %v7611_v17 }
 0x60a   : > { %3588 = vrot.lane.b32.xlu1 %v5860_v58, %s5080_s16 }
 0x60b   : > { %3596 = vrot.lane.b32.xlu0 %v5912_v41, %s5080_s16  ;;  %4913 = vset.pattern.permute.xlu1 %v10508_v6 }
 0x60c   : > { %v7617_v32 = vpop.permute.xlu0 %3411  ;;  %v7620_v51 = vpop.permute.xlu1 %3413 }
 0x60d   : > { %10507 = vst [vmem:[#allocation396_spill] sm:$0xff] %v7617_v32  ;;  %10509 = vst [vmem:[#allocation397_spill] sm:$0xff] %v7620_v51 }
 0x60e   : > { %3992 = vperm.xlu1 %4913, %v4955_v55  }
 0x60f   : > { %3912 = vperm.xlu0 %4910, %v7625_v16  }
 0x610   : > { %v7628_v17 = vpop.permute.xlu0 %3415  ;;  %v7630_v58 = vpop.permute.xlu1 %3417 }
 0x611   : > { %10510 = vst [vmem:[#allocation398_spill] sm:$0xff] %v7628_v17  ;;  %10511 = vst [vmem:[#allocation399_spill] sm:$0xff] %v7630_v58  ;;  %v7645_v17 = vld [vmem:[%s9810_s3 + $0x38] sm:$0xff] }
 0x612   : > { %4914 = vset.pattern.permute.xlu1 %v10501_v43 }
 0x613   : > { %3606 = vrot.lane.b32.xlu0 %v5959_v35, %s5080_s16  ;;  %3784 = vperm.xlu1 %4914, %v7625_v16  }
 0x614   : > { %v7636_v32 = vpop.permute.xlu0 %3419  ;;  %v7638_v55 = vpop.permute.xlu1 %3421 }
 0x615   : > { %10512 = vst [vmem:[#allocation400_spill] sm:$0xff] %v7636_v32  ;;  %10513 = vst [vmem:[#allocation401_spill] sm:$0xff] %v7638_v55 }
 0x617   : > { %3612 = vrot.lane.b32.xlu0 %v5981_v21, %s5080_s16  ;;  %3788 = vperm.xlu1 %4914, %v7645_v17   ;;  %v7663_v21 = vld [vmem:[%s9810_s3 + $0x40] sm:$0xff] }
 0x618   : > { %v7648_v58 = vpop.permute.xlu0 %3423  ;;  %v7650_v51 = vpop.permute.xlu1 %3425 }
 0x619   : > { %10514 = vst [vmem:[#allocation402_spill] sm:$0xff] %v7648_v58  ;;  %10515 = vst [vmem:[#allocation403_spill] sm:$0xff] %v7650_v51 }
 0x61b   : > { %3608 = vrot.lane.b32.xlu0 %v5968_v47, %s5080_s16  ;;  %4915 = vset.pattern.permute.xlu1 %v10504_v12 }
 0x61c   : > { %v7655_v35 = vpop.permute.xlu0 %3427  ;;  %v7657_v55 = vpop.permute.xlu1 %3429  ;;  %3908 = vperm.xlu1 %4915, %v7597_v26  }
 0x61d   : > { %10516 = vst [vmem:[#allocation404_spill] sm:$0xff] %v7655_v35  ;;  %10517 = vst [vmem:[#allocation405_spill] sm:$0xff] %v7657_v55 }
 0x61f   : > { %3920 = vperm.xlu0 %4910, %v7663_v21  }
 0x620   : > { %v7666_v58 = vpop.permute.xlu0 %3431  ;;  %v7668_v51 = vpop.permute.xlu1 %3433  ;;  %3592 = vrot.lane.b32.xlu1 %v5893_v60, %s5080_s16 }
 0x621   : > { %10518 = vst [vmem:[#allocation406_spill] sm:$0xff] %v7666_v58  ;;  %10519 = vst [vmem:[#allocation407_spill] sm:$0xff] %v7668_v51  ;;  %4916 = vset.pattern.permute.xlu1 %v10508_v6 }
 0x623   : > { %3618 = vrot.lane.b32.xlu0 %v6035_v44, %s5080_s16 }
 0x624   : > { %v7675_v35 = vpop.permute.xlu0 %3435  ;;  %v7677_v55 = vpop.permute.xlu1 %3437  ;;  %3598 = vrot.lane.b32.xlu1 %v5931_v2, %s5080_s16 }
 0x625   : > { %10520 = vst [vmem:[#allocation408_spill] sm:$0xff] %v7675_v35  ;;  %10521 = vst [vmem:[#allocation409_spill] sm:$0xff] %v7677_v55  ;;  %v7717_v55 = vld [vmem:[%s9810_s3 + $0x48] sm:$0xff] }
 0x627   : > { %3624 = vrot.lane.b32.xlu0 %v6061_v5, %s5080_s16  ;;  %v7699_v5 = vld [vmem:[%s9810_s3 + $0x50] sm:$0xff] }
 0x628   : > { %v7683_v58 = vpop.permute.xlu0 %3439  ;;  %v7685_v51 = vpop.permute.xlu1 %3441  ;;  %3590 = vrot.lane.b32.xlu1 %v5888_v27, %s5080_s16  ;;  %10526 = vst [vmem:[#allocation414_spill] sm:$0xff] %v7699_v5 }
 0x629   : > { %10522 = vst [vmem:[#allocation410_spill] sm:$0xff] %v7683_v58  ;;  %10523 = vst [vmem:[#allocation411_spill] sm:$0xff] %v7685_v51 }
 0x62b   : > { %3620 = vrot.lane.b32.xlu0 %v6048_v45, %s5080_s16 }
 0x62c   : > { %v7691_v44 = vpop.permute.xlu0 %3443  ;;  %v7693_v35 = vpop.permute.xlu1 %3445  ;;  %4000 = vperm.xlu1 %4916, %v7569_v7  }
 0x62d   : > { %10524 = vst [vmem:[#allocation412_spill] sm:$0xff] %v7691_v44  ;;  %10525 = vst [vmem:[#allocation413_spill] sm:$0xff] %v7693_v35  ;;  %v1014_v44 = vlaneseq }
 0x62f   : > { %3928 = vperm.xlu0 %4910, %v7699_v5  }
 0x630   : > { %v7702_v58 = vpop.permute.xlu0 %3447  ;;  %v7704_v51 = vpop.permute.xlu1 %3449  ;;  %4917 = vset.pattern.permute.xlu1 %v10501_v43 }
 0x631   : > { %10527 = vst [vmem:[#allocation415_spill] sm:$0xff] %v7702_v58  ;;  %10528 = vst [vmem:[#allocation416_spill] sm:$0xff] %v7704_v51  ;;  %3792 = vperm.xlu1 %4917, %v7663_v21   ;;  %v1015_v58 = vand.u32 127, %v1014_v44 }
 0x633   : > { %3630 = vrot.lane.b32.xlu0 %v6115_v50, %s5080_s16  ;;  %v1016_v50 = vadd.s32 128, %v1015_v58  ;;  %v1017_v44 = vand.u32 15, %v1015_v58 }
 0x634   : > { %v7710_v7 = vpop.permute.xlu0 %3451  ;;  %v7712_v35 = vpop.permute.xlu1 %3453 }
 0x635   : > { %10529 = vst [vmem:[#allocation417_spill] sm:$0xff] %v7710_v7  ;;  %10530 = vst [vmem:[#allocation418_spill] sm:$0xff] %v7712_v35  ;;  %3796 = vperm.xlu1 %4917, %v7717_v55   ;;  %v1018_v48 = vand.u32 15, %v1016_v50  ;;  %vm7751_vm2 = vcmp.ge.s32.totalorder %v1017_v44, 1  ;;  %vm7787_vm4 = vcmp.lt.s32.totalorder %v1017_v44, 15 }
 0x636   : > { %v1027_v50 = vsel %vm7751_vm2, %v5714_v1, 0.0 }
 0x637   : > { %3636 = vrot.lane.b32.xlu0 %v6141_v10, %s5080_s16  ;;  %v7739_v10 = vld [vmem:[%s9810_s3 + $0x60] sm:$0xff]  ;;  %vm7747_vm1 = vcmp.ge.s32.totalorder %v1018_v48, 1  ;;  %vm7791_vm5 = vcmp.lt.s32.totalorder %v1018_v48, 15 }
 0x638   : > { %v7722_v51 = vpop.permute.xlu0 %3455  ;;  %v7724_v32 = vpop.permute.xlu1 %3457  ;;  %10535 = vst [vmem:[#allocation423_spill] sm:$0xff] %v7739_v10  ;;  %v1032_v1 = vsel %vm7747_vm1, %v5811_v11, 0.0 }
 0x639   : > { %10531 = vst [vmem:[#allocation419_spill] sm:$0xff] %v7722_v51  ;;  %10532 = vst [vmem:[#allocation420_spill] sm:$0xff] %v7724_v32  ;;  %4918 = vset.pattern.permute.xlu1 %v10504_v12 }
 0x63a   : > { %3916 = vperm.xlu1 %4918, %v7645_v17  }
 0x63b   : > { %3632 = vrot.lane.b32.xlu0 %v6128_v9, %s5080_s16 }
 0x63c   : > { %v7730_v7 = vpop.permute.xlu0 %3459  ;;  %v7732_v35 = vpop.permute.xlu1 %3461 }
 0x63d   : > { %10533 = vst [vmem:[#allocation421_spill] sm:$0xff] %v7730_v7  ;;  %10534 = vst [vmem:[#allocation422_spill] sm:$0xff] %v7732_v35  ;;  %v1030_v35 = vsel %vm7747_vm1, %v5770_v13, 0.0  ;;  %v10548_v13 = vld [vmem:[#allocation8_spill] sm:$0xff] }
 0x63e   : > { %3604 = vrot.lane.b32.xlu1 %v5949_v0, %s5080_s16  ;;  %v7805_v49 = vmul.f32 %v10549_v56, %v1030_v35  ;;  %v1037_v35 = vsel %vm7751_vm2, %v5912_v41, 0.0  ;;  %v1042_v41 = vsel %vm7747_vm1, %v5995_v59, 0.0 }
 0x63f   : > { %3936 = vperm.xlu0 %4910, %v7739_v10   ;;  %4919 = vset.pattern.permute.xlu1 %v10508_v6 }
 0x640   : > { %v7743_v32 = vpop.permute.xlu0 %3463  ;;  %v7745_v51 = vpop.permute.xlu1 %3465 }
 0x641   : > { %10536 = vst [vmem:[#allocation424_spill] sm:$0xff] %v7743_v32  ;;  %10537 = vst [vmem:[#allocation425_spill] sm:$0xff] %v7745_v51  ;;  %v1028_v32 = vsel %vm7747_vm1, %v5721_v34, 0.0  ;;  %v1029_v51 = vsel %vm7751_vm2, %v5749_v46, 0.0  ;;  %v1033_v34 = vsel %vm7751_vm2, %v5846_v61, 0.0  ;;  %v7796_v61 = vmul.f32 %v10548_v13, %v1027_v50 }
 0x642   : > { %3610 = vrot.lane.b32.xlu1 %v5995_v59, %s5080_s16  ;;  %v7802_v63 = vmul.f32 %v10549_v56, %v1029_v51  ;;  %v1035_v51 = vsel %vm7751_vm2, %v5888_v27, 0.0  ;;  %v1036_v56 = vsel %vm7747_vm1, %v5893_v60, 0.0  ;;  %v1038_v50 = vsel %vm7747_vm1, %v5931_v2, 0.0  ;;  %v10554_v59 = vld [vmem:[#allocation15_spill] sm:$0xff] }
 0x643   : > { %4927 = vset.pattern.permute.xlu0 %v10508_v6  ;;  %v1040_v27 = vsel %vm7747_vm1, %v5949_v0, 0.0  ;;  %v1041_v60 = vsel %vm7751_vm2, %v5968_v47, 0.0  ;;  %v1044_v0 = vsel %vm7747_vm1, %v6021_v40, 0.0  ;;  %v1045_v47 = vsel %vm7751_vm2, %v6048_v45, 0.0 }
 0x644   : > { %3996 = vperm.xlu0 %4927, %v7556_v19   ;;  %v1031_v19 = vsel %vm7751_vm2, %v5800_v52, 0.0  ;;  %v7780_v53 = vpop.permute.xlu0 %3467  ;;  %v7784_v46 = vpop.permute.xlu1 %3566 }
 0x645   : > { %10542 = vst [vmem:[#allocation426_spill] sm:$0xff] %v7780_v53  ;;  %10543 = vst [vmem:[#allocation427_spill] sm:$0xff] %v7784_v46  ;;  %v7799_v53 = vmul.f32 %v10548_v13, %v1028_v32  ;;  %v10553_v46 = vld [vmem:[#allocation10_spill] sm:$0xff]  ;;  %v1034_v32 = vsel %vm7747_vm1, %v5869_v57, 0.0  ;;  %v1039_v57 = vsel %vm7751_vm2, %v5944_v8, 0.0 }
 0x646   : > { %3602 = vrot.lane.b32.xlu1 %v5944_v8, %s5080_s16  ;;  %v7814_v10 = vmul.f32 %v10553_v46, %v1033_v34  ;;  %v7846_v2 = vmul.f32 %v10553_v46, %v1034_v32  ;;  %v1043_v8 = vsel %vm7751_vm2, %v6016_v36, 0.0 }
 0x648   : > { %4004 = vperm.xlu0 %4927, %v7597_v26   ;;  %v10550_v26 = vld [vmem:[#allocation9_spill] sm:$0xff]  ;;  %v7871_v13 = vpop.permute.xlu1 %3570 }
 0x649   : > { %v7808_v44 = vmul.f32 %v10550_v26, %v1031_v19  ;;  %v7811_v48 = vmul.f32 %v10550_v26, %v1032_v1  ;;  %v7860_v19 = vmul.f32 %v10554_v59, %v1035_v51  ;;  %v10557_v1 = vld [vmem:[#allocation11_spill] sm:$0xff]  ;;  %v10560_v26 = vld [vmem:[#allocation17_spill] sm:$0xff] }
 0x64a   : > { %4008 = vperm.xlu1 %4919, %v7625_v16   ;;  %v7857_v16 = vpop.permute.xlu0 %3568  ;;  %v7866_v34 = vmul.f32 %v10557_v1, %v1037_v35  ;;  %v7869_v46 = vmul.f32 %v10557_v1, %v1038_v50  ;;  %v7874_v32 = vmul.f32 %v10560_v26, %v1039_v57  ;;  %v7877_v45 = vmul.f32 %v10560_v26, %v1040_v27  ;;  %v10566_v35 = vld [vmem:[#allocation19_spill] sm:$0xff]  ;;  %v10569_v57 = vld [vmem:[#allocation14_spill] sm:$0xff]  ;;  %v10571_v27 = vld [vmem:[#allocation44_spill] sm:$0xff] }
 0x64b   : > { %10551 = vst [vmem:[#allocation8_spill] sm:$0xff] %v7808_v44  ;;  %10552 = vst [vmem:[#allocation13_spill] sm:$0xff] %v7811_v48  ;;  %v10563_v48 = vld [vmem:[#allocation12_spill] sm:$0xff]  ;;  %v7887_v50 = vmul.f32 %v10566_v35, %v1043_v8  ;;  %v7893_v1 = vmul.f32 %v10569_v57, %v1045_v47  ;;  %v1046_v8 = vsel %vm7747_vm1, %v6075_v15, 0.0  ;;  %v1048_v47 = vsel %vm7747_vm1, %v6101_v18, 0.0 }
 0x64c   : > { %4012 = vperm.xlu0 %4927, %v7645_v17   ;;  %10555 = vst [vmem:[#allocation9_spill] sm:$0xff] %v7860_v19  ;;  %v7863_v17 = vmul.f32 %v10554_v59, %v1036_v56  ;;  %10558 = vst [vmem:[#allocation15_spill] sm:$0xff] %v7866_v34  ;;  %v7880_v51 = vmul.f32 %v10563_v48, %v1041_v60  ;;  %v7883_v56 = vmul.f32 %v10563_v48, %v1042_v41  ;;  %v10572_v60 = vld [vmem:[#allocation41_spill] sm:$0xff]  ;;  %v10573_v41 = vld [vmem:[#allocation43_spill] sm:$0xff] }
 0x64d   : > { %10559 = vst [vmem:[#allocation11_spill] sm:$0xff] %v7869_v46  ;;  %10561 = vst [vmem:[#allocation17_spill] sm:$0xff] %v7874_v32  ;;  %v7890_v59 = vmul.f32 %v10566_v35, %v1044_v0  ;;  %v1673_v48 = vsel %vm1672_vm3, %v10572_v60, %v10571_v27  ;;  %v1674_v26 = vsel %vm1672_vm3, %v10571_v27, %v10573_v41  ;;  %v1047_v0 = vsel %vm7751_vm2, %v6096_v42, 0.0  ;;  %v7945_v32 = vpop.permute.xlu1 %3574  ;;  %v10584_v46 = vld [vmem:[#allocation18_spill] sm:$0xff] }
 0x64e   : > { %10556 = vst [vmem:[#allocation10_spill] sm:$0xff] %v7863_v17  ;;  %10562 = vst [vmem:[#allocation428_spill] sm:$0xff] %v7877_v45  ;;  %4920 = vset.pattern.permute.xlu1 %v10501_v43  ;;  %v1049_v35 = vsel %vm7751_vm2, %v6128_v9, 0.0  ;;  %v1050_v27 = vsel %vm7747_vm1, %v6155_v39, 0.0  ;;  %v1051_v60 = vsel %vm7751_vm2, %v6176_v33, 0.0  ;;  %v1052_v41 = vsel %vm7747_vm1, %v6181_v3, 0.0 }
 0x64f   : > { %10564 = vst [vmem:[#allocation12_spill] sm:$0xff] %v7880_v51  ;;  %10565 = vst [vmem:[#allocation429_spill] sm:$0xff] %v7883_v56  ;;  %3800 = vperm.xlu1 %4920, %v7699_v5   ;;  %v1054_v9 = vsel %vm7747_vm1, %v5853_v54, 0.0  ;;  %v1737_v33 = vsel %vm7787_vm4, %v1673_v48, 0.0  ;;  %v1738_v3 = vsel %vm7791_vm5, %v1674_v26, 0.0  ;;  %v7940_v56 = vmul.f32 %v10569_v57, %v1046_v8  ;;  %v10575_v51 = vld [vmem:[#allocation21_spill] sm:$0xff] }
 0x650   : > { %10567 = vst [vmem:[#allocation19_spill] sm:$0xff] %v7887_v50  ;;  %10568 = vst [vmem:[#allocation430_spill] sm:$0xff] %v7890_v59  ;;  %4020 = vperm.xlu0 %4927, %v7717_v55   ;;  %v1055_v59 = vsel %vm7751_vm2, %v10480_v31, 0.0  ;;  %v7933_v50 = vpop.permute.xlu0 %3572  ;;  %v7943_v45 = vmul.f32 %v10575_v51, %v1047_v0  ;;  %v7950_v54 = vld [vmem:[%s9810_s3 + $0x58] sm:$0xff]  ;;  %v7955_v48 = vmul.f32 %v10575_v51, %v1048_v47  ;;  %v10578_v26 = vld [vmem:[#allocation16_spill] sm:$0xff] }
 0x651   : > { %10570 = vst [vmem:[#allocation14_spill] sm:$0xff] %v7893_v1  ;;  %v1053_v1 = vsel %vm7751_vm2, %v6208_v62, 0.0  ;;  %10574 = vst [vmem:[#allocation44_spill] sm:$0xff] %v7940_v56  ;;  %v7958_v57 = vmul.f32 %v10578_v26, %v1049_v35  ;;  %v7961_v8 = vmul.f32 %v10578_v26, %v1050_v27  ;;  %v10581_v0 = vld [vmem:[#allocation22_spill] sm:$0xff]  ;;  %v7973_v5 = vmul.f32 %v10584_v46, %v1054_v9  ;;  %v10587_v51 = vld [vmem:[#allocation23_spill] sm:$0xff]  ;;  %v8026_v42 = vpop.permute.xlu1 %3578 }
 0x652   : > { %10576 = vst [vmem:[#allocation41_spill] sm:$0xff] %v7943_v45  ;;  %10577 = vst [vmem:[#allocation43_spill] sm:$0xff] %v7955_v48  ;;  %v7964_v45 = vmul.f32 %v10581_v0, %v1051_v60  ;;  %v7967_v56 = vmul.f32 %v10581_v0, %v1052_v41  ;;  %v7970_v34 = vmul.f32 %v10584_v46, %v1053_v1  ;;  %v10589_v35 = vld [vmem:[#allocation24_spill] sm:$0xff]  ;;  %v10590_v26 = vld [vmem:[#allocation46_spill] sm:$0xff] }
 0x653   : > { %3804 = vperm.xlu1 %4920, %v7950_v54   ;;  %10579 = vst [vmem:[#allocation21_spill] sm:$0xff] %v7958_v57  ;;  %10580 = vst [vmem:[#allocation16_spill] sm:$0xff] %v7961_v8  ;;  %v7976_v47 = vmul.f32 %v10587_v51, %v1055_v59  ;;  %v1833_v57 = vmul.f32 %v10589_v35, %v1737_v33  ;;  %v1834_v27 = vmul.f32 %v10589_v35, %v1738_v3  ;;  %v10591_v8 = vld [vmem:[#allocation45_spill] sm:$0xff]  ;;  %v10593_v41 = vld [vmem:[#allocation50_spill] sm:$0xff] }
 0x654   : > { %4028 = vperm.xlu0 %4927, %v7950_v54   ;;  %10582 = vst [vmem:[#allocation22_spill] sm:$0xff] %v7964_v45  ;;  %10583 = vst [vmem:[#allocation431_spill] sm:$0xff] %v7967_v56  ;;  %v1995_v60 = vsel %vm1993_vm6, %v10591_v8, %v10590_v26  ;;  %v10592_v45 = vld [vmem:[#allocation53_spill] sm:$0xff]  ;;  %v10594_v1 = vld [vmem:[#allocation48_spill] sm:$0xff]  ;;  %v8013_v48 = vpop.permute.xlu0 %3576 }
 0x655   : > { %10585 = vst [vmem:[#allocation18_spill] sm:$0xff] %v7970_v34  ;;  %10586 = vst [vmem:[#allocation432_spill] sm:$0xff] %v7973_v5  ;;  %v1675_v0 = vsel %vm1672_vm3, %v10593_v41, %v10592_v45  ;;  %v10595_v34 = vld [vmem:[#allocation47_spill] sm:$0xff]  ;;  %v10596_v9 = vld [vmem:[#allocation52_spill] sm:$0xff] }
 0x656   : > { %10588 = vst [vmem:[#allocation23_spill] sm:$0xff] %v7976_v47  ;;  %v1444_v46 = vsel %vm1443_vm7, %v10595_v34, %v10594_v1  ;;  %v1676_v59 = vsel %vm1672_vm3, %v10592_v45, %v10596_v9  ;;  %v10597_v47 = vld [vmem:[#allocation58_spill] sm:$0xff]  ;;  %v10598_v33 = vld [vmem:[#allocation56_spill] sm:$0xff]  ;;  %v10600_v41 = vld [vmem:[#allocation49_spill] sm:$0xff] }
 0x657   : > { %v1446_v3 = vsel %vm1443_vm7, %v10598_v33, %v10597_v47  ;;  %4921 = vset.pattern.permute.xlu1 %v10504_v12  ;;  %v10599_v26 = vld [vmem:[#allocation42_spill] sm:$0xff]  ;;  %v1445_v45 = vsel %vm1443_vm7, %v10594_v1, %v10600_v41  ;;  %v10602_v5 = vld [vmem:[#allocation51_spill] sm:$0xff]  ;;  %10607 = vst [vmem:[#allocation24_spill] sm:$0xff] %v8026_v42 }
 0x658   : > { %3642 = vrot.lane.b32.xlu0 %v6195_v38, %s5080_s16  ;;  %v1994_v34 = vsel %vm1993_vm6, %v10599_v26, %v10591_v8  ;;  %v10601_v9 = vld [vmem:[#allocation54_spill] sm:$0xff]  ;;  %v10603_v56 = vld [vmem:[#allocation59_spill] sm:$0xff]  ;;  %3924 = vperm.xlu1 %4921, %v7717_v55   ;;  %v2059_v38 = vsel %vm7747_vm1, %v1995_v60, 0.0  ;;  %v1739_v8 = vsel %vm7787_vm4, %v1675_v0, 0.0  ;;  %v1740_v55 = vsel %vm7791_vm5, %v1676_v59, 0.0  ;;  %v10608_v60 = vld [vmem:[#allocation80_spill] sm:$0xff]  ;;  %v8059_v42 = vpop.permute.xlu0 %3580 }
 0x659   : > { %v1996_v33 = vsel %vm1993_vm6, %v10602_v5, %v10601_v9  ;;  %v1447_v35 = vsel %vm1443_vm7, %v10597_v47, %v10603_v56  ;;  %v10604_v26 = vld [vmem:[#allocation55_spill] sm:$0xff]  ;;  %v10606_v5 = vld [vmem:[#allocation70_spill] sm:$0xff]  ;;  %v1508_v56 = vadd.f32 %v1444_v46, %v7796_v61  ;;  %v1510_v47 = vadd.f32 %v1446_v3, %v7802_v63  ;;  %v10612_v59 = vld [vmem:[#allocation73_spill] sm:$0xff]  ;;  %10615 = vst [vmem:[#allocation46_spill] sm:$0xff] %v8059_v42 }
 0x65a   : > { %v1997_v1 = vsel %vm1993_vm6, %v10601_v9, %v10604_v26  ;;  %v10605_v41 = vld [vmem:[#allocation75_spill] sm:$0xff]  ;;  %v10609_v19 = vld [vmem:[#allocation78_spill] sm:$0xff]  ;;  %v1509_v44 = vadd.f32 %v1445_v45, %v7799_v53  ;;  %v1511_v9 = vadd.f32 %v1447_v35, %v7805_v49  ;;  %v2060_v26 = vsel %vm7751_vm2, %v1996_v33, 0.0  ;;  %v10611_v53 = vld [vmem:[#allocation76_spill] sm:$0xff] }
 0x65b   : > { %v1679_v17 = vsel %vm1672_vm3, %v10606_v5, %v10605_v41  ;;  %v1450_v0 = vsel %vm1443_vm7, %v10609_v19, %v10608_v60  ;;  %v2058_v5 = vsel %vm7751_vm2, %v1994_v34, 0.0  ;;  %v10610_v61 = vld [vmem:[#allocation27_spill] sm:$0xff]  ;;  %v2061_v63 = vsel %vm7747_vm1, %v1997_v1, 0.0  ;;  %v10616_v39 = vld [vmem:[#allocation26_spill] sm:$0xff] }
 0x65c   : > { %3648 = vrot.lane.b32.xlu0 %v10479_v24, %s5080_s16  ;;  %v1835_v46 = vmul.f32 %v10610_v61, %v1739_v8  ;;  %v1743_v19 = vsel %vm7787_vm4, %v1679_v17, 0.0  ;;  %v2000_v49 = vsel %vm1993_vm6, %v10612_v59, %v10611_v53  ;;  %3616 = vrot.lane.b32.xlu1 %v6021_v40, %s5080_s16  ;;  %v1836_v3 = vmul.f32 %v10610_v61, %v1740_v55  ;;  %v10613_v24 = vld [vmem:[#allocation207_spill] sm:$0xff]  ;;  %v10614_v17 = vld [vmem:[#allocation208_spill] sm:$0xff] }
 0x65d   : > { %v1514_v35 = vadd.f32 %v1450_v0, %v7814_v10  ;;  %v2156_v34 = vmul.f32 %v10613_v24, %v2060_v26  ;;  %v2157_v45 = vmul.f32 %v10613_v24, %v2061_v63  ;;  %4922 = vset.pattern.permute.xlu1 %v10508_v6  ;;  %v1865_v33 = vadd.f32 %v1833_v57, %v1508_v56  ;;  %v8065_v0 = vpop.permute.xlu1 %3582  ;;  %v10618_v56 = vld [vmem:[#allocation63_spill] sm:$0xff]  ;;  %v10625_v24 = vld [vmem:[#allocation225_spill] sm:$0xff] }
 0x65e   : > { %v1867_v8 = vadd.f32 %v1835_v46, %v1510_v47  ;;  %v2154_v1 = vmul.f32 %v10614_v17, %v2058_v5  ;;  %v1868_v59 = vadd.f32 %v1836_v3, %v1511_v9  ;;  %v1839_v40 = vmul.f32 %v10616_v39, %v1743_v19  ;;  %10617 = vst [vmem:[#allocation45_spill] sm:$0xff] %v8065_v0  ;;  %v10619_v47 = vld [vmem:[#allocation60_spill] sm:$0xff]  ;;  %v10620_v5 = vld [vmem:[#allocation210_spill] sm:$0xff]  ;;  %v10621_v63 = vld [vmem:[#allocation223_spill] sm:$0xff] }
 0x65f   : > { %v2155_v55 = vmul.f32 %v10614_v17, %v2059_v38  ;;  %v2064_v10 = vsel %vm7751_vm2, %v2000_v49, 0.0  ;;  %v1866_v57 = vadd.f32 %v1834_v27, %v1509_v44  ;;  %v8072_v26 = vsel %vm1672_vm3, %v10619_v47, %v10618_v56  ;;  %v10622_v19 = vld [vmem:[#allocation224_spill] sm:$0xff]  ;;  %v10623_v44 = vld [vmem:[#allocation226_spill] sm:$0xff]  ;;  %v10645_v42 = vld [vmem:[#allocation427_spill] sm:$0xff] }
 0x660   : > { %3644 = vrot.lane.b32.xlu0 %v6208_v62, %s5080_s16  ;;  %v2160_v9 = vmul.f32 %v10620_v5, %v2064_v10  ;;  %3622 = vrot.lane.b32.xlu1 %v6075_v15, %s5080_s16  ;;  %v1871_v38 = vadd.f32 %v1839_v40, %v1514_v35  ;;  %v2188_v61 = vadd.f32 %v2156_v34, %v1867_v8  ;;  %v10624_v3 = vld [vmem:[#allocation228_spill] sm:$0xff]  ;;  %v10626_v10 = vld [vmem:[#allocation227_spill] sm:$0xff] }
 0x661   : > { %v2189_v46 = vadd.f32 %v2157_v45, %v1868_v59  ;;  %v2475_v49 = vsel %vm2474_vm8, %v10622_v19, %v10621_v63  ;;  %v2186_v62 = vadd.f32 %v2154_v1, %v1865_v33  ;;  %v2476_v27 = vsel %vm2474_vm8, %v10621_v63, %v10623_v44  ;;  %v10627_v34 = vld [vmem:[#allocation271_spill] sm:$0xff]  ;;  %v10628_v45 = vld [vmem:[#allocation272_spill] sm:$0xff]  ;;  %v10629_v59 = vld [vmem:[#allocation273_spill] sm:$0xff] }
 0x662   : > { %v2477_v17 = vsel %vm2474_vm8, %v10625_v24, %v10624_v3  ;;  %v2478_v15 = vsel %vm2474_vm8, %v10624_v3, %v10626_v10  ;;  %v2187_v35 = vadd.f32 %v2155_v55, %v1866_v57  ;;  %v2668_v8 = vsel %vm2667_vm9, %v10628_v45, %v10627_v34  ;;  %v8098_v1 = vld [vmem:[%s9810_s3 + $0x68] sm:$0xff]  ;;  %v10630_v63 = vld [vmem:[#allocation160_spill] sm:$0xff]  ;;  %v10632_v19 = vld [vmem:[#allocation159_spill] sm:$0xff]  ;;  %v3585_v3 = vpop.permute.xlu0 %3584 }
 0x663   : > { %v2669_v33 = vsel %vm2667_vm9, %v10627_v34, %v10629_v59  ;;  %v2192_v40 = vadd.f32 %v2160_v9, %v1871_v38  ;;  %v2539_v47 = vadd.f32 %v2475_v49, %v2186_v62  ;;  %v10631_v55 = vld [vmem:[#allocation156_spill] sm:$0xff]  ;;  %v2671_v44 = vsel %vm2667_vm9, %v10630_v63, %v10632_v19  ;;  %v10633_v45 = vld [vmem:[#allocation277_spill] sm:$0xff]  ;;  %v10634_v59 = vld [vmem:[#allocation274_spill] sm:$0xff]  ;;  %v8112_v38 = vpop.permute.xlu1 %3586 }
 0x664   : > { %4036 = vperm.xlu0 %4927, %v8098_v1   ;;  %v2670_v57 = vsel %vm2667_vm9, %v10631_v55, %v10630_v63  ;;  %3614 = vrot.lane.b32.xlu1 %v6016_v36, %s5080_s16  ;;  %v2540_v24 = vadd.f32 %v2476_v27, %v2187_v35  ;;  %v2541_v10 = vadd.f32 %v2477_v17, %v2188_v61  ;;  %v10635_v49 = vld [vmem:[#allocation234_spill] sm:$0xff]  ;;  %v10636_v62 = vld [vmem:[#allocation231_spill] sm:$0xff]  ;;  %v2732_v63 = vsel %vm7787_vm4, %v2668_v8, 0.0 }
 0x665   : > { %v2542_v34 = vadd.f32 %v2478_v15, %v2189_v46  ;;  %v2674_v9 = vsel %vm2667_vm9, %v10634_v59, %v10633_v45  ;;  %v2481_v55 = vsel %vm2474_vm8, %v10636_v62, %v10635_v49  ;;  %v2733_v19 = vsel %vm7791_vm5, %v2669_v33, 0.0  ;;  %v10637_v15 = vld [vmem:[#allocation314_spill] sm:$0xff] }
 0x666   : > { %v2989_v36 = vsel %vm2988_vm10, %v7273_v22, %v7275_v28  ;;  %v2734_v61 = vsel %vm7787_vm4, %v2670_v57, 0.0  ;;  %v2735_v46 = vsel %vm7791_vm5, %v2671_v44, 0.0  ;;  %v2990_v27 = vsel %vm2988_vm10, %v7275_v28, %v7279_v4  ;;  %v10638_v22 = vld [vmem:[#allocation315_spill] sm:$0xff] }
 0x667   : > { %v2991_v17 = vsel %vm2988_vm10, %v7281_v30, %v7285_v14  ;;  %v2830_v35 = vmul.f32 %v10637_v15, %v2734_v61  ;;  %v2828_v8 = vmul.f32 %v10638_v22, %v2732_v63  ;;  %v2738_v33 = vsel %vm7787_vm4, %v2674_v9, 0.0  ;;  %v10639_v9 = vld [vmem:[#allocation317_spill] sm:$0xff] }
 0x668   : > { %3652 = vrot.lane.b32.xlu0 %v10481_v20, %s5080_s16  ;;  %v2992_v57 = vsel %vm2988_vm10, %v7285_v14, %v7287_v25  ;;  %4016 = vperm.xlu1 %4922, %v7663_v21   ;;  %v2831_v4 = vmul.f32 %v10637_v15, %v2735_v46  ;;  %v2829_v30 = vmul.f32 %v10638_v22, %v2733_v19  ;;  %v3053_v59 = vsel %vm7751_vm2, %v2989_v36, 0.0  ;;  %v10640_v25 = vld [vmem:[#allocation364_spill] sm:$0xff]  ;;  %v10641_v15 = vld [vmem:[#allocation365_spill] sm:$0xff] }
 0x669   : > { %v3761_v28 = vpop.permute.xlu0 %3760  ;;  %v2995_v44 = vsel %vm2988_vm10, %v7299_v37, %v7303_v23  ;;  %v3765_v62 = vpop.permute.xlu1 %3764  ;;  %v2834_v63 = vmul.f32 %v10639_v9, %v2738_v33  ;;  %v3054_v14 = vsel %vm7747_vm1, %v2990_v27, 0.0  ;;  %v3149_v21 = vmul.f32 %v10640_v25, %v3053_v59 }
 0x66a   : > { %v3055_v61 = vsel %vm7751_vm2, %v2991_v17, 0.0  ;;  %v2545_v46 = vadd.f32 %v2481_v55, %v2192_v40  ;;  %v3056_v19 = vsel %vm7747_vm1, %v2992_v57, 0.0  ;;  %v3150_v37 = vmul.f32 %v10640_v25, %v3054_v14  ;;  %v10642_v55 = vld [vmem:[#allocation62_spill] sm:$0xff]  ;;  %v10643_v14 = vld [vmem:[#allocation368_spill] sm:$0xff] }
 0x66b   : > { %v3151_v22 = vmul.f32 %v10641_v15, %v3055_v61  ;;  %v2860_v36 = vadd.f32 %v2828_v8, %v2539_v47  ;;  %v3152_v33 = vmul.f32 %v10641_v15, %v3056_v19  ;;  %v3059_v27 = vsel %vm7751_vm2, %v2995_v44, 0.0  ;;  %v10644_v47 = vld [vmem:[#allocation423_spill] sm:$0xff] }
 0x66c   : > { %3658 = vrot.lane.b32.xlu0 %v10484_v29, %s5080_s16  ;;  %4923 = vset.pattern.permute.xlu1 %v10501_v43  ;;  %v8172_v17 = vsel %vm1672_vm3, %v10618_v56, %v10642_v55  ;;  %v2862_v57 = vadd.f32 %v2830_v35, %v2541_v10  ;;  %v2861_v59 = vadd.f32 %v2829_v30, %v2540_v24  ;;  %v10647_v30 = vld [vmem:[#allocation79_spill] sm:$0xff] }
 0x66d   : > { %v8167_v40 = vpop.permute.xlu0 %3772  ;;  %v3155_v25 = vmul.f32 %v10643_v14, %v3059_v27  ;;  %3808 = vperm.xlu1 %4923, %v10644_v47   ;;  %v8176_v8 = vpop.permute.xlu1 %3768  ;;  %v2863_v61 = vadd.f32 %v2831_v4, %v2542_v34  ;;  %v2866_v44 = vadd.f32 %v2834_v63, %v2545_v46  ;;  %v3181_v19 = vadd.f32 %v3149_v21, %v2860_v36  ;;  %v10646_v4 = vld [vmem:[#allocation86_spill] sm:$0xff]  ;;  %v10649_v63 = vld [vmem:[#allocation381_spill] sm:$0xff]  ;;  %v10650_v21 = vld [vmem:[#allocation380_spill] sm:$0xff] }
 0x66e   : > { %v3182_v15 = vadd.f32 %v3150_v37, %v2861_v59  ;;  %v3183_v0 = vadd.f32 %v3151_v22, %v2862_v57  ;;  %v3663_v43 = vsel %vm3662_vm11, %v10645_v42, %v7857_v16  ;;  %v3664_v56 = vsel %vm3662_vm11, %v7857_v16, %v7871_v13  ;;  %v10648_v13 = vld [vmem:[#allocation87_spill] sm:$0xff]  ;;  %v10653_v37 = vld [vmem:[#allocation386_spill] sm:$0xff] }
 0x66f   : > { %v3184_v24 = vadd.f32 %v3152_v33, %v2863_v61  ;;  %v3665_v10 = vsel %vm3662_vm11, %v7933_v50, %v7945_v32  ;;  %v3666_v34 = vsel %vm3662_vm11, %v7945_v32, %v8013_v48  ;;  %v3669_v35 = vsel %vm3662_vm11, %v3585_v3, %v8112_v38  ;;  %v10651_v32 = vld [vmem:[#allocation382_spill] sm:$0xff]  ;;  %v10652_v3 = vld [vmem:[#allocation387_spill] sm:$0xff] }
 0x670   : > { %3650 = vrot.lane.b32.xlu0 %v10480_v31, %s5080_s16  ;;  %v3470_v16 = vsel %vm3469_vm12, %v10647_v30, %v10646_v4  ;;  %v3471_v31 = vsel %vm3469_vm12, %v10646_v4, %v10648_v13  ;;  %v3472_v50 = vsel %vm3469_vm12, %v10650_v21, %v10649_v63  ;;  %v3187_v46 = vadd.f32 %v3155_v25, %v2866_v44  ;;  %v8225_v61 = vld [vmem:[%s9810_s3 + $0x70] sm:$0xff]  ;;  %v10656_v30 = vld [vmem:[#allocation93_spill] sm:$0xff] }
 0x671   : > { %v8194_v42 = vpop.permute.xlu0 %3776  ;;  %3812 = vperm.xlu1 %4923, %v8098_v1   ;;  %v3473_v48 = vsel %vm3469_vm12, %v10649_v63, %v10651_v32  ;;  %v3476_v22 = vsel %vm3469_vm12, %v10653_v37, %v10652_v3  ;;  %v3727_v36 = vsel %vm7787_vm4, %v3663_v43, 0.0  ;;  %v3728_v33 = vsel %vm7791_vm5, %v3664_v56, 0.0 }
 0x672   : > { %v3889_v27 = vpop.permute.xlu1 %3888  ;;  %v3729_v55 = vsel %vm7787_vm4, %v3665_v10, 0.0  ;;  %v3730_v57 = vsel %vm7791_vm5, %v3666_v34, 0.0  ;;  %v3823_v59 = vmul.f32 %v3761_v28, %v3727_v36  ;;  %v3733_v25 = vsel %vm7787_vm4, %v3669_v35, 0.0 }
 0x673   : > { %v3825_v43 = vmul.f32 %v3765_v62, %v3729_v55  ;;  %v3826_v44 = vmul.f32 %v3765_v62, %v3730_v57  ;;  %v3824_v56 = vmul.f32 %v3761_v28, %v3728_v33  ;;  %v3829_v4 = vmul.f32 %v8167_v40, %v3733_v25 }
 0x674   : > { %4040 = vperm.xlu0 %4927, %v8225_v61   ;;  %v1741_v10 = vsel %vm7787_vm4, %v8072_v26, 0.0  ;;  %v10654_v34 = vsel %vm7747_vm1, %v10481_v20, 0.0  ;;  %v3534_v63 = vadd.f32 %v3470_v16, %v3181_v19  ;;  %v3535_v62 = vadd.f32 %v3471_v31, %v3182_v15 }
 0x675   : > { %v8237_v35 = vmul.f32 %v10587_v51, %v10654_v34  ;;  %4924 = vset.pattern.permute.xlu1 %v10504_v12  ;;  %v3536_v21 = vadd.f32 %v3472_v50, %v3183_v0  ;;  %v3537_v32 = vadd.f32 %v3473_v48, %v3184_v24  ;;  %v3540_v37 = vadd.f32 %v3476_v22, %v3187_v46  ;;  %v10657_v51 = vld [vmem:[#allocation74_spill] sm:$0xff]  ;;  %v10658_v50 = vld [vmem:[#allocation25_spill] sm:$0xff]  ;;  %v10660_v48 = vld [vmem:[#allocation64_spill] sm:$0xff] }
 0x676   : > { %v3893_v28 = vpop.permute.xlu0 %3892  ;;  %3932 = vperm.xlu1 %4924, %v7950_v54   ;;  %v1742_v20 = vsel %vm7791_vm5, %v8172_v17, 0.0  ;;  %v1680_v26 = vsel %vm1672_vm3, %v10605_v41, %v10657_v51  ;;  %v3855_v16 = vadd.f32 %v3823_v59, %v3534_v63  ;;  %v3856_v15 = vadd.f32 %v3824_v56, %v3535_v62  ;;  %v10659_v46 = vld [vmem:[#allocation65_spill] sm:$0xff]  ;;  %v10664_v34 = vld [vmem:[#allocation82_spill] sm:$0xff]  ;;  %v10667_v51 = vld [vmem:[#allocation67_spill] sm:$0xff] }
 0x677   : > { %10655 = vst [vmem:[#allocation53_spill] sm:$0xff] %v8237_v35  ;;  %v3985_v36 = vpop.permute.xlu1 %3984  ;;  %v3857_v0 = vadd.f32 %v3825_v43, %v3536_v21  ;;  %v3858_v24 = vadd.f32 %v3826_v44, %v3537_v32  ;;  %v3861_v31 = vadd.f32 %v3829_v4, %v3540_v37  ;;  %v1837_v54 = vmul.f32 %v10658_v50, %v1741_v10  ;;  %v10661_v22 = vld [vmem:[#allocation81_spill] sm:$0xff]  ;;  %v10663_v10 = vld [vmem:[#allocation83_spill] sm:$0xff] }
 0x678   : > { %v8257_v17 = vsel %vm1993_vm6, %v10660_v48, %v10659_v46  ;;  %v1451_v41 = vsel %vm1443_vm7, %v10608_v60, %v10661_v22  ;;  %v3951_v33 = vmul.f32 %v3889_v27, %v3855_v16  ;;  %v3952_v57 = vmul.f32 %v3889_v27, %v3856_v15  ;;  %v10662_v4 = vld [vmem:[#allocation77_spill] sm:$0xff] }
 0x679   : > { %v3953_v59 = vmul.f32 %v3893_v28, %v3857_v0  ;;  %v3954_v25 = vmul.f32 %v3893_v28, %v3858_v24  ;;  %v1838_v44 = vmul.f32 %v10658_v50, %v1742_v20  ;;  %v1744_v56 = vsel %vm7791_vm5, %v1680_v26, 0.0  ;;  %v10665_v32 = vld [vmem:[#allocation61_spill] sm:$0xff]  ;;  %v10666_v20 = vld [vmem:[#allocation68_spill] sm:$0xff] }
 0x67a   : > { %v8262_v55 = vpop.permute.xlu0 %3900  ;;  %3628 = vrot.lane.b32.xlu1 %v6101_v18, %s5080_s16  ;;  %v2001_v60 = vsel %vm1993_vm6, %v10611_v53, %v10662_v4  ;;  %v1681_v27 = vsel %vm1672_vm3, %v10664_v34, %v10663_v10  ;;  %v4048_v18 = vadd.f32 %v3985_v36, %v3952_v57  ;;  %v4047_v62 = vadd.f32 %v3985_v36, %v3951_v33  ;;  %v10668_v0 = vld [vmem:[#allocation69_spill] sm:$0xff]  ;;  %v10672_v57 = vld [vmem:[#allocation88_spill] sm:$0xff] }
 0x67b   : > { %v8267_v43 = vmul.f32 %v8262_v55, %v3861_v31  ;;  %v3989_v63 = vpop.permute.xlu1 %3988  ;;  %4925 = vset.pattern.permute.xlu1 %v10508_v6  ;;  %v8282_v37 = vsel %vm1993_vm6, %v10665_v32, %v10660_v48  ;;  %v1448_v26 = vsel %vm1443_vm7, %v10667_v51, %v10666_v20  ;;  %v1515_v16 = vadd.f32 %v1451_v41, %v7846_v2  ;;  %v10669_v31 = vld [vmem:[#allocation66_spill] sm:$0xff]  ;;  %v10670_v2 = vld [vmem:[#allocation84_spill] sm:$0xff]  ;;  %v10671_v33 = vld [vmem:[#allocation85_spill] sm:$0xff] }
 0x67c   : > { %v4050_v28 = vadd.f32 %v3989_v63, %v3954_v25  ;;  %v4049_v21 = vadd.f32 %v3989_v63, %v3953_v59  ;;  %v1449_v36 = vsel %vm1443_vm7, %v10666_v20, %v10668_v0  ;;  %v1840_v24 = vmul.f32 %v10616_v39, %v1744_v56  ;;  %v10673_v39 = vld [vmem:[#allocation91_spill] sm:$0xff]  ;;  %v10678_v32 = vld [vmem:[#allocation89_spill] sm:$0xff]  ;;  %v10744_v56 = vld [vmem:[#allocation278_spill] sm:$0xff] }
 0x67d   : > { %v2065_v48 = vsel %vm7747_vm1, %v2001_v60, 0.0  ;;  %v1745_v22 = vsel %vm7787_vm4, %v1681_v27, 0.0  ;;  %v1682_v41 = vsel %vm1672_vm3, %v10663_v10, %v10670_v2  ;;  %v1452_v59 = vsel %vm1443_vm7, %v10672_v57, %v10671_v33  ;;  %v10674_v60 = vld [vmem:[#allocation276_spill] sm:$0xff]  ;;  %v10743_v53 = vld [vmem:[#allocation281_spill] sm:$0xff] }
 0x67e   : > { %v8291_v15 = vpop.permute.xlu0 %3904  ;;  %3634 = vrot.lane.b32.xlu1 %v10669_v31, %s5080_s16  ;;  %v4798_v50 = vpack.c.bf16 %v4050_v28, %v4048_v18  ;;  %v4800_v46 = vpack.c.bf16 %v4049_v21, %v4047_v62  ;;  %v1453_v25 = vsel %vm1443_vm7, %v10671_v33, %v10673_v39  ;;  %v2161_v4 = vmul.f32 %v10620_v5, %v2065_v48  ;;  %v10675_v10 = vld [vmem:[#allocation8_spill] sm:$0xff]  ;;  %v10676_v18 = vld [vmem:[#allocation13_spill] sm:$0xff]  ;;  %v10677_v21 = vld [vmem:[#allocation94_spill] sm:$0xff] }
 0x67f   : > { %v2675_v34 = vsel %vm2667_vm9, %v10633_v45, %v10674_v60  ;;  %v1512_v63 = vadd.f32 %v1448_v26, %v10675_v10  ;;  %v1513_v28 = vadd.f32 %v1449_v36, %v10676_v18  ;;  %v1872_v62 = vadd.f32 %v1840_v24, %v1515_v16  ;;  %v10679_v5 = vld [vmem:[#allocation29_spill] sm:$0xff]  ;;  %v10683_v36 = vld [vmem:[#allocation10_spill] sm:$0xff]  ;;  %v10684_v2 = vld [vmem:[#allocation92_spill] sm:$0xff] }
 0x680   : > { %v8319_v27 = vpop.permute.xlu1 %3780  ;;  %4799 = vmatprep.subr.bf16.mxu1 %v4798_v50  ;;  %v1683_v20 = vsel %vm1672_vm3, %v10678_v32, %v10677_v21  ;;  %v1841_v0 = vmul.f32 %v10679_v5, %v1745_v22  ;;  %v1746_v45 = vsel %vm7791_vm5, %v1682_v41, 0.0  ;;  %v10680_v31 = vld [vmem:[#allocation9_spill] sm:$0xff]  ;;  %v10681_v50 = vld [vmem:[#allocation327_spill] sm:$0xff]  ;;  %v1517_v24 = vadd.f32 %v1453_v25, %v10683_v36 }
 0x681   : > { %4801 = vmatpush1.bf16.msra.mxu1 %v4800_v46  ;;  %v1516_v48 = vadd.f32 %v1452_v59, %v10680_v31  ;;  %v2996_v26 = vsel %vm2988_vm10, %v7303_v23, %v10681_v50  ;;  %v10682_v16 = vld [vmem:[#allocation57_spill] sm:$0xff]  ;;  %v1684_v46 = vsel %vm1672_vm3, %v10677_v21, %v10684_v2  ;;  %v2739_v41 = vsel %vm7791_vm5, %v2675_v34, 0.0  ;;  %v10687_v59 = vld [vmem:[#allocation95_spill] sm:$0xff]  ;;  %v10688_v21 = vld [vmem:[#allocation98_spill] sm:$0xff] }
 0x682   : > { %v8326_v51 = vpop.permute.xlu0 %3594  ;;  %3626 = vrot.lane.b32.xlu1 %v10682_v16, %s5080_s16  ;;  %v10685_v33 = vld [vmem:[#allocation233_spill] sm:$0xff]  ;;  %v1747_v57 = vsel %vm7787_vm4, %v1683_v20, 0.0  ;;  %v2193_v60 = vadd.f32 %v2161_v4, %v1872_v62  ;;  %v2835_v25 = vmul.f32 %v10639_v9, %v2739_v41  ;;  %v8352_v10 = vadd.f32 %v1837_v54, %v1512_v63  ;;  %v10689_v63 = vld [vmem:[#allocation414_spill] sm:$0xff]  ;;  %v10692_v36 = vld [vmem:[#allocation11_spill] sm:$0xff] }
 0x683   : > { %v2482_v22 = vsel %vm2474_vm8, %v10635_v49, %v10685_v33  ;;  %v10686_v23 = vld [vmem:[#allocation97_spill] sm:$0xff]  ;;  %v1842_v18 = vmul.f32 %v10679_v5, %v1746_v45  ;;  %v3060_v34 = vsel %vm7747_vm1, %v2996_v26, 0.0  ;;  %v8364_v31 = vadd.f32 %v1838_v44, %v1513_v28  ;;  %v10690_v45 = vld [vmem:[#allocation28_spill] sm:$0xff]  ;;  %v10691_v26 = vld [vmem:[#allocation15_spill] sm:$0xff] }
 0x684   : > { %v1454_v39 = vsel %vm1443_vm7, %v10687_v59, %v10686_v23  ;;  %v1455_v49 = vsel %vm1443_vm7, %v10686_v23, %v10688_v21  ;;  %v8366_v4 = vadd.f32 %v1841_v0, %v1516_v48  ;;  %v2546_v9 = vadd.f32 %v2482_v22, %v2193_v60  ;;  %v10693_v44 = vld [vmem:[#allocation101_spill] sm:$0xff]  ;;  %v10694_v28 = vld [vmem:[#allocation100_spill] sm:$0xff]  ;;  %v10695_v48 = vld [vmem:[#allocation102_spill] sm:$0xff] }
 0x685   : > { %v8360_v32 = vpop.permute.xlu1 %3896  ;;  %v3156_v54 = vmul.f32 %v10643_v14, %v3060_v34  ;;  %v8370_v62 = vadd.f32 %v1842_v18, %v1517_v24  ;;  %v1748_v5 = vsel %vm7791_vm5, %v1684_v46, 0.0  ;;  %v1843_v50 = vmul.f32 %v10690_v45, %v1747_v57  ;;  %v10696_v24 = vld [vmem:[#allocation103_spill] sm:$0xff]  ;;  %v10697_v22 = vld [vmem:[#allocation104_spill] sm:$0xff]  ;;  %v10698_v46 = vld [vmem:[#allocation106_spill] sm:$0xff] }
 0x686   : > { %v8362_v20 = vpop.permute.xlu0 %3600  ;;  %4024 = vperm.xlu1 %4925, %v10689_v63   ;;  %v1518_v16 = vadd.f32 %v1454_v39, %v10691_v26  ;;  %v1519_v2 = vadd.f32 %v1455_v49, %v10692_v36  ;;  %v1685_v0 = vsel %vm1672_vm3, %v10694_v28, %v10693_v44  ;;  %v1686_v14 = vsel %vm1672_vm3, %v10693_v44, %v10695_v48  ;;  %v10699_v23 = vld [vmem:[#allocation108_spill] sm:$0xff]  ;;  %v10700_v59 = vld [vmem:[#allocation105_spill] sm:$0xff] }
 0x687   : > { %v2867_v33 = vadd.f32 %v2835_v25, %v2546_v9  ;;  %v1456_v41 = vsel %vm1443_vm7, %v10697_v22, %v10696_v24  ;;  %v1457_v57 = vsel %vm1443_vm7, %v10696_v24, %v10698_v46  ;;  %v1687_v39 = vsel %vm1672_vm3, %v10700_v59, %v10699_v23  ;;  %v10701_v60 = vld [vmem:[#allocation388_spill] sm:$0xff]  ;;  %v10702_v25 = vld [vmem:[#allocation107_spill] sm:$0xff]  ;;  %v10703_v9 = vld [vmem:[#allocation110_spill] sm:$0xff] }
 0x688   : > { %v3477_v18 = vsel %vm3469_vm12, %v10652_v3, %v10701_v60  ;;  %v1688_v34 = vsel %vm1672_vm3, %v10699_v23, %v10702_v25  ;;  %v10704_v63 = vld [vmem:[#allocation109_spill] sm:$0xff]  ;;  %v10705_v28 = vmov 8   ;;  %v1749_v3 = vsel %vm7787_vm4, %v1685_v0, 0.0  ;;  %v10706_v24 = vld [vmem:[#allocation111_spill] sm:$0xff] }
 0x689   : > { %v3589_v21 = vpop.permute.xlu1 %3588  ;;  %v1458_v26 = vsel %vm1443_vm7, %v10704_v63, %v10703_v9  ;;  %v3188_v36 = vadd.f32 %v3156_v54, %v2867_v33  ;;  %v1750_v48 = vsel %vm7791_vm5, %v1686_v14, 0.0  ;;  %v1459_v22 = vsel %vm1443_vm7, %v10703_v9, %v10706_v24  ;;  %v10707_v54 = vld [vmem:[#allocation113_spill] sm:$0xff]  ;;  %v10708_v33 = vld [vmem:[#allocation112_spill] sm:$0xff] }
 0x68a   : > { %v8395_v49 = vpop.permute.xlu0 %3596  ;;  %v3670_v44 = vsel %vm3662_vm11, %v8112_v38, %v3589_v21  ;;  %4926 = vset.pattern.permute.xlu1 %v10705_v28  ;;  %v1751_v38 = vsel %vm7787_vm4, %v1687_v39, 0.0  ;;  %v1689_v23 = vsel %vm1672_vm3, %v10708_v33, %v10707_v54  ;;  %v10709_v14 = vld [vmem:[#allocation17_spill] sm:$0xff]  ;;  %v10710_v21 = vld [vmem:[#allocation428_spill] sm:$0xff]  ;;  %v1752_v9 = vsel %vm7791_vm5, %v1688_v34, 0.0  ;;  %v10715_v33 = vld [vmem:[#allocation30_spill] sm:$0xff] }
 0x68b   : > { %v3734_v46 = vsel %vm7791_vm5, %v3670_v44, 0.0  ;;  %3816 = vperm.xlu1 %4926, %v8225_v61   ;;  %v3541_v0 = vadd.f32 %v3477_v18, %v3188_v36  ;;  %v1520_v60 = vadd.f32 %v1456_v41, %v10709_v14  ;;  %v1521_v25 = vadd.f32 %v1457_v57, %v10710_v21  ;;  %v10711_v63 = vld [vmem:[#allocation12_spill] sm:$0xff]  ;;  %v10713_v18 = vld [vmem:[#allocation429_spill] sm:$0xff] }
 0x68c   : > { %v3830_v59 = vmul.f32 %v8167_v40, %v3734_v46  ;;  %v1522_v44 = vadd.f32 %v1458_v26, %v10711_v63  ;;  %v1844_v39 = vmul.f32 %v10690_v45, %v1748_v5  ;;  %v8432_v19 = vadd.f32 %v1843_v50, %v1518_v16  ;;  %v10714_v46 = vld [vmem:[#allocation31_spill] sm:$0xff]  ;;  %v10716_v45 = vld [vmem:[#allocation114_spill] sm:$0xff]  ;;  %v10720_v63 = vld [vmem:[#allocation33_spill] sm:$0xff] }
 0x68d   : > { %v8427_v28 = vpop.permute.xlu1 %3992  ;;  %v1523_v36 = vadd.f32 %v1459_v22, %v10713_v18  ;;  %v1845_v41 = vmul.f32 %v10714_v46, %v1749_v3  ;;  %v1846_v57 = vmul.f32 %v10714_v46, %v1750_v48  ;;  %v1847_v14 = vmul.f32 %v10715_v33, %v1751_v38  ;;  %v8443_v26 = vld [vmem:[%s9810_s3 + $0x78] sm:$0xff]  ;;  %v10719_v3 = vld [vmem:[#allocation116_spill] sm:$0xff] }
 0x68e   : > { %v8429_v24 = vpop.permute.xlu0 %3912  ;;  %v3862_v40 = vadd.f32 %v3830_v59, %v3541_v0  ;;  %v1753_v34 = vsel %vm7787_vm4, %v1689_v23, 0.0  ;;  %v1848_v5 = vmul.f32 %v10715_v33, %v1752_v9  ;;  %v8450_v50 = vsel %vm1672_vm3, %v10707_v54, %v10716_v45  ;;  %v10718_v16 = vld [vmem:[#allocation115_spill] sm:$0xff]  ;;  %v10723_v46 = vld [vmem:[#allocation172_spill] sm:$0xff]  ;;  %v10724_v45 = vld [vmem:[#allocation174_spill] sm:$0xff] }
 0x68f   : > { %10712 = vst [vmem:[#allocation50_spill] sm:$0xff] %v8429_v24  ;;  %3820 = vperm.xlu1 %4926, %v8443_v26   ;;  %10717 = vst [vmem:[#allocation48_spill] sm:$0xff] %v8450_v50  ;;  %v1460_v48 = vsel %vm1443_vm7, %v10719_v3, %v10718_v16  ;;  %v1876_v38 = vadd.f32 %v1844_v39, %v1519_v2  ;;  %v8458_v23 = vadd.f32 %v1845_v41, %v1520_v60  ;;  %v10722_v54 = vld [vmem:[#allocation171_spill] sm:$0xff]  ;;  %v10727_v39 = vld [vmem:[#allocation176_spill] sm:$0xff] }
 0x690   : > { %v8456_v22 = vmul.f32 %v8262_v55, %v3862_v40  ;;  %v8460_v0 = vadd.f32 %v1846_v57, %v1521_v25  ;;  %v1879_v59 = vadd.f32 %v1847_v14, %v1522_v44  ;;  %v1880_v9 = vadd.f32 %v1848_v5, %v1523_v36  ;;  %v10725_v25 = vld [vmem:[#allocation19_spill] sm:$0xff]  ;;  %v10728_v36 = vld [vmem:[#allocation173_spill] sm:$0xff]  ;;  %v10730_v14 = vld [vmem:[#allocation118_spill] sm:$0xff] }
 0x691   : > { %v8465_v18 = vmul.f32 %v10720_v63, %v1753_v34  ;;  %v2002_v33 = vsel %vm1993_vm6, %v10723_v46, %v10722_v54  ;;  %v2003_v55 = vsel %vm1993_vm6, %v10722_v54, %v10724_v45  ;;  %v8479_v44 = vadd.f32 %v1460_v48, %v10725_v25  ;;  %v10729_v41 = vld [vmem:[#allocation175_spill] sm:$0xff]  ;;  %v10732_v5 = vld [vmem:[#allocation177_spill] sm:$0xff]  ;;  %v10733_v3 = vld [vmem:[#allocation178_spill] sm:$0xff] }
 0x692   : > { %v8462_v21 = vpop.permute.xlu0 %3606  ;;  %v8473_v2 = vpop.permute.xlu1 %3784  ;;  %v2004_v40 = vsel %vm1993_vm6, %v10728_v36, %v10727_v39  ;;  %v2005_v57 = vsel %vm1993_vm6, %v10727_v39, %v10729_v41  ;;  %v8491_v34 = vsel %vm1443_vm7, %v10718_v16, %v10730_v14  ;;  %v2006_v48 = vsel %vm1993_vm6, %v10733_v3, %v10732_v5  ;;  %v10734_v54 = vld [vmem:[#allocation182_spill] sm:$0xff]  ;;  %v10735_v46 = vld [vmem:[#allocation179_spill] sm:$0xff]  ;;  %v10736_v25 = vld [vmem:[#allocation181_spill] sm:$0xff] }
 0x693   : > { %10721 = vst [vmem:[#allocation47_spill] sm:$0xff] %v8465_v18  ;;  %10726 = vst [vmem:[#allocation52_spill] sm:$0xff] %v8479_v44  ;;  %4928 = vset.pattern.permute.xlu1 %v10504_v12  ;;  %v2008_v45 = vsel %vm1993_vm6, %v10735_v46, %v10734_v54  ;;  %v2009_v36 = vsel %vm1993_vm6, %v10734_v54, %v10736_v25  ;;  %v10737_v39 = vld [vmem:[#allocation120_spill] sm:$0xff]  ;;  %v10738_v41 = vld [vmem:[#allocation117_spill] sm:$0xff]  ;;  %v2066_v3 = vsel %vm7751_vm2, %v2002_v33, 0.0  ;;  %v2067_v46 = vsel %vm7747_vm1, %v2003_v55, 0.0 }
 0x694   : > { %10731 = vst [vmem:[#allocation58_spill] sm:$0xff] %v8491_v34  ;;  %3940 = vperm.xlu1 %4928, %v8098_v1   ;;  %v8506_v13 = vsel %vm1672_vm3, %v10738_v41, %v10737_v39  ;;  %v10740_v16 = vld [vmem:[#allocation119_spill] sm:$0xff]  ;;  %v2068_v25 = vsel %vm7751_vm2, %v2004_v40, 0.0  ;;  %v2069_v41 = vsel %vm7747_vm1, %v2005_v57, 0.0  ;;  %v2070_v33 = vsel %vm7751_vm2, %v2006_v48, 0.0  ;;  %v10746_v55 = vld [vmem:[#allocation180_spill] sm:$0xff] }
 0x695   : > { %10739 = vst [vmem:[#allocation56_spill] sm:$0xff] %v8506_v13  ;;  %v8511_v14 = vsel %vm1672_vm3, %v10737_v39, %v10740_v16  ;;  %v10742_v54 = vld [vmem:[#allocation211_spill] sm:$0xff]  ;;  %v2677_v39 = vsel %vm2667_vm9, %v10744_v56, %v10743_v53  ;;  %v2007_v35 = vsel %vm1993_vm6, %v10732_v5, %v10746_v55  ;;  %v2073_v40 = vsel %vm7747_vm1, %v2009_v36, 0.0  ;;  %v10748_v53 = vld [vmem:[#allocation209_spill] sm:$0xff]  ;;  %v10750_v55 = vld [vmem:[#allocation330_spill] sm:$0xff] }
 0x696   : > { %10741 = vst [vmem:[#allocation42_spill] sm:$0xff] %v8511_v14  ;;  %v8517_v60 = vpop.permute.xlu0 %3612  ;;  %v2163_v1 = vmul.f32 %v10742_v54, %v2067_v46  ;;  %v8527_v16 = vpop.permute.xlu1 %3788  ;;  %v2072_v46 = vsel %vm7751_vm2, %v2008_v45, 0.0  ;;  %v10747_v57 = vsel %vm7751_vm2, %v8282_v37, 0.0  ;;  %v10749_v48 = vsel %vm7747_vm1, %v8257_v17, 0.0  ;;  %v10751_v44 = vld [vmem:[#allocation329_spill] sm:$0xff]  ;;  %v10752_v36 = vld [vmem:[#allocation72_spill] sm:$0xff] }
 0x697   : > { %10745 = vst [vmem:[#allocation49_spill] sm:$0xff] %v8527_v16  ;;  %v2158_v29 = vmul.f32 %v10748_v53, %v10747_v57  ;;  %v2159_v18 = vmul.f32 %v10748_v53, %v10749_v48  ;;  %v2162_v5 = vmul.f32 %v10742_v54, %v2066_v3  ;;  %v2998_v45 = vsel %vm2988_vm10, %v10751_v44, %v10750_v55  ;;  %v10753_v63 = vld [vmem:[#allocation212_spill] sm:$0xff]  ;;  %v10754_v57 = vld [vmem:[#allocation238_spill] sm:$0xff]  ;;  %v10755_v14 = vld [vmem:[#allocation235_spill] sm:$0xff] }
 0x698   : > { %3640 = vrot.lane.b32.xlu1 %v10752_v36, %s5080_s16  ;;  %v2164_v50 = vmul.f32 %v10753_v63, %v2068_v25  ;;  %v2165_v37 = vmul.f32 %v10753_v63, %v2069_v41  ;;  %v2484_v24 = vsel %vm2474_vm8, %v10755_v14, %v10754_v57  ;;  %v2741_v17 = vsel %vm7791_vm5, %v2677_v39, 0.0  ;;  %v10756_v3 = vld [vmem:[#allocation214_spill] sm:$0xff]  ;;  %v10758_v39 = vld [vmem:[#allocation213_spill] sm:$0xff] }
 0x699   : > { %4929 = vset.pattern.permute.xlu1 %v10508_v6  ;;  %v2168_v54 = vmul.f32 %v10756_v3, %v2072_v46  ;;  %v2169_v48 = vmul.f32 %v10756_v3, %v2073_v40  ;;  %v2195_v55 = vadd.f32 %v2163_v1, %v8370_v62  ;;  %v10757_v25 = vld [vmem:[#allocation318_spill] sm:$0xff]  ;;  %v2071_v41 = vsel %vm7747_vm1, %v2007_v35, 0.0  ;;  %v10760_v40 = vld [vmem:[#allocation367_spill] sm:$0xff]  ;;  %v10761_v3 = vld [vmem:[#allocation40_spill] sm:$0xff] }
 0x69a   : > { %v8561_v53 = vpop.permute.xlu0 %3608  ;;  %v2837_v36 = vmul.f32 %v10757_v25, %v2741_v17  ;;  %v2166_v57 = vmul.f32 %v10758_v39, %v2070_v33  ;;  %v3062_v34 = vsel %vm7747_vm1, %v2998_v45, 0.0  ;;  %v2190_v46 = vadd.f32 %v2158_v29, %v8352_v10  ;;  %v10762_v10 = vld [vmem:[#allocation279_spill] sm:$0xff] }
 0x69b   : > { %v8576_v16 = vpop.permute.xlu1 %3908  ;;  %v2191_v62 = vadd.f32 %v2159_v18, %v8364_v31  ;;  %v2548_v1 = vadd.f32 %v2484_v24, %v2195_v55  ;;  %v3158_v17 = vmul.f32 %v10760_v40, %v3062_v34  ;;  %v2196_v63 = vadd.f32 %v2164_v50, %v8432_v19  ;;  %v10763_v18 = vld [vmem:[#allocation229_spill] sm:$0xff]  ;;  %v10764_v34 = vld [vmem:[#allocation230_spill] sm:$0xff]  ;;  %v10765_v50 = vld [vmem:[#allocation232_spill] sm:$0xff] }
 0x69c   : > { %10759 = vst [vmem:[#allocation54_spill] sm:$0xff] %v8576_v16  ;;  %3646 = vrot.lane.b32.xlu1 %v10761_v3, %s5080_s16  ;;  %v2197_v35 = vadd.f32 %v2165_v37, %v1876_v38  ;;  %v2167_v33 = vmul.f32 %v10758_v39, %v2071_v41  ;;  %v2194_v13 = vadd.f32 %v2162_v5, %v8366_v4  ;;  %v10766_v5 = vld [vmem:[#allocation391_spill] sm:$0xff] }
 0x69d   : > { %v8588_v16 = vadd.f32 %v2168_v54, %v1879_v59  ;;  %v8590_v29 = vadd.f32 %v2169_v48, %v1880_v9  ;;  %v2676_v31 = vsel %vm2667_vm9, %v10762_v10, %v10744_v56  ;;  %v2869_v24 = vadd.f32 %v2837_v36, %v2548_v1  ;;  %v10767_v59 = vld [vmem:[#allocation390_spill] sm:$0xff]  ;;  %v10768_v54 = vld [vmem:[#allocation236_spill] sm:$0xff]  ;;  %v10770_v39 = vld [vmem:[#allocation71_spill] sm:$0xff] }
 0x69e   : > { %v8586_v45 = vpop.permute.xlu0 %3920  ;;  %v2479_v19 = vsel %vm2474_vm8, %v10764_v34, %v10763_v18  ;;  %v2480_v38 = vsel %vm2474_vm8, %v10763_v18, %v10765_v50  ;;  %v2198_v4 = vadd.f32 %v2166_v57, %v8458_v23  ;;  %v3479_v9 = vsel %vm3469_vm12, %v10767_v59, %v10766_v5  ;;  %v10769_v48 = vld [vmem:[#allocation328_spill] sm:$0xff]  ;;  %v10772_v57 = vld [vmem:[#allocation237_spill] sm:$0xff]  ;;  %v10773_v3 = vld [vmem:[#allocation239_spill] sm:$0xff] }
 0x69f   : > { %v3593_v37 = vpop.permute.xlu1 %3592  ;;  %v2483_v56 = vsel %vm2474_vm8, %v10768_v54, %v10755_v14  ;;  %v2997_v55 = vsel %vm2988_vm10, %v10769_v48, %v10751_v44  ;;  %v3190_v36 = vadd.f32 %v3158_v17, %v2869_v24  ;;  %v10771_v23 = vld [vmem:[#allocation240_spill] sm:$0xff]  ;;  %v2740_v14 = vsel %vm7787_vm4, %v2676_v31, 0.0  ;;  %v10775_v24 = vld [vmem:[#allocation242_spill] sm:$0xff] }
 0x6a0   : > { %v3672_v41 = vsel %vm3662_vm11, %v3593_v37, %v8326_v51  ;;  %3638 = vrot.lane.b32.xlu1 %v10770_v39, %s5080_s16  ;;  %v2485_v1 = vsel %vm2474_vm8, %v10772_v57, %v10771_v23  ;;  %v2486_v10 = vsel %vm2474_vm8, %v10771_v23, %v10773_v3  ;;  %v10774_v51 = vld [vmem:[#allocation241_spill] sm:$0xff]  ;;  %v2836_v34 = vmul.f32 %v10757_v25, %v2740_v14  ;;  %v10776_v57 = vld [vmem:[#allocation244_spill] sm:$0xff] }
 0x6a1   : > { %v3736_v44 = vsel %vm7791_vm5, %v3672_v41, 0.0  ;;  %v2487_v18 = vsel %vm2474_vm8, %v10775_v24, %v10774_v51  ;;  %v3543_v50 = vadd.f32 %v3479_v9, %v3190_v36  ;;  %v2543_v54 = vadd.f32 %v2479_v19, %v2190_v46  ;;  %v10777_v19 = vld [vmem:[#allocation163_spill] sm:$0xff]  ;;  %v10781_v36 = vld [vmem:[#allocation280_spill] sm:$0xff] }
 0x6a2   : > { %v8625_v17 = vpop.permute.xlu0 %3618  ;;  %v3832_v5 = vmul.f32 %v8194_v42, %v3736_v44  ;;  %v2544_v48 = vadd.f32 %v2480_v38, %v2191_v62  ;;  %v2199_v39 = vadd.f32 %v2167_v33, %v8460_v0  ;;  %v3061_v31 = vsel %vm7751_vm2, %v2997_v55, 0.0  ;;  %v10778_v0 = vld [vmem:[#allocation164_spill] sm:$0xff]  ;;  %v10779_v55 = vld [vmem:[#allocation275_spill] sm:$0xff] }
 0x6a3   : > { %v8635_v23 = vpop.permute.xlu1 %3598  ;;  %v2547_v41 = vadd.f32 %v2483_v56, %v2194_v13  ;;  %v2488_v3 = vsel %vm2474_vm8, %v10774_v51, %v10776_v57  ;;  %v3157_v24 = vmul.f32 %v10760_v40, %v3061_v31  ;;  %v2549_v9 = vadd.f32 %v2485_v1, %v2196_v63  ;;  %v10780_v56 = vld [vmem:[#allocation283_spill] sm:$0xff]  ;;  %v10785_v51 = vld [vmem:[#allocation389_spill] sm:$0xff] }
 0x6a4   : > { %4032 = vperm.xlu1 %4929, %v10644_v47   ;;  %v3864_v25 = vadd.f32 %v3832_v5, %v3543_v50  ;;  %v2550_v46 = vadd.f32 %v2486_v10, %v2197_v35  ;;  %v2551_v62 = vadd.f32 %v2487_v18, %v2198_v4  ;;  %v2672_v33 = vsel %vm2667_vm9, %v10778_v0, %v10777_v19  ;;  %v10782_v35 = vld [vmem:[#allocation246_spill] sm:$0xff]  ;;  %v10783_v4 = vld [vmem:[#allocation243_spill] sm:$0xff]  ;;  %v10786_v5 = vld [vmem:[#allocation245_spill] sm:$0xff] }
 0x6a5   : > { %v2673_v13 = vsel %vm2667_vm9, %v10777_v19, %v10779_v55  ;;  %v2678_v40 = vsel %vm2667_vm9, %v10781_v36, %v10780_v56  ;;  %v2868_v14 = vadd.f32 %v2836_v34, %v2547_v41  ;;  %v2552_v63 = vadd.f32 %v2488_v3, %v2199_v39  ;;  %v10784_v10 = vld [vmem:[#allocation282_spill] sm:$0xff]  ;;  %v10787_v3 = vld [vmem:[#allocation284_spill] sm:$0xff] }
 0x6a6   : > { %v8645_v38 = vpop.permute.xlu0 %3624  ;;  %v8654_v47 = vmul.f32 %v8291_v15, %v3864_v25  ;;  %v2489_v1 = vsel %vm2474_vm8, %v10783_v4, %v10782_v35  ;;  %v2679_v44 = vsel %vm2667_vm9, %v10780_v56, %v10784_v10  ;;  %v3478_v18 = vsel %vm3469_vm12, %v10785_v51, %v10767_v59  ;;  %v10788_v25 = vld [vmem:[#allocation285_spill] sm:$0xff]  ;;  %v10791_v36 = vld [vmem:[#allocation286_spill] sm:$0xff] }
 0x6a7   : > { %v3591_v50 = vpop.permute.xlu1 %3590  ;;  %v2490_v34 = vsel %vm2474_vm8, %v10782_v35, %v10786_v5  ;;  %v2736_v39 = vsel %vm7787_vm4, %v2672_v33, 0.0  ;;  %v3189_v31 = vadd.f32 %v3157_v24, %v2868_v14  ;;  %v2737_v57 = vsel %vm7791_vm5, %v2673_v13, 0.0  ;;  %v10790_v56 = vld [vmem:[#allocation289_spill] sm:$0xff]  ;;  %v10792_v14 = vld [vmem:[#allocation288_spill] sm:$0xff] }
 0x6a8   : > { %v3671_v41 = vsel %vm3662_vm11, %v3591_v50, %v3593_v37  ;;  %4930 = vset.pattern.permute.xlu1 %v10504_v12  ;;  %v2680_v59 = vsel %vm2667_vm9, %v10788_v25, %v10787_v3  ;;  %v2742_v19 = vsel %vm7787_vm4, %v2678_v40, 0.0  ;;  %v10789_v37 = vld [vmem:[#allocation287_spill] sm:$0xff]  ;;  %v2743_v33 = vsel %vm7791_vm5, %v2679_v44, 0.0  ;;  %v10793_v35 = vld [vmem:[#allocation316_spill] sm:$0xff] }
 0x6a9   : > { %v3735_v0 = vsel %vm7787_vm4, %v3671_v41, 0.0  ;;  %3944 = vperm.xlu1 %4930, %v8225_v61   ;;  %v2681_v12 = vsel %vm2667_vm9, %v10787_v3, %v10789_v37  ;;  %v3542_v55 = vadd.f32 %v3478_v18, %v3189_v31  ;;  %v2682_v40 = vsel %vm2667_vm9, %v10791_v36, %v10790_v56  ;;  %v10794_v18 = vld [vmem:[#allocation319_spill] sm:$0xff]  ;;  %v10797_v37 = vld [vmem:[#allocation324_spill] sm:$0xff] }
 0x6aa   : > { %v8682_v24 = vpop.permute.xlu0 %3620  ;;  %v3831_v13 = vmul.f32 %v8194_v42, %v3735_v0  ;;  %v2683_v61 = vsel %vm2667_vm9, %v10790_v56, %v10792_v14  ;;  %v2832_v4 = vmul.f32 %v10793_v35, %v2736_v39  ;;  %v2833_v10 = vmul.f32 %v10793_v35, %v2737_v57  ;;  %v10795_v39 = vld [vmem:[#allocation147_spill] sm:$0xff]  ;;  %v10796_v0 = vld [vmem:[#allocation325_spill] sm:$0xff] }
 0x6ab   : > { %v8698_v51 = vpop.permute.xlu1 %4000  ;;  %v2744_v44 = vsel %vm7787_vm4, %v2680_v59, 0.0  ;;  %v2838_v50 = vmul.f32 %v10794_v18, %v2742_v19  ;;  %v2839_v42 = vmul.f32 %v10794_v18, %v2743_v33  ;;  %v2553_v31 = vadd.f32 %v2489_v1, %v8588_v16  ;;  %v10798_v33 = vld [vmem:[#allocation320_spill] sm:$0xff]  ;;  %v10804_v18 = vld [vmem:[#allocation335_spill] sm:$0xff] }
 0x6ac   : > { %v3863_v5 = vadd.f32 %v3831_v13, %v3542_v55  ;;  %v2554_v41 = vadd.f32 %v2490_v34, %v8590_v29  ;;  %v2745_v3 = vsel %vm7791_vm5, %v2681_v12, 0.0  ;;  %v2840_v25 = vmul.f32 %v10795_v39, %v2744_v44  ;;  %v10800_v44 = vld [vmem:[#allocation332_spill] sm:$0xff] }
 0x6ad   : > { %3948 = vperm.xlu1 %4930, %v8443_v26   ;;  %v2746_v59 = vsel %vm7787_vm4, %v2682_v40, 0.0  ;;  %v2747_v19 = vsel %vm7791_vm5, %v2683_v61, 0.0  ;;  %v2993_v16 = vsel %vm2988_vm10, %v10797_v37, %v10796_v0  ;;  %v2864_v1 = vadd.f32 %v2832_v4, %v2543_v54  ;;  %v10799_v40 = vld [vmem:[#allocation326_spill] sm:$0xff] }
 0x6ae   : > { %v8710_v57 = vpop.permute.xlu0 %3928  ;;  %v8720_v29 = vmul.f32 %v8291_v15, %v3863_v5  ;;  %v2865_v34 = vadd.f32 %v2833_v10, %v2544_v48  ;;  %v2841_v12 = vmul.f32 %v10795_v39, %v2745_v3  ;;  %v2842_v55 = vmul.f32 %v10798_v33, %v2746_v59  ;;  %v10801_v15 = vld [vmem:[#allocation331_spill] sm:$0xff]  ;;  %v10802_v48 = vld [vmem:[#allocation333_spill] sm:$0xff]  ;;  %v10807_v3 = vld [vmem:[#allocation338_spill] sm:$0xff] }
 0x6af   : > { %v2870_v13 = vadd.f32 %v2838_v50, %v2549_v9  ;;  %v2871_v56 = vadd.f32 %v2839_v42, %v2550_v46  ;;  %v2843_v36 = vmul.f32 %v10798_v33, %v2747_v19  ;;  %v2994_v14 = vsel %vm2988_vm10, %v10796_v0, %v10799_v40  ;;  %v10803_v46 = vld [vmem:[#allocation90_spill] sm:$0xff]  ;;  %v10806_v42 = vld [vmem:[#allocation336_spill] sm:$0xff]  ;;  %v10808_v39 = vld [vmem:[#allocation337_spill] sm:$0xff] }
 0x6b0   : > { %v8728_v61 = vpop.permute.xlu1 %3792  ;;  %v2872_v35 = vadd.f32 %v2840_v25, %v2551_v62  ;;  %v2999_v54 = vsel %vm2988_vm10, %v10801_v15, %v10800_v44  ;;  %v3000_v4 = vsel %vm2988_vm10, %v10800_v44, %v10802_v48  ;;  %v3057_v9 = vsel %vm7751_vm2, %v2993_v16, 0.0  ;;  %v10805_v50 = vld [vmem:[#allocation334_spill] sm:$0xff]  ;;  %v10809_v59 = vld [vmem:[#allocation339_spill] sm:$0xff] }
 0x6b1   : > { %3654 = vrot.lane.b32.xlu1 %v10803_v46, %s5080_s16  ;;  %v3001_v62 = vsel %vm2988_vm10, %v10805_v50, %v10804_v18  ;;  %v3002_v5 = vsel %vm2988_vm10, %v10804_v18, %v10806_v42  ;;  %v3003_v25 = vsel %vm2988_vm10, %v10808_v39, %v10807_v3  ;;  %v3004_v19 = vsel %vm2988_vm10, %v10807_v3, %v10809_v59  ;;  %v10810_v33 = vld [vmem:[#allocation366_spill] sm:$0xff]  ;;  %v10815_v50 = vld [vmem:[#allocation45_spill] sm:$0xff] }
 0x6b2   : > { %v8740_v10 = vpop.permute.xlu0 %3630  ;;  %4931 = vset.pattern.permute.xlu1 %v10508_v6  ;;  %v2873_v0 = vadd.f32 %v2841_v12, %v2552_v63  ;;  %v2874_v37 = vadd.f32 %v2842_v55, %v2553_v31  ;;  %v3058_v16 = vsel %vm7747_vm1, %v2994_v14, 0.0  ;;  %v3153_v40 = vmul.f32 %v10810_v33, %v3057_v9  ;;  %v10811_v12 = vld [vmem:[#allocation96_spill] sm:$0xff]  ;;  %v10816_v39 = vld [vmem:[#allocation370_spill] sm:$0xff] }
 0x6b3   : > { %v2875_v44 = vadd.f32 %v2843_v36, %v2554_v41  ;;  %v3064_v15 = vsel %vm7747_vm1, %v3000_v4, 0.0  ;;  %v3154_v48 = vmul.f32 %v10810_v33, %v3058_v16  ;;  %v3063_v46 = vsel %vm7751_vm2, %v2999_v54, 0.0  ;;  %v10812_v36 = vld [vmem:[#allocation369_spill] sm:$0xff]  ;;  %v10813_v54 = vld [vmem:[#allocation46_spill] sm:$0xff]  ;;  %v10814_v4 = vld [vmem:[#allocation24_spill] sm:$0xff] }
 0x6b4   : > { %v8763_v18 = vpop.permute.xlu1 %3796  ;;  %v3066_v6 = vsel %vm7747_vm1, %v3002_v5, 0.0  ;;  %v3068_v63 = vsel %vm7747_vm1, %v3004_v19, 0.0  ;;  %v3065_v31 = vsel %vm7751_vm2, %v3001_v62, 0.0  ;;  %v3067_v41 = vsel %vm7751_vm2, %v3003_v25, 0.0  ;;  %v10817_v33 = vld [vmem:[#allocation372_spill] sm:$0xff] }
 0x6b5   : > { %3660 = vrot.lane.b32.xlu1 %v10811_v12, %s5080_s16  ;;  %v3161_v14 = vmul.f32 %v10812_v36, %v3065_v31  ;;  %v3667_v9 = vsel %vm3662_vm11, %v10814_v4, %v10813_v54  ;;  %v3668_v42 = vsel %vm3662_vm11, %v10813_v54, %v10815_v50  ;;  %v3673_v62 = vsel %vm3662_vm11, %v8395_v49, %v8635_v23  ;;  %v10818_v12 = vld [vmem:[#allocation384_spill] sm:$0xff]  ;;  %v10819_v54 = vld [vmem:[#allocation383_spill] sm:$0xff]  ;;  %v10820_v50 = vld [vmem:[#allocation385_spill] sm:$0xff] }
 0x6b6   : > { %v8775_v55 = vpop.permute.xlu0 %3636  ;;  %v3185_v5 = vadd.f32 %v3153_v40, %v2864_v1  ;;  %v3162_v3 = vmul.f32 %v10812_v36, %v3066_v6  ;;  %v3159_v25 = vmul.f32 %v10816_v39, %v3063_v46  ;;  %v3674_v59 = vsel %vm3662_vm11, %v8635_v23, %v8362_v20 }
 0x6b7   : > { %v3186_v19 = vadd.f32 %v3154_v48, %v2865_v34  ;;  %v3160_v16 = vmul.f32 %v10816_v39, %v3064_v15  ;;  %v3163_v31 = vmul.f32 %v10817_v33, %v3067_v41  ;;  %v3474_v4 = vsel %vm3469_vm12, %v10819_v54, %v10818_v12 }
 0x6b8   : > { %v3475_v49 = vsel %vm3469_vm12, %v10818_v12, %v10820_v50  ;;  %v3731_v1 = vsel %vm7787_vm4, %v3667_v9, 0.0  ;;  %v3732_v40 = vsel %vm7791_vm5, %v3668_v42, 0.0  ;;  %v3737_v20 = vsel %vm7787_vm4, %v3673_v62, 0.0  ;;  %v10821_v42 = vld [vmem:[#allocation393_spill] sm:$0xff]  ;;  %v10822_v62 = vld [vmem:[#allocation392_spill] sm:$0xff]  ;;  %v10823_v50 = vld [vmem:[#allocation394_spill] sm:$0xff] }
 0x6b9   : > { %3656 = vrot.lane.b32.xlu1 %v10656_v30, %s5080_s16  ;;  %v8808_v23 = vpop.permute.xlu1 %3916  ;;  %v8812_v15 = vadd.f32 %v3161_v14, %v2872_v35  ;;  %v3827_v48 = vmul.f32 %v8176_v8, %v3731_v1  ;;  %v3828_v46 = vmul.f32 %v8176_v8, %v3732_v40  ;;  %v3738_v6 = vsel %vm7791_vm5, %v3674_v59, 0.0  ;;  %v10824_v1 = vld [vmem:[#allocation397_spill] sm:$0xff]  ;;  %v10825_v40 = vld [vmem:[#allocation396_spill] sm:$0xff] }
 0x6ba   : > { %v8810_v34 = vpop.permute.xlu0 %3632  ;;  %v3194_v41 = vadd.f32 %v3162_v3, %v2873_v0  ;;  %v3164_v36 = vmul.f32 %v10817_v33, %v3068_v63  ;;  %v3191_v9 = vadd.f32 %v3159_v25, %v2870_v13  ;;  %v3480_v39 = vsel %vm3469_vm12, %v10822_v62, %v10821_v42 }
 0x6bb   : > { %v3538_v12 = vadd.f32 %v3474_v4, %v3185_v5  ;;  %v3539_v54 = vadd.f32 %v3475_v49, %v3186_v19  ;;  %v3481_v35 = vsel %vm3469_vm12, %v10821_v42, %v10823_v50  ;;  %v3833_v14 = vmul.f32 %v8319_v27, %v3737_v20 }
 0x6bc   : > { %v3192_v8 = vadd.f32 %v3160_v16, %v2871_v56  ;;  %v3483_v0 = vsel %vm3469_vm12, %v10825_v40, %v10824_v1  ;;  %v3195_v3 = vadd.f32 %v3163_v31, %v2874_v37  ;;  %v3834_v13 = vmul.f32 %v8319_v27, %v3738_v6  ;;  %v10826_v56 = vld [vmem:[#allocation395_spill] sm:$0xff]  ;;  %v10830_v1 = vld [vmem:[#allocation49_spill] sm:$0xff] }
 0x6bd   : > { %4044 = vperm.xlu1 %4931, %v8443_v26   ;;  %v3605_v63 = vpop.permute.xlu1 %3604  ;;  %v3544_v5 = vadd.f32 %v3480_v39, %v3191_v9  ;;  %v3859_v59 = vadd.f32 %v3827_v48, %v3538_v12  ;;  %v3860_v19 = vadd.f32 %v3828_v46, %v3539_v54  ;;  %v3482_v16 = vsel %vm3469_vm12, %v10826_v56, %v10825_v40  ;;  %v10827_v48 = vld [vmem:[#allocation399_spill] sm:$0xff]  ;;  %v10828_v46 = vld [vmem:[#allocation398_spill] sm:$0xff] }
 0x6be   : > { %v8831_v25 = vpop.permute.xlu0 %3936  ;;  %v3676_v33 = vsel %vm3662_vm11, %v3605_v63, %v8462_v21  ;;  %v3545_v4 = vadd.f32 %v3481_v35, %v3192_v8  ;;  %v3196_v49 = vadd.f32 %v3164_v36, %v2875_v44  ;;  %v3547_v37 = vadd.f32 %v3483_v0, %v3194_v41  ;;  %v10829_v21 = vld [vmem:[#allocation400_spill] sm:$0xff] }
 0x6bf   : > { %v3740_v27 = vsel %vm7791_vm5, %v3676_v33, 0.0  ;;  %v3955_v26 = vmul.f32 %v8360_v32, %v3859_v59  ;;  %v3956_v31 = vmul.f32 %v8360_v32, %v3860_v19  ;;  %v3865_v20 = vadd.f32 %v3833_v14, %v3544_v5 }
 0x6c0   : > { %v3484_v6 = vsel %vm3469_vm12, %v10828_v46, %v10827_v48  ;;  %v3485_v9 = vsel %vm3469_vm12, %v10827_v48, %v10829_v21  ;;  %v3836_v42 = vmul.f32 %v8473_v2, %v3740_v27  ;;  %v3866_v36 = vadd.f32 %v3834_v13, %v3545_v4  ;;  %v10833_v48 = vld [vmem:[#allocation58_spill] sm:$0xff] }
 0x6c1   : > { %v3611_v44 = vpop.permute.xlu1 %3610  ;;  %v4051_v62 = vadd.f32 %v8427_v28, %v3955_v26  ;;  %v4052_v41 = vadd.f32 %v8427_v28, %v3956_v31  ;;  %v3549_v8 = vadd.f32 %v3485_v9, %v3196_v49  ;;  %v3548_v33 = vadd.f32 %v3484_v6, %v3195_v3  ;;  %v10834_v9 = vld [vmem:[#allocation50_spill] sm:$0xff] }
 0x6c2   : > { %v3677_v32 = vsel %vm3662_vm11, %v8561_v53, %v3611_v44  ;;  %v3678_v39 = vsel %vm3662_vm11, %v3611_v44, %v8517_v60  ;;  %v10831_v53 = vld [vmem:[#allocation54_spill] sm:$0xff]  ;;  %v3868_v19 = vadd.f32 %v3836_v42, %v3547_v37  ;;  %v4056_v4 = vadd.f32 %v8698_v51, %v8654_v47 }
 0x6c3   : > { %v3997_v12 = vpop.permute.xlu0 %3996  ;;  %v3741_v54 = vsel %vm7787_vm4, %v3677_v32, 0.0  ;;  %v3742_v50 = vsel %vm7791_vm5, %v3678_v39, 0.0  ;;  %v3961_v0 = vmul.f32 %v10831_v53, %v3865_v20  ;;  %v3962_v59 = vmul.f32 %v10831_v53, %v3866_v36  ;;  %v10832_v20 = vld [vmem:[#allocation430_spill] sm:$0xff]  ;;  %v10836_v36 = vld [vmem:[#allocation56_spill] sm:$0xff]  ;;  %v10845_v53 = vld [vmem:[#allocation185_spill] sm:$0xff] }
 0x6c4   : > { %v4053_v35 = vadd.f32 %v3997_v12, %v8267_v43  ;;  %v4054_v14 = vadd.f32 %v3997_v12, %v8456_v22  ;;  %v3837_v28 = vmul.f32 %v10830_v1, %v3741_v54  ;;  %v3838_v40 = vmul.f32 %v10830_v1, %v3742_v50  ;;  %v10835_v42 = vld [vmem:[#allocation42_spill] sm:$0xff]  ;;  %v10841_v54 = vld [vmem:[#allocation123_spill] sm:$0xff] }
 0x6c5   : > { %v3603_v5 = vpop.permute.xlu1 %3602  ;;  %v4055_v49 = vadd.f32 %v8698_v51, %v8720_v29  ;;  %v1525_v37 = vadd.f32 %v10833_v48, %v10832_v20  ;;  %v3546_v3 = vadd.f32 %v3482_v16, %v8812_v15  ;;  %v3964_v51 = vmul.f32 %v10834_v9, %v3868_v19  ;;  %v10838_v15 = vld [vmem:[#allocation32_spill] sm:$0xff] }
 0x6c6   : > { %v4802_v13 = vpack.c.bf16 %v4054_v14, %v4052_v41  ;;  %v4804_v60 = vpack.c.bf16 %v4053_v35, %v4051_v62  ;;  %v3675_v43 = vsel %vm3662_vm11, %v3603_v5, %v3605_v63  ;;  %v3870_v56 = vadd.f32 %v3838_v40, %v3549_v8  ;;  %v10840_v41 = vld [vmem:[#allocation121_spill] sm:$0xff]  ;;  %v10842_v35 = vld [vmem:[#allocation183_spill] sm:$0xff]  ;;  %v10843_v14 = vld [vmem:[#allocation184_spill] sm:$0xff] }
 0x6c7   : > { %v4005_v22 = vpop.permute.xlu0 %4004  ;;  %v3739_v27 = vsel %vm7787_vm4, %v3675_v43, 0.0  ;;  %v3869_v63 = vadd.f32 %v3837_v28, %v3548_v33  ;;  %v1756_v44 = vsel %vm7791_vm5, %v10835_v42, 0.0  ;;  %v10837_v62 = vsel %vm7787_vm4, %v10836_v36, 0.0  ;;  %v10844_v40 = vld [vmem:[#allocation188_spill] sm:$0xff]  ;;  %v10847_v33 = vld [vmem:[#allocation14_spill] sm:$0xff] }
 0x6c8   : > { %v4057_v26 = vadd.f32 %v4005_v22, %v3961_v0  ;;  %v4058_v31 = vadd.f32 %v4005_v22, %v3962_v59  ;;  %4803 = vmatprep.subr.bf16.mxu1 %v4802_v13  ;;  %v3835_v47 = vmul.f32 %v8473_v2, %v3739_v27  ;;  %v3966_v29 = vmul.f32 %v8808_v23, %v3870_v56  ;;  %v10839_v2 = vld [vmem:[#allocation122_spill] sm:$0xff]  ;;  %v10846_v13 = vld [vmem:[#allocation187_spill] sm:$0xff]  ;;  %v10854_v36 = vld [vmem:[#allocation48_spill] sm:$0xff] }
 0x6c9   : > { %4805 = vmatpush1.bf16.msra.mxu1 %v4804_v60  ;;  %v4009_v21 = vpop.permute.xlu1 %4008  ;;  %v1851_v16 = vmul.f32 %v10838_v15, %v10837_v62  ;;  %v1462_v32 = vsel %vm1443_vm7, %v10840_v41, %v10839_v2  ;;  %v1463_v50 = vsel %vm1443_vm7, %v10839_v2, %v10841_v54  ;;  %v2010_v8 = vsel %vm1993_vm6, %v10843_v14, %v10842_v35  ;;  %v10848_v43 = vld [vmem:[#allocation186_spill] sm:$0xff]  ;;  %v10861_v14 = vld [vmem:[#allocation47_spill] sm:$0xff] }
 0x6ca   : > { %v4806_v46 = vpack.c.bf16 %v4058_v31, %v4056_v4  ;;  %v4808_v6 = vpack.c.bf16 %v4057_v26, %v4055_v49  ;;  %v3867_v39 = vadd.f32 %v3835_v47, %v3546_v3  ;;  %v4060_v1 = vadd.f32 %v4009_v21, %v3964_v51  ;;  %v10849_v49 = vld [vmem:[#allocation44_spill] sm:$0xff]  ;;  %v10850_v26 = vld [vmem:[#allocation125_spill] sm:$0xff]  ;;  %v10852_v47 = vld [vmem:[#allocation126_spill] sm:$0xff] }
 0x6cb   : > { %v4013_v12 = vpop.permute.xlu0 %4012  ;;  %v2012_v0 = vsel %vm1993_vm6, %v10845_v53, %v10844_v40  ;;  %v2013_v60 = vsel %vm1993_vm6, %v10844_v40, %v10846_v13  ;;  %v3965_v59 = vmul.f32 %v8808_v23, %v3869_v63  ;;  %v1852_v19 = vmul.f32 %v10838_v15, %v1756_v44  ;;  %v10851_v31 = vld [vmem:[#allocation124_spill] sm:$0xff]  ;;  %v10856_v15 = vld [vmem:[#allocation33_spill] sm:$0xff]  ;;  %v10862_v40 = vld [vmem:[#allocation99_spill] sm:$0xff] }
 0x6cc   : > { %v4062_v28 = vadd.f32 %v4013_v12, %v3966_v29  ;;  %4807 = vmatprep.subr.bf16.mxu1 %v4806_v46  ;;  %v3963_v5 = vmul.f32 %v10834_v9, %v3867_v39  ;;  %v1526_v4 = vadd.f32 %v1462_v32, %v10847_v33  ;;  %v2011_v22 = vsel %vm1993_vm6, %v10842_v35, %v10848_v43  ;;  %v10853_v51 = vld [vmem:[#allocation216_spill] sm:$0xff]  ;;  %v10866_v33 = vld [vmem:[#allocation130_spill] sm:$0xff] }
 0x6cd   : > { %4809 = vmatpush1.bf16.msra.mxu1 %v4808_v6  ;;  %v1527_v27 = vadd.f32 %v1463_v50, %v10849_v49  ;;  %v8912_v20 = vsel %vm1672_vm3, %v10851_v31, %v10850_v26  ;;  %v4061_v3 = vadd.f32 %v4013_v12, %v3965_v59  ;;  %v8919_v63 = vsel %vm1672_vm3, %v10850_v26, %v10852_v47  ;;  %v10858_v32 = vld [vmem:[#allocation20_spill] sm:$0xff]  ;;  %v10859_v12 = vld [vmem:[#allocation215_spill] sm:$0xff]  ;;  %v10871_v47 = vld [vmem:[#allocation294_spill] sm:$0xff] }
 0x6ce   : > { %v4810_v56 = vpack.c.bf16 %v4062_v28, %v4060_v1  ;;  %v4059_v48 = vadd.f32 %v4009_v21, %v3963_v5  ;;  %v8914_v23 = vpop.permute.xlu1 %3800  ;;  %v2074_v46 = vsel %vm7751_vm2, %v2010_v8, 0.0  ;;  %v2076_v6 = vsel %vm7751_vm2, %v2012_v0, 0.0  ;;  %v10860_v35 = vld [vmem:[#allocation52_spill] sm:$0xff]  ;;  %v10864_v5 = vld [vmem:[#allocation127_spill] sm:$0xff] }
 0x6cf   : > { %v2077_v9 = vsel %vm7747_vm1, %v2013_v60, 0.0  ;;  %v2075_v21 = vsel %vm7747_vm1, %v2011_v22, 0.0  ;;  %v2172_v29 = vmul.f32 %v10853_v51, %v2076_v6  ;;  %v10855_v62 = vsel %vm7791_vm5, %v10854_v36, 0.0  ;;  %v10865_v59 = vld [vmem:[#allocation128_spill] sm:$0xff]  ;;  %v10867_v22 = vld [vmem:[#allocation293_spill] sm:$0xff]  ;;  %v10869_v31 = vld [vmem:[#allocation295_spill] sm:$0xff] }
 0x6d0   : > { %4811 = vmatprep.subr.bf16.mxu1 %v4810_v56  ;;  %v2173_v42 = vmul.f32 %v10853_v51, %v2077_v9  ;;  %v4812_v44 = vpack.c.bf16 %v4061_v3, %v4059_v48  ;;  %v1850_v2 = vmul.f32 %v10856_v15, %v10855_v62  ;;  %v10857_v41 = vsel %vm7751_vm2, %v10656_v30, 0.0  ;;  %v10868_v56 = vld [vmem:[#allocation290_spill] sm:$0xff]  ;;  %v10870_v48 = vld [vmem:[#allocation292_spill] sm:$0xff]  ;;  %v10872_v6 = vld [vmem:[#allocation247_spill] sm:$0xff] }
 0x6d1   : > { %v8941_v39 = vmul.f32 %v10858_v32, %v10857_v41  ;;  %v2170_v54 = vmul.f32 %v10859_v12, %v2074_v46  ;;  %v2171_v50 = vmul.f32 %v10859_v12, %v2075_v21  ;;  %v1881_v8 = vadd.f32 %v10861_v14, %v10860_v35  ;;  %v10873_v9 = vld [vmem:[#allocation248_spill] sm:$0xff]  ;;  %v10874_v51 = vld [vmem:[#allocation250_spill] sm:$0xff]  ;;  %v10878_v15 = vld [vmem:[#allocation341_spill] sm:$0xff] }
 0x6d2   : > { %v1883_v1 = vadd.f32 %v1851_v16, %v1526_v4  ;;  %v1884_v28 = vadd.f32 %v1852_v19, %v1527_v27  ;;  %v10863_v53 = vsel %vm7747_vm1, %v10862_v40, 0.0  ;;  %v8954_v30 = vpop.permute.xlu1 %3804  ;;  %4813 = vmatpush1.bf16.msra.mxu1 %v4812_v44  ;;  %v1882_v13 = vadd.f32 %v1850_v2, %v1525_v37  ;;  %v10876_v44 = vld [vmem:[#allocation249_spill] sm:$0xff]  ;;  %v10877_v62 = vld [vmem:[#allocation342_spill] sm:$0xff]  ;;  %v10879_v41 = vld [vmem:[#allocation251_spill] sm:$0xff] }
 0x6d3   : > { %v8952_v0 = vmul.f32 %v10858_v32, %v10863_v53  ;;  %v1757_v60 = vsel %vm7787_vm4, %v8912_v20, 0.0  ;;  %v1758_v16 = vsel %vm7791_vm5, %v8919_v63, 0.0  ;;  %v8965_v19 = vsel %vm1443_vm7, %v10865_v59, %v10864_v5  ;;  %v10880_v12 = vld [vmem:[#allocation291_spill] sm:$0xff]  ;;  %v10881_v35 = vld [vmem:[#allocation344_spill] sm:$0xff] }
 0x6d4   : > { %v8970_v4 = vsel %vm1443_vm7, %v10864_v5, %v10866_v33  ;;  %v2204_v43 = vadd.f32 %v2172_v29, %v1883_v1  ;;  %v2205_v37 = vadd.f32 %v2173_v42, %v1884_v28  ;;  %v2685_v49 = vsel %vm2667_vm9, %v10868_v56, %v10867_v22  ;;  %v10875_v42 = vld [vmem:[#allocation252_spill] sm:$0xff]  ;;  %v10882_v14 = vld [vmem:[#allocation343_spill] sm:$0xff]  ;;  %v10884_v5 = vld [vmem:[#allocation345_spill] sm:$0xff] }
 0x6d5   : > { %v2202_v27 = vadd.f32 %v2170_v54, %v1881_v8  ;;  %v2203_v26 = vadd.f32 %v2171_v50, %v1882_v13  ;;  %v2686_v3 = vsel %vm2667_vm9, %v10870_v48, %v10869_v31  ;;  %v2687_v46 = vsel %vm2667_vm9, %v10869_v31, %v10871_v47  ;;  %v10883_v28 = vld [vmem:[#allocation144_spill] sm:$0xff]  ;;  %v10885_v22 = vld [vmem:[#allocation151_spill] sm:$0xff] }
 0x6d6   : > { %v2491_v21 = vsel %vm2474_vm8, %v10873_v9, %v10872_v6  ;;  %v2492_v29 = vsel %vm2474_vm8, %v10872_v6, %v10874_v51  ;;  %v2493_v36 = vsel %vm2474_vm8, %v10876_v44, %v10875_v42  ;;  %v3006_v2 = vsel %vm2988_vm10, %v10878_v15, %v10877_v62  ;;  %v10886_v6 = vld [vmem:[#allocation371_spill] sm:$0xff]  ;;  %v10887_v51 = vld [vmem:[#allocation340_spill] sm:$0xff] }
 0x6d7   : > { %v2494_v32 = vsel %vm2474_vm8, %v10875_v42, %v10879_v41  ;;  %v2684_v54 = vsel %vm2667_vm9, %v10880_v12, %v10868_v56  ;;  %v2749_v50 = vsel %vm7791_vm5, %v2685_v49, 0.0  ;;  %v3007_v8 = vsel %vm2988_vm10, %v10882_v14, %v10881_v35  ;;  %v9004_v1 = vpop.permute.xlu1 %3924  ;;  %v10888_v42 = vld [vmem:[#allocation374_spill] sm:$0xff]  ;;  %v10889_v12 = vld [vmem:[#allocation403_spill] sm:$0xff] }
 0x6d8   : > { %v2845_v40 = vmul.f32 %v10883_v28, %v2749_v50  ;;  %v2750_v53 = vsel %vm7787_vm4, %v2686_v3, 0.0  ;;  %v2751_v13 = vsel %vm7791_vm5, %v2687_v46, 0.0  ;;  %v3008_v59 = vsel %vm2988_vm10, %v10881_v35, %v10884_v5 }
 0x6d9   : > { %v2556_v33 = vadd.f32 %v2492_v29, %v2203_v26  ;;  %v2846_v56 = vmul.f32 %v10885_v22, %v2750_v53  ;;  %v2847_v49 = vmul.f32 %v10885_v22, %v2751_v13  ;;  %v3070_v31 = vsel %vm7747_vm1, %v3006_v2, 0.0 }
 0x6da   : > { %v2557_v48 = vadd.f32 %v2493_v36, %v2204_v43  ;;  %v2558_v47 = vadd.f32 %v2494_v32, %v2205_v37  ;;  %v3166_v9 = vmul.f32 %v10886_v6, %v3070_v31  ;;  %v3071_v3 = vsel %vm7751_vm2, %v3007_v8, 0.0  ;;  %v10891_v8 = vld [vmem:[#allocation405_spill] sm:$0xff] }
 0x6db   : > { %v2748_v46 = vsel %vm7787_vm4, %v2684_v54, 0.0  ;;  %v3005_v26 = vsel %vm2988_vm10, %v10887_v51, %v10878_v15  ;;  %v3072_v29 = vsel %vm7747_vm1, %v3008_v59, 0.0  ;;  %v3167_v44 = vmul.f32 %v10888_v42, %v3071_v3  ;;  %v3617_v62 = vpop.permute.xlu1 %3616  ;;  %v10890_v54 = vld [vmem:[#allocation402_spill] sm:$0xff] }
 0x6dc   : > { %v2844_v43 = vmul.f32 %v10883_v28, %v2748_v46  ;;  %v2877_v37 = vadd.f32 %v2845_v40, %v2556_v33  ;;  %v3168_v36 = vmul.f32 %v10888_v42, %v3072_v29  ;;  %v3680_v2 = vsel %vm3662_vm11, %v3617_v62, %v8625_v17  ;;  %v10892_v28 = vld [vmem:[#allocation404_spill] sm:$0xff]  ;;  %v10893_v59 = vld [vmem:[#allocation406_spill] sm:$0xff] }
 0x6dd   : > { %v2878_v41 = vadd.f32 %v2846_v56, %v2557_v48  ;;  %v2879_v32 = vadd.f32 %v2847_v49, %v2558_v47  ;;  %v3487_v15 = vsel %vm3469_vm12, %v10890_v54, %v10889_v12  ;;  %v3744_v50 = vsel %vm7791_vm5, %v3680_v2, 0.0  ;;  %v10896_v42 = vld [vmem:[#allocation132_spill] sm:$0xff] }
 0x6de   : > { %v3069_v35 = vsel %vm7751_vm2, %v3005_v26, 0.0  ;;  %v3198_v14 = vadd.f32 %v3166_v9, %v2877_v37  ;;  %v3488_v40 = vsel %vm3469_vm12, %v10892_v28, %v10891_v8  ;;  %v3840_v53 = vmul.f32 %v8728_v61, %v3744_v50  ;;  %v10895_v26 = vld [vmem:[#allocation41_spill] sm:$0xff]  ;;  %v10901_v28 = vld [vmem:[#allocation134_spill] sm:$0xff] }
 0x6df   : > { %v2555_v17 = vadd.f32 %v2491_v21, %v2202_v27  ;;  %v3165_v13 = vmul.f32 %v10886_v6, %v3069_v35  ;;  %v3199_v5 = vadd.f32 %v3167_v44, %v2878_v41  ;;  %v3489_v33 = vsel %vm3469_vm12, %v10891_v8, %v10893_v59  ;;  %v3623_v22 = vpop.permute.xlu1 %3622  ;;  %v10897_v44 = vld [vmem:[#allocation129_spill] sm:$0xff] }
 0x6e0   : > { %v3551_v56 = vadd.f32 %v3487_v15, %v3198_v14  ;;  %v3200_v49 = vadd.f32 %v3168_v36, %v2879_v32  ;;  %v3681_v31 = vsel %vm3662_vm11, %v8682_v24, %v3623_v22  ;;  %v3682_v48 = vsel %vm3662_vm11, %v3623_v22, %v8645_v38  ;;  %v10894_v24 = vld [vmem:[#allocation35_spill] sm:$0xff]  ;;  %v10898_v37 = vld [vmem:[#allocation401_spill] sm:$0xff] }
 0x6e1   : > { %v2876_v47 = vadd.f32 %v2844_v43, %v2555_v17  ;;  %v3552_v9 = vadd.f32 %v3488_v40, %v3199_v5  ;;  %v3745_v27 = vsel %vm7787_vm4, %v3681_v31, 0.0  ;;  %v3746_v21 = vsel %vm7791_vm5, %v3682_v48, 0.0  ;;  %v10900_v15 = vld [vmem:[#allocation131_spill] sm:$0xff]  ;;  %v10904_v31 = vld [vmem:[#allocation137_spill] sm:$0xff]  ;;  %v10905_v48 = vld [vmem:[#allocation136_spill] sm:$0xff] }
 0x6e2   : > { %v3553_v6 = vadd.f32 %v3489_v33, %v3200_v49  ;;  %v3841_v3 = vmul.f32 %v8763_v18, %v3745_v27  ;;  %v3842_v46 = vmul.f32 %v8763_v18, %v3746_v21  ;;  %v3872_v51 = vadd.f32 %v3840_v53, %v3551_v56  ;;  %v10903_v53 = vld [vmem:[#allocation135_spill] sm:$0xff]  ;;  %v10907_v27 = vld [vmem:[#allocation190_spill] sm:$0xff] }
 0x6e3   : > { %v1853_v38 = vmul.f32 %v10894_v24, %v1757_v60  ;;  %v1528_v29 = vadd.f32 %v8965_v19, %v10895_v26  ;;  %v1695_v43 = vsel %vm1672_vm3, %v10897_v44, %v10896_v42  ;;  %v3486_v36 = vsel %vm3469_vm12, %v10898_v37, %v10890_v54  ;;  %v3615_v2 = vpop.permute.xlu1 %3614  ;;  %v10899_v60 = vld [vmem:[#allocation43_spill] sm:$0xff]  ;;  %v10911_v26 = vld [vmem:[#allocation34_spill] sm:$0xff] }
 0x6e4   : > { %v3197_v18 = vadd.f32 %v3165_v13, %v2876_v47  ;;  %v3873_v41 = vadd.f32 %v3841_v3, %v3552_v9  ;;  %v3874_v32 = vadd.f32 %v3842_v46, %v3553_v6  ;;  %v3679_v12 = vsel %vm3662_vm11, %v3615_v2, %v3617_v62  ;;  %v4021_v13 = vpop.permute.xlu0 %4020  ;;  %v10906_v9 = vld [vmem:[#allocation189_spill] sm:$0xff]  ;;  %v10908_v6 = vld [vmem:[#allocation192_spill] sm:$0xff]  ;;  %v10909_v46 = vld [vmem:[#allocation194_spill] sm:$0xff] }
 0x6e5   : > { %v1854_v20 = vmul.f32 %v10894_v24, %v1758_v16  ;;  %v1529_v19 = vadd.f32 %v8970_v4, %v10899_v60  ;;  %v1696_v50 = vsel %vm1672_vm3, %v10896_v42, %v10900_v15  ;;  %v3743_v54 = vsel %vm7787_vm4, %v3679_v12, 0.0  ;;  %v10902_v4 = vld [vmem:[#allocation133_spill] sm:$0xff]  ;;  %v10916_v60 = vld [vmem:[#allocation140_spill] sm:$0xff] }
 0x6e6   : > { %v3550_v35 = vadd.f32 %v3486_v36, %v3197_v18  ;;  %v3839_v14 = vmul.f32 %v8728_v61, %v3743_v54  ;;  %v3968_v62 = vmul.f32 %v8586_v45, %v3872_v51  ;;  %v3970_v8 = vmul.f32 %v9004_v1, %v3874_v32  ;;  %v10912_v42 = vld [vmem:[#allocation21_spill] sm:$0xff] }
 0x6e7   : > { %v1885_v63 = vadd.f32 %v1853_v38, %v1528_v29  ;;  %v1759_v16 = vsel %vm7787_vm4, %v1695_v43, 0.0  ;;  %v1466_v40 = vsel %vm1443_vm7, %v10902_v4, %v10901_v28  ;;  %v1467_v17 = vsel %vm1443_vm7, %v10901_v28, %v10903_v53  ;;  %v4017_v5 = vpop.permute.xlu1 %4016  ;;  %v10913_v43 = vld [vmem:[#allocation16_spill] sm:$0xff]  ;;  %v10914_v36 = vld [vmem:[#allocation193_spill] sm:$0xff] }
 0x6e8   : > { %v3871_v59 = vadd.f32 %v3839_v14, %v3550_v35  ;;  %v3969_v61 = vmul.f32 %v9004_v1, %v3873_v41  ;;  %v4064_v33 = vadd.f32 %v4017_v5, %v3968_v62  ;;  %v4066_v22 = vadd.f32 %v4021_v13, %v3970_v8  ;;  %v10910_v1 = vld [vmem:[#allocation191_spill] sm:$0xff]  ;;  %v10917_v35 = vld [vmem:[#allocation217_spill] sm:$0xff] }
 0x6e9   : > { %v1886_v56 = vadd.f32 %v1854_v20, %v1529_v19  ;;  %v1760_v49 = vsel %vm7791_vm5, %v1696_v50, 0.0  ;;  %v1697_v47 = vsel %vm1672_vm3, %v10905_v48, %v10904_v31  ;;  %v2014_v21 = vsel %vm1993_vm6, %v10907_v27, %v10906_v9  ;;  %v10924_v27 = vld [vmem:[#allocation141_spill] sm:$0xff] }
 0x6ea   : > { %v2015_v3 = vsel %vm1993_vm6, %v10906_v9, %v10908_v6  ;;  %v2016_v51 = vsel %vm1993_vm6, %v10910_v1, %v10909_v46  ;;  %v3967_v24 = vmul.f32 %v8586_v45, %v3871_v59  ;;  %v4814_v38 = vpack.c.bf16 %v4066_v22, %v4064_v33  ;;  %v10915_v45 = vld [vmem:[#allocation139_spill] sm:$0xff]  ;;  %v10920_v59 = vld [vmem:[#allocation138_spill] sm:$0xff]  ;;  %v10923_v9 = vld [vmem:[#allocation145_spill] sm:$0xff] }
 0x6eb   : > { %v1855_v29 = vmul.f32 %v10911_v26, %v1759_v16  ;;  %v1530_v44 = vadd.f32 %v1466_v40, %v10912_v42  ;;  %v1531_v37 = vadd.f32 %v1467_v17, %v10913_v43  ;;  %v2017_v2 = vsel %vm1993_vm6, %v10909_v46, %v10914_v36  ;;  %v10918_v40 = vld [vmem:[#allocation218_spill] sm:$0xff]  ;;  %v10925_v6 = vld [vmem:[#allocation143_spill] sm:$0xff] }
 0x6ec   : > { %v1856_v18 = vmul.f32 %v10911_v26, %v1760_v49  ;;  %v1761_v41 = vsel %vm7787_vm4, %v1697_v47, 0.0  ;;  %v4063_v32 = vadd.f32 %v4017_v5, %v3967_v24  ;;  %v4065_v12 = vadd.f32 %v4021_v13, %v3969_v61  ;;  %v9120_v20 = vpop.permute.xlu1 %3808  ;;  %4815 = vmatprep.subr.bf16.mxu1 %v4814_v38  ;;  %v10919_v13 = vld [vmem:[#allocation37_spill] sm:$0xff]  ;;  %v10921_v33 = vld [vmem:[#allocation22_spill] sm:$0xff]  ;;  %v10930_v42 = vld [vmem:[#allocation255_spill] sm:$0xff] }
 0x6ed   : > { %v1468_v19 = vsel %vm1443_vm7, %v10916_v60, %v10915_v45  ;;  %v2078_v15 = vsel %vm7751_vm2, %v2014_v21, 0.0  ;;  %v2079_v50 = vsel %vm7747_vm1, %v2015_v3, 0.0  ;;  %v2080_v54 = vsel %vm7751_vm2, %v2016_v51, 0.0  ;;  %v10922_v49 = vld [vmem:[#allocation142_spill] sm:$0xff]  ;;  %v10926_v3 = vld [vmem:[#allocation253_spill] sm:$0xff]  ;;  %v10928_v51 = vld [vmem:[#allocation256_spill] sm:$0xff] }
 0x6ee   : > { %v2174_v14 = vmul.f32 %v10917_v35, %v2078_v15  ;;  %v2175_v62 = vmul.f32 %v10917_v35, %v2079_v50  ;;  %v2081_v8 = vsel %vm7747_vm1, %v2017_v2, 0.0  ;;  %v4816_v16 = vpack.c.bf16 %v4065_v12, %v4063_v32  ;;  %v10927_v46 = vld [vmem:[#allocation254_spill] sm:$0xff]  ;;  %v10931_v43 = vld [vmem:[#allocation299_spill] sm:$0xff]  ;;  %v10937_v50 = vld [vmem:[#allocation348_spill] sm:$0xff] }
 0x6ef   : > { %v1887_v28 = vadd.f32 %v1855_v29, %v1530_v44  ;;  %v1888_v4 = vadd.f32 %v1856_v18, %v1531_v37  ;;  %v2176_v53 = vmul.f32 %v10918_v40, %v2080_v54  ;;  %v2177_v17 = vmul.f32 %v10918_v40, %v2081_v8  ;;  %v10929_v29 = vld [vmem:[#allocation258_spill] sm:$0xff]  ;;  %v10932_v37 = vld [vmem:[#allocation296_spill] sm:$0xff]  ;;  %v10938_v54 = vld [vmem:[#allocation347_spill] sm:$0xff] }
 0x6f0   : > { %v9138_v5 = vmul.f32 %v10919_v13, %v1761_v41  ;;  %v9143_v61 = vsel %vm1672_vm3, %v10904_v31, %v10920_v59  ;;  %v9146_v22 = vadd.f32 %v1468_v19, %v10921_v33  ;;  %v9151_v48 = vsel %vm1443_vm7, %v10915_v45, %v10922_v49  ;;  %v9153_v47 = vpop.permute.xlu1 %3812  ;;  %4817 = vmatpush1.bf16.msra.mxu1 %v4816_v16  ;;  %v10933_v41 = vld [vmem:[#allocation301_spill] sm:$0xff]  ;;  %v10934_v32 = vld [vmem:[#allocation298_spill] sm:$0xff]  ;;  %v10935_v45 = vld [vmem:[#allocation300_spill] sm:$0xff] }
 0x6f1   : > { %v9158_v21 = vsel %vm1672_vm3, %v10924_v27, %v10923_v9  ;;  %v9163_v31 = vsel %vm1672_vm3, %v10923_v9, %v10925_v6  ;;  %v2495_v1 = vsel %vm2474_vm8, %v10927_v46, %v10926_v3  ;;  %v2496_v24 = vsel %vm2474_vm8, %v10926_v3, %v10928_v51  ;;  %v10936_v19 = vld [vmem:[#allocation257_spill] sm:$0xff]  ;;  %v10939_v8 = vld [vmem:[#allocation350_spill] sm:$0xff]  ;;  %v10943_v33 = vld [vmem:[#allocation148_spill] sm:$0xff] }
 0x6f2   : > { %v2206_v38 = vadd.f32 %v2174_v14, %v1885_v63  ;;  %v2207_v26 = vadd.f32 %v2175_v62, %v1886_v56  ;;  %v2497_v44 = vsel %vm2474_vm8, %v10930_v42, %v10929_v29  ;;  %v2689_v36 = vsel %vm2667_vm9, %v10932_v37, %v10931_v43  ;;  %v10940_v16 = vld [vmem:[#allocation349_spill] sm:$0xff]  ;;  %v10944_v3 = vld [vmem:[#allocation155_spill] sm:$0xff] }
 0x6f3   : > { %v2208_v2 = vadd.f32 %v2176_v53, %v1887_v28  ;;  %v2209_v18 = vadd.f32 %v2177_v17, %v1888_v4  ;;  %v2690_v12 = vsel %vm2667_vm9, %v10934_v32, %v10933_v41  ;;  %v2691_v60 = vsel %vm2667_vm9, %v10933_v41, %v10935_v45  ;;  %v10941_v4 = vld [vmem:[#allocation351_spill] sm:$0xff]  ;;  %v10942_v17 = vld [vmem:[#allocation297_spill] sm:$0xff] }
 0x6f4   : > { %v2559_v63 = vadd.f32 %v2495_v1, %v2206_v38  ;;  %v2560_v56 = vadd.f32 %v2496_v24, %v2207_v26  ;;  %v2498_v15 = vsel %vm2474_vm8, %v10929_v29, %v10936_v19  ;;  %v3010_v35 = vsel %vm2988_vm10, %v10938_v54, %v10937_v50  ;;  %v10945_v38 = vld [vmem:[#allocation373_spill] sm:$0xff] }
 0x6f5   : > { %v2561_v14 = vadd.f32 %v2497_v44, %v2208_v2  ;;  %v2753_v62 = vsel %vm7791_vm5, %v2689_v36, 0.0  ;;  %v3011_v28 = vsel %vm2988_vm10, %v10940_v16, %v10939_v8  ;;  %v3012_v40 = vsel %vm2988_vm10, %v10939_v8, %v10941_v4  ;;  %v9197_v53 = vpop.permute.xlu1 %3932  ;;  %v10946_v44 = vld [vmem:[#allocation346_spill] sm:$0xff]  ;;  %v9232_v19 = vld [vmem:[%s9810_s3 + $0x8] sm:$0xff]  ;;  %v10950_v16 = vld [vmem:[#allocation411_spill] sm:$0xff] }
 0x6f6   : > { %v2688_v59 = vsel %vm2667_vm9, %v10942_v17, %v10932_v37  ;;  %v2849_v49 = vmul.f32 %v10943_v33, %v2753_v62  ;;  %v2754_v9 = vsel %vm7787_vm4, %v2690_v12, 0.0  ;;  %v2755_v27 = vsel %vm7791_vm5, %v2691_v60, 0.0  ;;  %v10947_v37 = vld [vmem:[#allocation376_spill] sm:$0xff] }
 0x6f7   : > { %v2562_v6 = vadd.f32 %v2498_v15, %v2209_v18  ;;  %v2850_v46 = vmul.f32 %v10944_v3, %v2754_v9  ;;  %v2851_v1 = vmul.f32 %v10944_v3, %v2755_v27  ;;  %v3074_v51 = vsel %vm7747_vm1, %v3010_v35, 0.0  ;;  %v9238_v15 = vld [vmem:[%s9810_s3] sm:$0xff] }
 0x6f8   : > { %v3076_v24 = vsel %vm7747_vm1, %v3012_v40, 0.0  ;;  %v3170_v26 = vmul.f32 %v10945_v38, %v3074_v51  ;;  %v3075_v29 = vsel %vm7751_vm2, %v3011_v28, 0.0  ;;  %v2752_v42 = vsel %vm7787_vm4, %v2688_v59, 0.0  ;;  %v10951_v28 = vld [vmem:[#allocation410_spill] sm:$0xff]  ;;  %v9272_v51 = vld [vmem:[%s9810_s3 + $0x18] sm:$0xff] }
 0x6f9   : > { %v3009_v43 = vsel %vm2988_vm10, %v10946_v44, %v10938_v54  ;;  %v3171_v36 = vmul.f32 %v10947_v37, %v3075_v29  ;;  %v3172_v2 = vmul.f32 %v10947_v37, %v3076_v24  ;;  %v3629_v18 = vpop.permute.xlu1 %3628  ;;  %v5083_v41 = vmov 13   ;;  %v10949_v54 = vld [vmem:[#allocation408_spill] sm:$0xff]  ;;  %v10954_v37 = vld [vmem:[#allocation153_spill] sm:$0xff] }
 0x6fa   : > { %4933 = vset.pattern.permute.xlu1 %v5083_v41  ;;  %4932 = vset.pattern.permute.xlu0 %v5083_v41  ;;  %v1762_v32 = vsel %vm7791_vm5, %v9143_v61, 0.0  ;;  %v2848_v12 = vmul.f32 %v10943_v33, %v2752_v42  ;;  %v2881_v45 = vadd.f32 %v2849_v49, %v2560_v56  ;;  %v3684_v60 = vsel %vm3662_vm11, %v3629_v18, %v8740_v10  ;;  %v10948_v56 = vld [vmem:[#allocation409_spill] sm:$0xff]  ;;  %v10952_v33 = vld [vmem:[#allocation412_spill] sm:$0xff] }
 0x6fb   : > { %4261 = vperm.xlu1 %4933, %v9232_v19   ;;  %4257 = vperm.xlu0 %4932, %v9238_v15   ;;  %v2882_v61 = vadd.f32 %v2850_v46, %v2561_v14  ;;  %v2883_v50 = vadd.f32 %v2851_v1, %v2562_v6  ;;  %v3491_v10 = vsel %vm3469_vm12, %v10949_v54, %v10948_v56  ;;  %v3748_v35 = vsel %vm7791_vm5, %v3684_v60, 0.0  ;;  %v9266_v1 = vld [vmem:[%s9810_s3 + $0x10] sm:$0xff]  ;;  %v10957_v56 = vld [vmem:[#allocation36_spill] sm:$0xff] }
 0x6fc   : > { %v3073_v62 = vsel %vm7751_vm2, %v3009_v43, 0.0  ;;  %v3202_v8 = vadd.f32 %v3170_v26, %v2881_v45  ;;  %v3492_v4 = vsel %vm3469_vm12, %v10951_v28, %v10950_v16  ;;  %v3844_v40 = vmul.f32 %v8914_v23, %v3748_v35  ;;  %v10953_v43 = vld [vmem:[#allocation154_spill] sm:$0xff] }
 0x6fd   : > { %v3169_v14 = vmul.f32 %v10945_v38, %v3073_v62  ;;  %v3203_v17 = vadd.f32 %v3171_v36, %v2882_v61  ;;  %v3204_v59 = vadd.f32 %v3172_v2, %v2883_v50  ;;  %v3493_v49 = vsel %vm3469_vm12, %v10950_v16, %v10952_v33  ;;  %v3635_v9 = vpop.permute.xlu1 %3634  ;;  %v10955_v2 = vld [vmem:[#allocation407_spill] sm:$0xff] }
 0x6fe   : > { %v1763_v27 = vsel %vm7787_vm4, %v9158_v21, 0.0  ;;  %v3555_v6 = vadd.f32 %v3491_v10, %v3202_v8  ;;  %v3685_v3 = vsel %vm3662_vm11, %v8810_v34, %v3635_v9  ;;  %v3686_v46 = vsel %vm3662_vm11, %v3635_v9, %v8775_v55  ;;  %v10956_v50 = vld [vmem:[#allocation431_spill] sm:$0xff] }
 0x6ff   : > { %4265 = vperm.xlu1 %4933, %v9266_v1   ;;  %4269 = vperm.xlu0 %4932, %v9272_v51   ;;  %v2880_v21 = vadd.f32 %v2848_v12, %v2559_v63  ;;  %v3556_v24 = vadd.f32 %v3492_v4, %v3203_v17  ;;  %v3749_v34 = vsel %vm7787_vm4, %v3685_v3, 0.0  ;;  %v3750_v55 = vsel %vm7791_vm5, %v3686_v46, 0.0  ;;  %v10958_v4 = vld [vmem:[#allocation149_spill] sm:$0xff]  ;;  %v4029_v17 = vpop.permute.xlu0 %4028  ;;  %v10962_v46 = vld [vmem:[#allocation158_spill] sm:$0xff] }
 0x700   : > { %v3557_v38 = vadd.f32 %v3493_v49, %v3204_v59  ;;  %v3845_v26 = vmul.f32 %v8954_v30, %v3749_v34  ;;  %v3846_v29 = vmul.f32 %v8954_v30, %v3750_v55  ;;  %v3876_v42 = vadd.f32 %v3844_v40, %v3555_v6  ;;  %v10960_v40 = vld [vmem:[#allocation150_spill] sm:$0xff]  ;;  %v10961_v6 = vld [vmem:[#allocation157_spill] sm:$0xff]  ;;  %v10965_v55 = vld [vmem:[#allocation195_spill] sm:$0xff] }
 0x701   : > { %v9282_v44 = vmul.f32 %v10919_v13, %v1762_v32  ;;  %v1701_v63 = vsel %vm1672_vm3, %v10954_v37, %v10953_v43  ;;  %v3201_v36 = vadd.f32 %v3169_v14, %v2880_v21  ;;  %v3490_v41 = vsel %vm3469_vm12, %v10955_v2, %v10949_v54  ;;  %v3627_v12 = vpop.permute.xlu1 %3626  ;;  %v9297_v13 = vld [vmem:[%s9810_s3 + $0x20] sm:$0xff]  ;;  %v9303_v32 = vld [vmem:[%s9810_s3 + $0x28] sm:$0xff] }
 0x702   : > { %v1764_v45 = vsel %vm7791_vm5, %v9163_v31, 0.0  ;;  %v3877_v60 = vadd.f32 %v3845_v26, %v3556_v24  ;;  %v3878_v30 = vadd.f32 %v3846_v29, %v3557_v38  ;;  %v3683_v61 = vsel %vm3662_vm11, %v3627_v12, %v3629_v18  ;;  %v10963_v21 = vld [vmem:[#allocation161_spill] sm:$0xff]  ;;  %v10966_v38 = vld [vmem:[#allocation196_spill] sm:$0xff]  ;;  %v9349_v29 = vld [vmem:[%s9810_s3 + $0x38] sm:$0xff] }
 0x703   : > { %4273 = vperm.xlu1 %4933, %v9297_v13   ;;  %4277 = vperm.xlu0 %4932, %v9303_v32   ;;  %v9308_v31 = vadd.f32 %v9138_v5, %v9146_v22  ;;  %v1533_v18 = vadd.f32 %v9151_v48, %v10956_v50  ;;  %v1859_v54 = vmul.f32 %v10957_v56, %v1763_v27  ;;  %v3747_v10 = vsel %vm7787_vm4, %v3683_v61, 0.0  ;;  %v10959_v5 = vld [vmem:[#allocation146_spill] sm:$0xff]  ;;  %v10964_v34 = vld [vmem:[#allocation165_spill] sm:$0xff]  ;;  %v10968_v37 = vld [vmem:[#allocation200_spill] sm:$0xff] }
 0x704   : > { %v3554_v35 = vadd.f32 %v3490_v41, %v3201_v36  ;;  %v3843_v62 = vmul.f32 %v8914_v23, %v3747_v10  ;;  %v3972_v8 = vmul.f32 %v8710_v57, %v3876_v42  ;;  %v3974_v16 = vmul.f32 %v9197_v53, %v3878_v30  ;;  %v9331_v27 = vld [vmem:[%s9810_s3 + $0x30] sm:$0xff]  ;;  %v10972_v61 = vld [vmem:[#allocation39_spill] sm:$0xff] }
 0x705   : > { %v1860_v28 = vmul.f32 %v10957_v56, %v1764_v45  ;;  %v1470_v22 = vsel %vm1443_vm7, %v10959_v5, %v10958_v4  ;;  %v1471_v48 = vsel %vm1443_vm7, %v10958_v4, %v10960_v40  ;;  %v1765_v14 = vsel %vm7787_vm4, %v1701_v63, 0.0  ;;  %v4025_v59 = vpop.permute.xlu1 %4024  ;;  %v10967_v42 = vld [vmem:[#allocation198_spill] sm:$0xff]  ;;  %v10969_v63 = vld [vmem:[#allocation197_spill] sm:$0xff]  ;;  %v10973_v56 = vld [vmem:[#allocation199_spill] sm:$0xff] }
 0x706   : > { %v3875_v23 = vadd.f32 %v3843_v62, %v3554_v35  ;;  %v3973_v33 = vmul.f32 %v9197_v53, %v3877_v60  ;;  %v4068_v49 = vadd.f32 %v4025_v59, %v3972_v8  ;;  %v4070_v9 = vadd.f32 %v4029_v17, %v3974_v16  ;;  %v10970_v12 = vld [vmem:[#allocation18_spill] sm:$0xff]  ;;  %v10971_v60 = vld [vmem:[#allocation432_spill] sm:$0xff]  ;;  %v10974_v62 = vld [vmem:[#allocation23_spill] sm:$0xff] }
 0x707   : > { %4281 = vperm.xlu1 %4933, %v9331_v27   ;;  %v1702_v3 = vsel %vm1672_vm3, %v10953_v43, %v10961_v6  ;;  %v1472_v24 = vsel %vm1443_vm7, %v10963_v21, %v10962_v46  ;;  %v1473_v53 = vsel %vm1443_vm7, %v10962_v46, %v10964_v34  ;;  %v2018_v26 = vsel %vm1993_vm6, %v10966_v38, %v10965_v55  ;;  %v9393_v6 = vpop.permute.xlu0 %3642 }
 0x708   : > { %4285 = vperm.xlu0 %4932, %v9349_v29   ;;  %v2019_v43 = vsel %vm1993_vm6, %v10965_v55, %v10967_v42  ;;  %v2020_v36 = vsel %vm1993_vm6, %v10969_v63, %v10968_v37  ;;  %v3971_v2 = vmul.f32 %v8710_v57, %v3875_v23  ;;  %v4818_v41 = vpack.c.bf16 %v4070_v9, %v4068_v49  ;;  %v9373_v57 = vld [vmem:[%s9810_s3 + $0x40] sm:$0xff]  ;;  %v10976_v23 = vld [vmem:[#allocation219_spill] sm:$0xff] }
 0x709   : > { %v1534_v45 = vadd.f32 %v1470_v22, %v10970_v12  ;;  %v1535_v30 = vadd.f32 %v1471_v48, %v10971_v60  ;;  %v1861_v50 = vmul.f32 %v10972_v61, %v1765_v14  ;;  %v2021_v10 = vsel %vm1993_vm6, %v10968_v37, %v10973_v56  ;;  %v10975_v22 = vld [vmem:[#allocation53_spill] sm:$0xff]  ;;  %v10979_v37 = vld [vmem:[#allocation162_spill] sm:$0xff]  ;;  %v9425_v12 = vld [vmem:[%s9810_s3 + $0x58] sm:$0xff] }
 0x70a   : > { %v1766_v35 = vsel %vm7791_vm5, %v1702_v3, 0.0  ;;  %v1536_v8 = vadd.f32 %v1472_v24, %v10974_v62  ;;  %v4067_v16 = vadd.f32 %v4025_v59, %v3971_v2  ;;  %v4069_v4 = vadd.f32 %v4029_v17, %v3973_v33  ;;  %v9368_v5 = vpop.permute.xlu1 %3816  ;;  %4819 = vmatprep.subr.bf16.mxu1 %v4818_v41  ;;  %v9386_v59 = vld [vmem:[%s9810_s3 + $0x48] sm:$0xff]  ;;  %v10977_v24 = vld [vmem:[#allocation220_spill] sm:$0xff]  ;;  %v10982_v2 = vld [vmem:[#allocation262_spill] sm:$0xff] }
 0x70b   : > { %4289 = vperm.xlu1 %4933, %v9373_v57   ;;  %v1537_v40 = vadd.f32 %v1473_v53, %v10975_v22  ;;  %v2082_v48 = vsel %vm7751_vm2, %v2018_v26, 0.0  ;;  %v2083_v14 = vsel %vm7747_vm1, %v2019_v43, 0.0  ;;  %v2084_v17 = vsel %vm7751_vm2, %v2020_v36, 0.0  ;;  %v9406_v43 = vld [vmem:[%s9810_s3 + $0x50] sm:$0xff] }
 0x70c   : > { %4293 = vperm.xlu0 %4932, %v9386_v59   ;;  %v2178_v33 = vmul.f32 %v10976_v23, %v2082_v48  ;;  %v2179_v49 = vmul.f32 %v10976_v23, %v2083_v14  ;;  %v2085_v9 = vsel %vm7747_vm1, %v2021_v10, 0.0  ;;  %v4820_v3 = vpack.c.bf16 %v4069_v4, %v4067_v16  ;;  %v10985_v56 = vld [vmem:[#allocation302_spill] sm:$0xff]  ;;  %v10987_v16 = vld [vmem:[#allocation304_spill] sm:$0xff]  ;;  %v10990_v23 = vld [vmem:[#allocation261_spill] sm:$0xff] }
 0x70d   : > { %v1890_v46 = vadd.f32 %v9282_v44, %v1533_v18  ;;  %v1862_v21 = vmul.f32 %v10972_v61, %v1766_v35  ;;  %v2180_v34 = vmul.f32 %v10977_v24, %v2084_v17  ;;  %v2181_v53 = vmul.f32 %v10977_v24, %v2085_v9  ;;  %v10978_v18 = vld [vmem:[#allocation167_spill] sm:$0xff]  ;;  %v10988_v22 = vld [vmem:[#allocation306_spill] sm:$0xff]  ;;  %v10989_v17 = vld [vmem:[#allocation264_spill] sm:$0xff] }
 0x70e   : > { %v1891_v55 = vadd.f32 %v1859_v54, %v1534_v45  ;;  %v1892_v38 = vadd.f32 %v1860_v28, %v1535_v30  ;;  %v9399_v26 = vadd.f32 %v1861_v50, %v1536_v8  ;;  %v9401_v42 = vpop.permute.xlu1 %3820  ;;  %4821 = vmatpush1.bf16.msra.mxu1 %v4820_v3  ;;  %v9414_v63 = vsel %vm1672_vm3, %v10979_v37, %v10978_v18  ;;  %v10980_v54 = vld [vmem:[#allocation259_spill] sm:$0xff]  ;;  %v10981_v28 = vld [vmem:[#allocation260_spill] sm:$0xff]  ;;  %v10983_v45 = vld [vmem:[#allocation166_spill] sm:$0xff]  ;;  %v3649_v3 = vpop.permute.xlu0 %3648 }
 0x70f   : > { %4297 = vperm.xlu1 %4933, %v9406_v43   ;;  %v9409_v44 = vadd.f32 %v1862_v21, %v1537_v40  ;;  %v2499_v36 = vsel %vm2474_vm8, %v10981_v28, %v10980_v54  ;;  %v2500_v41 = vsel %vm2474_vm8, %v10980_v54, %v10982_v2  ;;  %v9431_v60 = vsel %vm1672_vm3, %v10978_v18, %v10983_v45  ;;  %v10984_v50 = vld [vmem:[#allocation305_spill] sm:$0xff]  ;;  %v10986_v8 = vld [vmem:[#allocation307_spill] sm:$0xff] }
 0x710   : > { %4301 = vperm.xlu0 %4932, %v9425_v12   ;;  %v2210_v30 = vadd.f32 %v2178_v33, %v9308_v31  ;;  %v2211_v61 = vadd.f32 %v2179_v49, %v1890_v46  ;;  %v2693_v10 = vsel %vm2667_vm9, %v10985_v56, %v10984_v50  ;;  %v2212_v35 = vadd.f32 %v2180_v34, %v1891_v55  ;;  %v10991_v33 = vld [vmem:[#allocation354_spill] sm:$0xff]  ;;  %v10992_v49 = vld [vmem:[#allocation353_spill] sm:$0xff]  ;;  %v9452_v46 = vld [vmem:[%s9810_s3 + $0x60] sm:$0xff] }
 0x711   : > { %v2213_v62 = vadd.f32 %v2181_v53, %v1892_v38  ;;  %v2694_v4 = vsel %vm2667_vm9, %v10987_v16, %v10986_v8  ;;  %v2695_v40 = vsel %vm2667_vm9, %v10986_v8, %v10988_v22  ;;  %v2501_v31 = vsel %vm2474_vm8, %v10990_v23, %v10989_v17  ;;  %v10993_v21 = vld [vmem:[#allocation263_spill] sm:$0xff]  ;;  %v10995_v38 = vld [vmem:[#allocation356_spill] sm:$0xff]  ;;  %v9471_v28 = vld [vmem:[%s9810_s3 + $0x68] sm:$0xff] }
 0x712   : > { %v2563_v48 = vadd.f32 %v2499_v36, %v2210_v30  ;;  %v2564_v14 = vadd.f32 %v2500_v41, %v2211_v61  ;;  %v3014_v9 = vsel %vm2988_vm10, %v10992_v49, %v10991_v33  ;;  %v2502_v24 = vsel %vm2474_vm8, %v10989_v17, %v10993_v21  ;;  %v10994_v34 = vld [vmem:[#allocation303_spill] sm:$0xff]  ;;  %v10997_v36 = vld [vmem:[#allocation152_spill] sm:$0xff]  ;;  %v10998_v30 = vld [vmem:[#allocation357_spill] sm:$0xff] }
 0x713   : > { %4305 = vperm.xlu1 %4933, %v9452_v46   ;;  %v2692_v53 = vsel %vm2667_vm9, %v10994_v34, %v10985_v56  ;;  %v2757_v55 = vsel %vm7791_vm5, %v2693_v10, 0.0  ;;  %v10996_v18 = vld [vmem:[#allocation355_spill] sm:$0xff]  ;;  %v9466_v54 = vpop.permute.xlu1 %3940  ;;  %v2758_v41 = vsel %vm7787_vm4, %v2694_v4, 0.0  ;;  %v2759_v45 = vsel %vm7791_vm5, %v2695_v40, 0.0  ;;  %v10999_v56 = vld [vmem:[#allocation321_spill] sm:$0xff] }
 0x714   : > { %v3015_v37 = vsel %vm2988_vm10, %v10996_v18, %v10995_v38  ;;  %4309 = vperm.xlu0 %4932, %v9471_v28   ;;  %v2853_v2 = vmul.f32 %v10997_v36, %v2757_v55  ;;  %v3016_v61 = vsel %vm2988_vm10, %v10995_v38, %v10998_v30  ;;  %v2565_v50 = vadd.f32 %v2501_v31, %v2212_v35  ;;  %v11000_v4 = vld [vmem:[#allocation375_spill] sm:$0xff]  ;;  %v9494_v35 = vld [vmem:[%s9810_s3 + $0x70] sm:$0xff]  ;;  %v11001_v31 = vld [vmem:[#allocation352_spill] sm:$0xff]  ;;  %v3645_v18 = vpop.permute.xlu0 %3644 }
 0x715   : > { %v2854_v10 = vmul.f32 %v10999_v56, %v2758_v41  ;;  %v2855_v8 = vmul.f32 %v10999_v56, %v2759_v45  ;;  %v3078_v16 = vsel %vm7747_vm1, %v3014_v9, 0.0  ;;  %v2566_v22 = vadd.f32 %v2502_v24, %v2213_v62  ;;  %v11002_v9 = vld [vmem:[#allocation378_spill] sm:$0xff]  ;;  %v9506_v34 = vld [vmem:[%s9810_s3 + $0x78] sm:$0xff]  ;;  %v11003_v45 = vld [vmem:[#allocation416_spill] sm:$0xff] }
 0x716   : > { %v2756_v17 = vsel %vm7787_vm4, %v2692_v53, 0.0  ;;  %v3174_v23 = vmul.f32 %v11000_v4, %v3078_v16  ;;  %v3079_v40 = vsel %vm7751_vm2, %v3015_v37, 0.0  ;;  %v3013_v33 = vsel %vm2988_vm10, %v11001_v31, %v10992_v49  ;;  %v11004_v30 = vld [vmem:[#allocation415_spill] sm:$0xff] }
 0x717   : > { %4313 = vperm.xlu1 %4933, %v9494_v35   ;;  %v3080_v62 = vsel %vm7747_vm1, %v3016_v61, 0.0  ;;  %v3175_v21 = vmul.f32 %v11002_v9, %v3079_v40  ;;  %v3641_v24 = vpop.permute.xlu1 %3640  ;;  %v2852_v53 = vmul.f32 %v10997_v36, %v2756_v17  ;;  %v2885_v55 = vadd.f32 %v2853_v2, %v2564_v14  ;;  %v11005_v14 = vld [vmem:[#allocation418_spill] sm:$0xff]  ;;  %v11006_v2 = vld [vmem:[#allocation417_spill] sm:$0xff] }
 0x718   : > { %4317 = vperm.xlu0 %4932, %v9506_v34   ;;  %v3176_v38 = vmul.f32 %v11002_v9, %v3080_v62  ;;  %v3688_v49 = vsel %vm3662_vm11, %v3641_v24, %v9393_v6  ;;  %v2886_v37 = vadd.f32 %v2854_v10, %v2565_v50  ;;  %v2887_v41 = vadd.f32 %v2855_v8, %v2566_v22  ;;  %v11007_v22 = vld [vmem:[#allocation419_spill] sm:$0xff] }
 0x719   : > { %v3495_v61 = vsel %vm3469_vm12, %v11004_v30, %v11003_v45  ;;  %v3752_v56 = vsel %vm7791_vm5, %v3688_v49, 0.0  ;;  %v3077_v16 = vsel %vm7751_vm2, %v3013_v33, 0.0  ;;  %v3206_v36 = vadd.f32 %v3174_v23, %v2885_v55  ;;  %v4037_v45 = vpop.permute.xlu0 %4036 }
 0x71a   : > { %v3496_v17 = vsel %vm3469_vm12, %v11006_v2, %v11005_v14  ;;  %v3848_v40 = vmul.f32 %v9120_v20, %v3752_v56  ;;  %v5084_v6 = vmov 14   ;;  %v1767_v50 = vsel %vm7787_vm4, %v9414_v63, 0.0 }
 0x71b   : > { %4934 = vset.pattern.permute.xlu1 %v5084_v6  ;;  %v3173_v10 = vmul.f32 %v11000_v4, %v3077_v16  ;;  %v3207_v8 = vadd.f32 %v3175_v21, %v2886_v37  ;;  %v3497_v31 = vsel %vm3469_vm12, %v11005_v14, %v11007_v22  ;;  %v3647_v23 = vpop.permute.xlu1 %3646  ;;  %v3559_v33 = vadd.f32 %v3495_v61, %v3206_v36  ;;  %v11011_v61 = vld [vmem:[#allocation203_spill] sm:$0xff]  ;;  %v11012_v16 = vld [vmem:[#allocation413_spill] sm:$0xff] }
 0x71c   : > { %4353 = vperm.xlu1 %4934, %v9238_v15   ;;  %4935 = vset.pattern.permute.xlu0 %v5084_v6  ;;  %v3208_v62 = vadd.f32 %v3176_v38, %v2887_v41  ;;  %v3689_v9 = vsel %vm3662_vm11, %v3645_v18, %v3647_v23  ;;  %v3690_v55 = vsel %vm3662_vm11, %v3647_v23, %v3649_v3  ;;  %v1768_v3 = vsel %vm7791_vm5, %v9431_v60, 0.0  ;;  %v11010_v18 = vld [vmem:[#allocation206_spill] sm:$0xff]  ;;  %v11016_v23 = vld [vmem:[#allocation201_spill] sm:$0xff] }
 0x71d   : > { %4357 = vperm.xlu0 %4935, %v9232_v19   ;;  %v2884_v63 = vadd.f32 %v2852_v53, %v2563_v48  ;;  %v3560_v49 = vadd.f32 %v3496_v17, %v3207_v8  ;;  %v3753_v4 = vsel %vm7787_vm4, %v3689_v9, 0.0  ;;  %v3754_v21 = vsel %vm7791_vm5, %v3690_v55, 0.0  ;;  %v11008_v19 = vld [vmem:[#allocation169_spill] sm:$0xff]  ;;  %v11009_v48 = vld [vmem:[#allocation168_spill] sm:$0xff]  ;;  %v11014_v8 = vld [vmem:[#allocation170_spill] sm:$0xff] }
 0x71e   : > { %v3561_v37 = vadd.f32 %v3497_v31, %v3208_v62  ;;  %v3849_v15 = vmul.f32 %v9153_v47, %v3753_v4  ;;  %v3850_v38 = vmul.f32 %v9153_v47, %v3754_v21  ;;  %v3880_v41 = vadd.f32 %v3848_v40, %v3559_v33  ;;  %v11013_v40 = vld [vmem:[#allocation38_spill] sm:$0xff]  ;;  %v11015_v31 = vld [vmem:[#allocation204_spill] sm:$0xff]  ;;  %v11018_v55 = vld [vmem:[#allocation205_spill] sm:$0xff] }
 0x71f   : > { %v1474_v53 = vsel %vm1443_vm7, %v11009_v48, %v11008_v19  ;;  %v2024_v56 = vsel %vm1993_vm6, %v11011_v61, %v11010_v18  ;;  %v3494_v36 = vsel %vm3469_vm12, %v11012_v16, %v11004_v30  ;;  %v3639_v14 = vpop.permute.xlu1 %3638  ;;  %v3205_v47 = vadd.f32 %v3173_v10, %v2884_v63  ;;  %v11017_v62 = vld [vmem:[#allocation202_spill] sm:$0xff] }
 0x720   : > { %4361 = vperm.xlu1 %4934, %v9266_v1   ;;  %v3881_v2 = vadd.f32 %v3849_v15, %v3560_v49  ;;  %v3882_v17 = vadd.f32 %v3850_v38, %v3561_v37  ;;  %v3687_v60 = vsel %vm3662_vm11, %v3639_v14, %v3641_v24  ;;  %v1863_v6 = vmul.f32 %v11013_v40, %v1767_v50  ;;  %v11019_v48 = vld [vmem:[#allocation222_spill] sm:$0xff] }
 0x721   : > { %4369 = vperm.xlu0 %4935, %v9297_v13   ;;  %v1475_v22 = vsel %vm1443_vm7, %v11008_v19, %v11014_v8  ;;  %v2023_v30 = vsel %vm1993_vm6, %v11016_v23, %v11015_v31  ;;  %v3751_v1 = vsel %vm7787_vm4, %v3687_v60, 0.0  ;;  %v3558_v10 = vadd.f32 %v3494_v36, %v3205_v47  ;;  %v11022_v36 = vld [vmem:[#allocation308_spill] sm:$0xff]  ;;  %v11024_v8 = vld [vmem:[#allocation265_spill] sm:$0xff] }
 0x722   : > { %v3847_v33 = vmul.f32 %v9120_v20, %v3751_v1  ;;  %v3976_v24 = vmul.f32 %v8831_v25, %v3880_v41  ;;  %v3978_v13 = vmul.f32 %v9466_v54, %v3882_v17  ;;  %v1538_v50 = vadd.f32 %v1474_v53, %v8941_v39  ;;  %v9578_v20 = vpop.permute.xlu0 %3652  ;;  %v11025_v31 = vld [vmem:[#allocation360_spill] sm:$0xff] }
 0x723   : > { %v2022_v9 = vsel %vm1993_vm6, %v11017_v62, %v11016_v23  ;;  %v2025_v63 = vsel %vm1993_vm6, %v11010_v18, %v11018_v55  ;;  %v2088_v49 = vsel %vm7751_vm2, %v2024_v56, 0.0  ;;  %v4033_v4 = vpop.permute.xlu1 %4032  ;;  %v3977_v37 = vmul.f32 %v9466_v54, %v3881_v2  ;;  %v11020_v18 = vld [vmem:[#allocation221_spill] sm:$0xff]  ;;  %v11026_v23 = vld [vmem:[#allocation359_spill] sm:$0xff]  ;;  %v11027_v1 = vld [vmem:[#allocation312_spill] sm:$0xff] }
 0x724   : > { %4365 = vperm.xlu1 %4934, %v9272_v51   ;;  %v3879_v21 = vadd.f32 %v3847_v33, %v3558_v10  ;;  %v4072_v39 = vadd.f32 %v4033_v4, %v3976_v24  ;;  %v4074_v15 = vadd.f32 %v4037_v45, %v3978_v13  ;;  %v1864_v38 = vmul.f32 %v11013_v40, %v1768_v3  ;;  %v11028_v10 = vld [vmem:[#allocation313_spill] sm:$0xff]  ;;  %v11031_v55 = vld [vmem:[#allocation270_spill] sm:$0xff] }
 0x725   : > { %4377 = vperm.xlu0 %4935, %v9331_v27   ;;  %v1539_v41 = vadd.f32 %v1475_v22, %v8952_v0  ;;  %v2087_v19 = vsel %vm7747_vm1, %v2023_v30, 0.0  ;;  %v2184_v53 = vmul.f32 %v11019_v48, %v2088_v49  ;;  %v2089_v61 = vsel %vm7747_vm1, %v2025_v63, 0.0  ;;  %v11021_v0 = vld [vmem:[#allocation311_spill] sm:$0xff] }
 0x726   : > { %v2183_v51 = vmul.f32 %v11020_v18, %v2087_v19  ;;  %v3975_v54 = vmul.f32 %v8831_v25, %v3879_v21  ;;  %v4822_v56 = vpack.c.bf16 %v4074_v15, %v4072_v39  ;;  %v1895_v16 = vadd.f32 %v1863_v6, %v1538_v50  ;;  %v11023_v6 = vld [vmem:[#allocation268_spill] sm:$0xff]  ;;  %v11029_v50 = vld [vmem:[#allocation266_spill] sm:$0xff] }
 0x727   : > { %v2086_v27 = vsel %vm7751_vm2, %v2022_v9, 0.0  ;;  %v2185_v3 = vmul.f32 %v11019_v48, %v2089_v61  ;;  %v2697_v14 = vsel %vm2667_vm9, %v11022_v36, %v11021_v0  ;;  %v4073_v17 = vadd.f32 %v4037_v45, %v3977_v37  ;;  %v11030_v9 = vld [vmem:[#allocation269_spill] sm:$0xff]  ;;  %v11036_v48 = vld [vmem:[#allocation362_spill] sm:$0xff] }
 0x728   : > { %4373 = vperm.xlu1 %4934, %v9303_v32   ;;  %v2182_v47 = vmul.f32 %v11020_v18, %v2086_v27  ;;  %v4071_v2 = vadd.f32 %v4033_v4, %v3975_v54  ;;  %v9599_v60 = vpop.permute.xlu1 %3944  ;;  %4823 = vmatprep.subr.bf16.mxu1 %v4822_v56  ;;  %v1896_v25 = vadd.f32 %v1864_v38, %v1539_v41  ;;  %v2761_v45 = vsel %vm7791_vm5, %v2697_v14, 0.0  ;;  %v11033_v37 = vld [vmem:[#allocation309_spill] sm:$0xff]  ;;  %v11034_v41 = vld [vmem:[#allocation310_spill] sm:$0xff]  ;;  %v11038_v54 = vld [vmem:[#allocation267_spill] sm:$0xff] }
 0x729   : > { %4385 = vperm.xlu0 %4935, %v9373_v57   ;;  %v2216_v40 = vadd.f32 %v2184_v53, %v1895_v16  ;;  %v2504_v22 = vsel %vm2474_vm8, %v11024_v8, %v11023_v6  ;;  %v3018_v30 = vsel %vm2988_vm10, %v11026_v23, %v11025_v31  ;;  %v2215_v32 = vadd.f32 %v2183_v51, %v9409_v44  ;;  %v9614_v57 = vpop.permute.xlu0 %3658  ;;  %v11032_v44 = vld [vmem:[#allocation322_spill] sm:$0xff]  ;;  %v11037_v18 = vld [vmem:[#allocation377_spill] sm:$0xff] }
 0x72a   : > { %v2699_v33 = vsel %vm2667_vm9, %v11028_v10, %v11027_v1  ;;  %v4824_v24 = vpack.c.bf16 %v4073_v17, %v4071_v2  ;;  %v2217_v13 = vadd.f32 %v2185_v3, %v1896_v25  ;;  %v2503_v62 = vsel %vm2474_vm8, %v11029_v50, %v11024_v8  ;;  %v11042_v8 = vld [vmem:[#allocation422_spill] sm:$0xff] }
 0x72b   : > { %v2506_v63 = vsel %vm2474_vm8, %v11031_v55, %v11030_v9  ;;  %v2857_v49 = vmul.f32 %v11032_v44, %v2761_v45  ;;  %v2214_v4 = vadd.f32 %v2182_v47, %v9399_v26  ;;  %v2568_v21 = vadd.f32 %v2504_v22, %v2215_v32  ;;  %v11035_v26 = vld [vmem:[#allocation363_spill] sm:$0xff]  ;;  %v11041_v47 = vld [vmem:[#allocation361_spill] sm:$0xff] }
 0x72c   : > { %4381 = vperm.xlu1 %4934, %v9349_v29   ;;  %v2696_v39 = vsel %vm2667_vm9, %v11033_v37, %v11022_v36  ;;  %v3082_v15 = vsel %vm7747_vm1, %v3018_v30, 0.0  ;;  %v9630_v38 = vpop.permute.xlu1 %3948  ;;  %4825 = vmatpush1.bf16.msra.mxu1 %v4824_v24  ;;  %v2698_v19 = vsel %vm2667_vm9, %v11034_v41, %v11028_v10  ;;  %v2763_v29 = vsel %vm7791_vm5, %v2699_v33, 0.0  ;;  %v11040_v36 = vld [vmem:[#allocation358_spill] sm:$0xff]  ;;  %v11043_v22 = vld [vmem:[#allocation421_spill] sm:$0xff]  ;;  %v11047_v41 = vld [vmem:[#allocation420_spill] sm:$0xff] }
 0x72d   : > { %4393 = vperm.xlu0 %4935, %v9406_v43   ;;  %v3020_v53 = vsel %vm2988_vm10, %v11036_v48, %v11035_v26  ;;  %v3178_v51 = vmul.f32 %v11037_v18, %v3082_v15  ;;  %v2567_v61 = vadd.f32 %v2503_v62, %v2214_v4  ;;  %v2505_v56 = vsel %vm2474_vm8, %v11038_v54, %v11031_v55  ;;  %v11039_v43 = vld [vmem:[#allocation323_spill] sm:$0xff]  ;;  %v3651_v30 = vpop.permute.xlu0 %3650 }
 0x72e   : > { %v2570_v16 = vadd.f32 %v2506_v63, %v2217_v13  ;;  %v2859_v27 = vmul.f32 %v11039_v43, %v2763_v29  ;;  %v2760_v3 = vsel %vm7787_vm4, %v2696_v39, 0.0  ;;  %v2889_v0 = vadd.f32 %v2857_v49, %v2568_v21  ;;  %v11046_v49 = vld [vmem:[#allocation425_spill] sm:$0xff] }
 0x72f   : > { %v3017_v14 = vsel %vm2988_vm10, %v11040_v36, %v11026_v23  ;;  %v3019_v2 = vsel %vm2988_vm10, %v11041_v47, %v11036_v48  ;;  %v2856_v17 = vmul.f32 %v11032_v44, %v2760_v3  ;;  %v2762_v25 = vsel %vm7787_vm4, %v2698_v19, 0.0  ;;  %v11045_v44 = vld [vmem:[#allocation426_spill] sm:$0xff] }
 0x730   : > { %4389 = vperm.xlu1 %4934, %v9386_v59   ;;  %v3084_v6 = vsel %vm7747_vm1, %v3020_v53, 0.0  ;;  %v3499_v31 = vsel %vm3469_vm12, %v11043_v22, %v11042_v8  ;;  %v3655_v23 = vpop.permute.xlu1 %3654  ;;  %v2858_v32 = vmul.f32 %v11039_v43, %v2762_v25  ;;  %v3210_v45 = vadd.f32 %v3178_v51, %v2889_v0  ;;  %v11044_v59 = vld [vmem:[#allocation379_spill] sm:$0xff] }
 0x731   : > { %4401 = vperm.xlu0 %4935, %v9452_v46   ;;  %v3180_v1 = vmul.f32 %v11044_v59, %v3084_v6  ;;  %v3692_v10 = vsel %vm3662_vm11, %v9578_v20, %v3655_v23  ;;  %v2891_v33 = vadd.f32 %v2859_v27, %v2570_v16  ;;  %v3081_v7 = vsel %vm7751_vm2, %v3017_v14, 0.0  ;;  %v4041_v0 = vpop.permute.xlu0 %4040  ;;  %v4085_v23 = vld [vmem:[#allocation4 + $0x30] sm:$0xff] }
 0x732   : > { %v3083_v24 = vsel %vm7751_vm2, %v3019_v2, 0.0  ;;  %v3756_v13 = vsel %vm7791_vm5, %v3692_v10, 0.0  ;;  %v3177_v46 = vmul.f32 %v11037_v18, %v3081_v7  ;;  %v3563_v50 = vadd.f32 %v3499_v31, %v3210_v45  ;;  %v11048_v18 = vld [vmem:[#allocation424_spill] sm:$0xff]  ;;  %v4082_v31 = vld [vmem:[#allocation4 + $0x18] sm:$0xff]  ;;  %v4092_v7 = vld [vmem:[#allocation4 + $0x68] sm:$0xff] }
 0x733   : > { %v3691_v62 = vsel %vm3662_vm11, %v3651_v30, %v9578_v20  ;;  %v3852_v9 = vmul.f32 %v9368_v5, %v3756_v13  ;;  %v2569_v55 = vadd.f32 %v2505_v56, %v2216_v40  ;;  %v3179_v63 = vmul.f32 %v11044_v59, %v3083_v24  ;;  %v4084_v30 = vld [vmem:[#allocation4 + $0x28] sm:$0xff]  ;;  %v4087_v45 = vld [vmem:[#allocation4 + $0x40] sm:$0xff]  ;;  %v4090_v10 = vld [vmem:[#allocation4 + $0x58] sm:$0xff] }
 0x734   : > { %4397 = vperm.xlu1 %4934, %v9425_v12   ;;  %v3501_v58 = vsel %vm3469_vm12, %v11046_v49, %v11045_v44  ;;  %v3661_v4 = vpop.permute.xlu1 %3660  ;;  %v2888_v21 = vadd.f32 %v2856_v17, %v2567_v61  ;;  %v3212_v37 = vadd.f32 %v3180_v1, %v2891_v33  ;;  %v3498_v12 = vsel %vm3469_vm12, %v11047_v41, %v11043_v22  ;;  %v4088_v59 = vld [vmem:[#allocation4 + $0x48] sm:$0xff]  ;;  %v4089_v1 = vld [vmem:[#allocation4 + $0x50] sm:$0xff]  ;;  %v4091_v33 = vld [vmem:[#allocation4 + $0x60] sm:$0xff] }
 0x735   : > { %4409 = vperm.xlu0 %4935, %v9494_v35   ;;  %v3884_v39 = vadd.f32 %v3852_v9, %v3563_v50  ;;  %v3694_v20 = vsel %vm3662_vm11, %v9614_v57, %v3661_v4  ;;  %v2890_v15 = vadd.f32 %v2858_v32, %v2569_v55  ;;  %v3755_v40 = vsel %vm7787_vm4, %v3691_v62, 0.0  ;;  %v4086_v32 = vld [vmem:[#allocation4 + $0x38] sm:$0xff]  ;;  %v4093_v24 = vld [vmem:[#allocation4 + $0x70] sm:$0xff] }
 0x736   : > { %v3758_v19 = vsel %vm7791_vm5, %v3694_v20, 0.0  ;;  %v3209_v29 = vadd.f32 %v3177_v46, %v2888_v21  ;;  %v3565_v26 = vadd.f32 %v3501_v58, %v3212_v37  ;;  %v3851_v35 = vmul.f32 %v9368_v5, %v3755_v40  ;;  %v4094_v13 = vld [vmem:[#allocation4 + $0x78] sm:$0xff] }
 0x737   : > { %v3854_v48 = vmul.f32 %v9401_v42, %v3758_v19  ;;  %v3211_v53 = vadd.f32 %v3179_v63, %v2890_v15  ;;  %v3500_v51 = vsel %vm3469_vm12, %v11048_v18, %v11046_v49  ;;  %v3980_v16 = vmul.f32 %v9599_v60, %v3884_v39 }
 0x738   : > { %4405 = vperm.xlu1 %4934, %v9471_v28   ;;  %v3657_v61 = vpop.permute.xlu1 %3656  ;;  %v3562_v54 = vadd.f32 %v3498_v12, %v3209_v29  ;;  %v11049_v22 = vmov 0.0  }
 0x739   : > { %v3693_v56 = vsel %vm3662_vm11, %v3657_v61, %v9614_v57  ;;  %v3886_v11 = vadd.f32 %v3854_v48, %v3565_v26  ;;  %v3564_v43 = vadd.f32 %v3500_v51, %v3211_v53  ;;  %v4076_v57 = vadd.f32 %v4041_v0, %v3980_v16 }
 0x73a   : > { %v3757_v5 = vsel %vm7787_vm4, %v3693_v56, 0.0  ;;  %v3883_v27 = vadd.f32 %v3851_v35, %v3562_v54 }
 0x73b   : > { %v3853_v28 = vmul.f32 %v9401_v42, %v3757_v5  ;;  %v3982_v3 = vmul.f32 %v9630_v38, %v3886_v11  ;;  %v4079_v42 = vld [vmem:[#allocation4] sm:$0xff] }
 0x73c   : > { %4413 = vperm.xlu1 %4934, %v9506_v34   ;;  %v4045_v36 = vpop.permute.xlu1 %4044  ;;  %v3979_v14 = vmul.f32 %v9599_v60, %v3883_v27  ;;  %v4080_v34 = vld [vmem:[#allocation4 + $0x8] sm:$0xff]  ;;  %v4081_v60 = vld [vmem:[#allocation4 + $0x10] sm:$0xff] }
 0x73d   : > { %v3885_v47 = vadd.f32 %v3853_v28, %v3564_v43  ;;  %v4078_v2 = vadd.f32 %v4045_v36, %v3982_v3 }
 0x73e   : > { %v4075_v52 = vadd.f32 %v4041_v0, %v3979_v14 }
 0x73f   : > { %v3981_v17 = vmul.f32 %v9630_v38, %v3885_v47  ;;  %v4826_v25 = vpack.c.bf16 %v4078_v2, %v4076_v57  ;;  %v4083_v38 = vld [vmem:[#allocation4 + $0x20] sm:$0xff] }
 0x741   : > { %v4077_v6 = vadd.f32 %v4045_v36, %v3981_v17  ;;  %4827 = vmatprep.subr.bf16.mxu1 %v4826_v25 }
 0x743   : > { %v4828_v8 = vpack.c.bf16 %v4077_v6, %v4075_v52 }
 0x745   : > { %4829 = vmatpush1.bf16.msra.mxu1 %v4828_v8 }
 0x748   : > { %4160 = vmatmul.mubr.f32.vlgmr.msra.gmra.mrb[0].mxu1 %v4079_v42 }
 0x749   : > { %4165 = vmatprep.mubr.f32.mxu1 %v11049_v22 }
 0x74c   : > { %4166 = vmatmul.mubr.f32.gmra.mrb[2].mxu1 %v4080_v34 }
 0x74d   : > { %4171 = vmatprep.mubr.f32.mxu1 %v11049_v22 }
 0x750   : > { %4172 = vmatmul.mubr.f32.gmra.mrb[4].mxu1 %v4081_v60 }
 0x751   : > { %4177 = vmatprep.mubr.f32.mxu1 %v11049_v22 }
 0x754   : > { %4178 = vmatmul.mubr.f32.gmra.mrb[6].mxu1 %v4082_v31 }
 0x755   : > { %4183 = vmatprep.mubr.f32.mxu1 %v11049_v22 }
 0x758   : > { %4184 = vmatmul.mubr.f32.gmra.mrb[8].mxu1 %v4083_v38 }
 0x759   : > { %4189 = vmatprep.mubr.f32.mxu1 %v11049_v22 }
 0x75c   : > { %4190 = vmatmul.mubr.f32.gmra.mrb[10].mxu1 %v4084_v30 }
 0x75d   : > { %4195 = vmatprep.mubr.f32.mxu1 %v11049_v22 }
 0x760   : > { %4196 = vmatmul.mubr.f32.gmra.mrb[12].mxu1 %v4085_v23 }
 0x761   : > { %4201 = vmatprep.mubr.f32.mxu1 %v11049_v22 }
 0x764   : > { %4202 = vmatmul.mubr.f32.gmra.mrb[14].mxu1 %v4086_v32 }
 0x765   : > { %4207 = vmatprep.mubr.f32.mxu1 %v11049_v22 }
 0x768   : > { %4208 = vmatmul.mubr.f32.gmra.mrb[16].mxu1 %v4087_v45 }
 0x769   : > { %4213 = vmatprep.mubr.f32.mxu1 %v11049_v22 }
 0x76c   : > { %4214 = vmatmul.mubr.f32.gmra.mrb[18].mxu1 %v4088_v59 }
 0x76d   : > { %4219 = vmatprep.mubr.f32.mxu1 %v11049_v22 }
 0x770   : > { %4220 = vmatmul.mubr.f32.gmra.mrb[20].mxu1 %v4089_v1 }
 0x771   : > { %4225 = vmatprep.mubr.f32.mxu1 %v11049_v22 }
 0x774   : > { %4226 = vmatmul.mubr.f32.gmra.mrb[22].mxu1 %v4090_v10 }
 0x775   : > { %4231 = vmatprep.mubr.f32.mxu1 %v11049_v22 }
 0x778   : > { %4232 = vmatmul.mubr.f32.gmra.mrb[24].mxu1 %v4091_v33 }
 0x779   : > { %4237 = vmatprep.mubr.f32.mxu1 %v11049_v22 }
 0x77a   : > { %v4262_v46 = vpop.permute.xlu1 %4261  ;;  %v4258_v50 = vpop.permute.xlu0 %4257 }
 0x77c   : > { %4238 = vmatmul.mubr.f32.gmra.mrb[26].mxu1 %v4092_v7 }
 0x77d   : > { %4243 = vmatprep.mubr.f32.mxu1 %v11049_v22 }
 0x77e   : > { %v4266_v62 = vpop.permute.xlu1 %4265  ;;  %v4270_v9 = vpop.permute.xlu0 %4269 }
 0x780   : > { %4244 = vmatmul.mubr.f32.gmra.mrb[28].mxu1 %v4093_v24 }
 0x781   : > { %4249 = vmatprep.mubr.f32.mxu1 %v11049_v22 }
 0x782   : > { %v9724_v55 = vpop.permute.xlu1 %4273  ;;  %v9726_v63 = vpop.permute.xlu0 %4277 }
 0x784   : > { %4250 = vmatmul.mubr.f32.gmra.mrb[30].mxu1 %v4094_v13 }
 0x786   : > { %v9728_v44 = vpop.permute.xlu1 %4281 }
 0x787   : > { %v9730_v49 = vpop.permute.xlu0 %4285 }
 0x78a   : > { %v9732_v58 = vpop.permute.xlu1 %4289 }
 0x78b   : > { %v9734_v4 = vpop.permute.xlu0 %4293 }
 0x78e   : > { %v9736_v21 = vpop.permute.xlu1 %4297 }
 0x78f   : > { %v9738_v37 = vpop.permute.xlu0 %4301 }
 0x792   : > { %v9740_v39 = vpop.permute.xlu1 %4305 }
 0x793   : > { %v9742_v20 = vpop.permute.xlu0 %4309 }
 0x796   : > { %v9744_v15 = vpop.permute.xlu1 %4313 }
 0x797   : > { %v9746_v41 = vpop.permute.xlu0 %4317 }
 0x79b   : > { %v4354_v29 = vpop.permute.xlu1 %4353 }
 0x79c   : > { %v4358_v18 = vpop.permute.xlu0 %4357 }
 0x79f   : > { %v4362_v27 = vpop.permute.xlu1 %4361 }
 0x7a3   : > { %v4366_v59 = vpop.permute.xlu1 %4365 }
 0x81b   : > { %v4161_v12 = vpop.f32.mrb[0].mxu1 }
 0x81c   : > { %v4320_v40 = vmul.f32 %v4258_v50, %v4161_v12  ;;  %v4163_v19 = vpop.f32.mrb[1].mxu1  ;;  %v4370_v12 = vpop.permute.xlu0 %4369 }
 0x81d   : > { %v4321_v26 = vmul.f32 %v4258_v50, %v4163_v19 }
 0x81e   : > { %v4416_v35 = vadd.f32 %v4354_v29, %v4320_v40 }
 0x81f   : > { %v4417_v48 = vadd.f32 %v4354_v29, %v4321_v26  ;;  %v4167_v53 = vpop.f32.mrb[2].mxu1 }
 0x820   : > { %v4448_v51 = vadd.f32 3.0, %v4416_v35  ;;  %v4322_v61 = vmul.f32 %v4262_v46, %v4167_v53  ;;  %v4169_v54 = vpop.f32.mrb[3].mxu1 }
 0x821   : > { %v4449_v56 = vadd.f32 3.0, %v4417_v48  ;;  %v4323_v11 = vmul.f32 %v4262_v46, %v4169_v54 }
 0x822   : > { %v4480_v16 = vmax.f32 %v4448_v51, 0.0  ;;  %v4418_v5 = vadd.f32 %v4358_v18, %v4322_v61 }
 0x823   : > { %v4481_v43 = vmax.f32 %v4449_v56, 0.0  ;;  %v4419_v28 = vadd.f32 %v4358_v18, %v4323_v11  ;;  %v4173_v3 = vpop.f32.mrb[4].mxu1 }
 0x824   : > { %v4512_v0 = vmin.f32 %v4480_v16, 6.0  ;;  %v4450_v36 = vadd.f32 3.0, %v4418_v5  ;;  %v4324_v14 = vmul.f32 %v4266_v62, %v4173_v3  ;;  %v4175_v47 = vpop.f32.mrb[5].mxu1 }
 0x825   : > { %v4513_v57 = vmin.f32 %v4481_v43, 6.0  ;;  %v4451_v2 = vadd.f32 3.0, %v4419_v28  ;;  %v4325_v17 = vmul.f32 %v4266_v62, %v4175_v47 }
 0x826   : > { %v4544_v25 = vmul.f32 %v4512_v0, %v4416_v35  ;;  %v4482_v52 = vmax.f32 %v4450_v36, 0.0  ;;  %v4420_v6 = vadd.f32 %v4362_v27, %v4324_v14  ;;  %v4374_v14 = vpop.permute.xlu1 %4373 }
 0x827   : > { %v4545_v8 = vmul.f32 %v4513_v57, %v4417_v48  ;;  %v4483_v42 = vmax.f32 %v4451_v2, 0.0  ;;  %v4421_v22 = vadd.f32 %v4362_v27, %v4325_v17  ;;  %v4179_v34 = vpop.f32.mrb[6].mxu1 }
 0x828   : > { %v4576_v60 = vmul.f32 0.16666667, %v4544_v25  ;;  %v4514_v31 = vmin.f32 %v4482_v52, 6.0  ;;  %v4452_v38 = vadd.f32 3.0, %v4420_v6  ;;  %v4326_v30 = vmul.f32 %v4270_v9, %v4179_v34  ;;  %v4181_v23 = vpop.f32.mrb[7].mxu1 }
 0x829   : > { %v4577_v32 = vmul.f32 0.16666667, %v4545_v8  ;;  %v4515_v45 = vmin.f32 %v4483_v42, 6.0  ;;  %v4453_v1 = vadd.f32 3.0, %v4421_v22  ;;  %v4327_v10 = vmul.f32 %v4270_v9, %v4181_v23 }
 0x82a   : > { %4640 = vst [vmem:[%s5204_s27 + $0x10] sm:$0xff] %v4576_v60  ;;  %v4546_v33 = vmul.f32 %v4514_v31, %v4418_v5  ;;  %v4484_v7 = vmax.f32 %v4452_v38, 0.0  ;;  %v4422_v24 = vadd.f32 %v4366_v59, %v4326_v30 }
 0x82b   : > { %4641 = vst [vmem:[%s5204_s27 + $0x18] sm:$0xff] %v4577_v32  ;;  %v4547_v13 = vmul.f32 %v4515_v45, %v4419_v28  ;;  %v4485_v46 = vmax.f32 %v4453_v1, 0.0  ;;  %v4423_v50 = vadd.f32 %v4366_v59, %v4327_v10  ;;  %v4185_v62 = vpop.f32.mrb[8].mxu1  ;;  %v4378_v32 = vpop.permute.xlu0 %4377 }
 0x82c   : > { %v4578_v40 = vmul.f32 0.16666667, %v4546_v33  ;;  %v4516_v19 = vmin.f32 %v4484_v7, 6.0  ;;  %v4454_v29 = vadd.f32 3.0, %v4422_v24  ;;  %v4328_v26 = vmul.f32 %v9724_v55, %v4185_v62  ;;  %v4187_v35 = vpop.f32.mrb[9].mxu1 }
 0x82d   : > { %v4579_v48 = vmul.f32 0.16666667, %v4547_v13  ;;  %v4517_v9 = vmin.f32 %v4485_v46, 6.0  ;;  %v4455_v53 = vadd.f32 3.0, %v4423_v50  ;;  %v4329_v18 = vmul.f32 %v9724_v55, %v4187_v35 }
 0x82e   : > { %4642 = vst [vmem:[%s5204_s27 + $0x30] sm:$0xff] %v4578_v40  ;;  %v4548_v51 = vmul.f32 %v4516_v19, %v4420_v6  ;;  %v4486_v61 = vmax.f32 %v4454_v29, 0.0  ;;  %v4424_v54 = vadd.f32 %v4370_v12, %v4328_v26  ;;  %v4382_v19 = vpop.permute.xlu1 %4381 }
 0x82f   : > { %4643 = vst [vmem:[%s5204_s27 + $0x38] sm:$0xff] %v4579_v48  ;;  %v4549_v56 = vmul.f32 %v4517_v9, %v4421_v22  ;;  %v4487_v11 = vmax.f32 %v4455_v53, 0.0  ;;  %v4425_v16 = vadd.f32 %v4370_v12, %v4329_v18  ;;  %v4191_v5 = vpop.f32.mrb[10].mxu1 }
 0x830   : > { %v4580_v43 = vmul.f32 0.16666667, %v4548_v51  ;;  %v4518_v27 = vmin.f32 %v4486_v61, 6.0  ;;  %v4456_v28 = vadd.f32 3.0, %v4424_v54  ;;  %v4330_v3 = vmul.f32 %v9726_v63, %v4191_v5  ;;  %v4193_v0 = vpop.f32.mrb[11].mxu1 }
 0x831   : > { %v4581_v36 = vmul.f32 0.16666667, %v4549_v56  ;;  %v4519_v55 = vmin.f32 %v4487_v11, 6.0  ;;  %v4457_v47 = vadd.f32 3.0, %v4425_v16  ;;  %v4331_v57 = vmul.f32 %v9726_v63, %v4193_v0 }
 0x832   : > { %4644 = vst [vmem:[%s5204_s27 + $0x50] sm:$0xff] %v4580_v43  ;;  %v4550_v2 = vmul.f32 %v4518_v27, %v4422_v24  ;;  %v4488_v17 = vmax.f32 %v4456_v28, 0.0  ;;  %v4426_v25 = vadd.f32 %v4374_v14, %v4330_v3 }
 0x833   : > { %4645 = vst [vmem:[%s5204_s27 + $0x58] sm:$0xff] %v4581_v36  ;;  %v4551_v52 = vmul.f32 %v4519_v55, %v4423_v50  ;;  %v4489_v6 = vmax.f32 %v4457_v47, 0.0  ;;  %v4427_v8 = vadd.f32 %v4374_v14, %v4331_v57  ;;  %v4197_v42 = vpop.f32.mrb[12].mxu1 }
 0x834   : > { %v4582_v22 = vmul.f32 0.16666667, %v4550_v2  ;;  %v4520_v34 = vmin.f32 %v4488_v17, 6.0  ;;  %v4458_v60 = vadd.f32 3.0, %v4426_v25  ;;  %v4332_v31 = vmul.f32 %v9728_v44, %v4197_v42  ;;  %v4199_v38 = vpop.f32.mrb[13].mxu1 }
 0x835   : > { %v4583_v30 = vmul.f32 0.16666667, %v4551_v52  ;;  %v4521_v23 = vmin.f32 %v4489_v6, 6.0  ;;  %v4459_v63 = vadd.f32 3.0, %v4427_v8  ;;  %v4333_v45 = vmul.f32 %v9728_v44, %v4199_v38 }
 0x836   : > { %4646 = vst [vmem:[%s5204_s27 + $0x70] sm:$0xff] %v4582_v22  ;;  %v4552_v59 = vmul.f32 %v4520_v34, %v4424_v54  ;;  %v4490_v1 = vmax.f32 %v4458_v60, 0.0  ;;  %v4428_v10 = vadd.f32 %v4378_v32, %v4332_v31  ;;  %v4390_v22 = vpop.permute.xlu1 %4389 }
 0x837   : > { %4647 = vst [vmem:[%s5204_s27 + $0x78] sm:$0xff] %v4583_v30  ;;  %v4553_v33 = vmul.f32 %v4521_v23, %v4425_v16  ;;  %v4491_v7 = vmax.f32 %v4459_v63, 0.0  ;;  %v4429_v24 = vadd.f32 %v4378_v32, %v4333_v45  ;;  %v4203_v13 = vpop.f32.mrb[14].mxu1 }
 0x838   : > { %v4584_v46 = vmul.f32 0.16666667, %v4552_v59  ;;  %v4522_v50 = vmin.f32 %v4490_v1, 6.0  ;;  %v4460_v62 = vadd.f32 3.0, %v4428_v10  ;;  %v4334_v12 = vmul.f32 %v9730_v49, %v4203_v13  ;;  %v4205_v40 = vpop.f32.mrb[15].mxu1 }
 0x839   : > { %v4585_v29 = vmul.f32 0.16666667, %v4553_v33  ;;  %v4523_v44 = vmin.f32 %v4491_v7, 6.0  ;;  %v4461_v26 = vadd.f32 3.0, %v4429_v24  ;;  %v4335_v35 = vmul.f32 %v9730_v49, %v4205_v40  ;;  %v4386_v49 = vpop.permute.xlu0 %4385 }
 0x83a   : > { %4648 = vst [vmem:[%s5204_s27 + $0x90] sm:$0xff] %v4584_v46  ;;  %v4554_v48 = vmul.f32 %v4522_v50, %v4426_v25  ;;  %v4492_v9 = vmax.f32 %v4460_v62, 0.0  ;;  %v4430_v53 = vadd.f32 %v4382_v19, %v4334_v12 }
 0x83b   : > { %4649 = vst [vmem:[%s5204_s27 + $0x98] sm:$0xff] %v4585_v29  ;;  %v4555_v18 = vmul.f32 %v4523_v44, %v4427_v8  ;;  %v4493_v51 = vmax.f32 %v4461_v26, 0.0  ;;  %v4431_v61 = vadd.f32 %v4382_v19, %v4335_v35  ;;  %v4209_v54 = vpop.f32.mrb[16].mxu1 }
 0x83c   : > { %v4586_v56 = vmul.f32 0.16666667, %v4554_v48  ;;  %v4524_v11 = vmin.f32 %v4492_v9, 6.0  ;;  %v4462_v16 = vadd.f32 3.0, %v4430_v53  ;;  %v4336_v5 = vmul.f32 %v9732_v58, %v4209_v54  ;;  %v4211_v43 = vpop.f32.mrb[17].mxu1 }
 0x83d   : > { %v4587_v27 = vmul.f32 0.16666667, %v4555_v18  ;;  %v4525_v28 = vmin.f32 %v4493_v51, 6.0  ;;  %v4463_v3 = vadd.f32 3.0, %v4431_v61  ;;  %v4337_v0 = vmul.f32 %v9732_v58, %v4211_v43  ;;  %v4394_v46 = vpop.permute.xlu0 %4393 }
 0x83e   : > { %4650 = vst [vmem:[%s5204_s27 + $0xb0] sm:$0xff] %v4586_v56  ;;  %v4556_v36 = vmul.f32 %v4524_v11, %v4428_v10  ;;  %v4494_v14 = vmax.f32 %v4462_v16, 0.0  ;;  %v4432_v55 = vadd.f32 %v4386_v49, %v4336_v5 }
 0x83f   : > { %4651 = vst [vmem:[%s5204_s27 + $0xb8] sm:$0xff] %v4587_v27  ;;  %v4557_v47 = vmul.f32 %v4525_v28, %v4429_v24  ;;  %v4495_v57 = vmax.f32 %v4463_v3, 0.0  ;;  %v4433_v2 = vadd.f32 %v4386_v49, %v4337_v0  ;;  %v4215_v17 = vpop.f32.mrb[18].mxu1 }
 0x840   : > { %v4588_v25 = vmul.f32 0.16666667, %v4556_v36  ;;  %v4526_v52 = vmin.f32 %v4494_v14, 6.0  ;;  %v4464_v6 = vadd.f32 3.0, %v4432_v55  ;;  %v4338_v8 = vmul.f32 %v9734_v4, %v4215_v17  ;;  %v4217_v42 = vpop.f32.mrb[19].mxu1 }
 0x841   : > { %v4589_v34 = vmul.f32 0.16666667, %v4557_v47  ;;  %v4527_v58 = vmin.f32 %v4495_v57, 6.0  ;;  %v4465_v60 = vadd.f32 3.0, %v4433_v2  ;;  %v4339_v31 = vmul.f32 %v9734_v4, %v4217_v42  ;;  %v4402_v57 = vpop.permute.xlu0 %4401 }
 0x842   : > { %4652 = vst [vmem:[%s5204_s27 + $0xd0] sm:$0xff] %v4588_v25  ;;  %v4558_v38 = vmul.f32 %v4526_v52, %v4430_v53  ;;  %v4496_v30 = vmax.f32 %v4464_v6, 0.0  ;;  %v4434_v23 = vadd.f32 %v4390_v22, %v4338_v8 }
 0x843   : > { %4653 = vst [vmem:[%s5204_s27 + $0xd8] sm:$0xff] %v4589_v34  ;;  %v4559_v63 = vmul.f32 %v4527_v58, %v4431_v61  ;;  %v4497_v32 = vmax.f32 %v4465_v60, 0.0  ;;  %v4435_v45 = vadd.f32 %v4390_v22, %v4339_v31  ;;  %v4221_v59 = vpop.f32.mrb[20].mxu1  ;;  %v4398_v61 = vpop.permute.xlu1 %4397 }
 0x844   : > { %v4590_v1 = vmul.f32 0.16666667, %v4558_v38  ;;  %v4528_v10 = vmin.f32 %v4496_v30, 6.0  ;;  %v4466_v33 = vadd.f32 3.0, %v4434_v23  ;;  %v4340_v7 = vmul.f32 %v9736_v21, %v4221_v59  ;;  %v4223_v24 = vpop.f32.mrb[21].mxu1 }
 0x845   : > { %v4591_v13 = vmul.f32 0.16666667, %v4559_v63  ;;  %v4529_v4 = vmin.f32 %v4497_v32, 6.0  ;;  %v4467_v50 = vadd.f32 3.0, %v4435_v45  ;;  %v4341_v62 = vmul.f32 %v9736_v21, %v4223_v24 }
 0x846   : > { %4654 = vst [vmem:[%s5204_s27 + $0xf0] sm:$0xff] %v4590_v1  ;;  %v4560_v12 = vmul.f32 %v4528_v10, %v4432_v55  ;;  %v4498_v40 = vmax.f32 %v4466_v33, 0.0  ;;  %v4436_v19 = vadd.f32 %v4394_v46, %v4340_v7 }
 0x847   : > { %4655 = vst [vmem:[%s5204_s27 + $0xf8] sm:$0xff] %v4591_v13  ;;  %v4561_v29 = vmul.f32 %v4529_v4, %v4433_v2  ;;  %v4499_v44 = vmax.f32 %v4467_v50, 0.0  ;;  %v4437_v26 = vadd.f32 %v4394_v46, %v4341_v62  ;;  %v4227_v35 = vpop.f32.mrb[22].mxu1  ;;  %v4406_v63 = vpop.permute.xlu1 %4405 }
 0x848   : > { %v4592_v48 = vmul.f32 0.16666667, %v4560_v12  ;;  %v4530_v9 = vmin.f32 %v4498_v40, 6.0  ;;  %v4468_v53 = vadd.f32 3.0, %v4436_v19  ;;  %v4342_v18 = vmul.f32 %v9738_v37, %v4227_v35  ;;  %v4229_v51 = vpop.f32.mrb[23].mxu1 }
 0x849   : > { %v4593_v54 = vmul.f32 0.16666667, %v4561_v29  ;;  %v4531_v21 = vmin.f32 %v4499_v44, 6.0  ;;  %v4469_v56 = vadd.f32 3.0, %v4437_v26  ;;  %v4343_v11 = vmul.f32 %v9738_v37, %v4229_v51 }
 0x84a   : > { %4656 = vst [vmem:[%s5204_s27 + $0x110] sm:$0xff] %v4592_v48  ;;  %v4562_v16 = vmul.f32 %v4530_v9, %v4434_v23  ;;  %v4500_v5 = vmax.f32 %v4468_v53, 0.0  ;;  %v4438_v43 = vadd.f32 %v4398_v61, %v4342_v18 }
 0x84b   : > { %4657 = vst [vmem:[%s5204_s27 + $0x118] sm:$0xff] %v4593_v54  ;;  %v4563_v27 = vmul.f32 %v4531_v21, %v4435_v45  ;;  %v4501_v28 = vmax.f32 %v4469_v56, 0.0  ;;  %v4439_v49 = vadd.f32 %v4398_v61, %v4343_v11  ;;  %v4233_v3 = vpop.f32.mrb[24].mxu1 }
 0x84c   : > { %v4594_v0 = vmul.f32 0.16666667, %v4562_v16  ;;  %v4532_v36 = vmin.f32 %v4500_v5, 6.0  ;;  %v4470_v14 = vadd.f32 3.0, %v4438_v43  ;;  %v4344_v55 = vmul.f32 %v9740_v39, %v4233_v3  ;;  %v4235_v47 = vpop.f32.mrb[25].mxu1  ;;  %v4414_v5 = vpop.permute.xlu1 %4413 }
 0x84d   : > { %v4595_v2 = vmul.f32 0.16666667, %v4563_v27  ;;  %v4533_v37 = vmin.f32 %v4501_v28, 6.0  ;;  %v4471_v17 = vadd.f32 3.0, %v4439_v49  ;;  %v4345_v25 = vmul.f32 %v9740_v39, %v4235_v47 }
 0x84e   : > { %4658 = vst [vmem:[%s5204_s27 + $0x130] sm:$0xff] %v4594_v0  ;;  %v4564_v52 = vmul.f32 %v4532_v36, %v4436_v19  ;;  %v4502_v6 = vmax.f32 %v4470_v14, 0.0  ;;  %v4440_v8 = vadd.f32 %v4402_v57, %v4344_v55  ;;  %v4410_v19 = vpop.permute.xlu0 %4409 }
 0x84f   : > { %4659 = vst [vmem:[%s5204_s27 + $0x138] sm:$0xff] %v4595_v2  ;;  %v4565_v42 = vmul.f32 %v4533_v37, %v4437_v26  ;;  %v4503_v22 = vmax.f32 %v4471_v17, 0.0  ;;  %v4441_v34 = vadd.f32 %v4402_v57, %v4345_v25  ;;  %v4239_v58 = vpop.f32.mrb[26].mxu1 }
 0x850   : > { %v4596_v60 = vmul.f32 0.16666667, %v4564_v52  ;;  %v4534_v31 = vmin.f32 %v4502_v6, 6.0  ;;  %v4472_v38 = vadd.f32 3.0, %v4440_v8  ;;  %v4346_v30 = vmul.f32 %v9742_v20, %v4239_v58  ;;  %v4241_v23 = vpop.f32.mrb[27].mxu1 }
 0x851   : > { %v4597_v32 = vmul.f32 0.16666667, %v4565_v42  ;;  %v4535_v39 = vmin.f32 %v4503_v22, 6.0  ;;  %v4473_v45 = vadd.f32 3.0, %v4441_v34  ;;  %v4347_v59 = vmul.f32 %v9742_v20, %v4241_v23 }
 0x852   : > { %4660 = vst [vmem:[%s5204_s27 + $0x150] sm:$0xff] %v4596_v60  ;;  %v4566_v1 = vmul.f32 %v4534_v31, %v4438_v43  ;;  %v4504_v10 = vmax.f32 %v4472_v38, 0.0  ;;  %v4442_v33 = vadd.f32 %v4406_v63, %v4346_v30 }
 0x853   : > { %4661 = vst [vmem:[%s5204_s27 + $0x158] sm:$0xff] %v4597_v32  ;;  %v4567_v7 = vmul.f32 %v4535_v39, %v4439_v49  ;;  %v4505_v24 = vmax.f32 %v4473_v45, 0.0  ;;  %v4443_v13 = vadd.f32 %v4406_v63, %v4347_v59  ;;  %v4245_v46 = vpop.f32.mrb[28].mxu1 }
 0x854   : > { %v4598_v4 = vmul.f32 0.16666667, %v4566_v1  ;;  %v4536_v50 = vmin.f32 %v4504_v10, 6.0  ;;  %v4474_v62 = vadd.f32 3.0, %v4442_v33  ;;  %v4348_v12 = vmul.f32 %v9744_v15, %v4245_v46  ;;  %v4247_v40 = vpop.f32.mrb[29].mxu1 }
 0x855   : > { %v4599_v29 = vmul.f32 0.16666667, %v4567_v7  ;;  %v4537_v20 = vmin.f32 %v4505_v24, 6.0  ;;  %v4475_v44 = vadd.f32 3.0, %v4443_v13  ;;  %v4349_v26 = vmul.f32 %v9744_v15, %v4247_v40 }
 0x856   : > { %4662 = vst [vmem:[%s5204_s27 + $0x170] sm:$0xff] %v4598_v4  ;;  %v4568_v35 = vmul.f32 %v4536_v50, %v4440_v8  ;;  %v4506_v48 = vmax.f32 %v4474_v62, 0.0  ;;  %v4444_v9 = vadd.f32 %v4410_v19, %v4348_v12 }
 0x857   : > { %4663 = vst [vmem:[%s5204_s27 + $0x178] sm:$0xff] %v4599_v29  ;;  %v4569_v53 = vmul.f32 %v4537_v20, %v4441_v34  ;;  %v4507_v18 = vmax.f32 %v4475_v44, 0.0  ;;  %v4445_v51 = vadd.f32 %v4410_v19, %v4349_v26  ;;  %v4251_v61 = vpop.f32.mrb[30].mxu1 }
 0x858   : > { %v4600_v54 = vmul.f32 0.16666667, %v4568_v35  ;;  %v4538_v21 = vmin.f32 %v4506_v48, 6.0  ;;  %v4476_v56 = vadd.f32 3.0, %v4444_v9  ;;  %v4350_v11 = vmul.f32 %v9746_v41, %v4251_v61  ;;  %v4253_v16 = vpop.f32.mrb[31].mxu1 }
 0x859   : > { %v4601_v43 = vmul.f32 0.16666667, %v4569_v53  ;;  %v4539_v15 = vmin.f32 %v4507_v18, 6.0  ;;  %v4477_v27 = vadd.f32 3.0, %v4445_v51  ;;  %v4351_v28 = vmul.f32 %v9746_v41, %v4253_v16 }
 0x85a   : > { %4664 = vst [vmem:[%s5204_s27 + $0x190] sm:$0xff] %v4600_v54  ;;  %v4570_v49 = vmul.f32 %v4538_v21, %v4442_v33  ;;  %v4508_v3 = vmax.f32 %v4476_v56, 0.0  ;;  %v4446_v0 = vadd.f32 %v4414_v5, %v4350_v11 }
 0x85b   : > { %4665 = vst [vmem:[%s5204_s27 + $0x198] sm:$0xff] %v4601_v43  ;;  %v4571_v36 = vmul.f32 %v4539_v15, %v4443_v13  ;;  %v4509_v14 = vmax.f32 %v4477_v27, 0.0  ;;  %v4447_v55 = vadd.f32 %v4414_v5, %v4351_v28 }
 0x85c   : > { %v4602_v47 = vmul.f32 0.16666667, %v4570_v49  ;;  %v4540_v57 = vmin.f32 %v4508_v3, 6.0  ;;  %v4478_v2 = vadd.f32 3.0, %v4446_v0 }
 0x85d   : > { %v4603_v37 = vmul.f32 0.16666667, %v4571_v36  ;;  %v4541_v17 = vmin.f32 %v4509_v14, 6.0  ;;  %v4479_v25 = vadd.f32 3.0, %v4447_v55 }
 0x85e   : > { %4666 = vst [vmem:[%s5204_s27 + $0x1b0] sm:$0xff] %v4602_v47  ;;  %v4572_v41 = vmul.f32 %v4540_v57, %v4444_v9  ;;  %v4510_v52 = vmax.f32 %v4478_v2, 0.0 }
 0x85f   : > { %4667 = vst [vmem:[%s5204_s27 + $0x1b8] sm:$0xff] %v4603_v37  ;;  %v4573_v6 = vmul.f32 %v4541_v17, %v4445_v51  ;;  %v4511_v8 = vmax.f32 %v4479_v25, 0.0 }
 0x860   : > { %v4604_v42 = vmul.f32 0.16666667, %v4572_v41  ;;  %v4542_v22 = vmin.f32 %v4510_v52, 6.0 }
 0x861   : > { %v4605_v34 = vmul.f32 0.16666667, %v4573_v6  ;;  %v4543_v58 = vmin.f32 %v4511_v8, 6.0 }
 0x862   : > { %4668 = vst [vmem:[%s5204_s27 + $0x1d0] sm:$0xff] %v4604_v42  ;;  %v4574_v60 = vmul.f32 %v4542_v22, %v4446_v0 }
 0x863   : > { %4669 = vst [vmem:[%s5204_s27 + $0x1d8] sm:$0xff] %v4605_v34  ;;  %v4575_v31 = vmul.f32 %v4543_v58, %v4447_v55 }
 0x864   : > { %v4606_v38 = vmul.f32 0.16666667, %v4574_v60 }
 0x865   : > { %v4607_v30 = vmul.f32 0.16666667, %v4575_v31 }
 0x866   : > { %4670 = vst [vmem:[%s5204_s27 + $0x1f0] sm:$0xff] %v4606_v38 }
 0x867   : > { %4671 = vst [vmem:[%s5204_s27 + $0x1f8] sm:$0xff] %v4607_v30 }
 0x868 PF: > { %s16_s15 = sadd.s32 1, %s5054_s15  }
 0x869   : > { %p13_p5 = scmp.ge.s32.totalorder %s16_s15, 4  }
 0x86b   :  { %15 = sbr.rel (!%p13_p5) target bundleno = 2 (0x2), region = 75 }
 0x872   :  { %4693 = vsyncpa [#allocation3], 1 }
 0x873   :  { %4695 = vsyncpa [#allocation3 + $0x1], 1 }
 0x874   :  { %4696 = vsyncpa [#allocation5], 1 }

</bundles_post_ra>
